<compile_context>
chip_gen: v7x
topology: tpu7x:2x2x1
jax: 0.10.0
libtpu: 0.0.40
codegen_flags: <defaults>
</compile_context>

<pallas_src>
import functools
import math

import jax
import jax.numpy as jnp
from jax.experimental import pallas as pl
from jax.experimental.pallas import tpu as pltpu

# ----------------------------- hyperparameters ------------------------------
SRC_PAD_IDX = 0
TRG_PAD_IDX = 0
TRG_SOS_IDX = 1
ENC_VOC_SIZE = 50
DEC_VOC_SIZE = 60
D_MODEL = 32
N_HEAD = 4
D_HEAD = D_MODEL // N_HEAD
MAX_LEN = 16
FFN_HIDDEN = 64
N_LAYERS = 2
DROP_PROB = 0.1          # unused at inference (dropout == identity)
LN_EPS = 1e-12           # hyunwoongko LayerNorm: eps=1e-12, biased variance
NEG_INF = -10000.0       # masked_fill value used by the reference model
VOCAB_PAD = 128          # logits padded to a lane-dense 128-wide output

BATCH = 2
SEQ = 8

# fixed operand orderings for the fused kernel
_ENC_KEYS = ("wq", "bq", "wk", "bk", "wv", "bv", "wo", "bo", "ln1_g", "ln1_b",
             "w1", "b1", "w2", "b2", "ln2_g", "ln2_b")
_DEC_KEYS = ("wq", "bq", "wk", "bk", "wv", "bv", "wo", "bo", "ln1_g", "ln1_b",
             "wq_c", "bq_c", "wk_c", "bk_c", "wv_c", "bv_c", "wo_c", "bo_c",
             "ln2_g", "ln2_b",
             "w1", "b1", "w2", "b2", "ln3_g", "ln3_b")


# --------------------------- in-kernel helpers -------------------------------
def _layer_norm(x, gamma, beta):
    mean = jnp.mean(x, axis=-1, keepdims=True)
    var = jnp.mean((x - mean) ** 2, axis=-1, keepdims=True)  # unbiased=False
    inv = jax.lax.rsqrt(var + LN_EPS)
    return (x - mean) * inv * gamma + beta


def _mha(xq, xkv, bias, wq, bq, wk, bk, wv, bv, wo, bo, layer):
    """Multi-head attention fused with the output projection.

    xq: (Lq, D), xkv: (Lk, D), bias: (Lq, Lk) additive (0 keep / -1e4 mask).
    Per-head weights are resident refs indexed only on leading axes:
      wq/wk/wv: (L, H, D, dt); bq/bk/bv: (L, H, 1, dt);
      wo: (L, H, dt, D); bo: (L, 1, D).
    Heads are unrolled at trace time; no lane slicing of activations.
    """
    scale = 1.0 / math.sqrt(D_HEAD)
    acc = None
    for h in range(N_HEAD):
        q = jnp.dot(xq, wq[layer, h], preferred_element_type=jnp.float32) + bq[layer, h]
        k = jnp.dot(xkv, wk[layer, h], preferred_element_type=jnp.float32) + bk[layer, h]
        v = jnp.dot(xkv, wv[layer, h], preferred_element_type=jnp.float32) + bv[layer, h]
        # scores: contract over d_head without materializing k.T
        s = jax.lax.dot_general(q * scale, k, (((1,), (1,)), ((), ())),
                                preferred_element_type=jnp.float32)      # (Lq, Lk)
        s = s + bias
        s = s - jnp.max(s, axis=-1, keepdims=True)
        p = jnp.exp(s)
        p = p * pl.reciprocal(jnp.sum(p, axis=-1, keepdims=True), approx=False)
        o = jnp.dot(p, v, preferred_element_type=jnp.float32)            # (Lq, dt)
        # concat(heads) @ Wo == sum_h o_h @ Wo[h]
        c = jnp.dot(o, wo[layer, h], preferred_element_type=jnp.float32)  # (Lq, D)
        acc = c if acc is None else acc + c
    return acc + bo[layer]


# ------------------------------ fused kernel ---------------------------------
def _transformer_kernel(*refs):
    xs_ref, xt_ref, eb_ref, sb_ref, cb_ref = refs[:5]
    pos = 5
    enc_w = dict(zip(_ENC_KEYS, refs[pos:pos + len(_ENC_KEYS)]))
    pos += len(_ENC_KEYS)
    dec_w = dict(zip(_DEC_KEYS, refs[pos:pos + len(_DEC_KEYS)]))
    pos += len(_DEC_KEYS)
    wout_ref = refs[pos]
    bout_ref = refs[pos + 1]
    out_ref = refs[pos + 2]

    enc_bias = eb_ref[0]     # (Ls, Ls) additive
    self_bias = sb_ref[0]    # (Lt, Lt)
    cross_bias = cb_ref[0]   # (Lt, Ls)

    # --------------------------- encoder stack ------------------------------
    x = xs_ref[...]          # (Ls, D) -- this grid step's batch element
    for layer in range(N_LAYERS):
        attn = _mha(x, x, enc_bias,
                    enc_w["wq"], enc_w["bq"], enc_w["wk"], enc_w["bk"],
                    enc_w["wv"], enc_w["bv"], enc_w["wo"], enc_w["bo"], layer)
        x = _layer_norm(x + attn, enc_w["ln1_g"][layer], enc_w["ln1_b"][layer])
        hid = jnp.maximum(
            jnp.dot(x, enc_w["w1"][layer], preferred_element_type=jnp.float32)
            + enc_w["b1"][layer], 0.0)
        ff = (jnp.dot(hid, enc_w["w2"][layer], preferred_element_type=jnp.float32)
              + enc_w["b2"][layer])
        x = _layer_norm(x + ff, enc_w["ln2_g"][layer], enc_w["ln2_b"][layer])
    enc = x                  # stays in VMEM -- never written to HBM

    # --------------------- decoder stack + vocab projection -----------------
    y = xt_ref[...]          # (Lt, D)
    for layer in range(N_LAYERS):
        # masked self-attention
        attn = _mha(y, y, self_bias,
                    dec_w["wq"], dec_w["bq"], dec_w["wk"], dec_w["bk"],
                    dec_w["wv"], dec_w["bv"], dec_w["wo"], dec_w["bo"], layer)
        y = _layer_norm(y + attn, dec_w["ln1_g"][layer], dec_w["ln1_b"][layer])
        # encoder-decoder (cross) attention
        attn = _mha(y, enc, cross_bias,
                    dec_w["wq_c"], dec_w["bq_c"], dec_w["wk_c"], dec_w["bk_c"],
                    dec_w["wv_c"], dec_w["bv_c"], dec_w["wo_c"], dec_w["bo_c"], layer)
        y = _layer_norm(y + attn, dec_w["ln2_g"][layer], dec_w["ln2_b"][layer])
        # position-wise FFN
        hid = jnp.maximum(
            jnp.dot(y, dec_w["w1"][layer], preferred_element_type=jnp.float32)
            + dec_w["b1"][layer], 0.0)
        ff = (jnp.dot(hid, dec_w["w2"][layer], preferred_element_type=jnp.float32)
              + dec_w["b2"][layer])
        y = _layer_norm(y + ff, dec_w["ln3_g"][layer], dec_w["ln3_b"][layer])

    # the kernel's only HBM store: lane-dense (Lt, 128) padded logits tile
    out_ref[...] = (jnp.dot(y, wout_ref[...], preferred_element_type=jnp.float32)
                    + bout_ref[...])


# ----------------------------- kernel wrapper --------------------------------
def _batch_row_spec(rows, cols):
    return pl.BlockSpec((rows, cols), lambda b: (b, 0))


def _batch_mask_spec(shape):
    return pl.BlockSpec((1,) + tuple(shape[1:]), lambda b: (b, 0, 0))


def _resident_spec(shape):
    n = len(shape)
    return pl.BlockSpec(tuple(shape), lambda b, _n=n: (0,) * _n)


def transformer_pallas(params, xs2d, xt2d, enc_bias, self_bias, cross_bias,
                       batch, ls, lt):
    operands = ([xs2d, xt2d, enc_bias, self_bias, cross_bias]
                + [params["enc"][k] for k in _ENC_KEYS]
                + [params["dec"][k] for k in _DEC_KEYS]
                + [params["w_out"], params["b_out"]])
    in_specs = ([_batch_row_spec(ls, D_MODEL), _batch_row_spec(lt, D_MODEL),
                 _batch_mask_spec(enc_bias.shape), _batch_mask_spec(self_bias.shape),
                 _batch_mask_spec(cross_bias.shape)]
                + [_resident_spec(params["enc"][k].shape) for k in _ENC_KEYS]
                + [_resident_spec(params["dec"][k].shape) for k in _DEC_KEYS]
                + [_resident_spec(params["w_out"].shape),
                   _resident_spec(params["b_out"].shape)])
    return pl.pallas_call(
        _transformer_kernel,
        out_shape=jax.ShapeDtypeStruct((batch * lt, VOCAB_PAD), jnp.float32),
        grid=(batch,),
        in_specs=in_specs,
        out_specs=_batch_row_spec(lt, VOCAB_PAD),
        compiler_params=pltpu.CompilerParams(dimension_semantics=("parallel",)),
    )(*operands)


# ------------------------------ model glue ------------------------------------
def sinusoid_encoding(max_len, d_model):
    pos = jnp.arange(max_len, dtype=jnp.float32)[:, None]
    _2i = jnp.arange(0, d_model, 2, dtype=jnp.float32)
    angle = pos / jnp.power(10000.0, _2i / d_model)
    enc = jnp.zeros((max_len, d_model), jnp.float32)
    enc = enc.at[:, 0::2].set(jnp.sin(angle))
    enc = enc.at[:, 1::2].set(jnp.cos(angle))
    return enc


def embed(table, pos_table, tokens):
    # TODO(synk): token-id gather stays in XLA (no clean Pallas gather at this size)
    tok = jnp.take(table, tokens, axis=0)                 # (B, L, D)
    return tok + pos_table[: tokens.shape[1]][None, :, :]


def transformer_forward(params, src, trg):
    b, ls = src.shape
    lt = trg.shape[1]

    # additive attention-bias masks (0.0 = attend, -1e4 = masked), built ONCE
    src_keep = (src != SRC_PAD_IDX)                                        # (B, Ls)
    enc_bias = jnp.broadcast_to(
        jnp.where(src_keep[:, None, :], 0.0, NEG_INF), (b, ls, ls)).astype(jnp.float32)
    cross_bias = jnp.broadcast_to(
        jnp.where(src_keep[:, None, :], 0.0, NEG_INF), (b, lt, ls)).astype(jnp.float32)
    causal = jnp.tril(jnp.ones((lt, lt), jnp.bool_))
    dec_keep = (trg != TRG_PAD_IDX)[:, :, None] & causal[None]
    self_bias = jnp.where(dec_keep, 0.0, NEG_INF).astype(jnp.float32)      # (B, Lt, Lt)

    xs = embed(params["enc_emb"], params["pos_table"], src).reshape(b * ls, D_MODEL)
    xt = embed(params["dec_emb"], params["pos_table"], trg).reshape(b * lt, D_MODEL)

    logits = transformer_pallas(params, xs, xt, enc_bias, self_bias, cross_bias,
                                b, ls, lt)
    return logits[:, :DEC_VOC_SIZE].reshape(b, lt, DEC_VOC_SIZE)


# ------------------------------ param init ------------------------------------
def _linear_w(key, d_in, d_out):
    kw, kb = jax.random.split(key)
    return (jax.random.normal(kw, (d_in, d_out), jnp.float32) * 0.02,
            jax.random.normal(kb, (1, d_out), jnp.float32) * 0.02)


def _split_heads_cols(w):   # (D, D) -> (H, D, dt): head h uses cols [h*dt:(h+1)*dt]
    return jnp.transpose(w.reshape(D_MODEL, N_HEAD, D_HEAD), (1, 0, 2))


def _split_heads_bias(bias):  # (1, D) -> (H, 1, dt)
    return jnp.transpose(bias.reshape(1, N_HEAD, D_HEAD), (1, 0, 2))


def _attn_block_params(key):
    kq, kk, kv, ko = jax.random.split(key, 4)
    wq, bq = _linear_w(kq, D_MODEL, D_MODEL)
    wk, bk = _linear_w(kk, D_MODEL, D_MODEL)
    wv, bv = _linear_w(kv, D_MODEL, D_MODEL)
    wo, bo = _linear_w(ko, D_MODEL, D_MODEL)
    return dict(
        wq=_split_heads_cols(wq), bq=_split_heads_bias(bq),
        wk=_split_heads_cols(wk), bk=_split_heads_bias(bk),
        wv=_split_heads_cols(wv), bv=_split_heads_bias(bv),
        wo=wo.reshape(N_HEAD, D_HEAD, D_MODEL), bo=bo)


def _enc_layer_params(key):
    ka, kf = jax.random.split(key)
    attn = _attn_block_params(ka)
    k1, k2 = jax.random.split(kf)
    w1, b1 = _linear_w(k1, D_MODEL, FFN_HIDDEN)
    w2, b2 = _linear_w(k2, FFN_HIDDEN, D_MODEL)
    ones = jnp.ones((1, D_MODEL), jnp.float32)
    zeros = jnp.zeros((1, D_MODEL), jnp.float32)
    return dict(**attn, ln1_g=ones, ln1_b=zeros,
                w1=w1, b1=b1, w2=w2, b2=b2, ln2_g=ones, ln2_b=zeros)


def _dec_layer_params(key):
    ks, kc, kf = jax.random.split(key, 3)
    self_attn = _attn_block_params(ks)
    cross = {k + "_c": v for k, v in _attn_block_params(kc).items()}
    k1, k2 = jax.random.split(kf)
    w1, b1 = _linear_w(k1, D_MODEL, FFN_HIDDEN)
    w2, b2 = _linear_w(k2, FFN_HIDDEN, D_MODEL)
    ones = jnp.ones((1, D_MODEL), jnp.float32)
    zeros = jnp.zeros((1, D_MODEL), jnp.float32)
    return dict(**self_attn, ln1_g=ones, ln1_b=zeros,
                **cross, ln2_g=ones, ln2_b=zeros,
                w1=w1, b1=b1, w2=w2, b2=b2, ln3_g=ones, ln3_b=zeros)


def _stack(dicts):
    return {k: jnp.stack([d[k] for d in dicts], axis=0) for k in dicts[0]}


def init_params(key):
    keys = jax.random.split(key, 6)
    enc_emb = jax.random.normal(keys[0], (ENC_VOC_SIZE, D_MODEL), jnp.float32) * 0.02
    dec_emb = jax.random.normal(keys[1], (DEC_VOC_SIZE, D_MODEL), jnp.float32) * 0.02
    # hyunwoongko TokenEmbedding hard-codes nn.Embedding(..., padding_idx=1),
    # so row 1 is the zeroed row (even though the pad id used by the masks is 0).
    enc_emb = enc_emb.at[1].set(0.0)
    dec_emb = dec_emb.at[1].set(0.0)

    enc_layers = _stack([_enc_layer_params(k) for k in jax.random.split(keys[2], N_LAYERS)])
    dec_layers = _stack([_dec_layer_params(k) for k in jax.random.split(keys[3], N_LAYERS)])

    w_out, b_out = _linear_w(keys[4], D_MODEL, DEC_VOC_SIZE)
    # pad the vocab projection so the fused kernel's only HBM store is lane-dense
    # (extra columns are exactly zero and sliced off outside).
    w_out_p = jnp.zeros((D_MODEL, VOCAB_PAD), jnp.float32).at[:, :DEC_VOC_SIZE].set(w_out)
    b_out_p = jnp.zeros((1, VOCAB_PAD), jnp.float32).at[:, :DEC_VOC_SIZE].set(b_out)

    return dict(enc_emb=enc_emb, dec_emb=dec_emb,
                pos_table=sinusoid_encoding(MAX_LEN, D_MODEL),
                enc=enc_layers, dec=dec_layers,
                w_out=w_out_p, b_out=b_out_p)


# --------------------------------- main ---------------------------------------
if __name__ == "__main__":
    root = jax.random.PRNGKey(0)
    k_param, k_src, k_trg = jax.random.split(root, 3)

    params = init_params(k_param)

    # token ids in [2, voc) with trailing padding (pad idx = 0)
    src = jax.random.randint(k_src, (BATCH, SEQ), 2, ENC_VOC_SIZE, jnp.int32)
    trg = jax.random.randint(k_trg, (BATCH, SEQ), 2, DEC_VOC_SIZE, jnp.int32)
    src = src.at[:, -2:].set(SRC_PAD_IDX)
    trg = trg.at[:, -1:].set(TRG_PAD_IDX)
    trg = trg.at[:, 0].set(TRG_SOS_IDX)

    fwd = jax.jit(functools.partial(transformer_forward, params))
    out = jax.block_until_ready(fwd(src, trg))

    assert out.shape == (BATCH, SEQ, DEC_VOC_SIZE)
    assert bool(jnp.all(jnp.isfinite(out)))
    print("KERNEL_OK")
</pallas_src>

<mosaic_0001>
module attributes {stable_mosaic.version = 11 : i64} {
  func.func @_transformer_kernel(%arg0: i32, %arg1: memref<8x32xf32, #tpu.memory_space<vmem>>, %arg2: memref<8x32xf32, #tpu.memory_space<vmem>>, %arg3: memref<1x8x8xf32, #tpu.memory_space<vmem>>, %arg4: memref<1x8x8xf32, #tpu.memory_space<vmem>>, %arg5: memref<1x8x8xf32, #tpu.memory_space<vmem>>, %arg6: memref<2x4x32x8xf32, #tpu.memory_space<vmem>>, %arg7: memref<2x4x1x8xf32, #tpu.memory_space<vmem>>, %arg8: memref<2x4x32x8xf32, #tpu.memory_space<vmem>>, %arg9: memref<2x4x1x8xf32, #tpu.memory_space<vmem>>, %arg10: memref<2x4x32x8xf32, #tpu.memory_space<vmem>>, %arg11: memref<2x4x1x8xf32, #tpu.memory_space<vmem>>, %arg12: memref<2x4x8x32xf32, #tpu.memory_space<vmem>>, %arg13: memref<2x1x32xf32, #tpu.memory_space<vmem>>, %arg14: memref<2x1x32xf32, #tpu.memory_space<vmem>>, %arg15: memref<2x1x32xf32, #tpu.memory_space<vmem>>, %arg16: memref<2x32x64xf32, #tpu.memory_space<vmem>>, %arg17: memref<2x1x64xf32, #tpu.memory_space<vmem>>, %arg18: memref<2x64x32xf32, #tpu.memory_space<vmem>>, %arg19: memref<2x1x32xf32, #tpu.memory_space<vmem>>, %arg20: memref<2x1x32xf32, #tpu.memory_space<vmem>>, %arg21: memref<2x1x32xf32, #tpu.memory_space<vmem>>, %arg22: memref<2x4x32x8xf32, #tpu.memory_space<vmem>>, %arg23: memref<2x4x1x8xf32, #tpu.memory_space<vmem>>, %arg24: memref<2x4x32x8xf32, #tpu.memory_space<vmem>>, %arg25: memref<2x4x1x8xf32, #tpu.memory_space<vmem>>, %arg26: memref<2x4x32x8xf32, #tpu.memory_space<vmem>>, %arg27: memref<2x4x1x8xf32, #tpu.memory_space<vmem>>, %arg28: memref<2x4x8x32xf32, #tpu.memory_space<vmem>>, %arg29: memref<2x1x32xf32, #tpu.memory_space<vmem>>, %arg30: memref<2x1x32xf32, #tpu.memory_space<vmem>>, %arg31: memref<2x1x32xf32, #tpu.memory_space<vmem>>, %arg32: memref<2x4x32x8xf32, #tpu.memory_space<vmem>>, %arg33: memref<2x4x1x8xf32, #tpu.memory_space<vmem>>, %arg34: memref<2x4x32x8xf32, #tpu.memory_space<vmem>>, %arg35: memref<2x4x1x8xf32, #tpu.memory_space<vmem>>, %arg36: memref<2x4x32x8xf32, #tpu.memory_space<vmem>>, %arg37: memref<2x4x1x8xf32, #tpu.memory_space<vmem>>, %arg38: memref<2x4x8x32xf32, #tpu.memory_space<vmem>>, %arg39: memref<2x1x32xf32, #tpu.memory_space<vmem>>, %arg40: memref<2x1x32xf32, #tpu.memory_space<vmem>>, %arg41: memref<2x1x32xf32, #tpu.memory_space<vmem>>, %arg42: memref<2x32x64xf32, #tpu.memory_space<vmem>>, %arg43: memref<2x1x64xf32, #tpu.memory_space<vmem>>, %arg44: memref<2x64x32xf32, #tpu.memory_space<vmem>>, %arg45: memref<2x1x32xf32, #tpu.memory_space<vmem>>, %arg46: memref<2x1x32xf32, #tpu.memory_space<vmem>>, %arg47: memref<2x1x32xf32, #tpu.memory_space<vmem>>, %arg48: memref<32x128xf32, #tpu.memory_space<vmem>>, %arg49: memref<1x128xf32, #tpu.memory_space<vmem>>, %arg50: memref<8x128xf32, #tpu.memory_space<vmem>>) attributes {dimension_semantics = [#tpu.dimension_semantics<parallel>], iteration_bounds = array<i64: 2>, scalar_prefetch = 0 : i64, scratch_operands = 0 : i64, tpu.core_type = #tpu.core_type<tc>, window_params = [{transform_indices = @transform_0, window_bounds = array<i64: 8, 32>}, {transform_indices = @transform_1, window_bounds = array<i64: 8, 32>}, {transform_indices = @transform_2, window_bounds = array<i64: 1, 8, 8>}, {transform_indices = @transform_3, window_bounds = array<i64: 1, 8, 8>}, {transform_indices = @transform_4, window_bounds = array<i64: 1, 8, 8>}, {pipeline_mode = #tpu.pipeline_mode<synchronous>, transform_indices = @transform_5, window_bounds = array<i64: 2, 4, 32, 8>}, {pipeline_mode = #tpu.pipeline_mode<synchronous>, transform_indices = @transform_6, window_bounds = array<i64: 2, 4, 1, 8>}, {pipeline_mode = #tpu.pipeline_mode<synchronous>, transform_indices = @transform_7, window_bounds = array<i64: 2, 4, 32, 8>}, {pipeline_mode = #tpu.pipeline_mode<synchronous>, transform_indices = @transform_8, window_bounds = array<i64: 2, 4, 1, 8>}, {pipeline_mode = #tpu.pipeline_mode<synchronous>, transform_indices = @transform_9, window_bounds = array<i64: 2, 4, 32, 8>}, {pipeline_mode = #tpu.pipeline_mode<synchronous>, transform_indices = @transform_10, window_bounds = array<i64: 2, 4, 1, 8>}, {pipeline_mode = #tpu.pipeline_mode<synchronous>, transform_indices = @transform_11, window_bounds = array<i64: 2, 4, 8, 32>}, {pipeline_mode = #tpu.pipeline_mode<synchronous>, transform_indices = @transform_12, window_bounds = array<i64: 2, 1, 32>}, {pipeline_mode = #tpu.pipeline_mode<synchronous>, transform_indices = @transform_13, window_bounds = array<i64: 2, 1, 32>}, {pipeline_mode = #tpu.pipeline_mode<synchronous>, transform_indices = @transform_14, window_bounds = array<i64: 2, 1, 32>}, {pipeline_mode = #tpu.pipeline_mode<synchronous>, transform_indices = @transform_15, window_bounds = array<i64: 2, 32, 64>}, {pipeline_mode = #tpu.pipeline_mode<synchronous>, transform_indices = @transform_16, window_bounds = array<i64: 2, 1, 64>}, {pipeline_mode = #tpu.pipeline_mode<synchronous>, transform_indices = @transform_17, window_bounds = array<i64: 2, 64, 32>}, {pipeline_mode = #tpu.pipeline_mode<synchronous>, transform_indices = @transform_18, window_bounds = array<i64: 2, 1, 32>}, {pipeline_mode = #tpu.pipeline_mode<synchronous>, transform_indices = @transform_19, window_bounds = array<i64: 2, 1, 32>}, {pipeline_mode = #tpu.pipeline_mode<synchronous>, transform_indices = @transform_20, window_bounds = array<i64: 2, 1, 32>}, {pipeline_mode = #tpu.pipeline_mode<synchronous>, transform_indices = @transform_21, window_bounds = array<i64: 2, 4, 32, 8>}, {pipeline_mode = #tpu.pipeline_mode<synchronous>, transform_indices = @transform_22, window_bounds = array<i64: 2, 4, 1, 8>}, {pipeline_mode = #tpu.pipeline_mode<synchronous>, transform_indices = @transform_23, window_bounds = array<i64: 2, 4, 32, 8>}, {pipeline_mode = #tpu.pipeline_mode<synchronous>, transform_indices = @transform_24, window_bounds = array<i64: 2, 4, 1, 8>}, {pipeline_mode = #tpu.pipeline_mode<synchronous>, transform_indices = @transform_25, window_bounds = array<i64: 2, 4, 32, 8>}, {pipeline_mode = #tpu.pipeline_mode<synchronous>, transform_indices = @transform_26, window_bounds = array<i64: 2, 4, 1, 8>}, {pipeline_mode = #tpu.pipeline_mode<synchronous>, transform_indices = @transform_27, window_bounds = array<i64: 2, 4, 8, 32>}, {pipeline_mode = #tpu.pipeline_mode<synchronous>, transform_indices = @transform_28, window_bounds = array<i64: 2, 1, 32>}, {pipeline_mode = #tpu.pipeline_mode<synchronous>, transform_indices = @transform_29, window_bounds = array<i64: 2, 1, 32>}, {pipeline_mode = #tpu.pipeline_mode<synchronous>, transform_indices = @transform_30, window_bounds = array<i64: 2, 1, 32>}, {pipeline_mode = #tpu.pipeline_mode<synchronous>, transform_indices = @transform_31, window_bounds = array<i64: 2, 4, 32, 8>}, {pipeline_mode = #tpu.pipeline_mode<synchronous>, transform_indices = @transform_32, window_bounds = array<i64: 2, 4, 1, 8>}, {pipeline_mode = #tpu.pipeline_mode<synchronous>, transform_indices = @transform_33, window_bounds = array<i64: 2, 4, 32, 8>}, {pipeline_mode = #tpu.pipeline_mode<synchronous>, transform_indices = @transform_34, window_bounds = array<i64: 2, 4, 1, 8>}, {pipeline_mode = #tpu.pipeline_mode<synchronous>, transform_indices = @transform_35, window_bounds = array<i64: 2, 4, 32, 8>}, {pipeline_mode = #tpu.pipeline_mode<synchronous>, transform_indices = @transform_36, window_bounds = array<i64: 2, 4, 1, 8>}, {pipeline_mode = #tpu.pipeline_mode<synchronous>, transform_indices = @transform_37, window_bounds = array<i64: 2, 4, 8, 32>}, {pipeline_mode = #tpu.pipeline_mode<synchronous>, transform_indices = @transform_38, window_bounds = array<i64: 2, 1, 32>}, {pipeline_mode = #tpu.pipeline_mode<synchronous>, transform_indices = @transform_39, window_bounds = array<i64: 2, 1, 32>}, {pipeline_mode = #tpu.pipeline_mode<synchronous>, transform_indices = @transform_40, window_bounds = array<i64: 2, 1, 32>}, {pipeline_mode = #tpu.pipeline_mode<synchronous>, transform_indices = @transform_41, window_bounds = array<i64: 2, 32, 64>}, {pipeline_mode = #tpu.pipeline_mode<synchronous>, transform_indices = @transform_42, window_bounds = array<i64: 2, 1, 64>}, {pipeline_mode = #tpu.pipeline_mode<synchronous>, transform_indices = @transform_43, window_bounds = array<i64: 2, 64, 32>}, {pipeline_mode = #tpu.pipeline_mode<synchronous>, transform_indices = @transform_44, window_bounds = array<i64: 2, 1, 32>}, {pipeline_mode = #tpu.pipeline_mode<synchronous>, transform_indices = @transform_45, window_bounds = array<i64: 2, 1, 32>}, {pipeline_mode = #tpu.pipeline_mode<synchronous>, transform_indices = @transform_46, window_bounds = array<i64: 2, 1, 32>}, {pipeline_mode = #tpu.pipeline_mode<synchronous>, transform_indices = @transform_47, window_bounds = array<i64: 32, 128>}, {pipeline_mode = #tpu.pipeline_mode<synchronous>, transform_indices = @transform_48, window_bounds = array<i64: 1, 128>}, {transform_indices = @transform_49, window_bounds = array<i64: 8, 128>}]} {
    %c0 = arith.constant 0 : index
    %c0_0 = arith.constant 0 : index
    %c0_1 = arith.constant 0 : index
    %0 = vector.load %arg3[%c0, %c0_0, %c0_1] : memref<1x8x8xf32, #tpu.memory_space<vmem>>, vector<1x8x8xf32>
    %1 = vector.shape_cast %0 : vector<1x8x8xf32> to vector<8x8xf32>
    %c0_2 = arith.constant 0 : index
    %c0_3 = arith.constant 0 : index
    %c0_4 = arith.constant 0 : index
    %2 = vector.load %arg4[%c0_2, %c0_3, %c0_4] : memref<1x8x8xf32, #tpu.memory_space<vmem>>, vector<1x8x8xf32>
    %3 = vector.shape_cast %2 : vector<1x8x8xf32> to vector<8x8xf32>
    %c0_5 = arith.constant 0 : index
    %c0_6 = arith.constant 0 : index
    %c0_7 = arith.constant 0 : index
    %4 = vector.load %arg5[%c0_5, %c0_6, %c0_7] : memref<1x8x8xf32, #tpu.memory_space<vmem>>, vector<1x8x8xf32>
    %5 = vector.shape_cast %4 : vector<1x8x8xf32> to vector<8x8xf32>
    %c0_8 = arith.constant 0 : index
    %c0_9 = arith.constant 0 : index
    %6 = vector.load %arg1[%c0_8, %c0_9] : memref<8x32xf32, #tpu.memory_space<vmem>>, vector<8x32xf32>
    %c0_10 = arith.constant 0 : index
    %c0_11 = arith.constant 0 : index
    %c0_12 = arith.constant 0 : index
    %c0_13 = arith.constant 0 : index
    %7 = vector.load %arg6[%c0_10, %c0_11, %c0_12, %c0_13] : memref<2x4x32x8xf32, #tpu.memory_space<vmem>>, vector<1x1x32x8xf32>
    %8 = vector.shape_cast %7 : vector<1x1x32x8xf32> to vector<32x8xf32>
    %cst = arith.constant dense<0.000000e+00> : vector<8x8xf32>
    %9 = tpu.matmul %6, %8, %cst {dimension_numbers = #tpu.dot_dimension_numbers<[1], [0], [0], [1], [0, 0, 1, 1], [], []>} : vector<8x32xf32>, vector<32x8xf32>, vector<8x8xf32> -> vector<8x8xf32>
    %c0_14 = arith.constant 0 : index
    %c0_15 = arith.constant 0 : index
    %c0_16 = arith.constant 0 : index
    %c0_17 = arith.constant 0 : index
    %10 = vector.load %arg7[%c0_14, %c0_15, %c0_16, %c0_17] : memref<2x4x1x8xf32, #tpu.memory_space<vmem>>, vector<1x1x1x8xf32>
    %11 = vector.shape_cast %10 : vector<1x1x1x8xf32> to vector<1x8xf32>
    %12 = vector.broadcast %11 : vector<1x8xf32> to vector<8x8xf32>
    %13 = arith.addf %9, %12 : vector<8x8xf32>
    %c0_18 = arith.constant 0 : index
    %c0_19 = arith.constant 0 : index
    %c0_20 = arith.constant 0 : index
    %c0_21 = arith.constant 0 : index
    %14 = vector.load %arg8[%c0_18, %c0_19, %c0_20, %c0_21] : memref<2x4x32x8xf32, #tpu.memory_space<vmem>>, vector<1x1x32x8xf32>
    %15 = vector.shape_cast %14 : vector<1x1x32x8xf32> to vector<32x8xf32>
    %cst_22 = arith.constant dense<0.000000e+00> : vector<8x8xf32>
    %16 = tpu.matmul %6, %15, %cst_22 {dimension_numbers = #tpu.dot_dimension_numbers<[1], [0], [0], [1], [0, 0, 1, 1], [], []>} : vector<8x32xf32>, vector<32x8xf32>, vector<8x8xf32> -> vector<8x8xf32>
    %c0_23 = arith.constant 0 : index
    %c0_24 = arith.constant 0 : index
    %c0_25 = arith.constant 0 : index
    %c0_26 = arith.constant 0 : index
    %17 = vector.load %arg9[%c0_23, %c0_24, %c0_25, %c0_26] : memref<2x4x1x8xf32, #tpu.memory_space<vmem>>, vector<1x1x1x8xf32>
    %18 = vector.shape_cast %17 : vector<1x1x1x8xf32> to vector<1x8xf32>
    %19 = vector.broadcast %18 : vector<1x8xf32> to vector<8x8xf32>
    %20 = arith.addf %16, %19 : vector<8x8xf32>
    %c0_27 = arith.constant 0 : index
    %c0_28 = arith.constant 0 : index
    %c0_29 = arith.constant 0 : index
    %c0_30 = arith.constant 0 : index
    %21 = vector.load %arg10[%c0_27, %c0_28, %c0_29, %c0_30] : memref<2x4x32x8xf32, #tpu.memory_space<vmem>>, vector<1x1x32x8xf32>
    %22 = vector.shape_cast %21 : vector<1x1x32x8xf32> to vector<32x8xf32>
    %cst_31 = arith.constant dense<0.000000e+00> : vector<8x8xf32>
    %23 = tpu.matmul %6, %22, %cst_31 {dimension_numbers = #tpu.dot_dimension_numbers<[1], [0], [0], [1], [0, 0, 1, 1], [], []>} : vector<8x32xf32>, vector<32x8xf32>, vector<8x8xf32> -> vector<8x8xf32>
    %c0_32 = arith.constant 0 : index
    %c0_33 = arith.constant 0 : index
    %c0_34 = arith.constant 0 : index
    %c0_35 = arith.constant 0 : index
    %24 = vector.load %arg11[%c0_32, %c0_33, %c0_34, %c0_35] : memref<2x4x1x8xf32, #tpu.memory_space<vmem>>, vector<1x1x1x8xf32>
    %25 = vector.shape_cast %24 : vector<1x1x1x8xf32> to vector<1x8xf32>
    %26 = vector.broadcast %25 : vector<1x8xf32> to vector<8x8xf32>
    %27 = arith.addf %23, %26 : vector<8x8xf32>
    %cst_36 = arith.constant 0.353553385 : f32
    %28 = vector.broadcast %cst_36 : f32 to vector<8x8xf32>
    %29 = arith.mulf %13, %28 : vector<8x8xf32>
    %cst_37 = arith.constant dense<0.000000e+00> : vector<8x8xf32>
    %30 = tpu.matmul %29, %20, %cst_37 {dimension_numbers = #tpu.dot_dimension_numbers<[1], [1], [0], [0], [0, 0, 1, 0], [], []>} : vector<8x8xf32>, vector<8x8xf32>, vector<8x8xf32> -> vector<8x8xf32>
    %31 = arith.addf %30, %1 : vector<8x8xf32>
    %cst_38 = arith.constant dense<0xFF800000> : vector<8xf32>
    %32 = vector.multi_reduction <maximumf>, %31, %cst_38 [1] : vector<8x8xf32> to vector<8xf32>
    %33 = vector.shape_cast %32 : vector<8xf32> to vector<8x1xf32>
    %34 = vector.broadcast %33 : vector<8x1xf32> to vector<8x8xf32>
    %35 = arith.subf %31, %34 : vector<8x8xf32>
    %36 = math.exp %35 : vector<8x8xf32>
    %cst_39 = arith.constant dense<0.000000e+00> : vector<8xf32>
    %37 = vector.multi_reduction <add>, %36, %cst_39 [1] : vector<8x8xf32> to vector<8xf32>
    %38 = vector.shape_cast %37 : vector<8xf32> to vector<8x1xf32>
    %39 = tpu.reciprocal %38 : vector<8x1xf32> -> vector<8x1xf32>
    %40 = vector.broadcast %39 : vector<8x1xf32> to vector<8x8xf32>
    %41 = arith.mulf %36, %40 : vector<8x8xf32>
    %cst_40 = arith.constant dense<0.000000e+00> : vector<8x8xf32>
    %42 = tpu.matmul %41, %27, %cst_40 {dimension_numbers = #tpu.dot_dimension_numbers<[1], [0], [0], [1], [0, 0, 1, 1], [], []>} : vector<8x8xf32>, vector<8x8xf32>, vector<8x8xf32> -> vector<8x8xf32>
    %c0_41 = arith.constant 0 : index
    %c0_42 = arith.constant 0 : index
    %c0_43 = arith.constant 0 : index
    %c0_44 = arith.constant 0 : index
    %43 = vector.load %arg12[%c0_41, %c0_42, %c0_43, %c0_44] : memref<2x4x8x32xf32, #tpu.memory_space<vmem>>, vector<1x1x8x32xf32>
    %44 = vector.shape_cast %43 : vector<1x1x8x32xf32> to vector<8x32xf32>
    %cst_45 = arith.constant dense<0.000000e+00> : vector<8x32xf32>
    %45 = tpu.matmul %42, %44, %cst_45 {dimension_numbers = #tpu.dot_dimension_numbers<[1], [0], [0], [1], [0, 0, 1, 1], [], []>} : vector<8x8xf32>, vector<8x32xf32>, vector<8x32xf32> -> vector<8x32xf32>
    %c0_46 = arith.constant 0 : index
    %c1 = arith.constant 1 : index
    %c0_47 = arith.constant 0 : index
    %c0_48 = arith.constant 0 : index
    %46 = vector.load %arg6[%c0_46, %c1, %c0_47, %c0_48] : memref<2x4x32x8xf32, #tpu.memory_space<vmem>>, vector<1x1x32x8xf32>
    %47 = vector.shape_cast %46 : vector<1x1x32x8xf32> to vector<32x8xf32>
    %cst_49 = arith.constant dense<0.000000e+00> : vector<8x8xf32>
    %48 = tpu.matmul %6, %47, %cst_49 {dimension_numbers = #tpu.dot_dimension_numbers<[1], [0], [0], [1], [0, 0, 1, 1], [], []>} : vector<8x32xf32>, vector<32x8xf32>, vector<8x8xf32> -> vector<8x8xf32>
    %c0_50 = arith.constant 0 : index
    %c1_51 = arith.constant 1 : index
    %c0_52 = arith.constant 0 : index
    %c0_53 = arith.constant 0 : index
    %49 = vector.load %arg7[%c0_50, %c1_51, %c0_52, %c0_53] : memref<2x4x1x8xf32, #tpu.memory_space<vmem>>, vector<1x1x1x8xf32>
    %50 = vector.shape_cast %49 : vector<1x1x1x8xf32> to vector<1x8xf32>
    %51 = vector.broadcast %50 : vector<1x8xf32> to vector<8x8xf32>
    %52 = arith.addf %48, %51 : vector<8x8xf32>
    %c0_54 = arith.constant 0 : index
    %c1_55 = arith.constant 1 : index
    %c0_56 = arith.constant 0 : index
    %c0_57 = arith.constant 0 : index
    %53 = vector.load %arg8[%c0_54, %c1_55, %c0_56, %c0_57] : memref<2x4x32x8xf32, #tpu.memory_space<vmem>>, vector<1x1x32x8xf32>
    %54 = vector.shape_cast %53 : vector<1x1x32x8xf32> to vector<32x8xf32>
    %cst_58 = arith.constant dense<0.000000e+00> : vector<8x8xf32>
    %55 = tpu.matmul %6, %54, %cst_58 {dimension_numbers = #tpu.dot_dimension_numbers<[1], [0], [0], [1], [0, 0, 1, 1], [], []>} : vector<8x32xf32>, vector<32x8xf32>, vector<8x8xf32> -> vector<8x8xf32>
    %c0_59 = arith.constant 0 : index
    %c1_60 = arith.constant 1 : index
    %c0_61 = arith.constant 0 : index
    %c0_62 = arith.constant 0 : index
    %56 = vector.load %arg9[%c0_59, %c1_60, %c0_61, %c0_62] : memref<2x4x1x8xf32, #tpu.memory_space<vmem>>, vector<1x1x1x8xf32>
    %57 = vector.shape_cast %56 : vector<1x1x1x8xf32> to vector<1x8xf32>
    %58 = vector.broadcast %57 : vector<1x8xf32> to vector<8x8xf32>
    %59 = arith.addf %55, %58 : vector<8x8xf32>
    %c0_63 = arith.constant 0 : index
    %c1_64 = arith.constant 1 : index
    %c0_65 = arith.constant 0 : index
    %c0_66 = arith.constant 0 : index
    %60 = vector.load %arg10[%c0_63, %c1_64, %c0_65, %c0_66] : memref<2x4x32x8xf32, #tpu.memory_space<vmem>>, vector<1x1x32x8xf32>
    %61 = vector.shape_cast %60 : vector<1x1x32x8xf32> to vector<32x8xf32>
    %cst_67 = arith.constant dense<0.000000e+00> : vector<8x8xf32>
    %62 = tpu.matmul %6, %61, %cst_67 {dimension_numbers = #tpu.dot_dimension_numbers<[1], [0], [0], [1], [0, 0, 1, 1], [], []>} : vector<8x32xf32>, vector<32x8xf32>, vector<8x8xf32> -> vector<8x8xf32>
    %c0_68 = arith.constant 0 : index
    %c1_69 = arith.constant 1 : index
    %c0_70 = arith.constant 0 : index
    %c0_71 = arith.constant 0 : index
    %63 = vector.load %arg11[%c0_68, %c1_69, %c0_70, %c0_71] : memref<2x4x1x8xf32, #tpu.memory_space<vmem>>, vector<1x1x1x8xf32>
    %64 = vector.shape_cast %63 : vector<1x1x1x8xf32> to vector<1x8xf32>
    %65 = vector.broadcast %64 : vector<1x8xf32> to vector<8x8xf32>
    %66 = arith.addf %62, %65 : vector<8x8xf32>
    %cst_72 = arith.constant 0.353553385 : f32
    %67 = vector.broadcast %cst_72 : f32 to vector<8x8xf32>
    %68 = arith.mulf %52, %67 : vector<8x8xf32>
    %cst_73 = arith.constant dense<0.000000e+00> : vector<8x8xf32>
    %69 = tpu.matmul %68, %59, %cst_73 {dimension_numbers = #tpu.dot_dimension_numbers<[1], [1], [0], [0], [0, 0, 1, 0], [], []>} : vector<8x8xf32>, vector<8x8xf32>, vector<8x8xf32> -> vector<8x8xf32>
    %70 = arith.addf %69, %1 : vector<8x8xf32>
    %cst_74 = arith.constant dense<0xFF800000> : vector<8xf32>
    %71 = vector.multi_reduction <maximumf>, %70, %cst_74 [1] : vector<8x8xf32> to vector<8xf32>
    %72 = vector.shape_cast %71 : vector<8xf32> to vector<8x1xf32>
    %73 = vector.broadcast %72 : vector<8x1xf32> to vector<8x8xf32>
    %74 = arith.subf %70, %73 : vector<8x8xf32>
    %75 = math.exp %74 : vector<8x8xf32>
    %cst_75 = arith.constant dense<0.000000e+00> : vector<8xf32>
    %76 = vector.multi_reduction <add>, %75, %cst_75 [1] : vector<8x8xf32> to vector<8xf32>
    %77 = vector.shape_cast %76 : vector<8xf32> to vector<8x1xf32>
    %78 = tpu.reciprocal %77 : vector<8x1xf32> -> vector<8x1xf32>
    %79 = vector.broadcast %78 : vector<8x1xf32> to vector<8x8xf32>
    %80 = arith.mulf %75, %79 : vector<8x8xf32>
    %cst_76 = arith.constant dense<0.000000e+00> : vector<8x8xf32>
    %81 = tpu.matmul %80, %66, %cst_76 {dimension_numbers = #tpu.dot_dimension_numbers<[1], [0], [0], [1], [0, 0, 1, 1], [], []>} : vector<8x8xf32>, vector<8x8xf32>, vector<8x8xf32> -> vector<8x8xf32>
    %c0_77 = arith.constant 0 : index
    %c1_78 = arith.constant 1 : index
    %c0_79 = arith.constant 0 : index
    %c0_80 = arith.constant 0 : index
    %82 = vector.load %arg12[%c0_77, %c1_78, %c0_79, %c0_80] : memref<2x4x8x32xf32, #tpu.memory_space<vmem>>, vector<1x1x8x32xf32>
    %83 = vector.shape_cast %82 : vector<1x1x8x32xf32> to vector<8x32xf32>
    %cst_81 = arith.constant dense<0.000000e+00> : vector<8x32xf32>
    %84 = tpu.matmul %81, %83, %cst_81 {dimension_numbers = #tpu.dot_dimension_numbers<[1], [0], [0], [1], [0, 0, 1, 1], [], []>} : vector<8x8xf32>, vector<8x32xf32>, vector<8x32xf32> -> vector<8x32xf32>
    %85 = arith.addf %45, %84 : vector<8x32xf32>
    %c0_82 = arith.constant 0 : index
    %c2 = arith.constant 2 : index
    %c0_83 = arith.constant 0 : index
    %c0_84 = arith.constant 0 : index
    %86 = vector.load %arg6[%c0_82, %c2, %c0_83, %c0_84] : memref<2x4x32x8xf32, #tpu.memory_space<vmem>>, vector<1x1x32x8xf32>
    %87 = vector.shape_cast %86 : vector<1x1x32x8xf32> to vector<32x8xf32>
    %cst_85 = arith.constant dense<0.000000e+00> : vector<8x8xf32>
    %88 = tpu.matmul %6, %87, %cst_85 {dimension_numbers = #tpu.dot_dimension_numbers<[1], [0], [0], [1], [0, 0, 1, 1], [], []>} : vector<8x32xf32>, vector<32x8xf32>, vector<8x8xf32> -> vector<8x8xf32>
    %c0_86 = arith.constant 0 : index
    %c2_87 = arith.constant 2 : index
    %c0_88 = arith.constant 0 : index
    %c0_89 = arith.constant 0 : index
    %89 = vector.load %arg7[%c0_86, %c2_87, %c0_88, %c0_89] : memref<2x4x1x8xf32, #tpu.memory_space<vmem>>, vector<1x1x1x8xf32>
    %90 = vector.shape_cast %89 : vector<1x1x1x8xf32> to vector<1x8xf32>
    %91 = vector.broadcast %90 : vector<1x8xf32> to vector<8x8xf32>
    %92 = arith.addf %88, %91 : vector<8x8xf32>
    %c0_90 = arith.constant 0 : index
    %c2_91 = arith.constant 2 : index
    %c0_92 = arith.constant 0 : index
    %c0_93 = arith.constant 0 : index
    %93 = vector.load %arg8[%c0_90, %c2_91, %c0_92, %c0_93] : memref<2x4x32x8xf32, #tpu.memory_space<vmem>>, vector<1x1x32x8xf32>
    %94 = vector.shape_cast %93 : vector<1x1x32x8xf32> to vector<32x8xf32>
    %cst_94 = arith.constant dense<0.000000e+00> : vector<8x8xf32>
    %95 = tpu.matmul %6, %94, %cst_94 {dimension_numbers = #tpu.dot_dimension_numbers<[1], [0], [0], [1], [0, 0, 1, 1], [], []>} : vector<8x32xf32>, vector<32x8xf32>, vector<8x8xf32> -> vector<8x8xf32>
    %c0_95 = arith.constant 0 : index
    %c2_96 = arith.constant 2 : index
    %c0_97 = arith.constant 0 : index
    %c0_98 = arith.constant 0 : index
    %96 = vector.load %arg9[%c0_95, %c2_96, %c0_97, %c0_98] : memref<2x4x1x8xf32, #tpu.memory_space<vmem>>, vector<1x1x1x8xf32>
    %97 = vector.shape_cast %96 : vector<1x1x1x8xf32> to vector<1x8xf32>
    %98 = vector.broadcast %97 : vector<1x8xf32> to vector<8x8xf32>
    %99 = arith.addf %95, %98 : vector<8x8xf32>
    %c0_99 = arith.constant 0 : index
    %c2_100 = arith.constant 2 : index
    %c0_101 = arith.constant 0 : index
    %c0_102 = arith.constant 0 : index
    %100 = vector.load %arg10[%c0_99, %c2_100, %c0_101, %c0_102] : memref<2x4x32x8xf32, #tpu.memory_space<vmem>>, vector<1x1x32x8xf32>
    %101 = vector.shape_cast %100 : vector<1x1x32x8xf32> to vector<32x8xf32>
    %cst_103 = arith.constant dense<0.000000e+00> : vector<8x8xf32>
    %102 = tpu.matmul %6, %101, %cst_103 {dimension_numbers = #tpu.dot_dimension_numbers<[1], [0], [0], [1], [0, 0, 1, 1], [], []>} : vector<8x32xf32>, vector<32x8xf32>, vector<8x8xf32> -> vector<8x8xf32>
    %c0_104 = arith.constant 0 : index
    %c2_105 = arith.constant 2 : index
    %c0_106 = arith.constant 0 : index
    %c0_107 = arith.constant 0 : index
    %103 = vector.load %arg11[%c0_104, %c2_105, %c0_106, %c0_107] : memref<2x4x1x8xf32, #tpu.memory_space<vmem>>, vector<1x1x1x8xf32>
    %104 = vector.shape_cast %103 : vector<1x1x1x8xf32> to vector<1x8xf32>
    %105 = vector.broadcast %104 : vector<1x8xf32> to vector<8x8xf32>
    %106 = arith.addf %102, %105 : vector<8x8xf32>
    %cst_108 = arith.constant 0.353553385 : f32
    %107 = vector.broadcast %cst_108 : f32 to vector<8x8xf32>
    %108 = arith.mulf %92, %107 : vector<8x8xf32>
    %cst_109 = arith.constant dense<0.000000e+00> : vector<8x8xf32>
    %109 = tpu.matmul %108, %99, %cst_109 {dimension_numbers = #tpu.dot_dimension_numbers<[1], [1], [0], [0], [0, 0, 1, 0], [], []>} : vector<8x8xf32>, vector<8x8xf32>, vector<8x8xf32> -> vector<8x8xf32>
    %110 = arith.addf %109, %1 : vector<8x8xf32>
    %cst_110 = arith.constant dense<0xFF800000> : vector<8xf32>
    %111 = vector.multi_reduction <maximumf>, %110, %cst_110 [1] : vector<8x8xf32> to vector<8xf32>
    %112 = vector.shape_cast %111 : vector<8xf32> to vector<8x1xf32>
    %113 = vector.broadcast %112 : vector<8x1xf32> to vector<8x8xf32>
    %114 = arith.subf %110, %113 : vector<8x8xf32>
    %115 = math.exp %114 : vector<8x8xf32>
    %cst_111 = arith.constant dense<0.000000e+00> : vector<8xf32>
    %116 = vector.multi_reduction <add>, %115, %cst_111 [1] : vector<8x8xf32> to vector<8xf32>
    %117 = vector.shape_cast %116 : vector<8xf32> to vector<8x1xf32>
    %118 = tpu.reciprocal %117 : vector<8x1xf32> -> vector<8x1xf32>
    %119 = vector.broadcast %118 : vector<8x1xf32> to vector<8x8xf32>
    %120 = arith.mulf %115, %119 : vector<8x8xf32>
    %cst_112 = arith.constant dense<0.000000e+00> : vector<8x8xf32>
    %121 = tpu.matmul %120, %106, %cst_112 {dimension_numbers = #tpu.dot_dimension_numbers<[1], [0], [0], [1], [0, 0, 1, 1], [], []>} : vector<8x8xf32>, vector<8x8xf32>, vector<8x8xf32> -> vector<8x8xf32>
    %c0_113 = arith.constant 0 : index
    %c2_114 = arith.constant 2 : index
    %c0_115 = arith.constant 0 : index
    %c0_116 = arith.constant 0 : index
    %122 = vector.load %arg12[%c0_113, %c2_114, %c0_115, %c0_116] : memref<2x4x8x32xf32, #tpu.memory_space<vmem>>, vector<1x1x8x32xf32>
    %123 = vector.shape_cast %122 : vector<1x1x8x32xf32> to vector<8x32xf32>
    %cst_117 = arith.constant dense<0.000000e+00> : vector<8x32xf32>
    %124 = tpu.matmul %121, %123, %cst_117 {dimension_numbers = #tpu.dot_dimension_numbers<[1], [0], [0], [1], [0, 0, 1, 1], [], []>} : vector<8x8xf32>, vector<8x32xf32>, vector<8x32xf32> -> vector<8x32xf32>
    %125 = arith.addf %85, %124 : vector<8x32xf32>
    %c0_118 = arith.constant 0 : index
    %c3 = arith.constant 3 : index
    %c0_119 = arith.constant 0 : index
    %c0_120 = arith.constant 0 : index
    %126 = vector.load %arg6[%c0_118, %c3, %c0_119, %c0_120] : memref<2x4x32x8xf32, #tpu.memory_space<vmem>>, vector<1x1x32x8xf32>
    %127 = vector.shape_cast %126 : vector<1x1x32x8xf32> to vector<32x8xf32>
    %cst_121 = arith.constant dense<0.000000e+00> : vector<8x8xf32>
    %128 = tpu.matmul %6, %127, %cst_121 {dimension_numbers = #tpu.dot_dimension_numbers<[1], [0], [0], [1], [0, 0, 1, 1], [], []>} : vector<8x32xf32>, vector<32x8xf32>, vector<8x8xf32> -> vector<8x8xf32>
    %c0_122 = arith.constant 0 : index
    %c3_123 = arith.constant 3 : index
    %c0_124 = arith.constant 0 : index
    %c0_125 = arith.constant 0 : index
    %129 = vector.load %arg7[%c0_122, %c3_123, %c0_124, %c0_125] : memref<2x4x1x8xf32, #tpu.memory_space<vmem>>, vector<1x1x1x8xf32>
    %130 = vector.shape_cast %129 : vector<1x1x1x8xf32> to vector<1x8xf32>
    %131 = vector.broadcast %130 : vector<1x8xf32> to vector<8x8xf32>
    %132 = arith.addf %128, %131 : vector<8x8xf32>
    %c0_126 = arith.constant 0 : index
    %c3_127 = arith.constant 3 : index
    %c0_128 = arith.constant 0 : index
    %c0_129 = arith.constant 0 : index
    %133 = vector.load %arg8[%c0_126, %c3_127, %c0_128, %c0_129] : memref<2x4x32x8xf32, #tpu.memory_space<vmem>>, vector<1x1x32x8xf32>
    %134 = vector.shape_cast %133 : vector<1x1x32x8xf32> to vector<32x8xf32>
    %cst_130 = arith.constant dense<0.000000e+00> : vector<8x8xf32>
    %135 = tpu.matmul %6, %134, %cst_130 {dimension_numbers = #tpu.dot_dimension_numbers<[1], [0], [0], [1], [0, 0, 1, 1], [], []>} : vector<8x32xf32>, vector<32x8xf32>, vector<8x8xf32> -> vector<8x8xf32>
    %c0_131 = arith.constant 0 : index
    %c3_132 = arith.constant 3 : index
    %c0_133 = arith.constant 0 : index
    %c0_134 = arith.constant 0 : index
    %136 = vector.load %arg9[%c0_131, %c3_132, %c0_133, %c0_134] : memref<2x4x1x8xf32, #tpu.memory_space<vmem>>, vector<1x1x1x8xf32>
    %137 = vector.shape_cast %136 : vector<1x1x1x8xf32> to vector<1x8xf32>
    %138 = vector.broadcast %137 : vector<1x8xf32> to vector<8x8xf32>
    %139 = arith.addf %135, %138 : vector<8x8xf32>
    %c0_135 = arith.constant 0 : index
    %c3_136 = arith.constant 3 : index
    %c0_137 = arith.constant 0 : index
    %c0_138 = arith.constant 0 : index
    %140 = vector.load %arg10[%c0_135, %c3_136, %c0_137, %c0_138] : memref<2x4x32x8xf32, #tpu.memory_space<vmem>>, vector<1x1x32x8xf32>
    %141 = vector.shape_cast %140 : vector<1x1x32x8xf32> to vector<32x8xf32>
    %cst_139 = arith.constant dense<0.000000e+00> : vector<8x8xf32>
    %142 = tpu.matmul %6, %141, %cst_139 {dimension_numbers = #tpu.dot_dimension_numbers<[1], [0], [0], [1], [0, 0, 1, 1], [], []>} : vector<8x32xf32>, vector<32x8xf32>, vector<8x8xf32> -> vector<8x8xf32>
    %c0_140 = arith.constant 0 : index
    %c3_141 = arith.constant 3 : index
    %c0_142 = arith.constant 0 : index
    %c0_143 = arith.constant 0 : index
    %143 = vector.load %arg11[%c0_140, %c3_141, %c0_142, %c0_143] : memref<2x4x1x8xf32, #tpu.memory_space<vmem>>, vector<1x1x1x8xf32>
    %144 = vector.shape_cast %143 : vector<1x1x1x8xf32> to vector<1x8xf32>
    %145 = vector.broadcast %144 : vector<1x8xf32> to vector<8x8xf32>
    %146 = arith.addf %142, %145 : vector<8x8xf32>
    %cst_144 = arith.constant 0.353553385 : f32
    %147 = vector.broadcast %cst_144 : f32 to vector<8x8xf32>
    %148 = arith.mulf %132, %147 : vector<8x8xf32>
    %cst_145 = arith.constant dense<0.000000e+00> : vector<8x8xf32>
    %149 = tpu.matmul %148, %139, %cst_145 {dimension_numbers = #tpu.dot_dimension_numbers<[1], [1], [0], [0], [0, 0, 1, 0], [], []>} : vector<8x8xf32>, vector<8x8xf32>, vector<8x8xf32> -> vector<8x8xf32>
    %150 = arith.addf %149, %1 : vector<8x8xf32>
    %cst_146 = arith.constant dense<0xFF800000> : vector<8xf32>
    %151 = vector.multi_reduction <maximumf>, %150, %cst_146 [1] : vector<8x8xf32> to vector<8xf32>
    %152 = vector.shape_cast %151 : vector<8xf32> to vector<8x1xf32>
    %153 = vector.broadcast %152 : vector<8x1xf32> to vector<8x8xf32>
    %154 = arith.subf %150, %153 : vector<8x8xf32>
    %155 = math.exp %154 : vector<8x8xf32>
    %cst_147 = arith.constant dense<0.000000e+00> : vector<8xf32>
    %156 = vector.multi_reduction <add>, %155, %cst_147 [1] : vector<8x8xf32> to vector<8xf32>
    %157 = vector.shape_cast %156 : vector<8xf32> to vector<8x1xf32>
    %158 = tpu.reciprocal %157 : vector<8x1xf32> -> vector<8x1xf32>
    %159 = vector.broadcast %158 : vector<8x1xf32> to vector<8x8xf32>
    %160 = arith.mulf %155, %159 : vector<8x8xf32>
    %cst_148 = arith.constant dense<0.000000e+00> : vector<8x8xf32>
    %161 = tpu.matmul %160, %146, %cst_148 {dimension_numbers = #tpu.dot_dimension_numbers<[1], [0], [0], [1], [0, 0, 1, 1], [], []>} : vector<8x8xf32>, vector<8x8xf32>, vector<8x8xf32> -> vector<8x8xf32>
    %c0_149 = arith.constant 0 : index
    %c3_150 = arith.constant 3 : index
    %c0_151 = arith.constant 0 : index
    %c0_152 = arith.constant 0 : index
    %162 = vector.load %arg12[%c0_149, %c3_150, %c0_151, %c0_152] : memref<2x4x8x32xf32, #tpu.memory_space<vmem>>, vector<1x1x8x32xf32>
    %163 = vector.shape_cast %162 : vector<1x1x8x32xf32> to vector<8x32xf32>
    %cst_153 = arith.constant dense<0.000000e+00> : vector<8x32xf32>
    %164 = tpu.matmul %161, %163, %cst_153 {dimension_numbers = #tpu.dot_dimension_numbers<[1], [0], [0], [1], [0, 0, 1, 1], [], []>} : vector<8x8xf32>, vector<8x32xf32>, vector<8x32xf32> -> vector<8x32xf32>
    %165 = arith.addf %125, %164 : vector<8x32xf32>
    %c0_154 = arith.constant 0 : index
    %c0_155 = arith.constant 0 : index
    %c0_156 = arith.constant 0 : index
    %166 = vector.load %arg13[%c0_154, %c0_155, %c0_156] : memref<2x1x32xf32, #tpu.memory_space<vmem>>, vector<1x1x32xf32>
    %167 = vector.shape_cast %166 : vector<1x1x32xf32> to vector<1x32xf32>
    %168 = vector.broadcast %167 : vector<1x32xf32> to vector<8x32xf32>
    %169 = arith.addf %165, %168 : vector<8x32xf32>
    %170 = arith.addf %6, %169 : vector<8x32xf32>
    %c0_157 = arith.constant 0 : index
    %c0_158 = arith.constant 0 : index
    %c0_159 = arith.constant 0 : index
    %171 = vector.load %arg14[%c0_157, %c0_158, %c0_159] : memref<2x1x32xf32, #tpu.memory_space<vmem>>, vector<1x1x32xf32>
    %172 = vector.shape_cast %171 : vector<1x1x32xf32> to vector<1x32xf32>
    %c0_160 = arith.constant 0 : index
    %c0_161 = arith.constant 0 : index
    %c0_162 = arith.constant 0 : index
    %173 = vector.load %arg15[%c0_160, %c0_161, %c0_162] : memref<2x1x32xf32, #tpu.memory_space<vmem>>, vector<1x1x32xf32>
    %174 = vector.shape_cast %173 : vector<1x1x32xf32> to vector<1x32xf32>
    %cst_163 = arith.constant dense<0.000000e+00> : vector<8xf32>
    %175 = vector.multi_reduction <add>, %170, %cst_163 [1] : vector<8x32xf32> to vector<8xf32>
    %176 = vector.shape_cast %175 : vector<8xf32> to vector<8x1xf32>
    %cst_164 = arith.constant 3.200000e+01 : f32
    %177 = vector.broadcast %cst_164 : f32 to vector<8x1xf32>
    %178 = arith.divf %176, %177 : vector<8x1xf32>
    %179 = vector.broadcast %178 : vector<8x1xf32> to vector<8x32xf32>
    %180 = arith.subf %170, %179 : vector<8x32xf32>
    %181 = arith.mulf %180, %180 : vector<8x32xf32>
    %cst_165 = arith.constant dense<0.000000e+00> : vector<8xf32>
    %182 = vector.multi_reduction <add>, %181, %cst_165 [1] : vector<8x32xf32> to vector<8xf32>
    %183 = vector.shape_cast %182 : vector<8xf32> to vector<8x1xf32>
    %cst_166 = arith.constant 3.200000e+01 : f32
    %184 = vector.broadcast %cst_166 : f32 to vector<8x1xf32>
    %185 = arith.divf %183, %184 : vector<8x1xf32>
    %cst_167 = arith.constant 9.99999996E-13 : f32
    %186 = vector.broadcast %cst_167 : f32 to vector<8x1xf32>
    %187 = arith.addf %185, %186 : vector<8x1xf32>
    %188 = math.rsqrt %187 : vector<8x1xf32>
    %189 = vector.broadcast %178 : vector<8x1xf32> to vector<8x32xf32>
    %190 = arith.subf %170, %189 : vector<8x32xf32>
    %191 = vector.broadcast %188 : vector<8x1xf32> to vector<8x32xf32>
    %192 = arith.mulf %190, %191 : vector<8x32xf32>
    %193 = vector.broadcast %172 : vector<1x32xf32> to vector<8x32xf32>
    %194 = arith.mulf %192, %193 : vector<8x32xf32>
    %195 = vector.broadcast %174 : vector<1x32xf32> to vector<8x32xf32>
    %196 = arith.addf %194, %195 : vector<8x32xf32>
    %c0_168 = arith.constant 0 : index
    %c0_169 = arith.constant 0 : index
    %c0_170 = arith.constant 0 : index
    %197 = vector.load %arg16[%c0_168, %c0_169, %c0_170] : memref<2x32x64xf32, #tpu.memory_space<vmem>>, vector<1x32x64xf32>
    %198 = vector.shape_cast %197 : vector<1x32x64xf32> to vector<32x64xf32>
    %cst_171 = arith.constant dense<0.000000e+00> : vector<8x64xf32>
    %199 = tpu.matmul %196, %198, %cst_171 {dimension_numbers = #tpu.dot_dimension_numbers<[1], [0], [0], [1], [0, 0, 1, 1], [], []>} : vector<8x32xf32>, vector<32x64xf32>, vector<8x64xf32> -> vector<8x64xf32>
    %c0_172 = arith.constant 0 : index
    %c0_173 = arith.constant 0 : index
    %c0_174 = arith.constant 0 : index
    %200 = vector.load %arg17[%c0_172, %c0_173, %c0_174] : memref<2x1x64xf32, #tpu.memory_space<vmem>>, vector<1x1x64xf32>
    %201 = vector.shape_cast %200 : vector<1x1x64xf32> to vector<1x64xf32>
    %202 = vector.broadcast %201 : vector<1x64xf32> to vector<8x64xf32>
    %203 = arith.addf %199, %202 : vector<8x64xf32>
    %cst_175 = arith.constant 0.000000e+00 : f32
    %204 = vector.broadcast %cst_175 : f32 to vector<8x64xf32>
    %205 = arith.maximumf %203, %204 : vector<8x64xf32>
    %c0_176 = arith.constant 0 : index
    %c0_177 = arith.constant 0 : index
    %c0_178 = arith.constant 0 : index
    %206 = vector.load %arg18[%c0_176, %c0_177, %c0_178] : memref<2x64x32xf32, #tpu.memory_space<vmem>>, vector<1x64x32xf32>
    %207 = vector.shape_cast %206 : vector<1x64x32xf32> to vector<64x32xf32>
    %cst_179 = arith.constant dense<0.000000e+00> : vector<8x32xf32>
    %208 = tpu.matmul %205, %207, %cst_179 {dimension_numbers = #tpu.dot_dimension_numbers<[1], [0], [0], [1], [0, 0, 1, 1], [], []>} : vector<8x64xf32>, vector<64x32xf32>, vector<8x32xf32> -> vector<8x32xf32>
    %c0_180 = arith.constant 0 : index
    %c0_181 = arith.constant 0 : index
    %c0_182 = arith.constant 0 : index
    %209 = vector.load %arg19[%c0_180, %c0_181, %c0_182] : memref<2x1x32xf32, #tpu.memory_space<vmem>>, vector<1x1x32xf32>
    %210 = vector.shape_cast %209 : vector<1x1x32xf32> to vector<1x32xf32>
    %211 = vector.broadcast %210 : vector<1x32xf32> to vector<8x32xf32>
    %212 = arith.addf %208, %211 : vector<8x32xf32>
    %213 = arith.addf %196, %212 : vector<8x32xf32>
    %c0_183 = arith.constant 0 : index
    %c0_184 = arith.constant 0 : index
    %c0_185 = arith.constant 0 : index
    %214 = vector.load %arg20[%c0_183, %c0_184, %c0_185] : memref<2x1x32xf32, #tpu.memory_space<vmem>>, vector<1x1x32xf32>
    %215 = vector.shape_cast %214 : vector<1x1x32xf32> to vector<1x32xf32>
    %c0_186 = arith.constant 0 : index
    %c0_187 = arith.constant 0 : index
    %c0_188 = arith.constant 0 : index
    %216 = vector.load %arg21[%c0_186, %c0_187, %c0_188] : memref<2x1x32xf32, #tpu.memory_space<vmem>>, vector<1x1x32xf32>
    %217 = vector.shape_cast %216 : vector<1x1x32xf32> to vector<1x32xf32>
    %cst_189 = arith.constant dense<0.000000e+00> : vector<8xf32>
    %218 = vector.multi_reduction <add>, %213, %cst_189 [1] : vector<8x32xf32> to vector<8xf32>
    %219 = vector.shape_cast %218 : vector<8xf32> to vector<8x1xf32>
    %cst_190 = arith.constant 3.200000e+01 : f32
    %220 = vector.broadcast %cst_190 : f32 to vector<8x1xf32>
    %221 = arith.divf %219, %220 : vector<8x1xf32>
    %222 = vector.broadcast %221 : vector<8x1xf32> to vector<8x32xf32>
    %223 = arith.subf %213, %222 : vector<8x32xf32>
    %224 = arith.mulf %223, %223 : vector<8x32xf32>
    %cst_191 = arith.constant dense<0.000000e+00> : vector<8xf32>
    %225 = vector.multi_reduction <add>, %224, %cst_191 [1] : vector<8x32xf32> to vector<8xf32>
    %226 = vector.shape_cast %225 : vector<8xf32> to vector<8x1xf32>
    %cst_192 = arith.constant 3.200000e+01 : f32
    %227 = vector.broadcast %cst_192 : f32 to vector<8x1xf32>
    %228 = arith.divf %226, %227 : vector<8x1xf32>
    %cst_193 = arith.constant 9.99999996E-13 : f32
    %229 = vector.broadcast %cst_193 : f32 to vector<8x1xf32>
    %230 = arith.addf %228, %229 : vector<8x1xf32>
    %231 = math.rsqrt %230 : vector<8x1xf32>
    %232 = vector.broadcast %221 : vector<8x1xf32> to vector<8x32xf32>
    %233 = arith.subf %213, %232 : vector<8x32xf32>
    %234 = vector.broadcast %231 : vector<8x1xf32> to vector<8x32xf32>
    %235 = arith.mulf %233, %234 : vector<8x32xf32>
    %236 = vector.broadcast %215 : vector<1x32xf32> to vector<8x32xf32>
    %237 = arith.mulf %235, %236 : vector<8x32xf32>
    %238 = vector.broadcast %217 : vector<1x32xf32> to vector<8x32xf32>
    %239 = arith.addf %237, %238 : vector<8x32xf32>
    %c1_194 = arith.constant 1 : index
    %c0_195 = arith.constant 0 : index
    %c0_196 = arith.constant 0 : index
    %c0_197 = arith.constant 0 : index
    %240 = vector.load %arg6[%c1_194, %c0_195, %c0_196, %c0_197] : memref<2x4x32x8xf32, #tpu.memory_space<vmem>>, vector<1x1x32x8xf32>
    %241 = vector.shape_cast %240 : vector<1x1x32x8xf32> to vector<32x8xf32>
    %cst_198 = arith.constant dense<0.000000e+00> : vector<8x8xf32>
    %242 = tpu.matmul %239, %241, %cst_198 {dimension_numbers = #tpu.dot_dimension_numbers<[1], [0], [0], [1], [0, 0, 1, 1], [], []>} : vector<8x32xf32>, vector<32x8xf32>, vector<8x8xf32> -> vector<8x8xf32>
    %c1_199 = arith.constant 1 : index
    %c0_200 = arith.constant 0 : index
    %c0_201 = arith.constant 0 : index
    %c0_202 = arith.constant 0 : index
    %243 = vector.load %arg7[%c1_199, %c0_200, %c0_201, %c0_202] : memref<2x4x1x8xf32, #tpu.memory_space<vmem>>, vector<1x1x1x8xf32>
    %244 = vector.shape_cast %243 : vector<1x1x1x8xf32> to vector<1x8xf32>
    %245 = vector.broadcast %244 : vector<1x8xf32> to vector<8x8xf32>
    %246 = arith.addf %242, %245 : vector<8x8xf32>
    %c1_203 = arith.constant 1 : index
    %c0_204 = arith.constant 0 : index
    %c0_205 = arith.constant 0 : index
    %c0_206 = arith.constant 0 : index
    %247 = vector.load %arg8[%c1_203, %c0_204, %c0_205, %c0_206] : memref<2x4x32x8xf32, #tpu.memory_space<vmem>>, vector<1x1x32x8xf32>
    %248 = vector.shape_cast %247 : vector<1x1x32x8xf32> to vector<32x8xf32>
    %cst_207 = arith.constant dense<0.000000e+00> : vector<8x8xf32>
    %249 = tpu.matmul %239, %248, %cst_207 {dimension_numbers = #tpu.dot_dimension_numbers<[1], [0], [0], [1], [0, 0, 1, 1], [], []>} : vector<8x32xf32>, vector<32x8xf32>, vector<8x8xf32> -> vector<8x8xf32>
    %c1_208 = arith.constant 1 : index
    %c0_209 = arith.constant 0 : index
    %c0_210 = arith.constant 0 : index
    %c0_211 = arith.constant 0 : index
    %250 = vector.load %arg9[%c1_208, %c0_209, %c0_210, %c0_211] : memref<2x4x1x8xf32, #tpu.memory_space<vmem>>, vector<1x1x1x8xf32>
    %251 = vector.shape_cast %250 : vector<1x1x1x8xf32> to vector<1x8xf32>
    %252 = vector.broadcast %251 : vector<1x8xf32> to vector<8x8xf32>
    %253 = arith.addf %249, %252 : vector<8x8xf32>
    %c1_212 = arith.constant 1 : index
    %c0_213 = arith.constant 0 : index
    %c0_214 = arith.constant 0 : index
    %c0_215 = arith.constant 0 : index
    %254 = vector.load %arg10[%c1_212, %c0_213, %c0_214, %c0_215] : memref<2x4x32x8xf32, #tpu.memory_space<vmem>>, vector<1x1x32x8xf32>
    %255 = vector.shape_cast %254 : vector<1x1x32x8xf32> to vector<32x8xf32>
    %cst_216 = arith.constant dense<0.000000e+00> : vector<8x8xf32>
    %256 = tpu.matmul %239, %255, %cst_216 {dimension_numbers = #tpu.dot_dimension_numbers<[1], [0], [0], [1], [0, 0, 1, 1], [], []>} : vector<8x32xf32>, vector<32x8xf32>, vector<8x8xf32> -> vector<8x8xf32>
    %c1_217 = arith.constant 1 : index
    %c0_218 = arith.constant 0 : index
    %c0_219 = arith.constant 0 : index
    %c0_220 = arith.constant 0 : index
    %257 = vector.load %arg11[%c1_217, %c0_218, %c0_219, %c0_220] : memref<2x4x1x8xf32, #tpu.memory_space<vmem>>, vector<1x1x1x8xf32>
    %258 = vector.shape_cast %257 : vector<1x1x1x8xf32> to vector<1x8xf32>
    %259 = vector.broadcast %258 : vector<1x8xf32> to vector<8x8xf32>
    %260 = arith.addf %256, %259 : vector<8x8xf32>
    %cst_221 = arith.constant 0.353553385 : f32
    %261 = vector.broadcast %cst_221 : f32 to vector<8x8xf32>
    %262 = arith.mulf %246, %261 : vector<8x8xf32>
    %cst_222 = arith.constant dense<0.000000e+00> : vector<8x8xf32>
    %263 = tpu.matmul %262, %253, %cst_222 {dimension_numbers = #tpu.dot_dimension_numbers<[1], [1], [0], [0], [0, 0, 1, 0], [], []>} : vector<8x8xf32>, vector<8x8xf32>, vector<8x8xf32> -> vector<8x8xf32>
    %264 = arith.addf %263, %1 : vector<8x8xf32>
    %cst_223 = arith.constant dense<0xFF800000> : vector<8xf32>
    %265 = vector.multi_reduction <maximumf>, %264, %cst_223 [1] : vector<8x8xf32> to vector<8xf32>
    %266 = vector.shape_cast %265 : vector<8xf32> to vector<8x1xf32>
    %267 = vector.broadcast %266 : vector<8x1xf32> to vector<8x8xf32>
    %268 = arith.subf %264, %267 : vector<8x8xf32>
    %269 = math.exp %268 : vector<8x8xf32>
    %cst_224 = arith.constant dense<0.000000e+00> : vector<8xf32>
    %270 = vector.multi_reduction <add>, %269, %cst_224 [1] : vector<8x8xf32> to vector<8xf32>
    %271 = vector.shape_cast %270 : vector<8xf32> to vector<8x1xf32>
    %272 = tpu.reciprocal %271 : vector<8x1xf32> -> vector<8x1xf32>
    %273 = vector.broadcast %272 : vector<8x1xf32> to vector<8x8xf32>
    %274 = arith.mulf %269, %273 : vector<8x8xf32>
    %cst_225 = arith.constant dense<0.000000e+00> : vector<8x8xf32>
    %275 = tpu.matmul %274, %260, %cst_225 {dimension_numbers = #tpu.dot_dimension_numbers<[1], [0], [0], [1], [0, 0, 1, 1], [], []>} : vector<8x8xf32>, vector<8x8xf32>, vector<8x8xf32> -> vector<8x8xf32>
    %c1_226 = arith.constant 1 : index
    %c0_227 = arith.constant 0 : index
    %c0_228 = arith.constant 0 : index
    %c0_229 = arith.constant 0 : index
    %276 = vector.load %arg12[%c1_226, %c0_227, %c0_228, %c0_229] : memref<2x4x8x32xf32, #tpu.memory_space<vmem>>, vector<1x1x8x32xf32>
    %277 = vector.shape_cast %276 : vector<1x1x8x32xf32> to vector<8x32xf32>
    %cst_230 = arith.constant dense<0.000000e+00> : vector<8x32xf32>
    %278 = tpu.matmul %275, %277, %cst_230 {dimension_numbers = #tpu.dot_dimension_numbers<[1], [0], [0], [1], [0, 0, 1, 1], [], []>} : vector<8x8xf32>, vector<8x32xf32>, vector<8x32xf32> -> vector<8x32xf32>
    %c1_231 = arith.constant 1 : index
    %c1_232 = arith.constant 1 : index
    %c0_233 = arith.constant 0 : index
    %c0_234 = arith.constant 0 : index
    %279 = vector.load %arg6[%c1_231, %c1_232, %c0_233, %c0_234] : memref<2x4x32x8xf32, #tpu.memory_space<vmem>>, vector<1x1x32x8xf32>
    %280 = vector.shape_cast %279 : vector<1x1x32x8xf32> to vector<32x8xf32>
    %cst_235 = arith.constant dense<0.000000e+00> : vector<8x8xf32>
    %281 = tpu.matmul %239, %280, %cst_235 {dimension_numbers = #tpu.dot_dimension_numbers<[1], [0], [0], [1], [0, 0, 1, 1], [], []>} : vector<8x32xf32>, vector<32x8xf32>, vector<8x8xf32> -> vector<8x8xf32>
    %c1_236 = arith.constant 1 : index
    %c1_237 = arith.constant 1 : index
    %c0_238 = arith.constant 0 : index
    %c0_239 = arith.constant 0 : index
    %282 = vector.load %arg7[%c1_236, %c1_237, %c0_238, %c0_239] : memref<2x4x1x8xf32, #tpu.memory_space<vmem>>, vector<1x1x1x8xf32>
    %283 = vector.shape_cast %282 : vector<1x1x1x8xf32> to vector<1x8xf32>
    %284 = vector.broadcast %283 : vector<1x8xf32> to vector<8x8xf32>
    %285 = arith.addf %281, %284 : vector<8x8xf32>
    %c1_240 = arith.constant 1 : index
    %c1_241 = arith.constant 1 : index
    %c0_242 = arith.constant 0 : index
    %c0_243 = arith.constant 0 : index
    %286 = vector.load %arg8[%c1_240, %c1_241, %c0_242, %c0_243] : memref<2x4x32x8xf32, #tpu.memory_space<vmem>>, vector<1x1x32x8xf32>
    %287 = vector.shape_cast %286 : vector<1x1x32x8xf32> to vector<32x8xf32>
    %cst_244 = arith.constant dense<0.000000e+00> : vector<8x8xf32>
    %288 = tpu.matmul %239, %287, %cst_244 {dimension_numbers = #tpu.dot_dimension_numbers<[1], [0], [0], [1], [0, 0, 1, 1], [], []>} : vector<8x32xf32>, vector<32x8xf32>, vector<8x8xf32> -> vector<8x8xf32>
    %c1_245 = arith.constant 1 : index
    %c1_246 = arith.constant 1 : index
    %c0_247 = arith.constant 0 : index
    %c0_248 = arith.constant 0 : index
    %289 = vector.load %arg9[%c1_245, %c1_246, %c0_247, %c0_248] : memref<2x4x1x8xf32, #tpu.memory_space<vmem>>, vector<1x1x1x8xf32>
    %290 = vector.shape_cast %289 : vector<1x1x1x8xf32> to vector<1x8xf32>
    %291 = vector.broadcast %290 : vector<1x8xf32> to vector<8x8xf32>
    %292 = arith.addf %288, %291 : vector<8x8xf32>
    %c1_249 = arith.constant 1 : index
    %c1_250 = arith.constant 1 : index
    %c0_251 = arith.constant 0 : index
    %c0_252 = arith.constant 0 : index
    %293 = vector.load %arg10[%c1_249, %c1_250, %c0_251, %c0_252] : memref<2x4x32x8xf32, #tpu.memory_space<vmem>>, vector<1x1x32x8xf32>
    %294 = vector.shape_cast %293 : vector<1x1x32x8xf32> to vector<32x8xf32>
    %cst_253 = arith.constant dense<0.000000e+00> : vector<8x8xf32>
    %295 = tpu.matmul %239, %294, %cst_253 {dimension_numbers = #tpu.dot_dimension_numbers<[1], [0], [0], [1], [0, 0, 1, 1], [], []>} : vector<8x32xf32>, vector<32x8xf32>, vector<8x8xf32> -> vector<8x8xf32>
    %c1_254 = arith.constant 1 : index
    %c1_255 = arith.constant 1 : index
    %c0_256 = arith.constant 0 : index
    %c0_257 = arith.constant 0 : index
    %296 = vector.load %arg11[%c1_254, %c1_255, %c0_256, %c0_257] : memref<2x4x1x8xf32, #tpu.memory_space<vmem>>, vector<1x1x1x8xf32>
    %297 = vector.shape_cast %296 : vector<1x1x1x8xf32> to vector<1x8xf32>
    %298 = vector.broadcast %297 : vector<1x8xf32> to vector<8x8xf32>
    %299 = arith.addf %295, %298 : vector<8x8xf32>
    %cst_258 = arith.constant 0.353553385 : f32
    %300 = vector.broadcast %cst_258 : f32 to vector<8x8xf32>
    %301 = arith.mulf %285, %300 : vector<8x8xf32>
    %cst_259 = arith.constant dense<0.000000e+00> : vector<8x8xf32>
    %302 = tpu.matmul %301, %292, %cst_259 {dimension_numbers = #tpu.dot_dimension_numbers<[1], [1], [0], [0], [0, 0, 1, 0], [], []>} : vector<8x8xf32>, vector<8x8xf32>, vector<8x8xf32> -> vector<8x8xf32>
    %303 = arith.addf %302, %1 : vector<8x8xf32>
    %cst_260 = arith.constant dense<0xFF800000> : vector<8xf32>
    %304 = vector.multi_reduction <maximumf>, %303, %cst_260 [1] : vector<8x8xf32> to vector<8xf32>
    %305 = vector.shape_cast %304 : vector<8xf32> to vector<8x1xf32>
    %306 = vector.broadcast %305 : vector<8x1xf32> to vector<8x8xf32>
    %307 = arith.subf %303, %306 : vector<8x8xf32>
    %308 = math.exp %307 : vector<8x8xf32>
    %cst_261 = arith.constant dense<0.000000e+00> : vector<8xf32>
    %309 = vector.multi_reduction <add>, %308, %cst_261 [1] : vector<8x8xf32> to vector<8xf32>
    %310 = vector.shape_cast %309 : vector<8xf32> to vector<8x1xf32>
    %311 = tpu.reciprocal %310 : vector<8x1xf32> -> vector<8x1xf32>
    %312 = vector.broadcast %311 : vector<8x1xf32> to vector<8x8xf32>
    %313 = arith.mulf %308, %312 : vector<8x8xf32>
    %cst_262 = arith.constant dense<0.000000e+00> : vector<8x8xf32>
    %314 = tpu.matmul %313, %299, %cst_262 {dimension_numbers = #tpu.dot_dimension_numbers<[1], [0], [0], [1], [0, 0, 1, 1], [], []>} : vector<8x8xf32>, vector<8x8xf32>, vector<8x8xf32> -> vector<8x8xf32>
    %c1_263 = arith.constant 1 : index
    %c1_264 = arith.constant 1 : index
    %c0_265 = arith.constant 0 : index
    %c0_266 = arith.constant 0 : index
    %315 = vector.load %arg12[%c1_263, %c1_264, %c0_265, %c0_266] : memref<2x4x8x32xf32, #tpu.memory_space<vmem>>, vector<1x1x8x32xf32>
    %316 = vector.shape_cast %315 : vector<1x1x8x32xf32> to vector<8x32xf32>
    %cst_267 = arith.constant dense<0.000000e+00> : vector<8x32xf32>
    %317 = tpu.matmul %314, %316, %cst_267 {dimension_numbers = #tpu.dot_dimension_numbers<[1], [0], [0], [1], [0, 0, 1, 1], [], []>} : vector<8x8xf32>, vector<8x32xf32>, vector<8x32xf32> -> vector<8x32xf32>
    %318 = arith.addf %278, %317 : vector<8x32xf32>
    %c1_268 = arith.constant 1 : index
    %c2_269 = arith.constant 2 : index
    %c0_270 = arith.constant 0 : index
    %c0_271 = arith.constant 0 : index
    %319 = vector.load %arg6[%c1_268, %c2_269, %c0_270, %c0_271] : memref<2x4x32x8xf32, #tpu.memory_space<vmem>>, vector<1x1x32x8xf32>
    %320 = vector.shape_cast %319 : vector<1x1x32x8xf32> to vector<32x8xf32>
    %cst_272 = arith.constant dense<0.000000e+00> : vector<8x8xf32>
    %321 = tpu.matmul %239, %320, %cst_272 {dimension_numbers = #tpu.dot_dimension_numbers<[1], [0], [0], [1], [0, 0, 1, 1], [], []>} : vector<8x32xf32>, vector<32x8xf32>, vector<8x8xf32> -> vector<8x8xf32>
    %c1_273 = arith.constant 1 : index
    %c2_274 = arith.constant 2 : index
    %c0_275 = arith.constant 0 : index
    %c0_276 = arith.constant 0 : index
    %322 = vector.load %arg7[%c1_273, %c2_274, %c0_275, %c0_276] : memref<2x4x1x8xf32, #tpu.memory_space<vmem>>, vector<1x1x1x8xf32>
    %323 = vector.shape_cast %322 : vector<1x1x1x8xf32> to vector<1x8xf32>
    %324 = vector.broadcast %323 : vector<1x8xf32> to vector<8x8xf32>
    %325 = arith.addf %321, %324 : vector<8x8xf32>
    %c1_277 = arith.constant 1 : index
    %c2_278 = arith.constant 2 : index
    %c0_279 = arith.constant 0 : index
    %c0_280 = arith.constant 0 : index
    %326 = vector.load %arg8[%c1_277, %c2_278, %c0_279, %c0_280] : memref<2x4x32x8xf32, #tpu.memory_space<vmem>>, vector<1x1x32x8xf32>
    %327 = vector.shape_cast %326 : vector<1x1x32x8xf32> to vector<32x8xf32>
    %cst_281 = arith.constant dense<0.000000e+00> : vector<8x8xf32>
    %328 = tpu.matmul %239, %327, %cst_281 {dimension_numbers = #tpu.dot_dimension_numbers<[1], [0], [0], [1], [0, 0, 1, 1], [], []>} : vector<8x32xf32>, vector<32x8xf32>, vector<8x8xf32> -> vector<8x8xf32>
    %c1_282 = arith.constant 1 : index
    %c2_283 = arith.constant 2 : index
    %c0_284 = arith.constant 0 : index
    %c0_285 = arith.constant 0 : index
    %329 = vector.load %arg9[%c1_282, %c2_283, %c0_284, %c0_285] : memref<2x4x1x8xf32, #tpu.memory_space<vmem>>, vector<1x1x1x8xf32>
    %330 = vector.shape_cast %329 : vector<1x1x1x8xf32> to vector<1x8xf32>
    %331 = vector.broadcast %330 : vector<1x8xf32> to vector<8x8xf32>
    %332 = arith.addf %328, %331 : vector<8x8xf32>
    %c1_286 = arith.constant 1 : index
    %c2_287 = arith.constant 2 : index
    %c0_288 = arith.constant 0 : index
    %c0_289 = arith.constant 0 : index
    %333 = vector.load %arg10[%c1_286, %c2_287, %c0_288, %c0_289] : memref<2x4x32x8xf32, #tpu.memory_space<vmem>>, vector<1x1x32x8xf32>
    %334 = vector.shape_cast %333 : vector<1x1x32x8xf32> to vector<32x8xf32>
    %cst_290 = arith.constant dense<0.000000e+00> : vector<8x8xf32>
    %335 = tpu.matmul %239, %334, %cst_290 {dimension_numbers = #tpu.dot_dimension_numbers<[1], [0], [0], [1], [0, 0, 1, 1], [], []>} : vector<8x32xf32>, vector<32x8xf32>, vector<8x8xf32> -> vector<8x8xf32>
    %c1_291 = arith.constant 1 : index
    %c2_292 = arith.constant 2 : index
    %c0_293 = arith.constant 0 : index
    %c0_294 = arith.constant 0 : index
    %336 = vector.load %arg11[%c1_291, %c2_292, %c0_293, %c0_294] : memref<2x4x1x8xf32, #tpu.memory_space<vmem>>, vector<1x1x1x8xf32>
    %337 = vector.shape_cast %336 : vector<1x1x1x8xf32> to vector<1x8xf32>
    %338 = vector.broadcast %337 : vector<1x8xf32> to vector<8x8xf32>
    %339 = arith.addf %335, %338 : vector<8x8xf32>
    %cst_295 = arith.constant 0.353553385 : f32
    %340 = vector.broadcast %cst_295 : f32 to vector<8x8xf32>
    %341 = arith.mulf %325, %340 : vector<8x8xf32>
    %cst_296 = arith.constant dense<0.000000e+00> : vector<8x8xf32>
    %342 = tpu.matmul %341, %332, %cst_296 {dimension_numbers = #tpu.dot_dimension_numbers<[1], [1], [0], [0], [0, 0, 1, 0], [], []>} : vector<8x8xf32>, vector<8x8xf32>, vector<8x8xf32> -> vector<8x8xf32>
    %343 = arith.addf %342, %1 : vector<8x8xf32>
    %cst_297 = arith.constant dense<0xFF800000> : vector<8xf32>
    %344 = vector.multi_reduction <maximumf>, %343, %cst_297 [1] : vector<8x8xf32> to vector<8xf32>
    %345 = vector.shape_cast %344 : vector<8xf32> to vector<8x1xf32>
    %346 = vector.broadcast %345 : vector<8x1xf32> to vector<8x8xf32>
    %347 = arith.subf %343, %346 : vector<8x8xf32>
    %348 = math.exp %347 : vector<8x8xf32>
    %cst_298 = arith.constant dense<0.000000e+00> : vector<8xf32>
    %349 = vector.multi_reduction <add>, %348, %cst_298 [1] : vector<8x8xf32> to vector<8xf32>
    %350 = vector.shape_cast %349 : vector<8xf32> to vector<8x1xf32>
    %351 = tpu.reciprocal %350 : vector<8x1xf32> -> vector<8x1xf32>
    %352 = vector.broadcast %351 : vector<8x1xf32> to vector<8x8xf32>
    %353 = arith.mulf %348, %352 : vector<8x8xf32>
    %cst_299 = arith.constant dense<0.000000e+00> : vector<8x8xf32>
    %354 = tpu.matmul %353, %339, %cst_299 {dimension_numbers = #tpu.dot_dimension_numbers<[1], [0], [0], [1], [0, 0, 1, 1], [], []>} : vector<8x8xf32>, vector<8x8xf32>, vector<8x8xf32> -> vector<8x8xf32>
    %c1_300 = arith.constant 1 : index
    %c2_301 = arith.constant 2 : index
    %c0_302 = arith.constant 0 : index
    %c0_303 = arith.constant 0 : index
    %355 = vector.load %arg12[%c1_300, %c2_301, %c0_302, %c0_303] : memref<2x4x8x32xf32, #tpu.memory_space<vmem>>, vector<1x1x8x32xf32>
    %356 = vector.shape_cast %355 : vector<1x1x8x32xf32> to vector<8x32xf32>
    %cst_304 = arith.constant dense<0.000000e+00> : vector<8x32xf32>
    %357 = tpu.matmul %354, %356, %cst_304 {dimension_numbers = #tpu.dot_dimension_numbers<[1], [0], [0], [1], [0, 0, 1, 1], [], []>} : vector<8x8xf32>, vector<8x32xf32>, vector<8x32xf32> -> vector<8x32xf32>
    %358 = arith.addf %318, %357 : vector<8x32xf32>
    %c1_305 = arith.constant 1 : index
    %c3_306 = arith.constant 3 : index
    %c0_307 = arith.constant 0 : index
    %c0_308 = arith.constant 0 : index
    %359 = vector.load %arg6[%c1_305, %c3_306, %c0_307, %c0_308] : memref<2x4x32x8xf32, #tpu.memory_space<vmem>>, vector<1x1x32x8xf32>
    %360 = vector.shape_cast %359 : vector<1x1x32x8xf32> to vector<32x8xf32>
    %cst_309 = arith.constant dense<0.000000e+00> : vector<8x8xf32>
    %361 = tpu.matmul %239, %360, %cst_309 {dimension_numbers = #tpu.dot_dimension_numbers<[1], [0], [0], [1], [0, 0, 1, 1], [], []>} : vector<8x32xf32>, vector<32x8xf32>, vector<8x8xf32> -> vector<8x8xf32>
    %c1_310 = arith.constant 1 : index
    %c3_311 = arith.constant 3 : index
    %c0_312 = arith.constant 0 : index
    %c0_313 = arith.constant 0 : index
    %362 = vector.load %arg7[%c1_310, %c3_311, %c0_312, %c0_313] : memref<2x4x1x8xf32, #tpu.memory_space<vmem>>, vector<1x1x1x8xf32>
    %363 = vector.shape_cast %362 : vector<1x1x1x8xf32> to vector<1x8xf32>
    %364 = vector.broadcast %363 : vector<1x8xf32> to vector<8x8xf32>
    %365 = arith.addf %361, %364 : vector<8x8xf32>
    %c1_314 = arith.constant 1 : index
    %c3_315 = arith.constant 3 : index
    %c0_316 = arith.constant 0 : index
    %c0_317 = arith.constant 0 : index
    %366 = vector.load %arg8[%c1_314, %c3_315, %c0_316, %c0_317] : memref<2x4x32x8xf32, #tpu.memory_space<vmem>>, vector<1x1x32x8xf32>
    %367 = vector.shape_cast %366 : vector<1x1x32x8xf32> to vector<32x8xf32>
    %cst_318 = arith.constant dense<0.000000e+00> : vector<8x8xf32>
    %368 = tpu.matmul %239, %367, %cst_318 {dimension_numbers = #tpu.dot_dimension_numbers<[1], [0], [0], [1], [0, 0, 1, 1], [], []>} : vector<8x32xf32>, vector<32x8xf32>, vector<8x8xf32> -> vector<8x8xf32>
    %c1_319 = arith.constant 1 : index
    %c3_320 = arith.constant 3 : index
    %c0_321 = arith.constant 0 : index
    %c0_322 = arith.constant 0 : index
    %369 = vector.load %arg9[%c1_319, %c3_320, %c0_321, %c0_322] : memref<2x4x1x8xf32, #tpu.memory_space<vmem>>, vector<1x1x1x8xf32>
    %370 = vector.shape_cast %369 : vector<1x1x1x8xf32> to vector<1x8xf32>
    %371 = vector.broadcast %370 : vector<1x8xf32> to vector<8x8xf32>
    %372 = arith.addf %368, %371 : vector<8x8xf32>
    %c1_323 = arith.constant 1 : index
    %c3_324 = arith.constant 3 : index
    %c0_325 = arith.constant 0 : index
    %c0_326 = arith.constant 0 : index
    %373 = vector.load %arg10[%c1_323, %c3_324, %c0_325, %c0_326] : memref<2x4x32x8xf32, #tpu.memory_space<vmem>>, vector<1x1x32x8xf32>
    %374 = vector.shape_cast %373 : vector<1x1x32x8xf32> to vector<32x8xf32>
    %cst_327 = arith.constant dense<0.000000e+00> : vector<8x8xf32>
    %375 = tpu.matmul %239, %374, %cst_327 {dimension_numbers = #tpu.dot_dimension_numbers<[1], [0], [0], [1], [0, 0, 1, 1], [], []>} : vector<8x32xf32>, vector<32x8xf32>, vector<8x8xf32> -> vector<8x8xf32>
    %c1_328 = arith.constant 1 : index
    %c3_329 = arith.constant 3 : index
    %c0_330 = arith.constant 0 : index
    %c0_331 = arith.constant 0 : index
    %376 = vector.load %arg11[%c1_328, %c3_329, %c0_330, %c0_331] : memref<2x4x1x8xf32, #tpu.memory_space<vmem>>, vector<1x1x1x8xf32>
    %377 = vector.shape_cast %376 : vector<1x1x1x8xf32> to vector<1x8xf32>
    %378 = vector.broadcast %377 : vector<1x8xf32> to vector<8x8xf32>
    %379 = arith.addf %375, %378 : vector<8x8xf32>
    %cst_332 = arith.constant 0.353553385 : f32
    %380 = vector.broadcast %cst_332 : f32 to vector<8x8xf32>
    %381 = arith.mulf %365, %380 : vector<8x8xf32>
    %cst_333 = arith.constant dense<0.000000e+00> : vector<8x8xf32>
    %382 = tpu.matmul %381, %372, %cst_333 {dimension_numbers = #tpu.dot_dimension_numbers<[1], [1], [0], [0], [0, 0, 1, 0], [], []>} : vector<8x8xf32>, vector<8x8xf32>, vector<8x8xf32> -> vector<8x8xf32>
    %383 = arith.addf %382, %1 : vector<8x8xf32>
    %cst_334 = arith.constant dense<0xFF800000> : vector<8xf32>
    %384 = vector.multi_reduction <maximumf>, %383, %cst_334 [1] : vector<8x8xf32> to vector<8xf32>
    %385 = vector.shape_cast %384 : vector<8xf32> to vector<8x1xf32>
    %386 = vector.broadcast %385 : vector<8x1xf32> to vector<8x8xf32>
    %387 = arith.subf %383, %386 : vector<8x8xf32>
    %388 = math.exp %387 : vector<8x8xf32>
    %cst_335 = arith.constant dense<0.000000e+00> : vector<8xf32>
    %389 = vector.multi_reduction <add>, %388, %cst_335 [1] : vector<8x8xf32> to vector<8xf32>
    %390 = vector.shape_cast %389 : vector<8xf32> to vector<8x1xf32>
    %391 = tpu.reciprocal %390 : vector<8x1xf32> -> vector<8x1xf32>
    %392 = vector.broadcast %391 : vector<8x1xf32> to vector<8x8xf32>
    %393 = arith.mulf %388, %392 : vector<8x8xf32>
    %cst_336 = arith.constant dense<0.000000e+00> : vector<8x8xf32>
    %394 = tpu.matmul %393, %379, %cst_336 {dimension_numbers = #tpu.dot_dimension_numbers<[1], [0], [0], [1], [0, 0, 1, 1], [], []>} : vector<8x8xf32>, vector<8x8xf32>, vector<8x8xf32> -> vector<8x8xf32>
    %c1_337 = arith.constant 1 : index
    %c3_338 = arith.constant 3 : index
    %c0_339 = arith.constant 0 : index
    %c0_340 = arith.constant 0 : index
    %395 = vector.load %arg12[%c1_337, %c3_338, %c0_339, %c0_340] : memref<2x4x8x32xf32, #tpu.memory_space<vmem>>, vector<1x1x8x32xf32>
    %396 = vector.shape_cast %395 : vector<1x1x8x32xf32> to vector<8x32xf32>
    %cst_341 = arith.constant dense<0.000000e+00> : vector<8x32xf32>
    %397 = tpu.matmul %394, %396, %cst_341 {dimension_numbers = #tpu.dot_dimension_numbers<[1], [0], [0], [1], [0, 0, 1, 1], [], []>} : vector<8x8xf32>, vector<8x32xf32>, vector<8x32xf32> -> vector<8x32xf32>
    %398 = arith.addf %358, %397 : vector<8x32xf32>
    %c1_342 = arith.constant 1 : index
    %c0_343 = arith.constant 0 : index
    %c0_344 = arith.constant 0 : index
    %399 = vector.load %arg13[%c1_342, %c0_343, %c0_344] : memref<2x1x32xf32, #tpu.memory_space<vmem>>, vector<1x1x32xf32>
    %400 = vector.shape_cast %399 : vector<1x1x32xf32> to vector<1x32xf32>
    %401 = vector.broadcast %400 : vector<1x32xf32> to vector<8x32xf32>
    %402 = arith.addf %398, %401 : vector<8x32xf32>
    %403 = arith.addf %239, %402 : vector<8x32xf32>
    %c1_345 = arith.constant 1 : index
    %c0_346 = arith.constant 0 : index
    %c0_347 = arith.constant 0 : index
    %404 = vector.load %arg14[%c1_345, %c0_346, %c0_347] : memref<2x1x32xf32, #tpu.memory_space<vmem>>, vector<1x1x32xf32>
    %405 = vector.shape_cast %404 : vector<1x1x32xf32> to vector<1x32xf32>
    %c1_348 = arith.constant 1 : index
    %c0_349 = arith.constant 0 : index
    %c0_350 = arith.constant 0 : index
    %406 = vector.load %arg15[%c1_348, %c0_349, %c0_350] : memref<2x1x32xf32, #tpu.memory_space<vmem>>, vector<1x1x32xf32>
    %407 = vector.shape_cast %406 : vector<1x1x32xf32> to vector<1x32xf32>
    %cst_351 = arith.constant dense<0.000000e+00> : vector<8xf32>
    %408 = vector.multi_reduction <add>, %403, %cst_351 [1] : vector<8x32xf32> to vector<8xf32>
    %409 = vector.shape_cast %408 : vector<8xf32> to vector<8x1xf32>
    %cst_352 = arith.constant 3.200000e+01 : f32
    %410 = vector.broadcast %cst_352 : f32 to vector<8x1xf32>
    %411 = arith.divf %409, %410 : vector<8x1xf32>
    %412 = vector.broadcast %411 : vector<8x1xf32> to vector<8x32xf32>
    %413 = arith.subf %403, %412 : vector<8x32xf32>
    %414 = arith.mulf %413, %413 : vector<8x32xf32>
    %cst_353 = arith.constant dense<0.000000e+00> : vector<8xf32>
    %415 = vector.multi_reduction <add>, %414, %cst_353 [1] : vector<8x32xf32> to vector<8xf32>
    %416 = vector.shape_cast %415 : vector<8xf32> to vector<8x1xf32>
    %cst_354 = arith.constant 3.200000e+01 : f32
    %417 = vector.broadcast %cst_354 : f32 to vector<8x1xf32>
    %418 = arith.divf %416, %417 : vector<8x1xf32>
    %cst_355 = arith.constant 9.99999996E-13 : f32
    %419 = vector.broadcast %cst_355 : f32 to vector<8x1xf32>
    %420 = arith.addf %418, %419 : vector<8x1xf32>
    %421 = math.rsqrt %420 : vector<8x1xf32>
    %422 = vector.broadcast %411 : vector<8x1xf32> to vector<8x32xf32>
    %423 = arith.subf %403, %422 : vector<8x32xf32>
    %424 = vector.broadcast %421 : vector<8x1xf32> to vector<8x32xf32>
    %425 = arith.mulf %423, %424 : vector<8x32xf32>
    %426 = vector.broadcast %405 : vector<1x32xf32> to vector<8x32xf32>
    %427 = arith.mulf %425, %426 : vector<8x32xf32>
    %428 = vector.broadcast %407 : vector<1x32xf32> to vector<8x32xf32>
    %429 = arith.addf %427, %428 : vector<8x32xf32>
    %c1_356 = arith.constant 1 : index
    %c0_357 = arith.constant 0 : index
    %c0_358 = arith.constant 0 : index
    %430 = vector.load %arg16[%c1_356, %c0_357, %c0_358] : memref<2x32x64xf32, #tpu.memory_space<vmem>>, vector<1x32x64xf32>
    %431 = vector.shape_cast %430 : vector<1x32x64xf32> to vector<32x64xf32>
    %cst_359 = arith.constant dense<0.000000e+00> : vector<8x64xf32>
    %432 = tpu.matmul %429, %431, %cst_359 {dimension_numbers = #tpu.dot_dimension_numbers<[1], [0], [0], [1], [0, 0, 1, 1], [], []>} : vector<8x32xf32>, vector<32x64xf32>, vector<8x64xf32> -> vector<8x64xf32>
    %c1_360 = arith.constant 1 : index
    %c0_361 = arith.constant 0 : index
    %c0_362 = arith.constant 0 : index
    %433 = vector.load %arg17[%c1_360, %c0_361, %c0_362] : memref<2x1x64xf32, #tpu.memory_space<vmem>>, vector<1x1x64xf32>
    %434 = vector.shape_cast %433 : vector<1x1x64xf32> to vector<1x64xf32>
    %435 = vector.broadcast %434 : vector<1x64xf32> to vector<8x64xf32>
    %436 = arith.addf %432, %435 : vector<8x64xf32>
    %cst_363 = arith.constant 0.000000e+00 : f32
    %437 = vector.broadcast %cst_363 : f32 to vector<8x64xf32>
    %438 = arith.maximumf %436, %437 : vector<8x64xf32>
    %c1_364 = arith.constant 1 : index
    %c0_365 = arith.constant 0 : index
    %c0_366 = arith.constant 0 : index
    %439 = vector.load %arg18[%c1_364, %c0_365, %c0_366] : memref<2x64x32xf32, #tpu.memory_space<vmem>>, vector<1x64x32xf32>
    %440 = vector.shape_cast %439 : vector<1x64x32xf32> to vector<64x32xf32>
    %cst_367 = arith.constant dense<0.000000e+00> : vector<8x32xf32>
    %441 = tpu.matmul %438, %440, %cst_367 {dimension_numbers = #tpu.dot_dimension_numbers<[1], [0], [0], [1], [0, 0, 1, 1], [], []>} : vector<8x64xf32>, vector<64x32xf32>, vector<8x32xf32> -> vector<8x32xf32>
    %c1_368 = arith.constant 1 : index
    %c0_369 = arith.constant 0 : index
    %c0_370 = arith.constant 0 : index
    %442 = vector.load %arg19[%c1_368, %c0_369, %c0_370] : memref<2x1x32xf32, #tpu.memory_space<vmem>>, vector<1x1x32xf32>
    %443 = vector.shape_cast %442 : vector<1x1x32xf32> to vector<1x32xf32>
    %444 = vector.broadcast %443 : vector<1x32xf32> to vector<8x32xf32>
    %445 = arith.addf %441, %444 : vector<8x32xf32>
    %446 = arith.addf %429, %445 : vector<8x32xf32>
    %c1_371 = arith.constant 1 : index
    %c0_372 = arith.constant 0 : index
    %c0_373 = arith.constant 0 : index
    %447 = vector.load %arg20[%c1_371, %c0_372, %c0_373] : memref<2x1x32xf32, #tpu.memory_space<vmem>>, vector<1x1x32xf32>
    %448 = vector.shape_cast %447 : vector<1x1x32xf32> to vector<1x32xf32>
    %c1_374 = arith.constant 1 : index
    %c0_375 = arith.constant 0 : index
    %c0_376 = arith.constant 0 : index
    %449 = vector.load %arg21[%c1_374, %c0_375, %c0_376] : memref<2x1x32xf32, #tpu.memory_space<vmem>>, vector<1x1x32xf32>
    %450 = vector.shape_cast %449 : vector<1x1x32xf32> to vector<1x32xf32>
    %cst_377 = arith.constant dense<0.000000e+00> : vector<8xf32>
    %451 = vector.multi_reduction <add>, %446, %cst_377 [1] : vector<8x32xf32> to vector<8xf32>
    %452 = vector.shape_cast %451 : vector<8xf32> to vector<8x1xf32>
    %cst_378 = arith.constant 3.200000e+01 : f32
    %453 = vector.broadcast %cst_378 : f32 to vector<8x1xf32>
    %454 = arith.divf %452, %453 : vector<8x1xf32>
    %455 = vector.broadcast %454 : vector<8x1xf32> to vector<8x32xf32>
    %456 = arith.subf %446, %455 : vector<8x32xf32>
    %457 = arith.mulf %456, %456 : vector<8x32xf32>
    %cst_379 = arith.constant dense<0.000000e+00> : vector<8xf32>
    %458 = vector.multi_reduction <add>, %457, %cst_379 [1] : vector<8x32xf32> to vector<8xf32>
    %459 = vector.shape_cast %458 : vector<8xf32> to vector<8x1xf32>
    %cst_380 = arith.constant 3.200000e+01 : f32
    %460 = vector.broadcast %cst_380 : f32 to vector<8x1xf32>
    %461 = arith.divf %459, %460 : vector<8x1xf32>
    %cst_381 = arith.constant 9.99999996E-13 : f32
    %462 = vector.broadcast %cst_381 : f32 to vector<8x1xf32>
    %463 = arith.addf %461, %462 : vector<8x1xf32>
    %464 = math.rsqrt %463 : vector<8x1xf32>
    %465 = vector.broadcast %454 : vector<8x1xf32> to vector<8x32xf32>
    %466 = arith.subf %446, %465 : vector<8x32xf32>
    %467 = vector.broadcast %464 : vector<8x1xf32> to vector<8x32xf32>
    %468 = arith.mulf %466, %467 : vector<8x32xf32>
    %469 = vector.broadcast %448 : vector<1x32xf32> to vector<8x32xf32>
    %470 = arith.mulf %468, %469 : vector<8x32xf32>
    %471 = vector.broadcast %450 : vector<1x32xf32> to vector<8x32xf32>
    %472 = arith.addf %470, %471 : vector<8x32xf32>
    %c0_382 = arith.constant 0 : index
    %c0_383 = arith.constant 0 : index
    %473 = vector.load %arg2[%c0_382, %c0_383] : memref<8x32xf32, #tpu.memory_space<vmem>>, vector<8x32xf32>
    %c0_384 = arith.constant 0 : index
    %c0_385 = arith.constant 0 : index
    %c0_386 = arith.constant 0 : index
    %c0_387 = arith.constant 0 : index
    %474 = vector.load %arg22[%c0_384, %c0_385, %c0_386, %c0_387] : memref<2x4x32x8xf32, #tpu.memory_space<vmem>>, vector<1x1x32x8xf32>
    %475 = vector.shape_cast %474 : vector<1x1x32x8xf32> to vector<32x8xf32>
    %cst_388 = arith.constant dense<0.000000e+00> : vector<8x8xf32>
    %476 = tpu.matmul %473, %475, %cst_388 {dimension_numbers = #tpu.dot_dimension_numbers<[1], [0], [0], [1], [0, 0, 1, 1], [], []>} : vector<8x32xf32>, vector<32x8xf32>, vector<8x8xf32> -> vector<8x8xf32>
    %c0_389 = arith.constant 0 : index
    %c0_390 = arith.constant 0 : index
    %c0_391 = arith.constant 0 : index
    %c0_392 = arith.constant 0 : index
    %477 = vector.load %arg23[%c0_389, %c0_390, %c0_391, %c0_392] : memref<2x4x1x8xf32, #tpu.memory_space<vmem>>, vector<1x1x1x8xf32>
    %478 = vector.shape_cast %477 : vector<1x1x1x8xf32> to vector<1x8xf32>
    %479 = vector.broadcast %478 : vector<1x8xf32> to vector<8x8xf32>
    %480 = arith.addf %476, %479 : vector<8x8xf32>
    %c0_393 = arith.constant 0 : index
    %c0_394 = arith.constant 0 : index
    %c0_395 = arith.constant 0 : index
    %c0_396 = arith.constant 0 : index
    %481 = vector.load %arg24[%c0_393, %c0_394, %c0_395, %c0_396] : memref<2x4x32x8xf32, #tpu.memory_space<vmem>>, vector<1x1x32x8xf32>
    %482 = vector.shape_cast %481 : vector<1x1x32x8xf32> to vector<32x8xf32>
    %cst_397 = arith.constant dense<0.000000e+00> : vector<8x8xf32>
    %483 = tpu.matmul %473, %482, %cst_397 {dimension_numbers = #tpu.dot_dimension_numbers<[1], [0], [0], [1], [0, 0, 1, 1], [], []>} : vector<8x32xf32>, vector<32x8xf32>, vector<8x8xf32> -> vector<8x8xf32>
    %c0_398 = arith.constant 0 : index
    %c0_399 = arith.constant 0 : index
    %c0_400 = arith.constant 0 : index
    %c0_401 = arith.constant 0 : index
    %484 = vector.load %arg25[%c0_398, %c0_399, %c0_400, %c0_401] : memref<2x4x1x8xf32, #tpu.memory_space<vmem>>, vector<1x1x1x8xf32>
    %485 = vector.shape_cast %484 : vector<1x1x1x8xf32> to vector<1x8xf32>
    %486 = vector.broadcast %485 : vector<1x8xf32> to vector<8x8xf32>
    %487 = arith.addf %483, %486 : vector<8x8xf32>
    %c0_402 = arith.constant 0 : index
    %c0_403 = arith.constant 0 : index
    %c0_404 = arith.constant 0 : index
    %c0_405 = arith.constant 0 : index
    %488 = vector.load %arg26[%c0_402, %c0_403, %c0_404, %c0_405] : memref<2x4x32x8xf32, #tpu.memory_space<vmem>>, vector<1x1x32x8xf32>
    %489 = vector.shape_cast %488 : vector<1x1x32x8xf32> to vector<32x8xf32>
    %cst_406 = arith.constant dense<0.000000e+00> : vector<8x8xf32>
    %490 = tpu.matmul %473, %489, %cst_406 {dimension_numbers = #tpu.dot_dimension_numbers<[1], [0], [0], [1], [0, 0, 1, 1], [], []>} : vector<8x32xf32>, vector<32x8xf32>, vector<8x8xf32> -> vector<8x8xf32>
    %c0_407 = arith.constant 0 : index
    %c0_408 = arith.constant 0 : index
    %c0_409 = arith.constant 0 : index
    %c0_410 = arith.constant 0 : index
    %491 = vector.load %arg27[%c0_407, %c0_408, %c0_409, %c0_410] : memref<2x4x1x8xf32, #tpu.memory_space<vmem>>, vector<1x1x1x8xf32>
    %492 = vector.shape_cast %491 : vector<1x1x1x8xf32> to vector<1x8xf32>
    %493 = vector.broadcast %492 : vector<1x8xf32> to vector<8x8xf32>
    %494 = arith.addf %490, %493 : vector<8x8xf32>
    %cst_411 = arith.constant 0.353553385 : f32
    %495 = vector.broadcast %cst_411 : f32 to vector<8x8xf32>
    %496 = arith.mulf %480, %495 : vector<8x8xf32>
    %cst_412 = arith.constant dense<0.000000e+00> : vector<8x8xf32>
    %497 = tpu.matmul %496, %487, %cst_412 {dimension_numbers = #tpu.dot_dimension_numbers<[1], [1], [0], [0], [0, 0, 1, 0], [], []>} : vector<8x8xf32>, vector<8x8xf32>, vector<8x8xf32> -> vector<8x8xf32>
    %498 = arith.addf %497, %3 : vector<8x8xf32>
    %cst_413 = arith.constant dense<0xFF800000> : vector<8xf32>
    %499 = vector.multi_reduction <maximumf>, %498, %cst_413 [1] : vector<8x8xf32> to vector<8xf32>
    %500 = vector.shape_cast %499 : vector<8xf32> to vector<8x1xf32>
    %501 = vector.broadcast %500 : vector<8x1xf32> to vector<8x8xf32>
    %502 = arith.subf %498, %501 : vector<8x8xf32>
    %503 = math.exp %502 : vector<8x8xf32>
    %cst_414 = arith.constant dense<0.000000e+00> : vector<8xf32>
    %504 = vector.multi_reduction <add>, %503, %cst_414 [1] : vector<8x8xf32> to vector<8xf32>
    %505 = vector.shape_cast %504 : vector<8xf32> to vector<8x1xf32>
    %506 = tpu.reciprocal %505 : vector<8x1xf32> -> vector<8x1xf32>
    %507 = vector.broadcast %506 : vector<8x1xf32> to vector<8x8xf32>
    %508 = arith.mulf %503, %507 : vector<8x8xf32>
    %cst_415 = arith.constant dense<0.000000e+00> : vector<8x8xf32>
    %509 = tpu.matmul %508, %494, %cst_415 {dimension_numbers = #tpu.dot_dimension_numbers<[1], [0], [0], [1], [0, 0, 1, 1], [], []>} : vector<8x8xf32>, vector<8x8xf32>, vector<8x8xf32> -> vector<8x8xf32>
    %c0_416 = arith.constant 0 : index
    %c0_417 = arith.constant 0 : index
    %c0_418 = arith.constant 0 : index
    %c0_419 = arith.constant 0 : index
    %510 = vector.load %arg28[%c0_416, %c0_417, %c0_418, %c0_419] : memref<2x4x8x32xf32, #tpu.memory_space<vmem>>, vector<1x1x8x32xf32>
    %511 = vector.shape_cast %510 : vector<1x1x8x32xf32> to vector<8x32xf32>
    %cst_420 = arith.constant dense<0.000000e+00> : vector<8x32xf32>
    %512 = tpu.matmul %509, %511, %cst_420 {dimension_numbers = #tpu.dot_dimension_numbers<[1], [0], [0], [1], [0, 0, 1, 1], [], []>} : vector<8x8xf32>, vector<8x32xf32>, vector<8x32xf32> -> vector<8x32xf32>
    %c0_421 = arith.constant 0 : index
    %c1_422 = arith.constant 1 : index
    %c0_423 = arith.constant 0 : index
    %c0_424 = arith.constant 0 : index
    %513 = vector.load %arg22[%c0_421, %c1_422, %c0_423, %c0_424] : memref<2x4x32x8xf32, #tpu.memory_space<vmem>>, vector<1x1x32x8xf32>
    %514 = vector.shape_cast %513 : vector<1x1x32x8xf32> to vector<32x8xf32>
    %cst_425 = arith.constant dense<0.000000e+00> : vector<8x8xf32>
    %515 = tpu.matmul %473, %514, %cst_425 {dimension_numbers = #tpu.dot_dimension_numbers<[1], [0], [0], [1], [0, 0, 1, 1], [], []>} : vector<8x32xf32>, vector<32x8xf32>, vector<8x8xf32> -> vector<8x8xf32>
    %c0_426 = arith.constant 0 : index
    %c1_427 = arith.constant 1 : index
    %c0_428 = arith.constant 0 : index
    %c0_429 = arith.constant 0 : index
    %516 = vector.load %arg23[%c0_426, %c1_427, %c0_428, %c0_429] : memref<2x4x1x8xf32, #tpu.memory_space<vmem>>, vector<1x1x1x8xf32>
    %517 = vector.shape_cast %516 : vector<1x1x1x8xf32> to vector<1x8xf32>
    %518 = vector.broadcast %517 : vector<1x8xf32> to vector<8x8xf32>
    %519 = arith.addf %515, %518 : vector<8x8xf32>
    %c0_430 = arith.constant 0 : index
    %c1_431 = arith.constant 1 : index
    %c0_432 = arith.constant 0 : index
    %c0_433 = arith.constant 0 : index
    %520 = vector.load %arg24[%c0_430, %c1_431, %c0_432, %c0_433] : memref<2x4x32x8xf32, #tpu.memory_space<vmem>>, vector<1x1x32x8xf32>
    %521 = vector.shape_cast %520 : vector<1x1x32x8xf32> to vector<32x8xf32>
    %cst_434 = arith.constant dense<0.000000e+00> : vector<8x8xf32>
    %522 = tpu.matmul %473, %521, %cst_434 {dimension_numbers = #tpu.dot_dimension_numbers<[1], [0], [0], [1], [0, 0, 1, 1], [], []>} : vector<8x32xf32>, vector<32x8xf32>, vector<8x8xf32> -> vector<8x8xf32>
    %c0_435 = arith.constant 0 : index
    %c1_436 = arith.constant 1 : index
    %c0_437 = arith.constant 0 : index
    %c0_438 = arith.constant 0 : index
    %523 = vector.load %arg25[%c0_435, %c1_436, %c0_437, %c0_438] : memref<2x4x1x8xf32, #tpu.memory_space<vmem>>, vector<1x1x1x8xf32>
    %524 = vector.shape_cast %523 : vector<1x1x1x8xf32> to vector<1x8xf32>
    %525 = vector.broadcast %524 : vector<1x8xf32> to vector<8x8xf32>
    %526 = arith.addf %522, %525 : vector<8x8xf32>
    %c0_439 = arith.constant 0 : index
    %c1_440 = arith.constant 1 : index
    %c0_441 = arith.constant 0 : index
    %c0_442 = arith.constant 0 : index
    %527 = vector.load %arg26[%c0_439, %c1_440, %c0_441, %c0_442] : memref<2x4x32x8xf32, #tpu.memory_space<vmem>>, vector<1x1x32x8xf32>
    %528 = vector.shape_cast %527 : vector<1x1x32x8xf32> to vector<32x8xf32>
    %cst_443 = arith.constant dense<0.000000e+00> : vector<8x8xf32>
    %529 = tpu.matmul %473, %528, %cst_443 {dimension_numbers = #tpu.dot_dimension_numbers<[1], [0], [0], [1], [0, 0, 1, 1], [], []>} : vector<8x32xf32>, vector<32x8xf32>, vector<8x8xf32> -> vector<8x8xf32>
    %c0_444 = arith.constant 0 : index
    %c1_445 = arith.constant 1 : index
    %c0_446 = arith.constant 0 : index
    %c0_447 = arith.constant 0 : index
    %530 = vector.load %arg27[%c0_444, %c1_445, %c0_446, %c0_447] : memref<2x4x1x8xf32, #tpu.memory_space<vmem>>, vector<1x1x1x8xf32>
    %531 = vector.shape_cast %530 : vector<1x1x1x8xf32> to vector<1x8xf32>
    %532 = vector.broadcast %531 : vector<1x8xf32> to vector<8x8xf32>
    %533 = arith.addf %529, %532 : vector<8x8xf32>
    %cst_448 = arith.constant 0.353553385 : f32
    %534 = vector.broadcast %cst_448 : f32 to vector<8x8xf32>
    %535 = arith.mulf %519, %534 : vector<8x8xf32>
    %cst_449 = arith.constant dense<0.000000e+00> : vector<8x8xf32>
    %536 = tpu.matmul %535, %526, %cst_449 {dimension_numbers = #tpu.dot_dimension_numbers<[1], [1], [0], [0], [0, 0, 1, 0], [], []>} : vector<8x8xf32>, vector<8x8xf32>, vector<8x8xf32> -> vector<8x8xf32>
    %537 = arith.addf %536, %3 : vector<8x8xf32>
    %cst_450 = arith.constant dense<0xFF800000> : vector<8xf32>
    %538 = vector.multi_reduction <maximumf>, %537, %cst_450 [1] : vector<8x8xf32> to vector<8xf32>
    %539 = vector.shape_cast %538 : vector<8xf32> to vector<8x1xf32>
    %540 = vector.broadcast %539 : vector<8x1xf32> to vector<8x8xf32>
    %541 = arith.subf %537, %540 : vector<8x8xf32>
    %542 = math.exp %541 : vector<8x8xf32>
    %cst_451 = arith.constant dense<0.000000e+00> : vector<8xf32>
    %543 = vector.multi_reduction <add>, %542, %cst_451 [1] : vector<8x8xf32> to vector<8xf32>
    %544 = vector.shape_cast %543 : vector<8xf32> to vector<8x1xf32>
    %545 = tpu.reciprocal %544 : vector<8x1xf32> -> vector<8x1xf32>
    %546 = vector.broadcast %545 : vector<8x1xf32> to vector<8x8xf32>
    %547 = arith.mulf %542, %546 : vector<8x8xf32>
    %cst_452 = arith.constant dense<0.000000e+00> : vector<8x8xf32>
    %548 = tpu.matmul %547, %533, %cst_452 {dimension_numbers = #tpu.dot_dimension_numbers<[1], [0], [0], [1], [0, 0, 1, 1], [], []>} : vector<8x8xf32>, vector<8x8xf32>, vector<8x8xf32> -> vector<8x8xf32>
    %c0_453 = arith.constant 0 : index
    %c1_454 = arith.constant 1 : index
    %c0_455 = arith.constant 0 : index
    %c0_456 = arith.constant 0 : index
    %549 = vector.load %arg28[%c0_453, %c1_454, %c0_455, %c0_456] : memref<2x4x8x32xf32, #tpu.memory_space<vmem>>, vector<1x1x8x32xf32>
    %550 = vector.shape_cast %549 : vector<1x1x8x32xf32> to vector<8x32xf32>
    %cst_457 = arith.constant dense<0.000000e+00> : vector<8x32xf32>
    %551 = tpu.matmul %548, %550, %cst_457 {dimension_numbers = #tpu.dot_dimension_numbers<[1], [0], [0], [1], [0, 0, 1, 1], [], []>} : vector<8x8xf32>, vector<8x32xf32>, vector<8x32xf32> -> vector<8x32xf32>
    %552 = arith.addf %512, %551 : vector<8x32xf32>
    %c0_458 = arith.constant 0 : index
    %c2_459 = arith.constant 2 : index
    %c0_460 = arith.constant 0 : index
    %c0_461 = arith.constant 0 : index
    %553 = vector.load %arg22[%c0_458, %c2_459, %c0_460, %c0_461] : memref<2x4x32x8xf32, #tpu.memory_space<vmem>>, vector<1x1x32x8xf32>
    %554 = vector.shape_cast %553 : vector<1x1x32x8xf32> to vector<32x8xf32>
    %cst_462 = arith.constant dense<0.000000e+00> : vector<8x8xf32>
    %555 = tpu.matmul %473, %554, %cst_462 {dimension_numbers = #tpu.dot_dimension_numbers<[1], [0], [0], [1], [0, 0, 1, 1], [], []>} : vector<8x32xf32>, vector<32x8xf32>, vector<8x8xf32> -> vector<8x8xf32>
    %c0_463 = arith.constant 0 : index
    %c2_464 = arith.constant 2 : index
    %c0_465 = arith.constant 0 : index
    %c0_466 = arith.constant 0 : index
    %556 = vector.load %arg23[%c0_463, %c2_464, %c0_465, %c0_466] : memref<2x4x1x8xf32, #tpu.memory_space<vmem>>, vector<1x1x1x8xf32>
    %557 = vector.shape_cast %556 : vector<1x1x1x8xf32> to vector<1x8xf32>
    %558 = vector.broadcast %557 : vector<1x8xf32> to vector<8x8xf32>
    %559 = arith.addf %555, %558 : vector<8x8xf32>
    %c0_467 = arith.constant 0 : index
    %c2_468 = arith.constant 2 : index
    %c0_469 = arith.constant 0 : index
    %c0_470 = arith.constant 0 : index
    %560 = vector.load %arg24[%c0_467, %c2_468, %c0_469, %c0_470] : memref<2x4x32x8xf32, #tpu.memory_space<vmem>>, vector<1x1x32x8xf32>
    %561 = vector.shape_cast %560 : vector<1x1x32x8xf32> to vector<32x8xf32>
    %cst_471 = arith.constant dense<0.000000e+00> : vector<8x8xf32>
    %562 = tpu.matmul %473, %561, %cst_471 {dimension_numbers = #tpu.dot_dimension_numbers<[1], [0], [0], [1], [0, 0, 1, 1], [], []>} : vector<8x32xf32>, vector<32x8xf32>, vector<8x8xf32> -> vector<8x8xf32>
    %c0_472 = arith.constant 0 : index
    %c2_473 = arith.constant 2 : index
    %c0_474 = arith.constant 0 : index
    %c0_475 = arith.constant 0 : index
    %563 = vector.load %arg25[%c0_472, %c2_473, %c0_474, %c0_475] : memref<2x4x1x8xf32, #tpu.memory_space<vmem>>, vector<1x1x1x8xf32>
    %564 = vector.shape_cast %563 : vector<1x1x1x8xf32> to vector<1x8xf32>
    %565 = vector.broadcast %564 : vector<1x8xf32> to vector<8x8xf32>
    %566 = arith.addf %562, %565 : vector<8x8xf32>
    %c0_476 = arith.constant 0 : index
    %c2_477 = arith.constant 2 : index
    %c0_478 = arith.constant 0 : index
    %c0_479 = arith.constant 0 : index
    %567 = vector.load %arg26[%c0_476, %c2_477, %c0_478, %c0_479] : memref<2x4x32x8xf32, #tpu.memory_space<vmem>>, vector<1x1x32x8xf32>
    %568 = vector.shape_cast %567 : vector<1x1x32x8xf32> to vector<32x8xf32>
    %cst_480 = arith.constant dense<0.000000e+00> : vector<8x8xf32>
    %569 = tpu.matmul %473, %568, %cst_480 {dimension_numbers = #tpu.dot_dimension_numbers<[1], [0], [0], [1], [0, 0, 1, 1], [], []>} : vector<8x32xf32>, vector<32x8xf32>, vector<8x8xf32> -> vector<8x8xf32>
    %c0_481 = arith.constant 0 : index
    %c2_482 = arith.constant 2 : index
    %c0_483 = arith.constant 0 : index
    %c0_484 = arith.constant 0 : index
    %570 = vector.load %arg27[%c0_481, %c2_482, %c0_483, %c0_484] : memref<2x4x1x8xf32, #tpu.memory_space<vmem>>, vector<1x1x1x8xf32>
    %571 = vector.shape_cast %570 : vector<1x1x1x8xf32> to vector<1x8xf32>
    %572 = vector.broadcast %571 : vector<1x8xf32> to vector<8x8xf32>
    %573 = arith.addf %569, %572 : vector<8x8xf32>
    %cst_485 = arith.constant 0.353553385 : f32
    %574 = vector.broadcast %cst_485 : f32 to vector<8x8xf32>
    %575 = arith.mulf %559, %574 : vector<8x8xf32>
    %cst_486 = arith.constant dense<0.000000e+00> : vector<8x8xf32>
    %576 = tpu.matmul %575, %566, %cst_486 {dimension_numbers = #tpu.dot_dimension_numbers<[1], [1], [0], [0], [0, 0, 1, 0], [], []>} : vector<8x8xf32>, vector<8x8xf32>, vector<8x8xf32> -> vector<8x8xf32>
    %577 = arith.addf %576, %3 : vector<8x8xf32>
    %cst_487 = arith.constant dense<0xFF800000> : vector<8xf32>
    %578 = vector.multi_reduction <maximumf>, %577, %cst_487 [1] : vector<8x8xf32> to vector<8xf32>
    %579 = vector.shape_cast %578 : vector<8xf32> to vector<8x1xf32>
    %580 = vector.broadcast %579 : vector<8x1xf32> to vector<8x8xf32>
    %581 = arith.subf %577, %580 : vector<8x8xf32>
    %582 = math.exp %581 : vector<8x8xf32>
    %cst_488 = arith.constant dense<0.000000e+00> : vector<8xf32>
    %583 = vector.multi_reduction <add>, %582, %cst_488 [1] : vector<8x8xf32> to vector<8xf32>
    %584 = vector.shape_cast %583 : vector<8xf32> to vector<8x1xf32>
    %585 = tpu.reciprocal %584 : vector<8x1xf32> -> vector<8x1xf32>
    %586 = vector.broadcast %585 : vector<8x1xf32> to vector<8x8xf32>
    %587 = arith.mulf %582, %586 : vector<8x8xf32>
    %cst_489 = arith.constant dense<0.000000e+00> : vector<8x8xf32>
    %588 = tpu.matmul %587, %573, %cst_489 {dimension_numbers = #tpu.dot_dimension_numbers<[1], [0], [0], [1], [0, 0, 1, 1], [], []>} : vector<8x8xf32>, vector<8x8xf32>, vector<8x8xf32> -> vector<8x8xf32>
    %c0_490 = arith.constant 0 : index
    %c2_491 = arith.constant 2 : index
    %c0_492 = arith.constant 0 : index
    %c0_493 = arith.constant 0 : index
    %589 = vector.load %arg28[%c0_490, %c2_491, %c0_492, %c0_493] : memref<2x4x8x32xf32, #tpu.memory_space<vmem>>, vector<1x1x8x32xf32>
    %590 = vector.shape_cast %589 : vector<1x1x8x32xf32> to vector<8x32xf32>
    %cst_494 = arith.constant dense<0.000000e+00> : vector<8x32xf32>
    %591 = tpu.matmul %588, %590, %cst_494 {dimension_numbers = #tpu.dot_dimension_numbers<[1], [0], [0], [1], [0, 0, 1, 1], [], []>} : vector<8x8xf32>, vector<8x32xf32>, vector<8x32xf32> -> vector<8x32xf32>
    %592 = arith.addf %552, %591 : vector<8x32xf32>
    %c0_495 = arith.constant 0 : index
    %c3_496 = arith.constant 3 : index
    %c0_497 = arith.constant 0 : index
    %c0_498 = arith.constant 0 : index
    %593 = vector.load %arg22[%c0_495, %c3_496, %c0_497, %c0_498] : memref<2x4x32x8xf32, #tpu.memory_space<vmem>>, vector<1x1x32x8xf32>
    %594 = vector.shape_cast %593 : vector<1x1x32x8xf32> to vector<32x8xf32>
    %cst_499 = arith.constant dense<0.000000e+00> : vector<8x8xf32>
    %595 = tpu.matmul %473, %594, %cst_499 {dimension_numbers = #tpu.dot_dimension_numbers<[1], [0], [0], [1], [0, 0, 1, 1], [], []>} : vector<8x32xf32>, vector<32x8xf32>, vector<8x8xf32> -> vector<8x8xf32>
    %c0_500 = arith.constant 0 : index
    %c3_501 = arith.constant 3 : index
    %c0_502 = arith.constant 0 : index
    %c0_503 = arith.constant 0 : index
    %596 = vector.load %arg23[%c0_500, %c3_501, %c0_502, %c0_503] : memref<2x4x1x8xf32, #tpu.memory_space<vmem>>, vector<1x1x1x8xf32>
    %597 = vector.shape_cast %596 : vector<1x1x1x8xf32> to vector<1x8xf32>
    %598 = vector.broadcast %597 : vector<1x8xf32> to vector<8x8xf32>
    %599 = arith.addf %595, %598 : vector<8x8xf32>
    %c0_504 = arith.constant 0 : index
    %c3_505 = arith.constant 3 : index
    %c0_506 = arith.constant 0 : index
    %c0_507 = arith.constant 0 : index
    %600 = vector.load %arg24[%c0_504, %c3_505, %c0_506, %c0_507] : memref<2x4x32x8xf32, #tpu.memory_space<vmem>>, vector<1x1x32x8xf32>
    %601 = vector.shape_cast %600 : vector<1x1x32x8xf32> to vector<32x8xf32>
    %cst_508 = arith.constant dense<0.000000e+00> : vector<8x8xf32>
    %602 = tpu.matmul %473, %601, %cst_508 {dimension_numbers = #tpu.dot_dimension_numbers<[1], [0], [0], [1], [0, 0, 1, 1], [], []>} : vector<8x32xf32>, vector<32x8xf32>, vector<8x8xf32> -> vector<8x8xf32>
    %c0_509 = arith.constant 0 : index
    %c3_510 = arith.constant 3 : index
    %c0_511 = arith.constant 0 : index
    %c0_512 = arith.constant 0 : index
    %603 = vector.load %arg25[%c0_509, %c3_510, %c0_511, %c0_512] : memref<2x4x1x8xf32, #tpu.memory_space<vmem>>, vector<1x1x1x8xf32>
    %604 = vector.shape_cast %603 : vector<1x1x1x8xf32> to vector<1x8xf32>
    %605 = vector.broadcast %604 : vector<1x8xf32> to vector<8x8xf32>
    %606 = arith.addf %602, %605 : vector<8x8xf32>
    %c0_513 = arith.constant 0 : index
    %c3_514 = arith.constant 3 : index
    %c0_515 = arith.constant 0 : index
    %c0_516 = arith.constant 0 : index
    %607 = vector.load %arg26[%c0_513, %c3_514, %c0_515, %c0_516] : memref<2x4x32x8xf32, #tpu.memory_space<vmem>>, vector<1x1x32x8xf32>
    %608 = vector.shape_cast %607 : vector<1x1x32x8xf32> to vector<32x8xf32>
    %cst_517 = arith.constant dense<0.000000e+00> : vector<8x8xf32>
    %609 = tpu.matmul %473, %608, %cst_517 {dimension_numbers = #tpu.dot_dimension_numbers<[1], [0], [0], [1], [0, 0, 1, 1], [], []>} : vector<8x32xf32>, vector<32x8xf32>, vector<8x8xf32> -> vector<8x8xf32>
    %c0_518 = arith.constant 0 : index
    %c3_519 = arith.constant 3 : index
    %c0_520 = arith.constant 0 : index
    %c0_521 = arith.constant 0 : index
    %610 = vector.load %arg27[%c0_518, %c3_519, %c0_520, %c0_521] : memref<2x4x1x8xf32, #tpu.memory_space<vmem>>, vector<1x1x1x8xf32>
    %611 = vector.shape_cast %610 : vector<1x1x1x8xf32> to vector<1x8xf32>
    %612 = vector.broadcast %611 : vector<1x8xf32> to vector<8x8xf32>
    %613 = arith.addf %609, %612 : vector<8x8xf32>
    %cst_522 = arith.constant 0.353553385 : f32
    %614 = vector.broadcast %cst_522 : f32 to vector<8x8xf32>
    %615 = arith.mulf %599, %614 : vector<8x8xf32>
    %cst_523 = arith.constant dense<0.000000e+00> : vector<8x8xf32>
    %616 = tpu.matmul %615, %606, %cst_523 {dimension_numbers = #tpu.dot_dimension_numbers<[1], [1], [0], [0], [0, 0, 1, 0], [], []>} : vector<8x8xf32>, vector<8x8xf32>, vector<8x8xf32> -> vector<8x8xf32>
    %617 = arith.addf %616, %3 : vector<8x8xf32>
    %cst_524 = arith.constant dense<0xFF800000> : vector<8xf32>
    %618 = vector.multi_reduction <maximumf>, %617, %cst_524 [1] : vector<8x8xf32> to vector<8xf32>
    %619 = vector.shape_cast %618 : vector<8xf32> to vector<8x1xf32>
    %620 = vector.broadcast %619 : vector<8x1xf32> to vector<8x8xf32>
    %621 = arith.subf %617, %620 : vector<8x8xf32>
    %622 = math.exp %621 : vector<8x8xf32>
    %cst_525 = arith.constant dense<0.000000e+00> : vector<8xf32>
    %623 = vector.multi_reduction <add>, %622, %cst_525 [1] : vector<8x8xf32> to vector<8xf32>
    %624 = vector.shape_cast %623 : vector<8xf32> to vector<8x1xf32>
    %625 = tpu.reciprocal %624 : vector<8x1xf32> -> vector<8x1xf32>
    %626 = vector.broadcast %625 : vector<8x1xf32> to vector<8x8xf32>
    %627 = arith.mulf %622, %626 : vector<8x8xf32>
    %cst_526 = arith.constant dense<0.000000e+00> : vector<8x8xf32>
    %628 = tpu.matmul %627, %613, %cst_526 {dimension_numbers = #tpu.dot_dimension_numbers<[1], [0], [0], [1], [0, 0, 1, 1], [], []>} : vector<8x8xf32>, vector<8x8xf32>, vector<8x8xf32> -> vector<8x8xf32>
    %c0_527 = arith.constant 0 : index
    %c3_528 = arith.constant 3 : index
    %c0_529 = arith.constant 0 : index
    %c0_530 = arith.constant 0 : index
    %629 = vector.load %arg28[%c0_527, %c3_528, %c0_529, %c0_530] : memref<2x4x8x32xf32, #tpu.memory_space<vmem>>, vector<1x1x8x32xf32>
    %630 = vector.shape_cast %629 : vector<1x1x8x32xf32> to vector<8x32xf32>
    %cst_531 = arith.constant dense<0.000000e+00> : vector<8x32xf32>
    %631 = tpu.matmul %628, %630, %cst_531 {dimension_numbers = #tpu.dot_dimension_numbers<[1], [0], [0], [1], [0, 0, 1, 1], [], []>} : vector<8x8xf32>, vector<8x32xf32>, vector<8x32xf32> -> vector<8x32xf32>
    %632 = arith.addf %592, %631 : vector<8x32xf32>
    %c0_532 = arith.constant 0 : index
    %c0_533 = arith.constant 0 : index
    %c0_534 = arith.constant 0 : index
    %633 = vector.load %arg29[%c0_532, %c0_533, %c0_534] : memref<2x1x32xf32, #tpu.memory_space<vmem>>, vector<1x1x32xf32>
    %634 = vector.shape_cast %633 : vector<1x1x32xf32> to vector<1x32xf32>
    %635 = vector.broadcast %634 : vector<1x32xf32> to vector<8x32xf32>
    %636 = arith.addf %632, %635 : vector<8x32xf32>
    %637 = arith.addf %473, %636 : vector<8x32xf32>
    %c0_535 = arith.constant 0 : index
    %c0_536 = arith.constant 0 : index
    %c0_537 = arith.constant 0 : index
    %638 = vector.load %arg30[%c0_535, %c0_536, %c0_537] : memref<2x1x32xf32, #tpu.memory_space<vmem>>, vector<1x1x32xf32>
    %639 = vector.shape_cast %638 : vector<1x1x32xf32> to vector<1x32xf32>
    %c0_538 = arith.constant 0 : index
    %c0_539 = arith.constant 0 : index
    %c0_540 = arith.constant 0 : index
    %640 = vector.load %arg31[%c0_538, %c0_539, %c0_540] : memref<2x1x32xf32, #tpu.memory_space<vmem>>, vector<1x1x32xf32>
    %641 = vector.shape_cast %640 : vector<1x1x32xf32> to vector<1x32xf32>
    %cst_541 = arith.constant dense<0.000000e+00> : vector<8xf32>
    %642 = vector.multi_reduction <add>, %637, %cst_541 [1] : vector<8x32xf32> to vector<8xf32>
    %643 = vector.shape_cast %642 : vector<8xf32> to vector<8x1xf32>
    %cst_542 = arith.constant 3.200000e+01 : f32
    %644 = vector.broadcast %cst_542 : f32 to vector<8x1xf32>
    %645 = arith.divf %643, %644 : vector<8x1xf32>
    %646 = vector.broadcast %645 : vector<8x1xf32> to vector<8x32xf32>
    %647 = arith.subf %637, %646 : vector<8x32xf32>
    %648 = arith.mulf %647, %647 : vector<8x32xf32>
    %cst_543 = arith.constant dense<0.000000e+00> : vector<8xf32>
    %649 = vector.multi_reduction <add>, %648, %cst_543 [1] : vector<8x32xf32> to vector<8xf32>
    %650 = vector.shape_cast %649 : vector<8xf32> to vector<8x1xf32>
    %cst_544 = arith.constant 3.200000e+01 : f32
    %651 = vector.broadcast %cst_544 : f32 to vector<8x1xf32>
    %652 = arith.divf %650, %651 : vector<8x1xf32>
    %cst_545 = arith.constant 9.99999996E-13 : f32
    %653 = vector.broadcast %cst_545 : f32 to vector<8x1xf32>
    %654 = arith.addf %652, %653 : vector<8x1xf32>
    %655 = math.rsqrt %654 : vector<8x1xf32>
    %656 = vector.broadcast %645 : vector<8x1xf32> to vector<8x32xf32>
    %657 = arith.subf %637, %656 : vector<8x32xf32>
    %658 = vector.broadcast %655 : vector<8x1xf32> to vector<8x32xf32>
    %659 = arith.mulf %657, %658 : vector<8x32xf32>
    %660 = vector.broadcast %639 : vector<1x32xf32> to vector<8x32xf32>
    %661 = arith.mulf %659, %660 : vector<8x32xf32>
    %662 = vector.broadcast %641 : vector<1x32xf32> to vector<8x32xf32>
    %663 = arith.addf %661, %662 : vector<8x32xf32>
    %c0_546 = arith.constant 0 : index
    %c0_547 = arith.constant 0 : index
    %c0_548 = arith.constant 0 : index
    %c0_549 = arith.constant 0 : index
    %664 = vector.load %arg32[%c0_546, %c0_547, %c0_548, %c0_549] : memref<2x4x32x8xf32, #tpu.memory_space<vmem>>, vector<1x1x32x8xf32>
    %665 = vector.shape_cast %664 : vector<1x1x32x8xf32> to vector<32x8xf32>
    %cst_550 = arith.constant dense<0.000000e+00> : vector<8x8xf32>
    %666 = tpu.matmul %663, %665, %cst_550 {dimension_numbers = #tpu.dot_dimension_numbers<[1], [0], [0], [1], [0, 0, 1, 1], [], []>} : vector<8x32xf32>, vector<32x8xf32>, vector<8x8xf32> -> vector<8x8xf32>
    %c0_551 = arith.constant 0 : index
    %c0_552 = arith.constant 0 : index
    %c0_553 = arith.constant 0 : index
    %c0_554 = arith.constant 0 : index
    %667 = vector.load %arg33[%c0_551, %c0_552, %c0_553, %c0_554] : memref<2x4x1x8xf32, #tpu.memory_space<vmem>>, vector<1x1x1x8xf32>
    %668 = vector.shape_cast %667 : vector<1x1x1x8xf32> to vector<1x8xf32>
    %669 = vector.broadcast %668 : vector<1x8xf32> to vector<8x8xf32>
    %670 = arith.addf %666, %669 : vector<8x8xf32>
    %c0_555 = arith.constant 0 : index
    %c0_556 = arith.constant 0 : index
    %c0_557 = arith.constant 0 : index
    %c0_558 = arith.constant 0 : index
    %671 = vector.load %arg34[%c0_555, %c0_556, %c0_557, %c0_558] : memref<2x4x32x8xf32, #tpu.memory_space<vmem>>, vector<1x1x32x8xf32>
    %672 = vector.shape_cast %671 : vector<1x1x32x8xf32> to vector<32x8xf32>
    %cst_559 = arith.constant dense<0.000000e+00> : vector<8x8xf32>
    %673 = tpu.matmul %472, %672, %cst_559 {dimension_numbers = #tpu.dot_dimension_numbers<[1], [0], [0], [1], [0, 0, 1, 1], [], []>} : vector<8x32xf32>, vector<32x8xf32>, vector<8x8xf32> -> vector<8x8xf32>
    %c0_560 = arith.constant 0 : index
    %c0_561 = arith.constant 0 : index
    %c0_562 = arith.constant 0 : index
    %c0_563 = arith.constant 0 : index
    %674 = vector.load %arg35[%c0_560, %c0_561, %c0_562, %c0_563] : memref<2x4x1x8xf32, #tpu.memory_space<vmem>>, vector<1x1x1x8xf32>
    %675 = vector.shape_cast %674 : vector<1x1x1x8xf32> to vector<1x8xf32>
    %676 = vector.broadcast %675 : vector<1x8xf32> to vector<8x8xf32>
    %677 = arith.addf %673, %676 : vector<8x8xf32>
    %c0_564 = arith.constant 0 : index
    %c0_565 = arith.constant 0 : index
    %c0_566 = arith.constant 0 : index
    %c0_567 = arith.constant 0 : index
    %678 = vector.load %arg36[%c0_564, %c0_565, %c0_566, %c0_567] : memref<2x4x32x8xf32, #tpu.memory_space<vmem>>, vector<1x1x32x8xf32>
    %679 = vector.shape_cast %678 : vector<1x1x32x8xf32> to vector<32x8xf32>
    %cst_568 = arith.constant dense<0.000000e+00> : vector<8x8xf32>
    %680 = tpu.matmul %472, %679, %cst_568 {dimension_numbers = #tpu.dot_dimension_numbers<[1], [0], [0], [1], [0, 0, 1, 1], [], []>} : vector<8x32xf32>, vector<32x8xf32>, vector<8x8xf32> -> vector<8x8xf32>
    %c0_569 = arith.constant 0 : index
    %c0_570 = arith.constant 0 : index
    %c0_571 = arith.constant 0 : index
    %c0_572 = arith.constant 0 : index
    %681 = vector.load %arg37[%c0_569, %c0_570, %c0_571, %c0_572] : memref<2x4x1x8xf32, #tpu.memory_space<vmem>>, vector<1x1x1x8xf32>
    %682 = vector.shape_cast %681 : vector<1x1x1x8xf32> to vector<1x8xf32>
    %683 = vector.broadcast %682 : vector<1x8xf32> to vector<8x8xf32>
    %684 = arith.addf %680, %683 : vector<8x8xf32>
    %cst_573 = arith.constant 0.353553385 : f32
    %685 = vector.broadcast %cst_573 : f32 to vector<8x8xf32>
    %686 = arith.mulf %670, %685 : vector<8x8xf32>
    %cst_574 = arith.constant dense<0.000000e+00> : vector<8x8xf32>
    %687 = tpu.matmul %686, %677, %cst_574 {dimension_numbers = #tpu.dot_dimension_numbers<[1], [1], [0], [0], [0, 0, 1, 0], [], []>} : vector<8x8xf32>, vector<8x8xf32>, vector<8x8xf32> -> vector<8x8xf32>
    %688 = arith.addf %687, %5 : vector<8x8xf32>
    %cst_575 = arith.constant dense<0xFF800000> : vector<8xf32>
    %689 = vector.multi_reduction <maximumf>, %688, %cst_575 [1] : vector<8x8xf32> to vector<8xf32>
    %690 = vector.shape_cast %689 : vector<8xf32> to vector<8x1xf32>
    %691 = vector.broadcast %690 : vector<8x1xf32> to vector<8x8xf32>
    %692 = arith.subf %688, %691 : vector<8x8xf32>
    %693 = math.exp %692 : vector<8x8xf32>
    %cst_576 = arith.constant dense<0.000000e+00> : vector<8xf32>
    %694 = vector.multi_reduction <add>, %693, %cst_576 [1] : vector<8x8xf32> to vector<8xf32>
    %695 = vector.shape_cast %694 : vector<8xf32> to vector<8x1xf32>
    %696 = tpu.reciprocal %695 : vector<8x1xf32> -> vector<8x1xf32>
    %697 = vector.broadcast %696 : vector<8x1xf32> to vector<8x8xf32>
    %698 = arith.mulf %693, %697 : vector<8x8xf32>
    %cst_577 = arith.constant dense<0.000000e+00> : vector<8x8xf32>
    %699 = tpu.matmul %698, %684, %cst_577 {dimension_numbers = #tpu.dot_dimension_numbers<[1], [0], [0], [1], [0, 0, 1, 1], [], []>} : vector<8x8xf32>, vector<8x8xf32>, vector<8x8xf32> -> vector<8x8xf32>
    %c0_578 = arith.constant 0 : index
    %c0_579 = arith.constant 0 : index
    %c0_580 = arith.constant 0 : index
    %c0_581 = arith.constant 0 : index
    %700 = vector.load %arg38[%c0_578, %c0_579, %c0_580, %c0_581] : memref<2x4x8x32xf32, #tpu.memory_space<vmem>>, vector<1x1x8x32xf32>
    %701 = vector.shape_cast %700 : vector<1x1x8x32xf32> to vector<8x32xf32>
    %cst_582 = arith.constant dense<0.000000e+00> : vector<8x32xf32>
    %702 = tpu.matmul %699, %701, %cst_582 {dimension_numbers = #tpu.dot_dimension_numbers<[1], [0], [0], [1], [0, 0, 1, 1], [], []>} : vector<8x8xf32>, vector<8x32xf32>, vector<8x32xf32> -> vector<8x32xf32>
    %c0_583 = arith.constant 0 : index
    %c1_584 = arith.constant 1 : index
    %c0_585 = arith.constant 0 : index
    %c0_586 = arith.constant 0 : index
    %703 = vector.load %arg32[%c0_583, %c1_584, %c0_585, %c0_586] : memref<2x4x32x8xf32, #tpu.memory_space<vmem>>, vector<1x1x32x8xf32>
    %704 = vector.shape_cast %703 : vector<1x1x32x8xf32> to vector<32x8xf32>
    %cst_587 = arith.constant dense<0.000000e+00> : vector<8x8xf32>
    %705 = tpu.matmul %663, %704, %cst_587 {dimension_numbers = #tpu.dot_dimension_numbers<[1], [0], [0], [1], [0, 0, 1, 1], [], []>} : vector<8x32xf32>, vector<32x8xf32>, vector<8x8xf32> -> vector<8x8xf32>
    %c0_588 = arith.constant 0 : index
    %c1_589 = arith.constant 1 : index
    %c0_590 = arith.constant 0 : index
    %c0_591 = arith.constant 0 : index
    %706 = vector.load %arg33[%c0_588, %c1_589, %c0_590, %c0_591] : memref<2x4x1x8xf32, #tpu.memory_space<vmem>>, vector<1x1x1x8xf32>
    %707 = vector.shape_cast %706 : vector<1x1x1x8xf32> to vector<1x8xf32>
    %708 = vector.broadcast %707 : vector<1x8xf32> to vector<8x8xf32>
    %709 = arith.addf %705, %708 : vector<8x8xf32>
    %c0_592 = arith.constant 0 : index
    %c1_593 = arith.constant 1 : index
    %c0_594 = arith.constant 0 : index
    %c0_595 = arith.constant 0 : index
    %710 = vector.load %arg34[%c0_592, %c1_593, %c0_594, %c0_595] : memref<2x4x32x8xf32, #tpu.memory_space<vmem>>, vector<1x1x32x8xf32>
    %711 = vector.shape_cast %710 : vector<1x1x32x8xf32> to vector<32x8xf32>
    %cst_596 = arith.constant dense<0.000000e+00> : vector<8x8xf32>
    %712 = tpu.matmul %472, %711, %cst_596 {dimension_numbers = #tpu.dot_dimension_numbers<[1], [0], [0], [1], [0, 0, 1, 1], [], []>} : vector<8x32xf32>, vector<32x8xf32>, vector<8x8xf32> -> vector<8x8xf32>
    %c0_597 = arith.constant 0 : index
    %c1_598 = arith.constant 1 : index
    %c0_599 = arith.constant 0 : index
    %c0_600 = arith.constant 0 : index
    %713 = vector.load %arg35[%c0_597, %c1_598, %c0_599, %c0_600] : memref<2x4x1x8xf32, #tpu.memory_space<vmem>>, vector<1x1x1x8xf32>
    %714 = vector.shape_cast %713 : vector<1x1x1x8xf32> to vector<1x8xf32>
    %715 = vector.broadcast %714 : vector<1x8xf32> to vector<8x8xf32>
    %716 = arith.addf %712, %715 : vector<8x8xf32>
    %c0_601 = arith.constant 0 : index
    %c1_602 = arith.constant 1 : index
    %c0_603 = arith.constant 0 : index
    %c0_604 = arith.constant 0 : index
    %717 = vector.load %arg36[%c0_601, %c1_602, %c0_603, %c0_604] : memref<2x4x32x8xf32, #tpu.memory_space<vmem>>, vector<1x1x32x8xf32>
    %718 = vector.shape_cast %717 : vector<1x1x32x8xf32> to vector<32x8xf32>
    %cst_605 = arith.constant dense<0.000000e+00> : vector<8x8xf32>
    %719 = tpu.matmul %472, %718, %cst_605 {dimension_numbers = #tpu.dot_dimension_numbers<[1], [0], [0], [1], [0, 0, 1, 1], [], []>} : vector<8x32xf32>, vector<32x8xf32>, vector<8x8xf32> -> vector<8x8xf32>
    %c0_606 = arith.constant 0 : index
    %c1_607 = arith.constant 1 : index
    %c0_608 = arith.constant 0 : index
    %c0_609 = arith.constant 0 : index
    %720 = vector.load %arg37[%c0_606, %c1_607, %c0_608, %c0_609] : memref<2x4x1x8xf32, #tpu.memory_space<vmem>>, vector<1x1x1x8xf32>
    %721 = vector.shape_cast %720 : vector<1x1x1x8xf32> to vector<1x8xf32>
    %722 = vector.broadcast %721 : vector<1x8xf32> to vector<8x8xf32>
    %723 = arith.addf %719, %722 : vector<8x8xf32>
    %cst_610 = arith.constant 0.353553385 : f32
    %724 = vector.broadcast %cst_610 : f32 to vector<8x8xf32>
    %725 = arith.mulf %709, %724 : vector<8x8xf32>
    %cst_611 = arith.constant dense<0.000000e+00> : vector<8x8xf32>
    %726 = tpu.matmul %725, %716, %cst_611 {dimension_numbers = #tpu.dot_dimension_numbers<[1], [1], [0], [0], [0, 0, 1, 0], [], []>} : vector<8x8xf32>, vector<8x8xf32>, vector<8x8xf32> -> vector<8x8xf32>
    %727 = arith.addf %726, %5 : vector<8x8xf32>
    %cst_612 = arith.constant dense<0xFF800000> : vector<8xf32>
    %728 = vector.multi_reduction <maximumf>, %727, %cst_612 [1] : vector<8x8xf32> to vector<8xf32>
    %729 = vector.shape_cast %728 : vector<8xf32> to vector<8x1xf32>
    %730 = vector.broadcast %729 : vector<8x1xf32> to vector<8x8xf32>
    %731 = arith.subf %727, %730 : vector<8x8xf32>
    %732 = math.exp %731 : vector<8x8xf32>
    %cst_613 = arith.constant dense<0.000000e+00> : vector<8xf32>
    %733 = vector.multi_reduction <add>, %732, %cst_613 [1] : vector<8x8xf32> to vector<8xf32>
    %734 = vector.shape_cast %733 : vector<8xf32> to vector<8x1xf32>
    %735 = tpu.reciprocal %734 : vector<8x1xf32> -> vector<8x1xf32>
    %736 = vector.broadcast %735 : vector<8x1xf32> to vector<8x8xf32>
    %737 = arith.mulf %732, %736 : vector<8x8xf32>
    %cst_614 = arith.constant dense<0.000000e+00> : vector<8x8xf32>
    %738 = tpu.matmul %737, %723, %cst_614 {dimension_numbers = #tpu.dot_dimension_numbers<[1], [0], [0], [1], [0, 0, 1, 1], [], []>} : vector<8x8xf32>, vector<8x8xf32>, vector<8x8xf32> -> vector<8x8xf32>
    %c0_615 = arith.constant 0 : index
    %c1_616 = arith.constant 1 : index
    %c0_617 = arith.constant 0 : index
    %c0_618 = arith.constant 0 : index
    %739 = vector.load %arg38[%c0_615, %c1_616, %c0_617, %c0_618] : memref<2x4x8x32xf32, #tpu.memory_space<vmem>>, vector<1x1x8x32xf32>
    %740 = vector.shape_cast %739 : vector<1x1x8x32xf32> to vector<8x32xf32>
    %cst_619 = arith.constant dense<0.000000e+00> : vector<8x32xf32>
    %741 = tpu.matmul %738, %740, %cst_619 {dimension_numbers = #tpu.dot_dimension_numbers<[1], [0], [0], [1], [0, 0, 1, 1], [], []>} : vector<8x8xf32>, vector<8x32xf32>, vector<8x32xf32> -> vector<8x32xf32>
    %742 = arith.addf %702, %741 : vector<8x32xf32>
    %c0_620 = arith.constant 0 : index
    %c2_621 = arith.constant 2 : index
    %c0_622 = arith.constant 0 : index
    %c0_623 = arith.constant 0 : index
    %743 = vector.load %arg32[%c0_620, %c2_621, %c0_622, %c0_623] : memref<2x4x32x8xf32, #tpu.memory_space<vmem>>, vector<1x1x32x8xf32>
    %744 = vector.shape_cast %743 : vector<1x1x32x8xf32> to vector<32x8xf32>
    %cst_624 = arith.constant dense<0.000000e+00> : vector<8x8xf32>
    %745 = tpu.matmul %663, %744, %cst_624 {dimension_numbers = #tpu.dot_dimension_numbers<[1], [0], [0], [1], [0, 0, 1, 1], [], []>} : vector<8x32xf32>, vector<32x8xf32>, vector<8x8xf32> -> vector<8x8xf32>
    %c0_625 = arith.constant 0 : index
    %c2_626 = arith.constant 2 : index
    %c0_627 = arith.constant 0 : index
    %c0_628 = arith.constant 0 : index
    %746 = vector.load %arg33[%c0_625, %c2_626, %c0_627, %c0_628] : memref<2x4x1x8xf32, #tpu.memory_space<vmem>>, vector<1x1x1x8xf32>
    %747 = vector.shape_cast %746 : vector<1x1x1x8xf32> to vector<1x8xf32>
    %748 = vector.broadcast %747 : vector<1x8xf32> to vector<8x8xf32>
    %749 = arith.addf %745, %748 : vector<8x8xf32>
    %c0_629 = arith.constant 0 : index
    %c2_630 = arith.constant 2 : index
    %c0_631 = arith.constant 0 : index
    %c0_632 = arith.constant 0 : index
    %750 = vector.load %arg34[%c0_629, %c2_630, %c0_631, %c0_632] : memref<2x4x32x8xf32, #tpu.memory_space<vmem>>, vector<1x1x32x8xf32>
    %751 = vector.shape_cast %750 : vector<1x1x32x8xf32> to vector<32x8xf32>
    %cst_633 = arith.constant dense<0.000000e+00> : vector<8x8xf32>
    %752 = tpu.matmul %472, %751, %cst_633 {dimension_numbers = #tpu.dot_dimension_numbers<[1], [0], [0], [1], [0, 0, 1, 1], [], []>} : vector<8x32xf32>, vector<32x8xf32>, vector<8x8xf32> -> vector<8x8xf32>
    %c0_634 = arith.constant 0 : index
    %c2_635 = arith.constant 2 : index
    %c0_636 = arith.constant 0 : index
    %c0_637 = arith.constant 0 : index
    %753 = vector.load %arg35[%c0_634, %c2_635, %c0_636, %c0_637] : memref<2x4x1x8xf32, #tpu.memory_space<vmem>>, vector<1x1x1x8xf32>
    %754 = vector.shape_cast %753 : vector<1x1x1x8xf32> to vector<1x8xf32>
    %755 = vector.broadcast %754 : vector<1x8xf32> to vector<8x8xf32>
    %756 = arith.addf %752, %755 : vector<8x8xf32>
    %c0_638 = arith.constant 0 : index
    %c2_639 = arith.constant 2 : index
    %c0_640 = arith.constant 0 : index
    %c0_641 = arith.constant 0 : index
    %757 = vector.load %arg36[%c0_638, %c2_639, %c0_640, %c0_641] : memref<2x4x32x8xf32, #tpu.memory_space<vmem>>, vector<1x1x32x8xf32>
    %758 = vector.shape_cast %757 : vector<1x1x32x8xf32> to vector<32x8xf32>
    %cst_642 = arith.constant dense<0.000000e+00> : vector<8x8xf32>
    %759 = tpu.matmul %472, %758, %cst_642 {dimension_numbers = #tpu.dot_dimension_numbers<[1], [0], [0], [1], [0, 0, 1, 1], [], []>} : vector<8x32xf32>, vector<32x8xf32>, vector<8x8xf32> -> vector<8x8xf32>
    %c0_643 = arith.constant 0 : index
    %c2_644 = arith.constant 2 : index
    %c0_645 = arith.constant 0 : index
    %c0_646 = arith.constant 0 : index
    %760 = vector.load %arg37[%c0_643, %c2_644, %c0_645, %c0_646] : memref<2x4x1x8xf32, #tpu.memory_space<vmem>>, vector<1x1x1x8xf32>
    %761 = vector.shape_cast %760 : vector<1x1x1x8xf32> to vector<1x8xf32>
    %762 = vector.broadcast %761 : vector<1x8xf32> to vector<8x8xf32>
    %763 = arith.addf %759, %762 : vector<8x8xf32>
    %cst_647 = arith.constant 0.353553385 : f32
    %764 = vector.broadcast %cst_647 : f32 to vector<8x8xf32>
    %765 = arith.mulf %749, %764 : vector<8x8xf32>
    %cst_648 = arith.constant dense<0.000000e+00> : vector<8x8xf32>
    %766 = tpu.matmul %765, %756, %cst_648 {dimension_numbers = #tpu.dot_dimension_numbers<[1], [1], [0], [0], [0, 0, 1, 0], [], []>} : vector<8x8xf32>, vector<8x8xf32>, vector<8x8xf32> -> vector<8x8xf32>
    %767 = arith.addf %766, %5 : vector<8x8xf32>
    %cst_649 = arith.constant dense<0xFF800000> : vector<8xf32>
    %768 = vector.multi_reduction <maximumf>, %767, %cst_649 [1] : vector<8x8xf32> to vector<8xf32>
    %769 = vector.shape_cast %768 : vector<8xf32> to vector<8x1xf32>
    %770 = vector.broadcast %769 : vector<8x1xf32> to vector<8x8xf32>
    %771 = arith.subf %767, %770 : vector<8x8xf32>
    %772 = math.exp %771 : vector<8x8xf32>
    %cst_650 = arith.constant dense<0.000000e+00> : vector<8xf32>
    %773 = vector.multi_reduction <add>, %772, %cst_650 [1] : vector<8x8xf32> to vector<8xf32>
    %774 = vector.shape_cast %773 : vector<8xf32> to vector<8x1xf32>
    %775 = tpu.reciprocal %774 : vector<8x1xf32> -> vector<8x1xf32>
    %776 = vector.broadcast %775 : vector<8x1xf32> to vector<8x8xf32>
    %777 = arith.mulf %772, %776 : vector<8x8xf32>
    %cst_651 = arith.constant dense<0.000000e+00> : vector<8x8xf32>
    %778 = tpu.matmul %777, %763, %cst_651 {dimension_numbers = #tpu.dot_dimension_numbers<[1], [0], [0], [1], [0, 0, 1, 1], [], []>} : vector<8x8xf32>, vector<8x8xf32>, vector<8x8xf32> -> vector<8x8xf32>
    %c0_652 = arith.constant 0 : index
    %c2_653 = arith.constant 2 : index
    %c0_654 = arith.constant 0 : index
    %c0_655 = arith.constant 0 : index
    %779 = vector.load %arg38[%c0_652, %c2_653, %c0_654, %c0_655] : memref<2x4x8x32xf32, #tpu.memory_space<vmem>>, vector<1x1x8x32xf32>
    %780 = vector.shape_cast %779 : vector<1x1x8x32xf32> to vector<8x32xf32>
    %cst_656 = arith.constant dense<0.000000e+00> : vector<8x32xf32>
    %781 = tpu.matmul %778, %780, %cst_656 {dimension_numbers = #tpu.dot_dimension_numbers<[1], [0], [0], [1], [0, 0, 1, 1], [], []>} : vector<8x8xf32>, vector<8x32xf32>, vector<8x32xf32> -> vector<8x32xf32>
    %782 = arith.addf %742, %781 : vector<8x32xf32>
    %c0_657 = arith.constant 0 : index
    %c3_658 = arith.constant 3 : index
    %c0_659 = arith.constant 0 : index
    %c0_660 = arith.constant 0 : index
    %783 = vector.load %arg32[%c0_657, %c3_658, %c0_659, %c0_660] : memref<2x4x32x8xf32, #tpu.memory_space<vmem>>, vector<1x1x32x8xf32>
    %784 = vector.shape_cast %783 : vector<1x1x32x8xf32> to vector<32x8xf32>
    %cst_661 = arith.constant dense<0.000000e+00> : vector<8x8xf32>
    %785 = tpu.matmul %663, %784, %cst_661 {dimension_numbers = #tpu.dot_dimension_numbers<[1], [0], [0], [1], [0, 0, 1, 1], [], []>} : vector<8x32xf32>, vector<32x8xf32>, vector<8x8xf32> -> vector<8x8xf32>
    %c0_662 = arith.constant 0 : index
    %c3_663 = arith.constant 3 : index
    %c0_664 = arith.constant 0 : index
    %c0_665 = arith.constant 0 : index
    %786 = vector.load %arg33[%c0_662, %c3_663, %c0_664, %c0_665] : memref<2x4x1x8xf32, #tpu.memory_space<vmem>>, vector<1x1x1x8xf32>
    %787 = vector.shape_cast %786 : vector<1x1x1x8xf32> to vector<1x8xf32>
    %788 = vector.broadcast %787 : vector<1x8xf32> to vector<8x8xf32>
    %789 = arith.addf %785, %788 : vector<8x8xf32>
    %c0_666 = arith.constant 0 : index
    %c3_667 = arith.constant 3 : index
    %c0_668 = arith.constant 0 : index
    %c0_669 = arith.constant 0 : index
    %790 = vector.load %arg34[%c0_666, %c3_667, %c0_668, %c0_669] : memref<2x4x32x8xf32, #tpu.memory_space<vmem>>, vector<1x1x32x8xf32>
    %791 = vector.shape_cast %790 : vector<1x1x32x8xf32> to vector<32x8xf32>
    %cst_670 = arith.constant dense<0.000000e+00> : vector<8x8xf32>
    %792 = tpu.matmul %472, %791, %cst_670 {dimension_numbers = #tpu.dot_dimension_numbers<[1], [0], [0], [1], [0, 0, 1, 1], [], []>} : vector<8x32xf32>, vector<32x8xf32>, vector<8x8xf32> -> vector<8x8xf32>
    %c0_671 = arith.constant 0 : index
    %c3_672 = arith.constant 3 : index
    %c0_673 = arith.constant 0 : index
    %c0_674 = arith.constant 0 : index
    %793 = vector.load %arg35[%c0_671, %c3_672, %c0_673, %c0_674] : memref<2x4x1x8xf32, #tpu.memory_space<vmem>>, vector<1x1x1x8xf32>
    %794 = vector.shape_cast %793 : vector<1x1x1x8xf32> to vector<1x8xf32>
    %795 = vector.broadcast %794 : vector<1x8xf32> to vector<8x8xf32>
    %796 = arith.addf %792, %795 : vector<8x8xf32>
    %c0_675 = arith.constant 0 : index
    %c3_676 = arith.constant 3 : index
    %c0_677 = arith.constant 0 : index
    %c0_678 = arith.constant 0 : index
    %797 = vector.load %arg36[%c0_675, %c3_676, %c0_677, %c0_678] : memref<2x4x32x8xf32, #tpu.memory_space<vmem>>, vector<1x1x32x8xf32>
    %798 = vector.shape_cast %797 : vector<1x1x32x8xf32> to vector<32x8xf32>
    %cst_679 = arith.constant dense<0.000000e+00> : vector<8x8xf32>
    %799 = tpu.matmul %472, %798, %cst_679 {dimension_numbers = #tpu.dot_dimension_numbers<[1], [0], [0], [1], [0, 0, 1, 1], [], []>} : vector<8x32xf32>, vector<32x8xf32>, vector<8x8xf32> -> vector<8x8xf32>
    %c0_680 = arith.constant 0 : index
    %c3_681 = arith.constant 3 : index
    %c0_682 = arith.constant 0 : index
    %c0_683 = arith.constant 0 : index
    %800 = vector.load %arg37[%c0_680, %c3_681, %c0_682, %c0_683] : memref<2x4x1x8xf32, #tpu.memory_space<vmem>>, vector<1x1x1x8xf32>
    %801 = vector.shape_cast %800 : vector<1x1x1x8xf32> to vector<1x8xf32>
    %802 = vector.broadcast %801 : vector<1x8xf32> to vector<8x8xf32>
    %803 = arith.addf %799, %802 : vector<8x8xf32>
    %cst_684 = arith.constant 0.353553385 : f32
    %804 = vector.broadcast %cst_684 : f32 to vector<8x8xf32>
    %805 = arith.mulf %789, %804 : vector<8x8xf32>
    %cst_685 = arith.constant dense<0.000000e+00> : vector<8x8xf32>
    %806 = tpu.matmul %805, %796, %cst_685 {dimension_numbers = #tpu.dot_dimension_numbers<[1], [1], [0], [0], [0, 0, 1, 0], [], []>} : vector<8x8xf32>, vector<8x8xf32>, vector<8x8xf32> -> vector<8x8xf32>
    %807 = arith.addf %806, %5 : vector<8x8xf32>
    %cst_686 = arith.constant dense<0xFF800000> : vector<8xf32>
    %808 = vector.multi_reduction <maximumf>, %807, %cst_686 [1] : vector<8x8xf32> to vector<8xf32>
    %809 = vector.shape_cast %808 : vector<8xf32> to vector<8x1xf32>
    %810 = vector.broadcast %809 : vector<8x1xf32> to vector<8x8xf32>
    %811 = arith.subf %807, %810 : vector<8x8xf32>
    %812 = math.exp %811 : vector<8x8xf32>
    %cst_687 = arith.constant dense<0.000000e+00> : vector<8xf32>
    %813 = vector.multi_reduction <add>, %812, %cst_687 [1] : vector<8x8xf32> to vector<8xf32>
    %814 = vector.shape_cast %813 : vector<8xf32> to vector<8x1xf32>
    %815 = tpu.reciprocal %814 : vector<8x1xf32> -> vector<8x1xf32>
    %816 = vector.broadcast %815 : vector<8x1xf32> to vector<8x8xf32>
    %817 = arith.mulf %812, %816 : vector<8x8xf32>
    %cst_688 = arith.constant dense<0.000000e+00> : vector<8x8xf32>
    %818 = tpu.matmul %817, %803, %cst_688 {dimension_numbers = #tpu.dot_dimension_numbers<[1], [0], [0], [1], [0, 0, 1, 1], [], []>} : vector<8x8xf32>, vector<8x8xf32>, vector<8x8xf32> -> vector<8x8xf32>
    %c0_689 = arith.constant 0 : index
    %c3_690 = arith.constant 3 : index
    %c0_691 = arith.constant 0 : index
    %c0_692 = arith.constant 0 : index
    %819 = vector.load %arg38[%c0_689, %c3_690, %c0_691, %c0_692] : memref<2x4x8x32xf32, #tpu.memory_space<vmem>>, vector<1x1x8x32xf32>
    %820 = vector.shape_cast %819 : vector<1x1x8x32xf32> to vector<8x32xf32>
    %cst_693 = arith.constant dense<0.000000e+00> : vector<8x32xf32>
    %821 = tpu.matmul %818, %820, %cst_693 {dimension_numbers = #tpu.dot_dimension_numbers<[1], [0], [0], [1], [0, 0, 1, 1], [], []>} : vector<8x8xf32>, vector<8x32xf32>, vector<8x32xf32> -> vector<8x32xf32>
    %822 = arith.addf %782, %821 : vector<8x32xf32>
    %c0_694 = arith.constant 0 : index
    %c0_695 = arith.constant 0 : index
    %c0_696 = arith.constant 0 : index
    %823 = vector.load %arg39[%c0_694, %c0_695, %c0_696] : memref<2x1x32xf32, #tpu.memory_space<vmem>>, vector<1x1x32xf32>
    %824 = vector.shape_cast %823 : vector<1x1x32xf32> to vector<1x32xf32>
    %825 = vector.broadcast %824 : vector<1x32xf32> to vector<8x32xf32>
    %826 = arith.addf %822, %825 : vector<8x32xf32>
    %827 = arith.addf %663, %826 : vector<8x32xf32>
    %c0_697 = arith.constant 0 : index
    %c0_698 = arith.constant 0 : index
    %c0_699 = arith.constant 0 : index
    %828 = vector.load %arg40[%c0_697, %c0_698, %c0_699] : memref<2x1x32xf32, #tpu.memory_space<vmem>>, vector<1x1x32xf32>
    %829 = vector.shape_cast %828 : vector<1x1x32xf32> to vector<1x32xf32>
    %c0_700 = arith.constant 0 : index
    %c0_701 = arith.constant 0 : index
    %c0_702 = arith.constant 0 : index
    %830 = vector.load %arg41[%c0_700, %c0_701, %c0_702] : memref<2x1x32xf32, #tpu.memory_space<vmem>>, vector<1x1x32xf32>
    %831 = vector.shape_cast %830 : vector<1x1x32xf32> to vector<1x32xf32>
    %cst_703 = arith.constant dense<0.000000e+00> : vector<8xf32>
    %832 = vector.multi_reduction <add>, %827, %cst_703 [1] : vector<8x32xf32> to vector<8xf32>
    %833 = vector.shape_cast %832 : vector<8xf32> to vector<8x1xf32>
    %cst_704 = arith.constant 3.200000e+01 : f32
    %834 = vector.broadcast %cst_704 : f32 to vector<8x1xf32>
    %835 = arith.divf %833, %834 : vector<8x1xf32>
    %836 = vector.broadcast %835 : vector<8x1xf32> to vector<8x32xf32>
    %837 = arith.subf %827, %836 : vector<8x32xf32>
    %838 = arith.mulf %837, %837 : vector<8x32xf32>
    %cst_705 = arith.constant dense<0.000000e+00> : vector<8xf32>
    %839 = vector.multi_reduction <add>, %838, %cst_705 [1] : vector<8x32xf32> to vector<8xf32>
    %840 = vector.shape_cast %839 : vector<8xf32> to vector<8x1xf32>
    %cst_706 = arith.constant 3.200000e+01 : f32
    %841 = vector.broadcast %cst_706 : f32 to vector<8x1xf32>
    %842 = arith.divf %840, %841 : vector<8x1xf32>
    %cst_707 = arith.constant 9.99999996E-13 : f32
    %843 = vector.broadcast %cst_707 : f32 to vector<8x1xf32>
    %844 = arith.addf %842, %843 : vector<8x1xf32>
    %845 = math.rsqrt %844 : vector<8x1xf32>
    %846 = vector.broadcast %835 : vector<8x1xf32> to vector<8x32xf32>
    %847 = arith.subf %827, %846 : vector<8x32xf32>
    %848 = vector.broadcast %845 : vector<8x1xf32> to vector<8x32xf32>
    %849 = arith.mulf %847, %848 : vector<8x32xf32>
    %850 = vector.broadcast %829 : vector<1x32xf32> to vector<8x32xf32>
    %851 = arith.mulf %849, %850 : vector<8x32xf32>
    %852 = vector.broadcast %831 : vector<1x32xf32> to vector<8x32xf32>
    %853 = arith.addf %851, %852 : vector<8x32xf32>
    %c0_708 = arith.constant 0 : index
    %c0_709 = arith.constant 0 : index
    %c0_710 = arith.constant 0 : index
    %854 = vector.load %arg42[%c0_708, %c0_709, %c0_710] : memref<2x32x64xf32, #tpu.memory_space<vmem>>, vector<1x32x64xf32>
    %855 = vector.shape_cast %854 : vector<1x32x64xf32> to vector<32x64xf32>
    %cst_711 = arith.constant dense<0.000000e+00> : vector<8x64xf32>
    %856 = tpu.matmul %853, %855, %cst_711 {dimension_numbers = #tpu.dot_dimension_numbers<[1], [0], [0], [1], [0, 0, 1, 1], [], []>} : vector<8x32xf32>, vector<32x64xf32>, vector<8x64xf32> -> vector<8x64xf32>
    %c0_712 = arith.constant 0 : index
    %c0_713 = arith.constant 0 : index
    %c0_714 = arith.constant 0 : index
    %857 = vector.load %arg43[%c0_712, %c0_713, %c0_714] : memref<2x1x64xf32, #tpu.memory_space<vmem>>, vector<1x1x64xf32>
    %858 = vector.shape_cast %857 : vector<1x1x64xf32> to vector<1x64xf32>
    %859 = vector.broadcast %858 : vector<1x64xf32> to vector<8x64xf32>
    %860 = arith.addf %856, %859 : vector<8x64xf32>
    %cst_715 = arith.constant 0.000000e+00 : f32
    %861 = vector.broadcast %cst_715 : f32 to vector<8x64xf32>
    %862 = arith.maximumf %860, %861 : vector<8x64xf32>
    %c0_716 = arith.constant 0 : index
    %c0_717 = arith.constant 0 : index
    %c0_718 = arith.constant 0 : index
    %863 = vector.load %arg44[%c0_716, %c0_717, %c0_718] : memref<2x64x32xf32, #tpu.memory_space<vmem>>, vector<1x64x32xf32>
    %864 = vector.shape_cast %863 : vector<1x64x32xf32> to vector<64x32xf32>
    %cst_719 = arith.constant dense<0.000000e+00> : vector<8x32xf32>
    %865 = tpu.matmul %862, %864, %cst_719 {dimension_numbers = #tpu.dot_dimension_numbers<[1], [0], [0], [1], [0, 0, 1, 1], [], []>} : vector<8x64xf32>, vector<64x32xf32>, vector<8x32xf32> -> vector<8x32xf32>
    %c0_720 = arith.constant 0 : index
    %c0_721 = arith.constant 0 : index
    %c0_722 = arith.constant 0 : index
    %866 = vector.load %arg45[%c0_720, %c0_721, %c0_722] : memref<2x1x32xf32, #tpu.memory_space<vmem>>, vector<1x1x32xf32>
    %867 = vector.shape_cast %866 : vector<1x1x32xf32> to vector<1x32xf32>
    %868 = vector.broadcast %867 : vector<1x32xf32> to vector<8x32xf32>
    %869 = arith.addf %865, %868 : vector<8x32xf32>
    %870 = arith.addf %853, %869 : vector<8x32xf32>
    %c0_723 = arith.constant 0 : index
    %c0_724 = arith.constant 0 : index
    %c0_725 = arith.constant 0 : index
    %871 = vector.load %arg46[%c0_723, %c0_724, %c0_725] : memref<2x1x32xf32, #tpu.memory_space<vmem>>, vector<1x1x32xf32>
    %872 = vector.shape_cast %871 : vector<1x1x32xf32> to vector<1x32xf32>
    %c0_726 = arith.constant 0 : index
    %c0_727 = arith.constant 0 : index
    %c0_728 = arith.constant 0 : index
    %873 = vector.load %arg47[%c0_726, %c0_727, %c0_728] : memref<2x1x32xf32, #tpu.memory_space<vmem>>, vector<1x1x32xf32>
    %874 = vector.shape_cast %873 : vector<1x1x32xf32> to vector<1x32xf32>
    %cst_729 = arith.constant dense<0.000000e+00> : vector<8xf32>
    %875 = vector.multi_reduction <add>, %870, %cst_729 [1] : vector<8x32xf32> to vector<8xf32>
    %876 = vector.shape_cast %875 : vector<8xf32> to vector<8x1xf32>
    %cst_730 = arith.constant 3.200000e+01 : f32
    %877 = vector.broadcast %cst_730 : f32 to vector<8x1xf32>
    %878 = arith.divf %876, %877 : vector<8x1xf32>
    %879 = vector.broadcast %878 : vector<8x1xf32> to vector<8x32xf32>
    %880 = arith.subf %870, %879 : vector<8x32xf32>
    %881 = arith.mulf %880, %880 : vector<8x32xf32>
    %cst_731 = arith.constant dense<0.000000e+00> : vector<8xf32>
    %882 = vector.multi_reduction <add>, %881, %cst_731 [1] : vector<8x32xf32> to vector<8xf32>
    %883 = vector.shape_cast %882 : vector<8xf32> to vector<8x1xf32>
    %cst_732 = arith.constant 3.200000e+01 : f32
    %884 = vector.broadcast %cst_732 : f32 to vector<8x1xf32>
    %885 = arith.divf %883, %884 : vector<8x1xf32>
    %cst_733 = arith.constant 9.99999996E-13 : f32
    %886 = vector.broadcast %cst_733 : f32 to vector<8x1xf32>
    %887 = arith.addf %885, %886 : vector<8x1xf32>
    %888 = math.rsqrt %887 : vector<8x1xf32>
    %889 = vector.broadcast %878 : vector<8x1xf32> to vector<8x32xf32>
    %890 = arith.subf %870, %889 : vector<8x32xf32>
    %891 = vector.broadcast %888 : vector<8x1xf32> to vector<8x32xf32>
    %892 = arith.mulf %890, %891 : vector<8x32xf32>
    %893 = vector.broadcast %872 : vector<1x32xf32> to vector<8x32xf32>
    %894 = arith.mulf %892, %893 : vector<8x32xf32>
    %895 = vector.broadcast %874 : vector<1x32xf32> to vector<8x32xf32>
    %896 = arith.addf %894, %895 : vector<8x32xf32>
    %c1_734 = arith.constant 1 : index
    %c0_735 = arith.constant 0 : index
    %c0_736 = arith.constant 0 : index
    %c0_737 = arith.constant 0 : index
    %897 = vector.load %arg22[%c1_734, %c0_735, %c0_736, %c0_737] : memref<2x4x32x8xf32, #tpu.memory_space<vmem>>, vector<1x1x32x8xf32>
    %898 = vector.shape_cast %897 : vector<1x1x32x8xf32> to vector<32x8xf32>
    %cst_738 = arith.constant dense<0.000000e+00> : vector<8x8xf32>
    %899 = tpu.matmul %896, %898, %cst_738 {dimension_numbers = #tpu.dot_dimension_numbers<[1], [0], [0], [1], [0, 0, 1, 1], [], []>} : vector<8x32xf32>, vector<32x8xf32>, vector<8x8xf32> -> vector<8x8xf32>
    %c1_739 = arith.constant 1 : index
    %c0_740 = arith.constant 0 : index
    %c0_741 = arith.constant 0 : index
    %c0_742 = arith.constant 0 : index
    %900 = vector.load %arg23[%c1_739, %c0_740, %c0_741, %c0_742] : memref<2x4x1x8xf32, #tpu.memory_space<vmem>>, vector<1x1x1x8xf32>
    %901 = vector.shape_cast %900 : vector<1x1x1x8xf32> to vector<1x8xf32>
    %902 = vector.broadcast %901 : vector<1x8xf32> to vector<8x8xf32>
    %903 = arith.addf %899, %902 : vector<8x8xf32>
    %c1_743 = arith.constant 1 : index
    %c0_744 = arith.constant 0 : index
    %c0_745 = arith.constant 0 : index
    %c0_746 = arith.constant 0 : index
    %904 = vector.load %arg24[%c1_743, %c0_744, %c0_745, %c0_746] : memref<2x4x32x8xf32, #tpu.memory_space<vmem>>, vector<1x1x32x8xf32>
    %905 = vector.shape_cast %904 : vector<1x1x32x8xf32> to vector<32x8xf32>
    %cst_747 = arith.constant dense<0.000000e+00> : vector<8x8xf32>
    %906 = tpu.matmul %896, %905, %cst_747 {dimension_numbers = #tpu.dot_dimension_numbers<[1], [0], [0], [1], [0, 0, 1, 1], [], []>} : vector<8x32xf32>, vector<32x8xf32>, vector<8x8xf32> -> vector<8x8xf32>
    %c1_748 = arith.constant 1 : index
    %c0_749 = arith.constant 0 : index
    %c0_750 = arith.constant 0 : index
    %c0_751 = arith.constant 0 : index
    %907 = vector.load %arg25[%c1_748, %c0_749, %c0_750, %c0_751] : memref<2x4x1x8xf32, #tpu.memory_space<vmem>>, vector<1x1x1x8xf32>
    %908 = vector.shape_cast %907 : vector<1x1x1x8xf32> to vector<1x8xf32>
    %909 = vector.broadcast %908 : vector<1x8xf32> to vector<8x8xf32>
    %910 = arith.addf %906, %909 : vector<8x8xf32>
    %c1_752 = arith.constant 1 : index
    %c0_753 = arith.constant 0 : index
    %c0_754 = arith.constant 0 : index
    %c0_755 = arith.constant 0 : index
    %911 = vector.load %arg26[%c1_752, %c0_753, %c0_754, %c0_755] : memref<2x4x32x8xf32, #tpu.memory_space<vmem>>, vector<1x1x32x8xf32>
    %912 = vector.shape_cast %911 : vector<1x1x32x8xf32> to vector<32x8xf32>
    %cst_756 = arith.constant dense<0.000000e+00> : vector<8x8xf32>
    %913 = tpu.matmul %896, %912, %cst_756 {dimension_numbers = #tpu.dot_dimension_numbers<[1], [0], [0], [1], [0, 0, 1, 1], [], []>} : vector<8x32xf32>, vector<32x8xf32>, vector<8x8xf32> -> vector<8x8xf32>
    %c1_757 = arith.constant 1 : index
    %c0_758 = arith.constant 0 : index
    %c0_759 = arith.constant 0 : index
    %c0_760 = arith.constant 0 : index
    %914 = vector.load %arg27[%c1_757, %c0_758, %c0_759, %c0_760] : memref<2x4x1x8xf32, #tpu.memory_space<vmem>>, vector<1x1x1x8xf32>
    %915 = vector.shape_cast %914 : vector<1x1x1x8xf32> to vector<1x8xf32>
    %916 = vector.broadcast %915 : vector<1x8xf32> to vector<8x8xf32>
    %917 = arith.addf %913, %916 : vector<8x8xf32>
    %cst_761 = arith.constant 0.353553385 : f32
    %918 = vector.broadcast %cst_761 : f32 to vector<8x8xf32>
    %919 = arith.mulf %903, %918 : vector<8x8xf32>
    %cst_762 = arith.constant dense<0.000000e+00> : vector<8x8xf32>
    %920 = tpu.matmul %919, %910, %cst_762 {dimension_numbers = #tpu.dot_dimension_numbers<[1], [1], [0], [0], [0, 0, 1, 0], [], []>} : vector<8x8xf32>, vector<8x8xf32>, vector<8x8xf32> -> vector<8x8xf32>
    %921 = arith.addf %920, %3 : vector<8x8xf32>
    %cst_763 = arith.constant dense<0xFF800000> : vector<8xf32>
    %922 = vector.multi_reduction <maximumf>, %921, %cst_763 [1] : vector<8x8xf32> to vector<8xf32>
    %923 = vector.shape_cast %922 : vector<8xf32> to vector<8x1xf32>
    %924 = vector.broadcast %923 : vector<8x1xf32> to vector<8x8xf32>
    %925 = arith.subf %921, %924 : vector<8x8xf32>
    %926 = math.exp %925 : vector<8x8xf32>
    %cst_764 = arith.constant dense<0.000000e+00> : vector<8xf32>
    %927 = vector.multi_reduction <add>, %926, %cst_764 [1] : vector<8x8xf32> to vector<8xf32>
    %928 = vector.shape_cast %927 : vector<8xf32> to vector<8x1xf32>
    %929 = tpu.reciprocal %928 : vector<8x1xf32> -> vector<8x1xf32>
    %930 = vector.broadcast %929 : vector<8x1xf32> to vector<8x8xf32>
    %931 = arith.mulf %926, %930 : vector<8x8xf32>
    %cst_765 = arith.constant dense<0.000000e+00> : vector<8x8xf32>
    %932 = tpu.matmul %931, %917, %cst_765 {dimension_numbers = #tpu.dot_dimension_numbers<[1], [0], [0], [1], [0, 0, 1, 1], [], []>} : vector<8x8xf32>, vector<8x8xf32>, vector<8x8xf32> -> vector<8x8xf32>
    %c1_766 = arith.constant 1 : index
    %c0_767 = arith.constant 0 : index
    %c0_768 = arith.constant 0 : index
    %c0_769 = arith.constant 0 : index
    %933 = vector.load %arg28[%c1_766, %c0_767, %c0_768, %c0_769] : memref<2x4x8x32xf32, #tpu.memory_space<vmem>>, vector<1x1x8x32xf32>
    %934 = vector.shape_cast %933 : vector<1x1x8x32xf32> to vector<8x32xf32>
    %cst_770 = arith.constant dense<0.000000e+00> : vector<8x32xf32>
    %935 = tpu.matmul %932, %934, %cst_770 {dimension_numbers = #tpu.dot_dimension_numbers<[1], [0], [0], [1], [0, 0, 1, 1], [], []>} : vector<8x8xf32>, vector<8x32xf32>, vector<8x32xf32> -> vector<8x32xf32>
    %c1_771 = arith.constant 1 : index
    %c1_772 = arith.constant 1 : index
    %c0_773 = arith.constant 0 : index
    %c0_774 = arith.constant 0 : index
    %936 = vector.load %arg22[%c1_771, %c1_772, %c0_773, %c0_774] : memref<2x4x32x8xf32, #tpu.memory_space<vmem>>, vector<1x1x32x8xf32>
    %937 = vector.shape_cast %936 : vector<1x1x32x8xf32> to vector<32x8xf32>
    %cst_775 = arith.constant dense<0.000000e+00> : vector<8x8xf32>
    %938 = tpu.matmul %896, %937, %cst_775 {dimension_numbers = #tpu.dot_dimension_numbers<[1], [0], [0], [1], [0, 0, 1, 1], [], []>} : vector<8x32xf32>, vector<32x8xf32>, vector<8x8xf32> -> vector<8x8xf32>
    %c1_776 = arith.constant 1 : index
    %c1_777 = arith.constant 1 : index
    %c0_778 = arith.constant 0 : index
    %c0_779 = arith.constant 0 : index
    %939 = vector.load %arg23[%c1_776, %c1_777, %c0_778, %c0_779] : memref<2x4x1x8xf32, #tpu.memory_space<vmem>>, vector<1x1x1x8xf32>
    %940 = vector.shape_cast %939 : vector<1x1x1x8xf32> to vector<1x8xf32>
    %941 = vector.broadcast %940 : vector<1x8xf32> to vector<8x8xf32>
    %942 = arith.addf %938, %941 : vector<8x8xf32>
    %c1_780 = arith.constant 1 : index
    %c1_781 = arith.constant 1 : index
    %c0_782 = arith.constant 0 : index
    %c0_783 = arith.constant 0 : index
    %943 = vector.load %arg24[%c1_780, %c1_781, %c0_782, %c0_783] : memref<2x4x32x8xf32, #tpu.memory_space<vmem>>, vector<1x1x32x8xf32>
    %944 = vector.shape_cast %943 : vector<1x1x32x8xf32> to vector<32x8xf32>
    %cst_784 = arith.constant dense<0.000000e+00> : vector<8x8xf32>
    %945 = tpu.matmul %896, %944, %cst_784 {dimension_numbers = #tpu.dot_dimension_numbers<[1], [0], [0], [1], [0, 0, 1, 1], [], []>} : vector<8x32xf32>, vector<32x8xf32>, vector<8x8xf32> -> vector<8x8xf32>
    %c1_785 = arith.constant 1 : index
    %c1_786 = arith.constant 1 : index
    %c0_787 = arith.constant 0 : index
    %c0_788 = arith.constant 0 : index
    %946 = vector.load %arg25[%c1_785, %c1_786, %c0_787, %c0_788] : memref<2x4x1x8xf32, #tpu.memory_space<vmem>>, vector<1x1x1x8xf32>
    %947 = vector.shape_cast %946 : vector<1x1x1x8xf32> to vector<1x8xf32>
    %948 = vector.broadcast %947 : vector<1x8xf32> to vector<8x8xf32>
    %949 = arith.addf %945, %948 : vector<8x8xf32>
    %c1_789 = arith.constant 1 : index
    %c1_790 = arith.constant 1 : index
    %c0_791 = arith.constant 0 : index
    %c0_792 = arith.constant 0 : index
    %950 = vector.load %arg26[%c1_789, %c1_790, %c0_791, %c0_792] : memref<2x4x32x8xf32, #tpu.memory_space<vmem>>, vector<1x1x32x8xf32>
    %951 = vector.shape_cast %950 : vector<1x1x32x8xf32> to vector<32x8xf32>
    %cst_793 = arith.constant dense<0.000000e+00> : vector<8x8xf32>
    %952 = tpu.matmul %896, %951, %cst_793 {dimension_numbers = #tpu.dot_dimension_numbers<[1], [0], [0], [1], [0, 0, 1, 1], [], []>} : vector<8x32xf32>, vector<32x8xf32>, vector<8x8xf32> -> vector<8x8xf32>
    %c1_794 = arith.constant 1 : index
    %c1_795 = arith.constant 1 : index
    %c0_796 = arith.constant 0 : index
    %c0_797 = arith.constant 0 : index
    %953 = vector.load %arg27[%c1_794, %c1_795, %c0_796, %c0_797] : memref<2x4x1x8xf32, #tpu.memory_space<vmem>>, vector<1x1x1x8xf32>
    %954 = vector.shape_cast %953 : vector<1x1x1x8xf32> to vector<1x8xf32>
    %955 = vector.broadcast %954 : vector<1x8xf32> to vector<8x8xf32>
    %956 = arith.addf %952, %955 : vector<8x8xf32>
    %cst_798 = arith.constant 0.353553385 : f32
    %957 = vector.broadcast %cst_798 : f32 to vector<8x8xf32>
    %958 = arith.mulf %942, %957 : vector<8x8xf32>
    %cst_799 = arith.constant dense<0.000000e+00> : vector<8x8xf32>
    %959 = tpu.matmul %958, %949, %cst_799 {dimension_numbers = #tpu.dot_dimension_numbers<[1], [1], [0], [0], [0, 0, 1, 0], [], []>} : vector<8x8xf32>, vector<8x8xf32>, vector<8x8xf32> -> vector<8x8xf32>
    %960 = arith.addf %959, %3 : vector<8x8xf32>
    %cst_800 = arith.constant dense<0xFF800000> : vector<8xf32>
    %961 = vector.multi_reduction <maximumf>, %960, %cst_800 [1] : vector<8x8xf32> to vector<8xf32>
    %962 = vector.shape_cast %961 : vector<8xf32> to vector<8x1xf32>
    %963 = vector.broadcast %962 : vector<8x1xf32> to vector<8x8xf32>
    %964 = arith.subf %960, %963 : vector<8x8xf32>
    %965 = math.exp %964 : vector<8x8xf32>
    %cst_801 = arith.constant dense<0.000000e+00> : vector<8xf32>
    %966 = vector.multi_reduction <add>, %965, %cst_801 [1] : vector<8x8xf32> to vector<8xf32>
    %967 = vector.shape_cast %966 : vector<8xf32> to vector<8x1xf32>
    %968 = tpu.reciprocal %967 : vector<8x1xf32> -> vector<8x1xf32>
    %969 = vector.broadcast %968 : vector<8x1xf32> to vector<8x8xf32>
    %970 = arith.mulf %965, %969 : vector<8x8xf32>
    %cst_802 = arith.constant dense<0.000000e+00> : vector<8x8xf32>
    %971 = tpu.matmul %970, %956, %cst_802 {dimension_numbers = #tpu.dot_dimension_numbers<[1], [0], [0], [1], [0, 0, 1, 1], [], []>} : vector<8x8xf32>, vector<8x8xf32>, vector<8x8xf32> -> vector<8x8xf32>
    %c1_803 = arith.constant 1 : index
    %c1_804 = arith.constant 1 : index
    %c0_805 = arith.constant 0 : index
    %c0_806 = arith.constant 0 : index
    %972 = vector.load %arg28[%c1_803, %c1_804, %c0_805, %c0_806] : memref<2x4x8x32xf32, #tpu.memory_space<vmem>>, vector<1x1x8x32xf32>
    %973 = vector.shape_cast %972 : vector<1x1x8x32xf32> to vector<8x32xf32>
    %cst_807 = arith.constant dense<0.000000e+00> : vector<8x32xf32>
    %974 = tpu.matmul %971, %973, %cst_807 {dimension_numbers = #tpu.dot_dimension_numbers<[1], [0], [0], [1], [0, 0, 1, 1], [], []>} : vector<8x8xf32>, vector<8x32xf32>, vector<8x32xf32> -> vector<8x32xf32>
    %975 = arith.addf %935, %974 : vector<8x32xf32>
    %c1_808 = arith.constant 1 : index
    %c2_809 = arith.constant 2 : index
    %c0_810 = arith.constant 0 : index
    %c0_811 = arith.constant 0 : index
    %976 = vector.load %arg22[%c1_808, %c2_809, %c0_810, %c0_811] : memref<2x4x32x8xf32, #tpu.memory_space<vmem>>, vector<1x1x32x8xf32>
    %977 = vector.shape_cast %976 : vector<1x1x32x8xf32> to vector<32x8xf32>
    %cst_812 = arith.constant dense<0.000000e+00> : vector<8x8xf32>
    %978 = tpu.matmul %896, %977, %cst_812 {dimension_numbers = #tpu.dot_dimension_numbers<[1], [0], [0], [1], [0, 0, 1, 1], [], []>} : vector<8x32xf32>, vector<32x8xf32>, vector<8x8xf32> -> vector<8x8xf32>
    %c1_813 = arith.constant 1 : index
    %c2_814 = arith.constant 2 : index
    %c0_815 = arith.constant 0 : index
    %c0_816 = arith.constant 0 : index
    %979 = vector.load %arg23[%c1_813, %c2_814, %c0_815, %c0_816] : memref<2x4x1x8xf32, #tpu.memory_space<vmem>>, vector<1x1x1x8xf32>
    %980 = vector.shape_cast %979 : vector<1x1x1x8xf32> to vector<1x8xf32>
    %981 = vector.broadcast %980 : vector<1x8xf32> to vector<8x8xf32>
    %982 = arith.addf %978, %981 : vector<8x8xf32>
    %c1_817 = arith.constant 1 : index
    %c2_818 = arith.constant 2 : index
    %c0_819 = arith.constant 0 : index
    %c0_820 = arith.constant 0 : index
    %983 = vector.load %arg24[%c1_817, %c2_818, %c0_819, %c0_820] : memref<2x4x32x8xf32, #tpu.memory_space<vmem>>, vector<1x1x32x8xf32>
    %984 = vector.shape_cast %983 : vector<1x1x32x8xf32> to vector<32x8xf32>
    %cst_821 = arith.constant dense<0.000000e+00> : vector<8x8xf32>
    %985 = tpu.matmul %896, %984, %cst_821 {dimension_numbers = #tpu.dot_dimension_numbers<[1], [0], [0], [1], [0, 0, 1, 1], [], []>} : vector<8x32xf32>, vector<32x8xf32>, vector<8x8xf32> -> vector<8x8xf32>
    %c1_822 = arith.constant 1 : index
    %c2_823 = arith.constant 2 : index
    %c0_824 = arith.constant 0 : index
    %c0_825 = arith.constant 0 : index
    %986 = vector.load %arg25[%c1_822, %c2_823, %c0_824, %c0_825] : memref<2x4x1x8xf32, #tpu.memory_space<vmem>>, vector<1x1x1x8xf32>
    %987 = vector.shape_cast %986 : vector<1x1x1x8xf32> to vector<1x8xf32>
    %988 = vector.broadcast %987 : vector<1x8xf32> to vector<8x8xf32>
    %989 = arith.addf %985, %988 : vector<8x8xf32>
    %c1_826 = arith.constant 1 : index
    %c2_827 = arith.constant 2 : index
    %c0_828 = arith.constant 0 : index
    %c0_829 = arith.constant 0 : index
    %990 = vector.load %arg26[%c1_826, %c2_827, %c0_828, %c0_829] : memref<2x4x32x8xf32, #tpu.memory_space<vmem>>, vector<1x1x32x8xf32>
    %991 = vector.shape_cast %990 : vector<1x1x32x8xf32> to vector<32x8xf32>
    %cst_830 = arith.constant dense<0.000000e+00> : vector<8x8xf32>
    %992 = tpu.matmul %896, %991, %cst_830 {dimension_numbers = #tpu.dot_dimension_numbers<[1], [0], [0], [1], [0, 0, 1, 1], [], []>} : vector<8x32xf32>, vector<32x8xf32>, vector<8x8xf32> -> vector<8x8xf32>
    %c1_831 = arith.constant 1 : index
    %c2_832 = arith.constant 2 : index
    %c0_833 = arith.constant 0 : index
    %c0_834 = arith.constant 0 : index
    %993 = vector.load %arg27[%c1_831, %c2_832, %c0_833, %c0_834] : memref<2x4x1x8xf32, #tpu.memory_space<vmem>>, vector<1x1x1x8xf32>
    %994 = vector.shape_cast %993 : vector<1x1x1x8xf32> to vector<1x8xf32>
    %995 = vector.broadcast %994 : vector<1x8xf32> to vector<8x8xf32>
    %996 = arith.addf %992, %995 : vector<8x8xf32>
    %cst_835 = arith.constant 0.353553385 : f32
    %997 = vector.broadcast %cst_835 : f32 to vector<8x8xf32>
    %998 = arith.mulf %982, %997 : vector<8x8xf32>
    %cst_836 = arith.constant dense<0.000000e+00> : vector<8x8xf32>
    %999 = tpu.matmul %998, %989, %cst_836 {dimension_numbers = #tpu.dot_dimension_numbers<[1], [1], [0], [0], [0, 0, 1, 0], [], []>} : vector<8x8xf32>, vector<8x8xf32>, vector<8x8xf32> -> vector<8x8xf32>
    %1000 = arith.addf %999, %3 : vector<8x8xf32>
    %cst_837 = arith.constant dense<0xFF800000> : vector<8xf32>
    %1001 = vector.multi_reduction <maximumf>, %1000, %cst_837 [1] : vector<8x8xf32> to vector<8xf32>
    %1002 = vector.shape_cast %1001 : vector<8xf32> to vector<8x1xf32>
    %1003 = vector.broadcast %1002 : vector<8x1xf32> to vector<8x8xf32>
    %1004 = arith.subf %1000, %1003 : vector<8x8xf32>
    %1005 = math.exp %1004 : vector<8x8xf32>
    %cst_838 = arith.constant dense<0.000000e+00> : vector<8xf32>
    %1006 = vector.multi_reduction <add>, %1005, %cst_838 [1] : vector<8x8xf32> to vector<8xf32>
    %1007 = vector.shape_cast %1006 : vector<8xf32> to vector<8x1xf32>
    %1008 = tpu.reciprocal %1007 : vector<8x1xf32> -> vector<8x1xf32>
    %1009 = vector.broadcast %1008 : vector<8x1xf32> to vector<8x8xf32>
    %1010 = arith.mulf %1005, %1009 : vector<8x8xf32>
    %cst_839 = arith.constant dense<0.000000e+00> : vector<8x8xf32>
    %1011 = tpu.matmul %1010, %996, %cst_839 {dimension_numbers = #tpu.dot_dimension_numbers<[1], [0], [0], [1], [0, 0, 1, 1], [], []>} : vector<8x8xf32>, vector<8x8xf32>, vector<8x8xf32> -> vector<8x8xf32>
    %c1_840 = arith.constant 1 : index
    %c2_841 = arith.constant 2 : index
    %c0_842 = arith.constant 0 : index
    %c0_843 = arith.constant 0 : index
    %1012 = vector.load %arg28[%c1_840, %c2_841, %c0_842, %c0_843] : memref<2x4x8x32xf32, #tpu.memory_space<vmem>>, vector<1x1x8x32xf32>
    %1013 = vector.shape_cast %1012 : vector<1x1x8x32xf32> to vector<8x32xf32>
    %cst_844 = arith.constant dense<0.000000e+00> : vector<8x32xf32>
    %1014 = tpu.matmul %1011, %1013, %cst_844 {dimension_numbers = #tpu.dot_dimension_numbers<[1], [0], [0], [1], [0, 0, 1, 1], [], []>} : vector<8x8xf32>, vector<8x32xf32>, vector<8x32xf32> -> vector<8x32xf32>
    %1015 = arith.addf %975, %1014 : vector<8x32xf32>
    %c1_845 = arith.constant 1 : index
    %c3_846 = arith.constant 3 : index
    %c0_847 = arith.constant 0 : index
    %c0_848 = arith.constant 0 : index
    %1016 = vector.load %arg22[%c1_845, %c3_846, %c0_847, %c0_848] : memref<2x4x32x8xf32, #tpu.memory_space<vmem>>, vector<1x1x32x8xf32>
    %1017 = vector.shape_cast %1016 : vector<1x1x32x8xf32> to vector<32x8xf32>
    %cst_849 = arith.constant dense<0.000000e+00> : vector<8x8xf32>
    %1018 = tpu.matmul %896, %1017, %cst_849 {dimension_numbers = #tpu.dot_dimension_numbers<[1], [0], [0], [1], [0, 0, 1, 1], [], []>} : vector<8x32xf32>, vector<32x8xf32>, vector<8x8xf32> -> vector<8x8xf32>
    %c1_850 = arith.constant 1 : index
    %c3_851 = arith.constant 3 : index
    %c0_852 = arith.constant 0 : index
    %c0_853 = arith.constant 0 : index
    %1019 = vector.load %arg23[%c1_850, %c3_851, %c0_852, %c0_853] : memref<2x4x1x8xf32, #tpu.memory_space<vmem>>, vector<1x1x1x8xf32>
    %1020 = vector.shape_cast %1019 : vector<1x1x1x8xf32> to vector<1x8xf32>
    %1021 = vector.broadcast %1020 : vector<1x8xf32> to vector<8x8xf32>
    %1022 = arith.addf %1018, %1021 : vector<8x8xf32>
    %c1_854 = arith.constant 1 : index
    %c3_855 = arith.constant 3 : index
    %c0_856 = arith.constant 0 : index
    %c0_857 = arith.constant 0 : index
    %1023 = vector.load %arg24[%c1_854, %c3_855, %c0_856, %c0_857] : memref<2x4x32x8xf32, #tpu.memory_space<vmem>>, vector<1x1x32x8xf32>
    %1024 = vector.shape_cast %1023 : vector<1x1x32x8xf32> to vector<32x8xf32>
    %cst_858 = arith.constant dense<0.000000e+00> : vector<8x8xf32>
    %1025 = tpu.matmul %896, %1024, %cst_858 {dimension_numbers = #tpu.dot_dimension_numbers<[1], [0], [0], [1], [0, 0, 1, 1], [], []>} : vector<8x32xf32>, vector<32x8xf32>, vector<8x8xf32> -> vector<8x8xf32>
    %c1_859 = arith.constant 1 : index
    %c3_860 = arith.constant 3 : index
    %c0_861 = arith.constant 0 : index
    %c0_862 = arith.constant 0 : index
    %1026 = vector.load %arg25[%c1_859, %c3_860, %c0_861, %c0_862] : memref<2x4x1x8xf32, #tpu.memory_space<vmem>>, vector<1x1x1x8xf32>
    %1027 = vector.shape_cast %1026 : vector<1x1x1x8xf32> to vector<1x8xf32>
    %1028 = vector.broadcast %1027 : vector<1x8xf32> to vector<8x8xf32>
    %1029 = arith.addf %1025, %1028 : vector<8x8xf32>
    %c1_863 = arith.constant 1 : index
    %c3_864 = arith.constant 3 : index
    %c0_865 = arith.constant 0 : index
    %c0_866 = arith.constant 0 : index
    %1030 = vector.load %arg26[%c1_863, %c3_864, %c0_865, %c0_866] : memref<2x4x32x8xf32, #tpu.memory_space<vmem>>, vector<1x1x32x8xf32>
    %1031 = vector.shape_cast %1030 : vector<1x1x32x8xf32> to vector<32x8xf32>
    %cst_867 = arith.constant dense<0.000000e+00> : vector<8x8xf32>
    %1032 = tpu.matmul %896, %1031, %cst_867 {dimension_numbers = #tpu.dot_dimension_numbers<[1], [0], [0], [1], [0, 0, 1, 1], [], []>} : vector<8x32xf32>, vector<32x8xf32>, vector<8x8xf32> -> vector<8x8xf32>
    %c1_868 = arith.constant 1 : index
    %c3_869 = arith.constant 3 : index
    %c0_870 = arith.constant 0 : index
    %c0_871 = arith.constant 0 : index
    %1033 = vector.load %arg27[%c1_868, %c3_869, %c0_870, %c0_871] : memref<2x4x1x8xf32, #tpu.memory_space<vmem>>, vector<1x1x1x8xf32>
    %1034 = vector.shape_cast %1033 : vector<1x1x1x8xf32> to vector<1x8xf32>
    %1035 = vector.broadcast %1034 : vector<1x8xf32> to vector<8x8xf32>
    %1036 = arith.addf %1032, %1035 : vector<8x8xf32>
    %cst_872 = arith.constant 0.353553385 : f32
    %1037 = vector.broadcast %cst_872 : f32 to vector<8x8xf32>
    %1038 = arith.mulf %1022, %1037 : vector<8x8xf32>
    %cst_873 = arith.constant dense<0.000000e+00> : vector<8x8xf32>
    %1039 = tpu.matmul %1038, %1029, %cst_873 {dimension_numbers = #tpu.dot_dimension_numbers<[1], [1], [0], [0], [0, 0, 1, 0], [], []>} : vector<8x8xf32>, vector<8x8xf32>, vector<8x8xf32> -> vector<8x8xf32>
    %1040 = arith.addf %1039, %3 : vector<8x8xf32>
    %cst_874 = arith.constant dense<0xFF800000> : vector<8xf32>
    %1041 = vector.multi_reduction <maximumf>, %1040, %cst_874 [1] : vector<8x8xf32> to vector<8xf32>
    %1042 = vector.shape_cast %1041 : vector<8xf32> to vector<8x1xf32>
    %1043 = vector.broadcast %1042 : vector<8x1xf32> to vector<8x8xf32>
    %1044 = arith.subf %1040, %1043 : vector<8x8xf32>
    %1045 = math.exp %1044 : vector<8x8xf32>
    %cst_875 = arith.constant dense<0.000000e+00> : vector<8xf32>
    %1046 = vector.multi_reduction <add>, %1045, %cst_875 [1] : vector<8x8xf32> to vector<8xf32>
    %1047 = vector.shape_cast %1046 : vector<8xf32> to vector<8x1xf32>
    %1048 = tpu.reciprocal %1047 : vector<8x1xf32> -> vector<8x1xf32>
    %1049 = vector.broadcast %1048 : vector<8x1xf32> to vector<8x8xf32>
    %1050 = arith.mulf %1045, %1049 : vector<8x8xf32>
    %cst_876 = arith.constant dense<0.000000e+00> : vector<8x8xf32>
    %1051 = tpu.matmul %1050, %1036, %cst_876 {dimension_numbers = #tpu.dot_dimension_numbers<[1], [0], [0], [1], [0, 0, 1, 1], [], []>} : vector<8x8xf32>, vector<8x8xf32>, vector<8x8xf32> -> vector<8x8xf32>
    %c1_877 = arith.constant 1 : index
    %c3_878 = arith.constant 3 : index
    %c0_879 = arith.constant 0 : index
    %c0_880 = arith.constant 0 : index
    %1052 = vector.load %arg28[%c1_877, %c3_878, %c0_879, %c0_880] : memref<2x4x8x32xf32, #tpu.memory_space<vmem>>, vector<1x1x8x32xf32>
    %1053 = vector.shape_cast %1052 : vector<1x1x8x32xf32> to vector<8x32xf32>
    %cst_881 = arith.constant dense<0.000000e+00> : vector<8x32xf32>
    %1054 = tpu.matmul %1051, %1053, %cst_881 {dimension_numbers = #tpu.dot_dimension_numbers<[1], [0], [0], [1], [0, 0, 1, 1], [], []>} : vector<8x8xf32>, vector<8x32xf32>, vector<8x32xf32> -> vector<8x32xf32>
    %1055 = arith.addf %1015, %1054 : vector<8x32xf32>
    %c1_882 = arith.constant 1 : index
    %c0_883 = arith.constant 0 : index
    %c0_884 = arith.constant 0 : index
    %1056 = vector.load %arg29[%c1_882, %c0_883, %c0_884] : memref<2x1x32xf32, #tpu.memory_space<vmem>>, vector<1x1x32xf32>
    %1057 = vector.shape_cast %1056 : vector<1x1x32xf32> to vector<1x32xf32>
    %1058 = vector.broadcast %1057 : vector<1x32xf32> to vector<8x32xf32>
    %1059 = arith.addf %1055, %1058 : vector<8x32xf32>
    %1060 = arith.addf %896, %1059 : vector<8x32xf32>
    %c1_885 = arith.constant 1 : index
    %c0_886 = arith.constant 0 : index
    %c0_887 = arith.constant 0 : index
    %1061 = vector.load %arg30[%c1_885, %c0_886, %c0_887] : memref<2x1x32xf32, #tpu.memory_space<vmem>>, vector<1x1x32xf32>
    %1062 = vector.shape_cast %1061 : vector<1x1x32xf32> to vector<1x32xf32>
    %c1_888 = arith.constant 1 : index
    %c0_889 = arith.constant 0 : index
    %c0_890 = arith.constant 0 : index
    %1063 = vector.load %arg31[%c1_888, %c0_889, %c0_890] : memref<2x1x32xf32, #tpu.memory_space<vmem>>, vector<1x1x32xf32>
    %1064 = vector.shape_cast %1063 : vector<1x1x32xf32> to vector<1x32xf32>
    %cst_891 = arith.constant dense<0.000000e+00> : vector<8xf32>
    %1065 = vector.multi_reduction <add>, %1060, %cst_891 [1] : vector<8x32xf32> to vector<8xf32>
    %1066 = vector.shape_cast %1065 : vector<8xf32> to vector<8x1xf32>
    %cst_892 = arith.constant 3.200000e+01 : f32
    %1067 = vector.broadcast %cst_892 : f32 to vector<8x1xf32>
    %1068 = arith.divf %1066, %1067 : vector<8x1xf32>
    %1069 = vector.broadcast %1068 : vector<8x1xf32> to vector<8x32xf32>
    %1070 = arith.subf %1060, %1069 : vector<8x32xf32>
    %1071 = arith.mulf %1070, %1070 : vector<8x32xf32>
    %cst_893 = arith.constant dense<0.000000e+00> : vector<8xf32>
    %1072 = vector.multi_reduction <add>, %1071, %cst_893 [1] : vector<8x32xf32> to vector<8xf32>
    %1073 = vector.shape_cast %1072 : vector<8xf32> to vector<8x1xf32>
    %cst_894 = arith.constant 3.200000e+01 : f32
    %1074 = vector.broadcast %cst_894 : f32 to vector<8x1xf32>
    %1075 = arith.divf %1073, %1074 : vector<8x1xf32>
    %cst_895 = arith.constant 9.99999996E-13 : f32
    %1076 = vector.broadcast %cst_895 : f32 to vector<8x1xf32>
    %1077 = arith.addf %1075, %1076 : vector<8x1xf32>
    %1078 = math.rsqrt %1077 : vector<8x1xf32>
    %1079 = vector.broadcast %1068 : vector<8x1xf32> to vector<8x32xf32>
    %1080 = arith.subf %1060, %1079 : vector<8x32xf32>
    %1081 = vector.broadcast %1078 : vector<8x1xf32> to vector<8x32xf32>
    %1082 = arith.mulf %1080, %1081 : vector<8x32xf32>
    %1083 = vector.broadcast %1062 : vector<1x32xf32> to vector<8x32xf32>
    %1084 = arith.mulf %1082, %1083 : vector<8x32xf32>
    %1085 = vector.broadcast %1064 : vector<1x32xf32> to vector<8x32xf32>
    %1086 = arith.addf %1084, %1085 : vector<8x32xf32>
    %c1_896 = arith.constant 1 : index
    %c0_897 = arith.constant 0 : index
    %c0_898 = arith.constant 0 : index
    %c0_899 = arith.constant 0 : index
    %1087 = vector.load %arg32[%c1_896, %c0_897, %c0_898, %c0_899] : memref<2x4x32x8xf32, #tpu.memory_space<vmem>>, vector<1x1x32x8xf32>
    %1088 = vector.shape_cast %1087 : vector<1x1x32x8xf32> to vector<32x8xf32>
    %cst_900 = arith.constant dense<0.000000e+00> : vector<8x8xf32>
    %1089 = tpu.matmul %1086, %1088, %cst_900 {dimension_numbers = #tpu.dot_dimension_numbers<[1], [0], [0], [1], [0, 0, 1, 1], [], []>} : vector<8x32xf32>, vector<32x8xf32>, vector<8x8xf32> -> vector<8x8xf32>
    %c1_901 = arith.constant 1 : index
    %c0_902 = arith.constant 0 : index
    %c0_903 = arith.constant 0 : index
    %c0_904 = arith.constant 0 : index
    %1090 = vector.load %arg33[%c1_901, %c0_902, %c0_903, %c0_904] : memref<2x4x1x8xf32, #tpu.memory_space<vmem>>, vector<1x1x1x8xf32>
    %1091 = vector.shape_cast %1090 : vector<1x1x1x8xf32> to vector<1x8xf32>
    %1092 = vector.broadcast %1091 : vector<1x8xf32> to vector<8x8xf32>
    %1093 = arith.addf %1089, %1092 : vector<8x8xf32>
    %c1_905 = arith.constant 1 : index
    %c0_906 = arith.constant 0 : index
    %c0_907 = arith.constant 0 : index
    %c0_908 = arith.constant 0 : index
    %1094 = vector.load %arg34[%c1_905, %c0_906, %c0_907, %c0_908] : memref<2x4x32x8xf32, #tpu.memory_space<vmem>>, vector<1x1x32x8xf32>
    %1095 = vector.shape_cast %1094 : vector<1x1x32x8xf32> to vector<32x8xf32>
    %cst_909 = arith.constant dense<0.000000e+00> : vector<8x8xf32>
    %1096 = tpu.matmul %472, %1095, %cst_909 {dimension_numbers = #tpu.dot_dimension_numbers<[1], [0], [0], [1], [0, 0, 1, 1], [], []>} : vector<8x32xf32>, vector<32x8xf32>, vector<8x8xf32> -> vector<8x8xf32>
    %c1_910 = arith.constant 1 : index
    %c0_911 = arith.constant 0 : index
    %c0_912 = arith.constant 0 : index
    %c0_913 = arith.constant 0 : index
    %1097 = vector.load %arg35[%c1_910, %c0_911, %c0_912, %c0_913] : memref<2x4x1x8xf32, #tpu.memory_space<vmem>>, vector<1x1x1x8xf32>
    %1098 = vector.shape_cast %1097 : vector<1x1x1x8xf32> to vector<1x8xf32>
    %1099 = vector.broadcast %1098 : vector<1x8xf32> to vector<8x8xf32>
    %1100 = arith.addf %1096, %1099 : vector<8x8xf32>
    %c1_914 = arith.constant 1 : index
    %c0_915 = arith.constant 0 : index
    %c0_916 = arith.constant 0 : index
    %c0_917 = arith.constant 0 : index
    %1101 = vector.load %arg36[%c1_914, %c0_915, %c0_916, %c0_917] : memref<2x4x32x8xf32, #tpu.memory_space<vmem>>, vector<1x1x32x8xf32>
    %1102 = vector.shape_cast %1101 : vector<1x1x32x8xf32> to vector<32x8xf32>
    %cst_918 = arith.constant dense<0.000000e+00> : vector<8x8xf32>
    %1103 = tpu.matmul %472, %1102, %cst_918 {dimension_numbers = #tpu.dot_dimension_numbers<[1], [0], [0], [1], [0, 0, 1, 1], [], []>} : vector<8x32xf32>, vector<32x8xf32>, vector<8x8xf32> -> vector<8x8xf32>
    %c1_919 = arith.constant 1 : index
    %c0_920 = arith.constant 0 : index
    %c0_921 = arith.constant 0 : index
    %c0_922 = arith.constant 0 : index
    %1104 = vector.load %arg37[%c1_919, %c0_920, %c0_921, %c0_922] : memref<2x4x1x8xf32, #tpu.memory_space<vmem>>, vector<1x1x1x8xf32>
    %1105 = vector.shape_cast %1104 : vector<1x1x1x8xf32> to vector<1x8xf32>
    %1106 = vector.broadcast %1105 : vector<1x8xf32> to vector<8x8xf32>
    %1107 = arith.addf %1103, %1106 : vector<8x8xf32>
    %cst_923 = arith.constant 0.353553385 : f32
    %1108 = vector.broadcast %cst_923 : f32 to vector<8x8xf32>
    %1109 = arith.mulf %1093, %1108 : vector<8x8xf32>
    %cst_924 = arith.constant dense<0.000000e+00> : vector<8x8xf32>
    %1110 = tpu.matmul %1109, %1100, %cst_924 {dimension_numbers = #tpu.dot_dimension_numbers<[1], [1], [0], [0], [0, 0, 1, 0], [], []>} : vector<8x8xf32>, vector<8x8xf32>, vector<8x8xf32> -> vector<8x8xf32>
    %1111 = arith.addf %1110, %5 : vector<8x8xf32>
    %cst_925 = arith.constant dense<0xFF800000> : vector<8xf32>
    %1112 = vector.multi_reduction <maximumf>, %1111, %cst_925 [1] : vector<8x8xf32> to vector<8xf32>
    %1113 = vector.shape_cast %1112 : vector<8xf32> to vector<8x1xf32>
    %1114 = vector.broadcast %1113 : vector<8x1xf32> to vector<8x8xf32>
    %1115 = arith.subf %1111, %1114 : vector<8x8xf32>
    %1116 = math.exp %1115 : vector<8x8xf32>
    %cst_926 = arith.constant dense<0.000000e+00> : vector<8xf32>
    %1117 = vector.multi_reduction <add>, %1116, %cst_926 [1] : vector<8x8xf32> to vector<8xf32>
    %1118 = vector.shape_cast %1117 : vector<8xf32> to vector<8x1xf32>
    %1119 = tpu.reciprocal %1118 : vector<8x1xf32> -> vector<8x1xf32>
    %1120 = vector.broadcast %1119 : vector<8x1xf32> to vector<8x8xf32>
    %1121 = arith.mulf %1116, %1120 : vector<8x8xf32>
    %cst_927 = arith.constant dense<0.000000e+00> : vector<8x8xf32>
    %1122 = tpu.matmul %1121, %1107, %cst_927 {dimension_numbers = #tpu.dot_dimension_numbers<[1], [0], [0], [1], [0, 0, 1, 1], [], []>} : vector<8x8xf32>, vector<8x8xf32>, vector<8x8xf32> -> vector<8x8xf32>
    %c1_928 = arith.constant 1 : index
    %c0_929 = arith.constant 0 : index
    %c0_930 = arith.constant 0 : index
    %c0_931 = arith.constant 0 : index
    %1123 = vector.load %arg38[%c1_928, %c0_929, %c0_930, %c0_931] : memref<2x4x8x32xf32, #tpu.memory_space<vmem>>, vector<1x1x8x32xf32>
    %1124 = vector.shape_cast %1123 : vector<1x1x8x32xf32> to vector<8x32xf32>
    %cst_932 = arith.constant dense<0.000000e+00> : vector<8x32xf32>
    %1125 = tpu.matmul %1122, %1124, %cst_932 {dimension_numbers = #tpu.dot_dimension_numbers<[1], [0], [0], [1], [0, 0, 1, 1], [], []>} : vector<8x8xf32>, vector<8x32xf32>, vector<8x32xf32> -> vector<8x32xf32>
    %c1_933 = arith.constant 1 : index
    %c1_934 = arith.constant 1 : index
    %c0_935 = arith.constant 0 : index
    %c0_936 = arith.constant 0 : index
    %1126 = vector.load %arg32[%c1_933, %c1_934, %c0_935, %c0_936] : memref<2x4x32x8xf32, #tpu.memory_space<vmem>>, vector<1x1x32x8xf32>
    %1127 = vector.shape_cast %1126 : vector<1x1x32x8xf32> to vector<32x8xf32>
    %cst_937 = arith.constant dense<0.000000e+00> : vector<8x8xf32>
    %1128 = tpu.matmul %1086, %1127, %cst_937 {dimension_numbers = #tpu.dot_dimension_numbers<[1], [0], [0], [1], [0, 0, 1, 1], [], []>} : vector<8x32xf32>, vector<32x8xf32>, vector<8x8xf32> -> vector<8x8xf32>
    %c1_938 = arith.constant 1 : index
    %c1_939 = arith.constant 1 : index
    %c0_940 = arith.constant 0 : index
    %c0_941 = arith.constant 0 : index
    %1129 = vector.load %arg33[%c1_938, %c1_939, %c0_940, %c0_941] : memref<2x4x1x8xf32, #tpu.memory_space<vmem>>, vector<1x1x1x8xf32>
    %1130 = vector.shape_cast %1129 : vector<1x1x1x8xf32> to vector<1x8xf32>
    %1131 = vector.broadcast %1130 : vector<1x8xf32> to vector<8x8xf32>
    %1132 = arith.addf %1128, %1131 : vector<8x8xf32>
    %c1_942 = arith.constant 1 : index
    %c1_943 = arith.constant 1 : index
    %c0_944 = arith.constant 0 : index
    %c0_945 = arith.constant 0 : index
    %1133 = vector.load %arg34[%c1_942, %c1_943, %c0_944, %c0_945] : memref<2x4x32x8xf32, #tpu.memory_space<vmem>>, vector<1x1x32x8xf32>
    %1134 = vector.shape_cast %1133 : vector<1x1x32x8xf32> to vector<32x8xf32>
    %cst_946 = arith.constant dense<0.000000e+00> : vector<8x8xf32>
    %1135 = tpu.matmul %472, %1134, %cst_946 {dimension_numbers = #tpu.dot_dimension_numbers<[1], [0], [0], [1], [0, 0, 1, 1], [], []>} : vector<8x32xf32>, vector<32x8xf32>, vector<8x8xf32> -> vector<8x8xf32>
    %c1_947 = arith.constant 1 : index
    %c1_948 = arith.constant 1 : index
    %c0_949 = arith.constant 0 : index
    %c0_950 = arith.constant 0 : index
    %1136 = vector.load %arg35[%c1_947, %c1_948, %c0_949, %c0_950] : memref<2x4x1x8xf32, #tpu.memory_space<vmem>>, vector<1x1x1x8xf32>
    %1137 = vector.shape_cast %1136 : vector<1x1x1x8xf32> to vector<1x8xf32>
    %1138 = vector.broadcast %1137 : vector<1x8xf32> to vector<8x8xf32>
    %1139 = arith.addf %1135, %1138 : vector<8x8xf32>
    %c1_951 = arith.constant 1 : index
    %c1_952 = arith.constant 1 : index
    %c0_953 = arith.constant 0 : index
    %c0_954 = arith.constant 0 : index
    %1140 = vector.load %arg36[%c1_951, %c1_952, %c0_953, %c0_954] : memref<2x4x32x8xf32, #tpu.memory_space<vmem>>, vector<1x1x32x8xf32>
    %1141 = vector.shape_cast %1140 : vector<1x1x32x8xf32> to vector<32x8xf32>
    %cst_955 = arith.constant dense<0.000000e+00> : vector<8x8xf32>
    %1142 = tpu.matmul %472, %1141, %cst_955 {dimension_numbers = #tpu.dot_dimension_numbers<[1], [0], [0], [1], [0, 0, 1, 1], [], []>} : vector<8x32xf32>, vector<32x8xf32>, vector<8x8xf32> -> vector<8x8xf32>
    %c1_956 = arith.constant 1 : index
    %c1_957 = arith.constant 1 : index
    %c0_958 = arith.constant 0 : index
    %c0_959 = arith.constant 0 : index
    %1143 = vector.load %arg37[%c1_956, %c1_957, %c0_958, %c0_959] : memref<2x4x1x8xf32, #tpu.memory_space<vmem>>, vector<1x1x1x8xf32>
    %1144 = vector.shape_cast %1143 : vector<1x1x1x8xf32> to vector<1x8xf32>
    %1145 = vector.broadcast %1144 : vector<1x8xf32> to vector<8x8xf32>
    %1146 = arith.addf %1142, %1145 : vector<8x8xf32>
    %cst_960 = arith.constant 0.353553385 : f32
    %1147 = vector.broadcast %cst_960 : f32 to vector<8x8xf32>
    %1148 = arith.mulf %1132, %1147 : vector<8x8xf32>
    %cst_961 = arith.constant dense<0.000000e+00> : vector<8x8xf32>
    %1149 = tpu.matmul %1148, %1139, %cst_961 {dimension_numbers = #tpu.dot_dimension_numbers<[1], [1], [0], [0], [0, 0, 1, 0], [], []>} : vector<8x8xf32>, vector<8x8xf32>, vector<8x8xf32> -> vector<8x8xf32>
    %1150 = arith.addf %1149, %5 : vector<8x8xf32>
    %cst_962 = arith.constant dense<0xFF800000> : vector<8xf32>
    %1151 = vector.multi_reduction <maximumf>, %1150, %cst_962 [1] : vector<8x8xf32> to vector<8xf32>
    %1152 = vector.shape_cast %1151 : vector<8xf32> to vector<8x1xf32>
    %1153 = vector.broadcast %1152 : vector<8x1xf32> to vector<8x8xf32>
    %1154 = arith.subf %1150, %1153 : vector<8x8xf32>
    %1155 = math.exp %1154 : vector<8x8xf32>
    %cst_963 = arith.constant dense<0.000000e+00> : vector<8xf32>
    %1156 = vector.multi_reduction <add>, %1155, %cst_963 [1] : vector<8x8xf32> to vector<8xf32>
    %1157 = vector.shape_cast %1156 : vector<8xf32> to vector<8x1xf32>
    %1158 = tpu.reciprocal %1157 : vector<8x1xf32> -> vector<8x1xf32>
    %1159 = vector.broadcast %1158 : vector<8x1xf32> to vector<8x8xf32>
    %1160 = arith.mulf %1155, %1159 : vector<8x8xf32>
    %cst_964 = arith.constant dense<0.000000e+00> : vector<8x8xf32>
    %1161 = tpu.matmul %1160, %1146, %cst_964 {dimension_numbers = #tpu.dot_dimension_numbers<[1], [0], [0], [1], [0, 0, 1, 1], [], []>} : vector<8x8xf32>, vector<8x8xf32>, vector<8x8xf32> -> vector<8x8xf32>
    %c1_965 = arith.constant 1 : index
    %c1_966 = arith.constant 1 : index
    %c0_967 = arith.constant 0 : index
    %c0_968 = arith.constant 0 : index
    %1162 = vector.load %arg38[%c1_965, %c1_966, %c0_967, %c0_968] : memref<2x4x8x32xf32, #tpu.memory_space<vmem>>, vector<1x1x8x32xf32>
    %1163 = vector.shape_cast %1162 : vector<1x1x8x32xf32> to vector<8x32xf32>
    %cst_969 = arith.constant dense<0.000000e+00> : vector<8x32xf32>
    %1164 = tpu.matmul %1161, %1163, %cst_969 {dimension_numbers = #tpu.dot_dimension_numbers<[1], [0], [0], [1], [0, 0, 1, 1], [], []>} : vector<8x8xf32>, vector<8x32xf32>, vector<8x32xf32> -> vector<8x32xf32>
    %1165 = arith.addf %1125, %1164 : vector<8x32xf32>
    %c1_970 = arith.constant 1 : index
    %c2_971 = arith.constant 2 : index
    %c0_972 = arith.constant 0 : index
    %c0_973 = arith.constant 0 : index
    %1166 = vector.load %arg32[%c1_970, %c2_971, %c0_972, %c0_973] : memref<2x4x32x8xf32, #tpu.memory_space<vmem>>, vector<1x1x32x8xf32>
    %1167 = vector.shape_cast %1166 : vector<1x1x32x8xf32> to vector<32x8xf32>
    %cst_974 = arith.constant dense<0.000000e+00> : vector<8x8xf32>
    %1168 = tpu.matmul %1086, %1167, %cst_974 {dimension_numbers = #tpu.dot_dimension_numbers<[1], [0], [0], [1], [0, 0, 1, 1], [], []>} : vector<8x32xf32>, vector<32x8xf32>, vector<8x8xf32> -> vector<8x8xf32>
    %c1_975 = arith.constant 1 : index
    %c2_976 = arith.constant 2 : index
    %c0_977 = arith.constant 0 : index
    %c0_978 = arith.constant 0 : index
    %1169 = vector.load %arg33[%c1_975, %c2_976, %c0_977, %c0_978] : memref<2x4x1x8xf32, #tpu.memory_space<vmem>>, vector<1x1x1x8xf32>
    %1170 = vector.shape_cast %1169 : vector<1x1x1x8xf32> to vector<1x8xf32>
    %1171 = vector.broadcast %1170 : vector<1x8xf32> to vector<8x8xf32>
    %1172 = arith.addf %1168, %1171 : vector<8x8xf32>
    %c1_979 = arith.constant 1 : index
    %c2_980 = arith.constant 2 : index
    %c0_981 = arith.constant 0 : index
    %c0_982 = arith.constant 0 : index
    %1173 = vector.load %arg34[%c1_979, %c2_980, %c0_981, %c0_982] : memref<2x4x32x8xf32, #tpu.memory_space<vmem>>, vector<1x1x32x8xf32>
    %1174 = vector.shape_cast %1173 : vector<1x1x32x8xf32> to vector<32x8xf32>
    %cst_983 = arith.constant dense<0.000000e+00> : vector<8x8xf32>
    %1175 = tpu.matmul %472, %1174, %cst_983 {dimension_numbers = #tpu.dot_dimension_numbers<[1], [0], [0], [1], [0, 0, 1, 1], [], []>} : vector<8x32xf32>, vector<32x8xf32>, vector<8x8xf32> -> vector<8x8xf32>
    %c1_984 = arith.constant 1 : index
    %c2_985 = arith.constant 2 : index
    %c0_986 = arith.constant 0 : index
    %c0_987 = arith.constant 0 : index
    %1176 = vector.load %arg35[%c1_984, %c2_985, %c0_986, %c0_987] : memref<2x4x1x8xf32, #tpu.memory_space<vmem>>, vector<1x1x1x8xf32>
    %1177 = vector.shape_cast %1176 : vector<1x1x1x8xf32> to vector<1x8xf32>
    %1178 = vector.broadcast %1177 : vector<1x8xf32> to vector<8x8xf32>
    %1179 = arith.addf %1175, %1178 : vector<8x8xf32>
    %c1_988 = arith.constant 1 : index
    %c2_989 = arith.constant 2 : index
    %c0_990 = arith.constant 0 : index
    %c0_991 = arith.constant 0 : index
    %1180 = vector.load %arg36[%c1_988, %c2_989, %c0_990, %c0_991] : memref<2x4x32x8xf32, #tpu.memory_space<vmem>>, vector<1x1x32x8xf32>
    %1181 = vector.shape_cast %1180 : vector<1x1x32x8xf32> to vector<32x8xf32>
    %cst_992 = arith.constant dense<0.000000e+00> : vector<8x8xf32>
    %1182 = tpu.matmul %472, %1181, %cst_992 {dimension_numbers = #tpu.dot_dimension_numbers<[1], [0], [0], [1], [0, 0, 1, 1], [], []>} : vector<8x32xf32>, vector<32x8xf32>, vector<8x8xf32> -> vector<8x8xf32>
    %c1_993 = arith.constant 1 : index
    %c2_994 = arith.constant 2 : index
    %c0_995 = arith.constant 0 : index
    %c0_996 = arith.constant 0 : index
    %1183 = vector.load %arg37[%c1_993, %c2_994, %c0_995, %c0_996] : memref<2x4x1x8xf32, #tpu.memory_space<vmem>>, vector<1x1x1x8xf32>
    %1184 = vector.shape_cast %1183 : vector<1x1x1x8xf32> to vector<1x8xf32>
    %1185 = vector.broadcast %1184 : vector<1x8xf32> to vector<8x8xf32>
    %1186 = arith.addf %1182, %1185 : vector<8x8xf32>
    %cst_997 = arith.constant 0.353553385 : f32
    %1187 = vector.broadcast %cst_997 : f32 to vector<8x8xf32>
    %1188 = arith.mulf %1172, %1187 : vector<8x8xf32>
    %cst_998 = arith.constant dense<0.000000e+00> : vector<8x8xf32>
    %1189 = tpu.matmul %1188, %1179, %cst_998 {dimension_numbers = #tpu.dot_dimension_numbers<[1], [1], [0], [0], [0, 0, 1, 0], [], []>} : vector<8x8xf32>, vector<8x8xf32>, vector<8x8xf32> -> vector<8x8xf32>
    %1190 = arith.addf %1189, %5 : vector<8x8xf32>
    %cst_999 = arith.constant dense<0xFF800000> : vector<8xf32>
    %1191 = vector.multi_reduction <maximumf>, %1190, %cst_999 [1] : vector<8x8xf32> to vector<8xf32>
    %1192 = vector.shape_cast %1191 : vector<8xf32> to vector<8x1xf32>
    %1193 = vector.broadcast %1192 : vector<8x1xf32> to vector<8x8xf32>
    %1194 = arith.subf %1190, %1193 : vector<8x8xf32>
    %1195 = math.exp %1194 : vector<8x8xf32>
    %cst_1000 = arith.constant dense<0.000000e+00> : vector<8xf32>
    %1196 = vector.multi_reduction <add>, %1195, %cst_1000 [1] : vector<8x8xf32> to vector<8xf32>
    %1197 = vector.shape_cast %1196 : vector<8xf32> to vector<8x1xf32>
    %1198 = tpu.reciprocal %1197 : vector<8x1xf32> -> vector<8x1xf32>
    %1199 = vector.broadcast %1198 : vector<8x1xf32> to vector<8x8xf32>
    %1200 = arith.mulf %1195, %1199 : vector<8x8xf32>
    %cst_1001 = arith.constant dense<0.000000e+00> : vector<8x8xf32>
    %1201 = tpu.matmul %1200, %1186, %cst_1001 {dimension_numbers = #tpu.dot_dimension_numbers<[1], [0], [0], [1], [0, 0, 1, 1], [], []>} : vector<8x8xf32>, vector<8x8xf32>, vector<8x8xf32> -> vector<8x8xf32>
    %c1_1002 = arith.constant 1 : index
    %c2_1003 = arith.constant 2 : index
    %c0_1004 = arith.constant 0 : index
    %c0_1005 = arith.constant 0 : index
    %1202 = vector.load %arg38[%c1_1002, %c2_1003, %c0_1004, %c0_1005] : memref<2x4x8x32xf32, #tpu.memory_space<vmem>>, vector<1x1x8x32xf32>
    %1203 = vector.shape_cast %1202 : vector<1x1x8x32xf32> to vector<8x32xf32>
    %cst_1006 = arith.constant dense<0.000000e+00> : vector<8x32xf32>
    %1204 = tpu.matmul %1201, %1203, %cst_1006 {dimension_numbers = #tpu.dot_dimension_numbers<[1], [0], [0], [1], [0, 0, 1, 1], [], []>} : vector<8x8xf32>, vector<8x32xf32>, vector<8x32xf32> -> vector<8x32xf32>
    %1205 = arith.addf %1165, %1204 : vector<8x32xf32>
    %c1_1007 = arith.constant 1 : index
    %c3_1008 = arith.constant 3 : index
    %c0_1009 = arith.constant 0 : index
    %c0_1010 = arith.constant 0 : index
    %1206 = vector.load %arg32[%c1_1007, %c3_1008, %c0_1009, %c0_1010] : memref<2x4x32x8xf32, #tpu.memory_space<vmem>>, vector<1x1x32x8xf32>
    %1207 = vector.shape_cast %1206 : vector<1x1x32x8xf32> to vector<32x8xf32>
    %cst_1011 = arith.constant dense<0.000000e+00> : vector<8x8xf32>
    %1208 = tpu.matmul %1086, %1207, %cst_1011 {dimension_numbers = #tpu.dot_dimension_numbers<[1], [0], [0], [1], [0, 0, 1, 1], [], []>} : vector<8x32xf32>, vector<32x8xf32>, vector<8x8xf32> -> vector<8x8xf32>
    %c1_1012 = arith.constant 1 : index
    %c3_1013 = arith.constant 3 : index
    %c0_1014 = arith.constant 0 : index
    %c0_1015 = arith.constant 0 : index
    %1209 = vector.load %arg33[%c1_1012, %c3_1013, %c0_1014, %c0_1015] : memref<2x4x1x8xf32, #tpu.memory_space<vmem>>, vector<1x1x1x8xf32>
    %1210 = vector.shape_cast %1209 : vector<1x1x1x8xf32> to vector<1x8xf32>
    %1211 = vector.broadcast %1210 : vector<1x8xf32> to vector<8x8xf32>
    %1212 = arith.addf %1208, %1211 : vector<8x8xf32>
    %c1_1016 = arith.constant 1 : index
    %c3_1017 = arith.constant 3 : index
    %c0_1018 = arith.constant 0 : index
    %c0_1019 = arith.constant 0 : index
    %1213 = vector.load %arg34[%c1_1016, %c3_1017, %c0_1018, %c0_1019] : memref<2x4x32x8xf32, #tpu.memory_space<vmem>>, vector<1x1x32x8xf32>
    %1214 = vector.shape_cast %1213 : vector<1x1x32x8xf32> to vector<32x8xf32>
    %cst_1020 = arith.constant dense<0.000000e+00> : vector<8x8xf32>
    %1215 = tpu.matmul %472, %1214, %cst_1020 {dimension_numbers = #tpu.dot_dimension_numbers<[1], [0], [0], [1], [0, 0, 1, 1], [], []>} : vector<8x32xf32>, vector<32x8xf32>, vector<8x8xf32> -> vector<8x8xf32>
    %c1_1021 = arith.constant 1 : index
    %c3_1022 = arith.constant 3 : index
    %c0_1023 = arith.constant 0 : index
    %c0_1024 = arith.constant 0 : index
    %1216 = vector.load %arg35[%c1_1021, %c3_1022, %c0_1023, %c0_1024] : memref<2x4x1x8xf32, #tpu.memory_space<vmem>>, vector<1x1x1x8xf32>
    %1217 = vector.shape_cast %1216 : vector<1x1x1x8xf32> to vector<1x8xf32>
    %1218 = vector.broadcast %1217 : vector<1x8xf32> to vector<8x8xf32>
    %1219 = arith.addf %1215, %1218 : vector<8x8xf32>
    %c1_1025 = arith.constant 1 : index
    %c3_1026 = arith.constant 3 : index
    %c0_1027 = arith.constant 0 : index
    %c0_1028 = arith.constant 0 : index
    %1220 = vector.load %arg36[%c1_1025, %c3_1026, %c0_1027, %c0_1028] : memref<2x4x32x8xf32, #tpu.memory_space<vmem>>, vector<1x1x32x8xf32>
    %1221 = vector.shape_cast %1220 : vector<1x1x32x8xf32> to vector<32x8xf32>
    %cst_1029 = arith.constant dense<0.000000e+00> : vector<8x8xf32>
    %1222 = tpu.matmul %472, %1221, %cst_1029 {dimension_numbers = #tpu.dot_dimension_numbers<[1], [0], [0], [1], [0, 0, 1, 1], [], []>} : vector<8x32xf32>, vector<32x8xf32>, vector<8x8xf32> -> vector<8x8xf32>
    %c1_1030 = arith.constant 1 : index
    %c3_1031 = arith.constant 3 : index
    %c0_1032 = arith.constant 0 : index
    %c0_1033 = arith.constant 0 : index
    %1223 = vector.load %arg37[%c1_1030, %c3_1031, %c0_1032, %c0_1033] : memref<2x4x1x8xf32, #tpu.memory_space<vmem>>, vector<1x1x1x8xf32>
    %1224 = vector.shape_cast %1223 : vector<1x1x1x8xf32> to vector<1x8xf32>
    %1225 = vector.broadcast %1224 : vector<1x8xf32> to vector<8x8xf32>
    %1226 = arith.addf %1222, %1225 : vector<8x8xf32>
    %cst_1034 = arith.constant 0.353553385 : f32
    %1227 = vector.broadcast %cst_1034 : f32 to vector<8x8xf32>
    %1228 = arith.mulf %1212, %1227 : vector<8x8xf32>
    %cst_1035 = arith.constant dense<0.000000e+00> : vector<8x8xf32>
    %1229 = tpu.matmul %1228, %1219, %cst_1035 {dimension_numbers = #tpu.dot_dimension_numbers<[1], [1], [0], [0], [0, 0, 1, 0], [], []>} : vector<8x8xf32>, vector<8x8xf32>, vector<8x8xf32> -> vector<8x8xf32>
    %1230 = arith.addf %1229, %5 : vector<8x8xf32>
    %cst_1036 = arith.constant dense<0xFF800000> : vector<8xf32>
    %1231 = vector.multi_reduction <maximumf>, %1230, %cst_1036 [1] : vector<8x8xf32> to vector<8xf32>
    %1232 = vector.shape_cast %1231 : vector<8xf32> to vector<8x1xf32>
    %1233 = vector.broadcast %1232 : vector<8x1xf32> to vector<8x8xf32>
    %1234 = arith.subf %1230, %1233 : vector<8x8xf32>
    %1235 = math.exp %1234 : vector<8x8xf32>
    %cst_1037 = arith.constant dense<0.000000e+00> : vector<8xf32>
    %1236 = vector.multi_reduction <add>, %1235, %cst_1037 [1] : vector<8x8xf32> to vector<8xf32>
    %1237 = vector.shape_cast %1236 : vector<8xf32> to vector<8x1xf32>
    %1238 = tpu.reciprocal %1237 : vector<8x1xf32> -> vector<8x1xf32>
    %1239 = vector.broadcast %1238 : vector<8x1xf32> to vector<8x8xf32>
    %1240 = arith.mulf %1235, %1239 : vector<8x8xf32>
    %cst_1038 = arith.constant dense<0.000000e+00> : vector<8x8xf32>
    %1241 = tpu.matmul %1240, %1226, %cst_1038 {dimension_numbers = #tpu.dot_dimension_numbers<[1], [0], [0], [1], [0, 0, 1, 1], [], []>} : vector<8x8xf32>, vector<8x8xf32>, vector<8x8xf32> -> vector<8x8xf32>
    %c1_1039 = arith.constant 1 : index
    %c3_1040 = arith.constant 3 : index
    %c0_1041 = arith.constant 0 : index
    %c0_1042 = arith.constant 0 : index
    %1242 = vector.load %arg38[%c1_1039, %c3_1040, %c0_1041, %c0_1042] : memref<2x4x8x32xf32, #tpu.memory_space<vmem>>, vector<1x1x8x32xf32>
    %1243 = vector.shape_cast %1242 : vector<1x1x8x32xf32> to vector<8x32xf32>
    %cst_1043 = arith.constant dense<0.000000e+00> : vector<8x32xf32>
    %1244 = tpu.matmul %1241, %1243, %cst_1043 {dimension_numbers = #tpu.dot_dimension_numbers<[1], [0], [0], [1], [0, 0, 1, 1], [], []>} : vector<8x8xf32>, vector<8x32xf32>, vector<8x32xf32> -> vector<8x32xf32>
    %1245 = arith.addf %1205, %1244 : vector<8x32xf32>
    %c1_1044 = arith.constant 1 : index
    %c0_1045 = arith.constant 0 : index
    %c0_1046 = arith.constant 0 : index
    %1246 = vector.load %arg39[%c1_1044, %c0_1045, %c0_1046] : memref<2x1x32xf32, #tpu.memory_space<vmem>>, vector<1x1x32xf32>
    %1247 = vector.shape_cast %1246 : vector<1x1x32xf32> to vector<1x32xf32>
    %1248 = vector.broadcast %1247 : vector<1x32xf32> to vector<8x32xf32>
    %1249 = arith.addf %1245, %1248 : vector<8x32xf32>
    %1250 = arith.addf %1086, %1249 : vector<8x32xf32>
    %c1_1047 = arith.constant 1 : index
    %c0_1048 = arith.constant 0 : index
    %c0_1049 = arith.constant 0 : index
    %1251 = vector.load %arg40[%c1_1047, %c0_1048, %c0_1049] : memref<2x1x32xf32, #tpu.memory_space<vmem>>, vector<1x1x32xf32>
    %1252 = vector.shape_cast %1251 : vector<1x1x32xf32> to vector<1x32xf32>
    %c1_1050 = arith.constant 1 : index
    %c0_1051 = arith.constant 0 : index
    %c0_1052 = arith.constant 0 : index
    %1253 = vector.load %arg41[%c1_1050, %c0_1051, %c0_1052] : memref<2x1x32xf32, #tpu.memory_space<vmem>>, vector<1x1x32xf32>
    %1254 = vector.shape_cast %1253 : vector<1x1x32xf32> to vector<1x32xf32>
    %cst_1053 = arith.constant dense<0.000000e+00> : vector<8xf32>
    %1255 = vector.multi_reduction <add>, %1250, %cst_1053 [1] : vector<8x32xf32> to vector<8xf32>
    %1256 = vector.shape_cast %1255 : vector<8xf32> to vector<8x1xf32>
    %cst_1054 = arith.constant 3.200000e+01 : f32
    %1257 = vector.broadcast %cst_1054 : f32 to vector<8x1xf32>
    %1258 = arith.divf %1256, %1257 : vector<8x1xf32>
    %1259 = vector.broadcast %1258 : vector<8x1xf32> to vector<8x32xf32>
    %1260 = arith.subf %1250, %1259 : vector<8x32xf32>
    %1261 = arith.mulf %1260, %1260 : vector<8x32xf32>
    %cst_1055 = arith.constant dense<0.000000e+00> : vector<8xf32>
    %1262 = vector.multi_reduction <add>, %1261, %cst_1055 [1] : vector<8x32xf32> to vector<8xf32>
    %1263 = vector.shape_cast %1262 : vector<8xf32> to vector<8x1xf32>
    %cst_1056 = arith.constant 3.200000e+01 : f32
    %1264 = vector.broadcast %cst_1056 : f32 to vector<8x1xf32>
    %1265 = arith.divf %1263, %1264 : vector<8x1xf32>
    %cst_1057 = arith.constant 9.99999996E-13 : f32
    %1266 = vector.broadcast %cst_1057 : f32 to vector<8x1xf32>
    %1267 = arith.addf %1265, %1266 : vector<8x1xf32>
    %1268 = math.rsqrt %1267 : vector<8x1xf32>
    %1269 = vector.broadcast %1258 : vector<8x1xf32> to vector<8x32xf32>
    %1270 = arith.subf %1250, %1269 : vector<8x32xf32>
    %1271 = vector.broadcast %1268 : vector<8x1xf32> to vector<8x32xf32>
    %1272 = arith.mulf %1270, %1271 : vector<8x32xf32>
    %1273 = vector.broadcast %1252 : vector<1x32xf32> to vector<8x32xf32>
    %1274 = arith.mulf %1272, %1273 : vector<8x32xf32>
    %1275 = vector.broadcast %1254 : vector<1x32xf32> to vector<8x32xf32>
    %1276 = arith.addf %1274, %1275 : vector<8x32xf32>
    %c1_1058 = arith.constant 1 : index
    %c0_1059 = arith.constant 0 : index
    %c0_1060 = arith.constant 0 : index
    %1277 = vector.load %arg42[%c1_1058, %c0_1059, %c0_1060] : memref<2x32x64xf32, #tpu.memory_space<vmem>>, vector<1x32x64xf32>
    %1278 = vector.shape_cast %1277 : vector<1x32x64xf32> to vector<32x64xf32>
    %cst_1061 = arith.constant dense<0.000000e+00> : vector<8x64xf32>
    %1279 = tpu.matmul %1276, %1278, %cst_1061 {dimension_numbers = #tpu.dot_dimension_numbers<[1], [0], [0], [1], [0, 0, 1, 1], [], []>} : vector<8x32xf32>, vector<32x64xf32>, vector<8x64xf32> -> vector<8x64xf32>
    %c1_1062 = arith.constant 1 : index
    %c0_1063 = arith.constant 0 : index
    %c0_1064 = arith.constant 0 : index
    %1280 = vector.load %arg43[%c1_1062, %c0_1063, %c0_1064] : memref<2x1x64xf32, #tpu.memory_space<vmem>>, vector<1x1x64xf32>
    %1281 = vector.shape_cast %1280 : vector<1x1x64xf32> to vector<1x64xf32>
    %1282 = vector.broadcast %1281 : vector<1x64xf32> to vector<8x64xf32>
    %1283 = arith.addf %1279, %1282 : vector<8x64xf32>
    %cst_1065 = arith.constant 0.000000e+00 : f32
    %1284 = vector.broadcast %cst_1065 : f32 to vector<8x64xf32>
    %1285 = arith.maximumf %1283, %1284 : vector<8x64xf32>
    %c1_1066 = arith.constant 1 : index
    %c0_1067 = arith.constant 0 : index
    %c0_1068 = arith.constant 0 : index
    %1286 = vector.load %arg44[%c1_1066, %c0_1067, %c0_1068] : memref<2x64x32xf32, #tpu.memory_space<vmem>>, vector<1x64x32xf32>
    %1287 = vector.shape_cast %1286 : vector<1x64x32xf32> to vector<64x32xf32>
    %cst_1069 = arith.constant dense<0.000000e+00> : vector<8x32xf32>
    %1288 = tpu.matmul %1285, %1287, %cst_1069 {dimension_numbers = #tpu.dot_dimension_numbers<[1], [0], [0], [1], [0, 0, 1, 1], [], []>} : vector<8x64xf32>, vector<64x32xf32>, vector<8x32xf32> -> vector<8x32xf32>
    %c1_1070 = arith.constant 1 : index
    %c0_1071 = arith.constant 0 : index
    %c0_1072 = arith.constant 0 : index
    %1289 = vector.load %arg45[%c1_1070, %c0_1071, %c0_1072] : memref<2x1x32xf32, #tpu.memory_space<vmem>>, vector<1x1x32xf32>
    %1290 = vector.shape_cast %1289 : vector<1x1x32xf32> to vector<1x32xf32>
    %1291 = vector.broadcast %1290 : vector<1x32xf32> to vector<8x32xf32>
    %1292 = arith.addf %1288, %1291 : vector<8x32xf32>
    %1293 = arith.addf %1276, %1292 : vector<8x32xf32>
    %c1_1073 = arith.constant 1 : index
    %c0_1074 = arith.constant 0 : index
    %c0_1075 = arith.constant 0 : index
    %1294 = vector.load %arg46[%c1_1073, %c0_1074, %c0_1075] : memref<2x1x32xf32, #tpu.memory_space<vmem>>, vector<1x1x32xf32>
    %1295 = vector.shape_cast %1294 : vector<1x1x32xf32> to vector<1x32xf32>
    %c1_1076 = arith.constant 1 : index
    %c0_1077 = arith.constant 0 : index
    %c0_1078 = arith.constant 0 : index
    %1296 = vector.load %arg47[%c1_1076, %c0_1077, %c0_1078] : memref<2x1x32xf32, #tpu.memory_space<vmem>>, vector<1x1x32xf32>
    %1297 = vector.shape_cast %1296 : vector<1x1x32xf32> to vector<1x32xf32>
    %cst_1079 = arith.constant dense<0.000000e+00> : vector<8xf32>
    %1298 = vector.multi_reduction <add>, %1293, %cst_1079 [1] : vector<8x32xf32> to vector<8xf32>
    %1299 = vector.shape_cast %1298 : vector<8xf32> to vector<8x1xf32>
    %cst_1080 = arith.constant 3.200000e+01 : f32
    %1300 = vector.broadcast %cst_1080 : f32 to vector<8x1xf32>
    %1301 = arith.divf %1299, %1300 : vector<8x1xf32>
    %1302 = vector.broadcast %1301 : vector<8x1xf32> to vector<8x32xf32>
    %1303 = arith.subf %1293, %1302 : vector<8x32xf32>
    %1304 = arith.mulf %1303, %1303 : vector<8x32xf32>
    %cst_1081 = arith.constant dense<0.000000e+00> : vector<8xf32>
    %1305 = vector.multi_reduction <add>, %1304, %cst_1081 [1] : vector<8x32xf32> to vector<8xf32>
    %1306 = vector.shape_cast %1305 : vector<8xf32> to vector<8x1xf32>
    %cst_1082 = arith.constant 3.200000e+01 : f32
    %1307 = vector.broadcast %cst_1082 : f32 to vector<8x1xf32>
    %1308 = arith.divf %1306, %1307 : vector<8x1xf32>
    %cst_1083 = arith.constant 9.99999996E-13 : f32
    %1309 = vector.broadcast %cst_1083 : f32 to vector<8x1xf32>
    %1310 = arith.addf %1308, %1309 : vector<8x1xf32>
    %1311 = math.rsqrt %1310 : vector<8x1xf32>
    %1312 = vector.broadcast %1301 : vector<8x1xf32> to vector<8x32xf32>
    %1313 = arith.subf %1293, %1312 : vector<8x32xf32>
    %1314 = vector.broadcast %1311 : vector<8x1xf32> to vector<8x32xf32>
    %1315 = arith.mulf %1313, %1314 : vector<8x32xf32>
    %1316 = vector.broadcast %1295 : vector<1x32xf32> to vector<8x32xf32>
    %1317 = arith.mulf %1315, %1316 : vector<8x32xf32>
    %1318 = vector.broadcast %1297 : vector<1x32xf32> to vector<8x32xf32>
    %1319 = arith.addf %1317, %1318 : vector<8x32xf32>
    %c0_1084 = arith.constant 0 : index
    %c0_1085 = arith.constant 0 : index
    %1320 = vector.load %arg48[%c0_1084, %c0_1085] : memref<32x128xf32, #tpu.memory_space<vmem>>, vector<32x128xf32>
    %cst_1086 = arith.constant dense<0.000000e+00> : vector<8x128xf32>
    %1321 = tpu.matmul %1319, %1320, %cst_1086 {dimension_numbers = #tpu.dot_dimension_numbers<[1], [0], [0], [1], [0, 0, 1, 1], [], []>} : vector<8x32xf32>, vector<32x128xf32>, vector<8x128xf32> -> vector<8x128xf32>
    %c0_1087 = arith.constant 0 : index
    %c0_1088 = arith.constant 0 : index
    %1322 = vector.load %arg49[%c0_1087, %c0_1088] : memref<1x128xf32, #tpu.memory_space<vmem>>, vector<1x128xf32>
    %1323 = vector.broadcast %1322 : vector<1x128xf32> to vector<8x128xf32>
    %1324 = arith.addf %1321, %1323 : vector<8x128xf32>
    %c0_1089 = arith.constant 0 : index
    %c0_1090 = arith.constant 0 : index
    %1325 = vector.load %arg50[%c0_1089, %c0_1090] : memref<8x128xf32, #tpu.memory_space<vmem>>, vector<8x128xf32>
    tpu.vector_store %arg50[%c0_1089, %c0_1090], %1324 {strides = array<i32>} : memref<8x128xf32, #tpu.memory_space<vmem>>, vector<8x128xf32>,
    return
  }
  func.func @transform_0(%arg0: i32) -> (i32, i32) {
    %c0_i32 = arith.constant 0 : i32
    %c0_i32_0 = arith.constant 0 : i32
    return %arg0, %c0_i32 : i32, i32
  }
  func.func @transform_1(%arg0: i32) -> (i32, i32) {
    %c0_i32 = arith.constant 0 : i32
    %c0_i32_0 = arith.constant 0 : i32
    return %arg0, %c0_i32 : i32, i32
  }
  func.func @transform_2(%arg0: i32) -> (i32, i32, i32) {
    %c0_i32 = arith.constant 0 : i32
    %c0_i32_0 = arith.constant 0 : i32
    %c0_i32_1 = arith.constant 0 : i32
    return %arg0, %c0_i32, %c0_i32_0 : i32, i32, i32
  }
  func.func @transform_3(%arg0: i32) -> (i32, i32, i32) {
    %c0_i32 = arith.constant 0 : i32
    %c0_i32_0 = arith.constant 0 : i32
    %c0_i32_1 = arith.constant 0 : i32
    return %arg0, %c0_i32, %c0_i32_0 : i32, i32, i32
  }
  func.func @transform_4(%arg0: i32) -> (i32, i32, i32) {
    %c0_i32 = arith.constant 0 : i32
    %c0_i32_0 = arith.constant 0 : i32
    %c0_i32_1 = arith.constant 0 : i32
    return %arg0, %c0_i32, %c0_i32_0 : i32, i32, i32
  }
  func.func @transform_5(%arg0: i32) -> (i32, i32, i32, i32) {
    %c0_i32 = arith.constant 0 : i32
    %c0_i32_0 = arith.constant 0 : i32
    %c0_i32_1 = arith.constant 0 : i32
    %c0_i32_2 = arith.constant 0 : i32
    %c0_i32_3 = arith.constant 0 : i32
    return %c0_i32, %c0_i32_0, %c0_i32_1, %c0_i32_2 : i32, i32, i32, i32
  }
  func.func @transform_6(%arg0: i32) -> (i32, i32, i32, i32) {
    %c0_i32 = arith.constant 0 : i32
    %c0_i32_0 = arith.constant 0 : i32
    %c0_i32_1 = arith.constant 0 : i32
    %c0_i32_2 = arith.constant 0 : i32
    %c0_i32_3 = arith.constant 0 : i32
    return %c0_i32, %c0_i32_0, %c0_i32_1, %c0_i32_2 : i32, i32, i32, i32
  }
  func.func @transform_7(%arg0: i32) -> (i32, i32, i32, i32) {
    %c0_i32 = arith.constant 0 : i32
    %c0_i32_0 = arith.constant 0 : i32
    %c0_i32_1 = arith.constant 0 : i32
    %c0_i32_2 = arith.constant 0 : i32
    %c0_i32_3 = arith.constant 0 : i32
    return %c0_i32, %c0_i32_0, %c0_i32_1, %c0_i32_2 : i32, i32, i32, i32
  }
  func.func @transform_8(%arg0: i32) -> (i32, i32, i32, i32) {
    %c0_i32 = arith.constant 0 : i32
    %c0_i32_0 = arith.constant 0 : i32
    %c0_i32_1 = arith.constant 0 : i32
    %c0_i32_2 = arith.constant 0 : i32
    %c0_i32_3 = arith.constant 0 : i32
    return %c0_i32, %c0_i32_0, %c0_i32_1, %c0_i32_2 : i32, i32, i32, i32
  }
  func.func @transform_9(%arg0: i32) -> (i32, i32, i32, i32) {
    %c0_i32 = arith.constant 0 : i32
    %c0_i32_0 = arith.constant 0 : i32
    %c0_i32_1 = arith.constant 0 : i32
    %c0_i32_2 = arith.constant 0 : i32
    %c0_i32_3 = arith.constant 0 : i32
    return %c0_i32, %c0_i32_0, %c0_i32_1, %c0_i32_2 : i32, i32, i32, i32
  }
  func.func @transform_10(%arg0: i32) -> (i32, i32, i32, i32) {
    %c0_i32 = arith.constant 0 : i32
    %c0_i32_0 = arith.constant 0 : i32
    %c0_i32_1 = arith.constant 0 : i32
    %c0_i32_2 = arith.constant 0 : i32
    %c0_i32_3 = arith.constant 0 : i32
    return %c0_i32, %c0_i32_0, %c0_i32_1, %c0_i32_2 : i32, i32, i32, i32
  }
  func.func @transform_11(%arg0: i32) -> (i32, i32, i32, i32) {
    %c0_i32 = arith.constant 0 : i32
    %c0_i32_0 = arith.constant 0 : i32
    %c0_i32_1 = arith.constant 0 : i32
    %c0_i32_2 = arith.constant 0 : i32
    %c0_i32_3 = arith.constant 0 : i32
    return %c0_i32, %c0_i32_0, %c0_i32_1, %c0_i32_2 : i32, i32, i32, i32
  }
  func.func @transform_12(%arg0: i32) -> (i32, i32, i32) {
    %c0_i32 = arith.constant 0 : i32
    %c0_i32_0 = arith.constant 0 : i32
    %c0_i32_1 = arith.constant 0 : i32
    %c0_i32_2 = arith.constant 0 : i32
    return %c0_i32, %c0_i32_0, %c0_i32_1 : i32, i32, i32
  }
  func.func @transform_13(%arg0: i32) -> (i32, i32, i32) {
    %c0_i32 = arith.constant 0 : i32
    %c0_i32_0 = arith.constant 0 : i32
    %c0_i32_1 = arith.constant 0 : i32
    %c0_i32_2 = arith.constant 0 : i32
    return %c0_i32, %c0_i32_0, %c0_i32_1 : i32, i32, i32
  }
  func.func @transform_14(%arg0: i32) -> (i32, i32, i32) {
    %c0_i32 = arith.constant 0 : i32
    %c0_i32_0 = arith.constant 0 : i32
    %c0_i32_1 = arith.constant 0 : i32
    %c0_i32_2 = arith.constant 0 : i32
    return %c0_i32, %c0_i32_0, %c0_i32_1 : i32, i32, i32
  }
  func.func @transform_15(%arg0: i32) -> (i32, i32, i32) {
    %c0_i32 = arith.constant 0 : i32
    %c0_i32_0 = arith.constant 0 : i32
    %c0_i32_1 = arith.constant 0 : i32
    %c0_i32_2 = arith.constant 0 : i32
    return %c0_i32, %c0_i32_0, %c0_i32_1 : i32, i32, i32
  }
  func.func @transform_16(%arg0: i32) -> (i32, i32, i32) {
    %c0_i32 = arith.constant 0 : i32
    %c0_i32_0 = arith.constant 0 : i32
    %c0_i32_1 = arith.constant 0 : i32
    %c0_i32_2 = arith.constant 0 : i32
    return %c0_i32, %c0_i32_0, %c0_i32_1 : i32, i32, i32
  }
  func.func @transform_17(%arg0: i32) -> (i32, i32, i32) {
    %c0_i32 = arith.constant 0 : i32
    %c0_i32_0 = arith.constant 0 : i32
    %c0_i32_1 = arith.constant 0 : i32
    %c0_i32_2 = arith.constant 0 : i32
    return %c0_i32, %c0_i32_0, %c0_i32_1 : i32, i32, i32
  }
  func.func @transform_18(%arg0: i32) -> (i32, i32, i32) {
    %c0_i32 = arith.constant 0 : i32
    %c0_i32_0 = arith.constant 0 : i32
    %c0_i32_1 = arith.constant 0 : i32
    %c0_i32_2 = arith.constant 0 : i32
    return %c0_i32, %c0_i32_0, %c0_i32_1 : i32, i32, i32
  }
  func.func @transform_19(%arg0: i32) -> (i32, i32, i32) {
    %c0_i32 = arith.constant 0 : i32
    %c0_i32_0 = arith.constant 0 : i32
    %c0_i32_1 = arith.constant 0 : i32
    %c0_i32_2 = arith.constant 0 : i32
    return %c0_i32, %c0_i32_0, %c0_i32_1 : i32, i32, i32
  }
  func.func @transform_20(%arg0: i32) -> (i32, i32, i32) {
    %c0_i32 = arith.constant 0 : i32
    %c0_i32_0 = arith.constant 0 : i32
    %c0_i32_1 = arith.constant 0 : i32
    %c0_i32_2 = arith.constant 0 : i32
    return %c0_i32, %c0_i32_0, %c0_i32_1 : i32, i32, i32
  }
  func.func @transform_21(%arg0: i32) -> (i32, i32, i32, i32) {
    %c0_i32 = arith.constant 0 : i32
    %c0_i32_0 = arith.constant 0 : i32
    %c0_i32_1 = arith.constant 0 : i32
    %c0_i32_2 = arith.constant 0 : i32
    %c0_i32_3 = arith.constant 0 : i32
    return %c0_i32, %c0_i32_0, %c0_i32_1, %c0_i32_2 : i32, i32, i32, i32
  }
  func.func @transform_22(%arg0: i32) -> (i32, i32, i32, i32) {
    %c0_i32 = arith.constant 0 : i32
    %c0_i32_0 = arith.constant 0 : i32
    %c0_i32_1 = arith.constant 0 : i32
    %c0_i32_2 = arith.constant 0 : i32
    %c0_i32_3 = arith.constant 0 : i32
    return %c0_i32, %c0_i32_0, %c0_i32_1, %c0_i32_2 : i32, i32, i32, i32
  }
  func.func @transform_23(%arg0: i32) -> (i32, i32, i32, i32) {
    %c0_i32 = arith.constant 0 : i32
    %c0_i32_0 = arith.constant 0 : i32
    %c0_i32_1 = arith.constant 0 : i32
    %c0_i32_2 = arith.constant 0 : i32
    %c0_i32_3 = arith.constant 0 : i32
    return %c0_i32, %c0_i32_0, %c0_i32_1, %c0_i32_2 : i32, i32, i32, i32
  }
  func.func @transform_24(%arg0: i32) -> (i32, i32, i32, i32) {
    %c0_i32 = arith.constant 0 : i32
    %c0_i32_0 = arith.constant 0 : i32
    %c0_i32_1 = arith.constant 0 : i32
    %c0_i32_2 = arith.constant 0 : i32
    %c0_i32_3 = arith.constant 0 : i32
    return %c0_i32, %c0_i32_0, %c0_i32_1, %c0_i32_2 : i32, i32, i32, i32
  }
  func.func @transform_25(%arg0: i32) -> (i32, i32, i32, i32) {
    %c0_i32 = arith.constant 0 : i32
    %c0_i32_0 = arith.constant 0 : i32
    %c0_i32_1 = arith.constant 0 : i32
    %c0_i32_2 = arith.constant 0 : i32
    %c0_i32_3 = arith.constant 0 : i32
    return %c0_i32, %c0_i32_0, %c0_i32_1, %c0_i32_2 : i32, i32, i32, i32
  }
  func.func @transform_26(%arg0: i32) -> (i32, i32, i32, i32) {
    %c0_i32 = arith.constant 0 : i32
    %c0_i32_0 = arith.constant 0 : i32
    %c0_i32_1 = arith.constant 0 : i32
    %c0_i32_2 = arith.constant 0 : i32
    %c0_i32_3 = arith.constant 0 : i32
    return %c0_i32, %c0_i32_0, %c0_i32_1, %c0_i32_2 : i32, i32, i32, i32
  }
  func.func @transform_27(%arg0: i32) -> (i32, i32, i32, i32) {
    %c0_i32 = arith.constant 0 : i32
    %c0_i32_0 = arith.constant 0 : i32
    %c0_i32_1 = arith.constant 0 : i32
    %c0_i32_2 = arith.constant 0 : i32
    %c0_i32_3 = arith.constant 0 : i32
    return %c0_i32, %c0_i32_0, %c0_i32_1, %c0_i32_2 : i32, i32, i32, i32
  }
  func.func @transform_28(%arg0: i32) -> (i32, i32, i32) {
    %c0_i32 = arith.constant 0 : i32
    %c0_i32_0 = arith.constant 0 : i32
    %c0_i32_1 = arith.constant 0 : i32
    %c0_i32_2 = arith.constant 0 : i32
    return %c0_i32, %c0_i32_0, %c0_i32_1 : i32, i32, i32
  }
  func.func @transform_29(%arg0: i32) -> (i32, i32, i32) {
    %c0_i32 = arith.constant 0 : i32
    %c0_i32_0 = arith.constant 0 : i32
    %c0_i32_1 = arith.constant 0 : i32
    %c0_i32_2 = arith.constant 0 : i32
    return %c0_i32, %c0_i32_0, %c0_i32_1 : i32, i32, i32
  }
  func.func @transform_30(%arg0: i32) -> (i32, i32, i32) {
    %c0_i32 = arith.constant 0 : i32
    %c0_i32_0 = arith.constant 0 : i32
    %c0_i32_1 = arith.constant 0 : i32
    %c0_i32_2 = arith.constant 0 : i32
    return %c0_i32, %c0_i32_0, %c0_i32_1 : i32, i32, i32
  }
  func.func @transform_31(%arg0: i32) -> (i32, i32, i32, i32) {
    %c0_i32 = arith.constant 0 : i32
    %c0_i32_0 = arith.constant 0 : i32
    %c0_i32_1 = arith.constant 0 : i32
    %c0_i32_2 = arith.constant 0 : i32
    %c0_i32_3 = arith.constant 0 : i32
    return %c0_i32, %c0_i32_0, %c0_i32_1, %c0_i32_2 : i32, i32, i32, i32
  }
  func.func @transform_32(%arg0: i32) -> (i32, i32, i32, i32) {
    %c0_i32 = arith.constant 0 : i32
    %c0_i32_0 = arith.constant 0 : i32
    %c0_i32_1 = arith.constant 0 : i32
    %c0_i32_2 = arith.constant 0 : i32
    %c0_i32_3 = arith.constant 0 : i32
    return %c0_i32, %c0_i32_0, %c0_i32_1, %c0_i32_2 : i32, i32, i32, i32
  }
  func.func @transform_33(%arg0: i32) -> (i32, i32, i32, i32) {
    %c0_i32 = arith.constant 0 : i32
    %c0_i32_0 = arith.constant 0 : i32
    %c0_i32_1 = arith.constant 0 : i32
    %c0_i32_2 = arith.constant 0 : i32
    %c0_i32_3 = arith.constant 0 : i32
    return %c0_i32, %c0_i32_0, %c0_i32_1, %c0_i32_2 : i32, i32, i32, i32
  }
  func.func @transform_34(%arg0: i32) -> (i32, i32, i32, i32) {
    %c0_i32 = arith.constant 0 : i32
    %c0_i32_0 = arith.constant 0 : i32
    %c0_i32_1 = arith.constant 0 : i32
    %c0_i32_2 = arith.constant 0 : i32
    %c0_i32_3 = arith.constant 0 : i32
    return %c0_i32, %c0_i32_0, %c0_i32_1, %c0_i32_2 : i32, i32, i32, i32
  }
  func.func @transform_35(%arg0: i32) -> (i32, i32, i32, i32) {
    %c0_i32 = arith.constant 0 : i32
    %c0_i32_0 = arith.constant 0 : i32
    %c0_i32_1 = arith.constant 0 : i32
    %c0_i32_2 = arith.constant 0 : i32
    %c0_i32_3 = arith.constant 0 : i32
    return %c0_i32, %c0_i32_0, %c0_i32_1, %c0_i32_2 : i32, i32, i32, i32
  }
  func.func @transform_36(%arg0: i32) -> (i32, i32, i32, i32) {
    %c0_i32 = arith.constant 0 : i32
    %c0_i32_0 = arith.constant 0 : i32
    %c0_i32_1 = arith.constant 0 : i32
    %c0_i32_2 = arith.constant 0 : i32
    %c0_i32_3 = arith.constant 0 : i32
    return %c0_i32, %c0_i32_0, %c0_i32_1, %c0_i32_2 : i32, i32, i32, i32
  }
  func.func @transform_37(%arg0: i32) -> (i32, i32, i32, i32) {
    %c0_i32 = arith.constant 0 : i32
    %c0_i32_0 = arith.constant 0 : i32
    %c0_i32_1 = arith.constant 0 : i32
    %c0_i32_2 = arith.constant 0 : i32
    %c0_i32_3 = arith.constant 0 : i32
    return %c0_i32, %c0_i32_0, %c0_i32_1, %c0_i32_2 : i32, i32, i32, i32
  }
  func.func @transform_38(%arg0: i32) -> (i32, i32, i32) {
    %c0_i32 = arith.constant 0 : i32
    %c0_i32_0 = arith.constant 0 : i32
    %c0_i32_1 = arith.constant 0 : i32
    %c0_i32_2 = arith.constant 0 : i32
    return %c0_i32, %c0_i32_0, %c0_i32_1 : i32, i32, i32
  }
  func.func @transform_39(%arg0: i32) -> (i32, i32, i32) {
    %c0_i32 = arith.constant 0 : i32
    %c0_i32_0 = arith.constant 0 : i32
    %c0_i32_1 = arith.constant 0 : i32
    %c0_i32_2 = arith.constant 0 : i32
    return %c0_i32, %c0_i32_0, %c0_i32_1 : i32, i32, i32
  }
  func.func @transform_40(%arg0: i32) -> (i32, i32, i32) {
    %c0_i32 = arith.constant 0 : i32
    %c0_i32_0 = arith.constant 0 : i32
    %c0_i32_1 = arith.constant 0 : i32
    %c0_i32_2 = arith.constant 0 : i32
    return %c0_i32, %c0_i32_0, %c0_i32_1 : i32, i32, i32
  }
  func.func @transform_41(%arg0: i32) -> (i32, i32, i32) {
    %c0_i32 = arith.constant 0 : i32
    %c0_i32_0 = arith.constant 0 : i32
    %c0_i32_1 = arith.constant 0 : i32
    %c0_i32_2 = arith.constant 0 : i32
    return %c0_i32, %c0_i32_0, %c0_i32_1 : i32, i32, i32
  }
  func.func @transform_42(%arg0: i32) -> (i32, i32, i32) {
    %c0_i32 = arith.constant 0 : i32
    %c0_i32_0 = arith.constant 0 : i32
    %c0_i32_1 = arith.constant 0 : i32
    %c0_i32_2 = arith.constant 0 : i32
    return %c0_i32, %c0_i32_0, %c0_i32_1 : i32, i32, i32
  }
  func.func @transform_43(%arg0: i32) -> (i32, i32, i32) {
    %c0_i32 = arith.constant 0 : i32
    %c0_i32_0 = arith.constant 0 : i32
    %c0_i32_1 = arith.constant 0 : i32
    %c0_i32_2 = arith.constant 0 : i32
    return %c0_i32, %c0_i32_0, %c0_i32_1 : i32, i32, i32
  }
  func.func @transform_44(%arg0: i32) -> (i32, i32, i32) {
    %c0_i32 = arith.constant 0 : i32
    %c0_i32_0 = arith.constant 0 : i32
    %c0_i32_1 = arith.constant 0 : i32
    %c0_i32_2 = arith.constant 0 : i32
    return %c0_i32, %c0_i32_0, %c0_i32_1 : i32, i32, i32
  }
  func.func @transform_45(%arg0: i32) -> (i32, i32, i32) {
    %c0_i32 = arith.constant 0 : i32
    %c0_i32_0 = arith.constant 0 : i32
    %c0_i32_1 = arith.constant 0 : i32
    %c0_i32_2 = arith.constant 0 : i32
    return %c0_i32, %c0_i32_0, %c0_i32_1 : i32, i32, i32
  }
  func.func @transform_46(%arg0: i32) -> (i32, i32, i32) {
    %c0_i32 = arith.constant 0 : i32
    %c0_i32_0 = arith.constant 0 : i32
    %c0_i32_1 = arith.constant 0 : i32
    %c0_i32_2 = arith.constant 0 : i32
    return %c0_i32, %c0_i32_0, %c0_i32_1 : i32, i32, i32
  }
  func.func @transform_47(%arg0: i32) -> (i32, i32) {
    %c0_i32 = arith.constant 0 : i32
    %c0_i32_0 = arith.constant 0 : i32
    %c0_i32_1 = arith.constant 0 : i32
    return %c0_i32, %c0_i32_0 : i32, i32
  }
  func.func @transform_48(%arg0: i32) -> (i32, i32) {
    %c0_i32 = arith.constant 0 : i32
    %c0_i32_0 = arith.constant 0 : i32
    %c0_i32_1 = arith.constant 0 : i32
    return %c0_i32, %c0_i32_0 : i32, i32
  }
  func.func @transform_49(%arg0: i32) -> (i32, i32) {
    %c0_i32 = arith.constant 0 : i32
    %c0_i32_0 = arith.constant 0 : i32
    return %arg0, %c0_i32 : i32, i32
  }
}

</mosaic_0001>

<bundles_post_ra>
// kernel: transformer_forward.1
= control target key start
LH: loop header
LB: loop body
LE: loop exit
PB: predicated region body
PF: predicated region fallthrough
CT: control target
= control target key end

     0   :  { %s19265_s6 = smov 1   ;;  %s19266_s10 = smov 2   ;;  %s21166_s0 = inlined_call_operand.smem [shape: u32[50], index: -1, kind: input, shape index: {}] }
   0x1   :  { %s19357_s5 = sld [smem:[%s21166_s0]]   ;;  %s19267_s14 = smov 3  }
   0x2   :  { %s19362_s9 = sld [smem:[%s21166_s0 + %s19265_s6]]   ;;  %s19268_s18 = smov 4  }
   0x3   :  { %s19367_s13 = sld [smem:[%s21166_s0 + %s19266_s10]]   ;;  %s19269_s22 = smov 5  }
   0x4   :  { %s19372_s17 = sld [smem:[%s21166_s0 + %s19267_s14]]   ;;  %s19270_s26 = smov 6  }
   0x5   :  { %s19377_s21 = sld [smem:[%s21166_s0 + %s19268_s18]]   ;;  %s19271_s30 = smov 7  }
   0x6   :  { %s19382_s25 = sld [smem:[%s21166_s0 + %s19269_s22]]   ;;  %s19272_s4 = smov 8  }
   0x7   :  { %21214 = sst [smem:[#allocation60_spill]] %s19357_s5  ;;  %s19273_s10 = smov 9  }
   0x8   :  { %21215 = sst [smem:[#allocation61_spill]] %s19362_s9  ;;  %s19274_s15 = smov 10  }
   0x9   :  { %21216 = sst [smem:[#allocation62_spill]] %s19367_s13  ;;  %s19275_s20 = smov 11  }
   0xa   :  { %21217 = sst [smem:[#allocation63_spill]] %s19372_s17  ;;  %s19277_s1 = smov 13  }
   0xb   :  { %21218 = sst [smem:[#allocation64_spill]] %s19377_s21  ;;  %s19278_s7 = smov 14  }
   0xc   :  { %s19387_s29 = sld [smem:[%s21166_s0 + %s19270_s26]]   ;;  %s19276_s26 = smov 12  }
   0xd   :  { %s19392_s3 = sld [smem:[%s21166_s0 + %s19271_s30]]   ;;  %s19280_s22 = smov 16  }
   0xe   :  { %s19397_s8 = sld [smem:[%s21166_s0 + %s19272_s4]]   ;;  %s19281_s28 = smov 17  }
   0xf   :  { %s19402_s14 = sld [smem:[%s21166_s0 + %s19273_s10]]  }
  0x10   :  { %s19407_s19 = sld [smem:[%s21166_s0 + %s19274_s15]]   ;;  %s19279_s15 = smov 15  }
  0x11   :  { %s19412_s24 = sld [smem:[%s21166_s0 + %s19275_s20]]  }
  0x12   :  { %s19417_s30 = sld [smem:[%s21166_s0 + %s19276_s26]]  }
  0x13   :  { %21219 = sst [smem:[#allocation65_spill]] %s19392_s3 }
  0x14   :  { %21220 = sst [smem:[#allocation66_spill]] %s19397_s8 }
  0x15   :  { %21221 = sst [smem:[#allocation67_spill]] %s19402_s14 }
  0x16   :  { %s19422_s6 = sld [smem:[%s21166_s0 + %s19277_s1]]  }
  0x17   :  { %21222 = sst [smem:[#allocation68_spill]] %s19412_s24 }
  0x18   :  { %s19427_s12 = sld [smem:[%s21166_s0 + %s19278_s7]]   ;;  %s19282_s7 = smov 18  }
  0x19   :  { %s19432_s20 = sld [smem:[%s21166_s0 + %s19279_s15]]   ;;  %s19283_s15 = smov 19  }
  0x1a   :  { %s19437_s27 = sld [smem:[%s21166_s0 + %s19280_s22]]   ;;  %s19284_s22 = smov 20  }
  0x1b   :  { %s19442_s4 = sld [smem:[%s21166_s0 + %s19281_s28]]   ;;  %s19285_s28 = smov 21  }
  0x1c   :  { %21223 = sst [smem:[#allocation69_spill]] %s19422_s6 }
  0x1d   :  { %s19447_s21 = sld [smem:[%s21166_s0 + %s19282_s7]]   ;;  %s19286_s7 = smov 22  }
  0x1e   :  { %21224 = sst [smem:[#allocation70_spill]] %s19427_s12 }
  0x1f   :  { %21225 = sst [smem:[#allocation71_spill]] %s19432_s20 }
  0x20   :  { %s19452_s17 = sld [smem:[%s21166_s0 + %s19283_s15]]   ;;  %s19287_s15 = smov 23  }
  0x21   :  { %21226 = sst [smem:[#allocation72_spill]] %s19442_s4 }
  0x22   :  { %s19457_s9 = sld [smem:[%s21166_s0 + %s19284_s22]]   ;;  %s19288_s22 = smov 24  }
  0x23   :  { %s19462_s12 = sld [smem:[%s21166_s0 + %s19285_s28]]   ;;  %s19289_s28 = smov 25  }
  0x24   :  { %s19467_s6 = sld [smem:[%s21166_s0 + %s19286_s7]]   ;;  %s19290_s7 = smov 26  }
  0x25   :  { %s19482_s13 = sld [smem:[%s21166_s0 + %s19289_s28]]   ;;  %s19293_s28 = smov 29  }
  0x26   :  { %21227 = sst [smem:[#allocation73_spill]] %s19452_s17 }
  0x27   :  { %s19472_s17 = sld [smem:[%s21166_s0 + %s19287_s15]]   ;;  %s19291_s15 = smov 27  }
  0x28   :  { %21228 = sst [smem:[#allocation74_spill]] %s19457_s9 }
  0x29   :  { %21229 = sst [smem:[#allocation75_spill]] %s19462_s12 }
  0x2a   :  { %21230 = sst [smem:[#allocation76_spill]] %s19467_s6 }
  0x2b   :  { %s19477_s9 = sld [smem:[%s21166_s0 + %s19288_s22]]   ;;  %s19292_s22 = smov 28  }
  0x2c   :  { %21233 = sst [smem:[#allocation79_spill]] %s19482_s13 }
  0x2d   :  { %21231 = sst [smem:[#allocation77_spill]] %s19472_s17 }
  0x2e   :  { %s19487_s5 = sld [smem:[%s21166_s0 + %s19290_s7]]   ;;  %s19294_s7 = smov 30  }
  0x2f   :  { %s19492_s17 = sld [smem:[%s21166_s0 + %s19291_s15]]   ;;  %s19295_s15 = smov 31  }
  0x30   :  { %s19497_s12 = sld [smem:[%s21166_s0 + %s19292_s22]]   ;;  %s19296_s22 = smov 32  }
  0x31   :  { %21232 = sst [smem:[#allocation78_spill]] %s19477_s9 }
  0x32   :  { %s19502_s13 = sld [smem:[%s21166_s0 + %s19293_s28]]   ;;  %s19297_s28 = smov 33  }
  0x33   :  { %s19507_s4 = sld [smem:[%s21166_s0 + %s19294_s7]]   ;;  %s19298_s7 = smov 34  }
  0x34   :  { %21234 = sst [smem:[#allocation80_spill]] %s19487_s5 }
  0x35   :  { %21235 = sst [smem:[#allocation81_spill]] %s19492_s17 }
  0x36   :  { %s19512_s17 = sld [smem:[%s21166_s0 + %s19295_s15]]   ;;  %s19299_s15 = smov 35  }
  0x37   :  { %s19517_s20 = sld [smem:[%s21166_s0 + %s19296_s22]]   ;;  %s19300_s22 = smov 36  }
  0x38   :  { %21236 = sst [smem:[#allocation82_spill]] %s19502_s13 }
  0x39   :  { %21237 = sst [smem:[#allocation83_spill]] %s19507_s4 }
  0x3a   :  { %s19522_s13 = sld [smem:[%s21166_s0 + %s19297_s28]]   ;;  %s19301_s28 = smov 37  }
  0x3b   :  { %s19527_s4 = sld [smem:[%s21166_s0 + %s19298_s7]]   ;;  %s19302_s7 = smov 38  }
  0x3c   :  { %21238 = sst [smem:[#allocation84_spill]] %s19512_s17 }
  0x3d   :  { %s19532_s17 = sld [smem:[%s21166_s0 + %s19299_s15]]   ;;  %s19303_s15 = smov 39  }
  0x3e   :  { %s19537_s24 = sld [smem:[%s21166_s0 + %s19300_s22]]   ;;  %s19304_s22 = smov 40  }
  0x40   :  { %21239 = sst [smem:[#allocation85_spill]] %s19522_s13 }
  0x41   :  { %21240 = sst [smem:[#allocation86_spill]] %s19527_s4 }
  0x42   :  { %s19542_s13 = sld [smem:[%s21166_s0 + %s19301_s28]]   ;;  %s19305_s28 = smov 41  }
  0x43   :  { %21241 = sst [smem:[#allocation87_spill]] %s19532_s17 }
  0x44   :  { %21242 = sst [smem:[#allocation88_spill]] %s19537_s24 }
  0x45   :  { %s19547_s4 = sld [smem:[%s21166_s0 + %s19302_s7]]   ;;  %s19306_s7 = smov 42  }
  0x46   :  { %s19552_s17 = sld [smem:[%s21166_s0 + %s19303_s15]]   ;;  %s19307_s15 = smov 43  }
  0x47   :  { %s19557_s24 = sld [smem:[%s21166_s0 + %s19304_s22]]   ;;  %s19308_s22 = smov 44  }
  0x48   :  { %21243 = sst [smem:[#allocation89_spill]] %s19542_s13 }
  0x49   :  { %s19562_s13 = sld [smem:[%s21166_s0 + %s19305_s28]]   ;;  %s19309_s28 = smov 45  }
  0x4a   :  { %s19567_s14 = sld [smem:[%s21166_s0 + %s19306_s7]]   ;;  %s19310_s7 = smov 46  }
  0x4b   :  { %21244 = sst [smem:[#allocation90_spill]] %s19547_s4 }
  0x4c   :  { %21245 = sst [smem:[#allocation91_spill]] %s19552_s17 }
  0x4d   :  { %21246 = sst [smem:[#allocation92_spill]] %s19557_s24 }
  0x4e   :  { %s19572_s17 = sld [smem:[%s21166_s0 + %s19307_s15]]   ;;  %s19311_s15 = smov 47  }
  0x4f   :  { %21247 = sst [smem:[#allocation93_spill]] %s19562_s13 }
  0x50   :  { %s19577_s24 = sld [smem:[%s21166_s0 + %s19308_s22]]   ;;  %s19312_s22 = smov 48  }
  0x51   :  { %s19582_s13 = sld [smem:[%s21166_s0 + %s19309_s28]]   ;;  %s19313_s28 = smov 49  }
  0x52   :  { %s19587_s3 = sld [smem:[%s21166_s0 + %s19310_s7]]  }
  0x54   :  { %21248 = sst [smem:[#allocation94_spill]] %s19572_s17 }
  0x55   :  { %s19592_s17 = sld [smem:[%s21166_s0 + %s19311_s15]]  }
  0x56   :  { %21249 = sst [smem:[#allocation95_spill]] %s19577_s24 }
  0x57   :  { %21250 = sst [smem:[#allocation96_spill]] %s19582_s13 }
  0x58   :  { %s19597_s24 = sld [smem:[%s21166_s0 + %s19312_s22]]  }
  0x59   :  { %s19602_s13 = sld [smem:[%s21166_s0 + %s19313_s28]]  }
  0x5a   :  { %104 = vsyncpa [#allocation3], 0 }
  0x5b   :  { %105 = vsyncpa [#allocation5], 0 }
  0x5c   :  { %106 = vsyncpa [#allocation8], 0 }
  0x5d   :  { %107 = vsyncpa [#allocation11], 0 }
  0x5e   :  { %108 = vsyncpa [#allocation14], 0 }
  0x5f   :  { %109 = vsyncpa [#allocation17], 0 }
  0x60   :  { %110 = vsyncpa [#allocation20], 0 }
  0x61   :  { %111 = vsyncpa [#allocation23], 0 }
  0x62   :  { %112 = vsyncpa [#allocation26], 0 }
  0x63   :  { %113 = vsyncpa [#allocation29], 0 }
  0x64   :  { %114 = vsyncpa [#allocation32], 0 }
  0x65   :  { %115 = vsyncpa [#allocation35], 0 }
  0x66   :  { %116 = vsyncpa [#allocation38], 0 }
  0x67   :  { %117 = vsyncpa [#allocation41], 0 }
  0x68   :  { %118 = vsyncpa [#allocation44], 0  ;;  %s19604_s7 = smov 0  }
  0x69 LB: > { %s21251_s9 = sld [smem:[#allocation78_spill]]  ;;  %s21252_s6 = sld [smem:[#allocation76_spill]]  ;;  %s19263_s7 = sphi %s19604_s7, %s124_s7  }
  0x6a   : > { %s21253_s5 = sld [smem:[#allocation80_spill]]  ;;  %s21254_s4 = sld [smem:[#allocation90_spill]] }
  0x6b   : > { %s21255_s8 = sld [smem:[#allocation66_spill]]  ;;  %s19314_s0 = smov [#allocation4]  }
  0x6c   : > { %s1234_s10 = sshll.u32 %s19314_s0, 4  ;;  %s19610_s11 = sadd.s32 4294967295, %s19263_s7   ;;  %s19615_s10 = int_to_ptr.vmem [resolvable:$true] %s1234_s10 }
  0x6d   : > { %p15159_p0 = scmp.ge.s32.totalorder %s19263_s7, 1  ;;  %p1209_p1 = scmp.lt.s32.totalorder %s19263_s7, 3 }
  0x6e   : > { %p21194_p2 = scmp.eq.s32.totalorder %s19610_s11, 0  ;;  %s19315_s16 = smov [#allocation7]  }
  0x6f   : > { %p19617_p3 = pnand %p15159_p0, %p1209_p1  ;;  %s1260_s18 = sshll.u32 %s19315_s16, 4  ;;  %s19623_s18 = int_to_ptr.vmem [resolvable:$true] %s1260_s18 }
  0x70   : > { %s19316_s23 = smov [#allocation10]   ;;  %s19317_s28 = smov [#allocation13]  }
  0x71   : > { %s21256_s15 = scalar_select %p19617_p3, 1, 0 }
  0x72   : > { %p18061_p4 = pneg %p19617_p3  ;;  %s1286_s26 = sshll.u32 %s19316_s23, 4  ;;  %s19631_s26 = int_to_ptr.vmem [resolvable:$true] %s1286_s26 }
  0x73   : > { %s19633_s1 = sshll.u32 %s19317_s28, 4  ;;  %s18413_s2 = scalar_lea.hbm %s19387_s29, 128  ;;  %s1313_s1 = int_to_ptr.vmem [resolvable:$true] %s19633_s1 }
  0x74   : > { %p19627_p5 = pnand %p21194_p2, %p18061_p4  ;;  %p18414_p6 = scmp.ne.s32.totalorder %s19387_s29, %s18413_s2 }
  0x75   : > { %p18420_p10 = scmp.lt.u32.totalorder %s18413_s2, %s19387_s29 }
  0x76   : > { %p19639_p7 = pneg %p19627_p5 }
  0x78   : > { %p18416_p8 = pnand %p19639_p7, %p18414_p6 }
  0x7a   : > { %p18417_p9 = pneg %p18416_p8 }
  0x7c   : > { %p18422_p11 = pnand %p18420_p10, %p18417_p9 }
  0x7e   : > { %18425 = shalt.err (!%p18422_p11)
}
  0x7f   : > { %s18426_s16 = scalar_lea.vmem %s19615_s10, 128  ;;  %p18434_p1 = scmp.lt.s32.totalorder %s19615_s10, %s19615_s10 }
  0x80   : > { %p18427_p12 = scmp.ne.s32.totalorder %s19615_s10, %s18426_s16  ;;  %p18435_p4 = scmp.lt.s32.totalorder %s18426_s16, %s18426_s16 }
  0x82   : > { %p18429_p13 = pnand %p18427_p12, %p19639_p7  ;;  %p18436_p2 = por %p18435_p4, %p18434_p1 }
  0x84   : > { %p18430_p0 = pneg %p18429_p13 }
  0x86   : > { %p18437_p3 = pnand %p18436_p2, %p18430_p0 }
  0x88   : > { %18440 = shalt.err (!%p18437_p3)
}
  0x89   : > { %s19318_s23 = smov 16   ;;  %s19319_s28 = smov 1  }
  0x8a   : > { %18067 = dma.hbm_to_vmem [thread:$0]  (!%p19627_p5), %s19387_s29, 128, %s19615_s10, [#allocation5], %s19318_s23, %s19318_s23, %s19319_s28  }
  0x8b   : > { %s18441_s2 = scalar_lea.hbm %s21255_s8, 128 }
  0x8c   : > { %p18442_p6 = scmp.ne.s32.totalorder %s21255_s8, %s18441_s2  ;;  %p18448_p3 = scmp.lt.u32.totalorder %s18441_s2, %s21255_s8 }
  0x8e   : > { %p18444_p8 = pnand %p18442_p6, %p19639_p7 }
  0x90   : > { %p18445_p2 = pneg %p18444_p8 }
  0x92   : > { %p18450_p9 = pnand %p18448_p3, %p18445_p2 }
  0x94   : > { %18453 = shalt.err (!%p18450_p9)
}
  0x95   : > { %s18454_s16 = scalar_lea.vmem %s19623_s18, 128  ;;  %p18462_p13 = scmp.lt.s32.totalorder %s19623_s18, %s19623_s18 }
  0x96   : > { %p18455_p10 = scmp.ne.s32.totalorder %s19623_s18, %s18454_s16  ;;  %p18463_p0 = scmp.lt.s32.totalorder %s18454_s16, %s18454_s16 }
  0x98   : > { %p18457_p11 = pnand %p18455_p10, %p19639_p7  ;;  %p18464_p1 = por %p18463_p0, %p18462_p13 }
  0x9a   : > { %p18458_p12 = pneg %p18457_p11 }
  0x9c   : > { %p18465_p4 = pnand %p18464_p1, %p18458_p12 }
  0x9e   : > { %18468 = shalt.err (!%p18465_p4)
}
  0x9f   : > { %18073 = dma.hbm_to_vmem [thread:$0]  (!%p19627_p5), %s21255_s8, 128, %s19623_s18, [#allocation8], %s19318_s23, %s19318_s23, %s19319_s28  }
  0xa0   : > { %s18469_s10 = scalar_lea.hbm %s19407_s19, 128 }
  0xa1   : > { %p18470_p6 = scmp.ne.s32.totalorder %s19407_s19, %s18469_s10  ;;  %p18476_p3 = scmp.lt.u32.totalorder %s18469_s10, %s19407_s19 }
  0xa3   : > { %p18472_p8 = pnand %p18470_p6, %p19639_p7 }
  0xa5   : > { %p18473_p2 = pneg %p18472_p8 }
  0xa7   : > { %p18478_p9 = pnand %p18476_p3, %p18473_p2 }
  0xa9   : > { %18481 = shalt.err (!%p18478_p9)
}
  0xaa   : > { %s18482_s2 = scalar_lea.vmem %s19631_s26, 128  ;;  %p18490_p13 = scmp.lt.s32.totalorder %s19631_s26, %s19631_s26 }
  0xab   : > { %p18483_p10 = scmp.ne.s32.totalorder %s19631_s26, %s18482_s2  ;;  %p18491_p0 = scmp.lt.s32.totalorder %s18482_s2, %s18482_s2 }
  0xad   : > { %p18485_p11 = pnand %p18483_p10, %p19639_p7  ;;  %p18492_p1 = por %p18491_p0, %p18490_p13 }
  0xaf   : > { %p18486_p12 = pneg %p18485_p11 }
  0xb1   : > { %p18493_p4 = pnand %p18492_p1, %p18486_p12 }
  0xb3   : > { %18496 = shalt.err (!%p18493_p4)
}
  0xb4   : > { %18079 = dma.hbm_to_vmem [thread:$0]  (!%p19627_p5), %s19407_s19, 128, %s19631_s26, [#allocation11], %s19318_s23, %s19318_s23, %s19319_s28  }
  0xb5   : > { %s18497_s18 = scalar_lea.hbm %s19417_s30, 32 }
  0xb6   : > { %p18498_p6 = scmp.ne.s32.totalorder %s19417_s30, %s18497_s18  ;;  %p18504_p3 = scmp.lt.u32.totalorder %s18497_s18, %s19417_s30 }
  0xb8   : > { %p18500_p8 = pnand %p18498_p6, %p19639_p7 }
  0xba   : > { %p18501_p2 = pneg %p18500_p8 }
  0xbc   : > { %p18506_p9 = pnand %p18504_p3, %p18501_p2 }
  0xbe   : > { %18509 = shalt.err (!%p18506_p9)
}
  0xbf   : > { %s18510_s16 = scalar_lea.vmem %s1313_s1, 32  ;;  %p18518_p13 = scmp.lt.s32.totalorder %s1313_s1, %s1313_s1 }
  0xc0   : > { %p18511_p10 = scmp.ne.s32.totalorder %s1313_s1, %s18510_s16  ;;  %p18519_p0 = scmp.lt.s32.totalorder %s18510_s16, %s18510_s16 }
  0xc2   : > { %p18513_p11 = pnand %p18511_p10, %p19639_p7  ;;  %p18520_p1 = por %p18519_p0, %p18518_p13 }
  0xc4   : > { %p18514_p12 = pneg %p18513_p11 }
  0xc6   : > { %p18521_p4 = pnand %p18520_p1, %p18514_p12 }
  0xc8   : > { %18524 = shalt.err (!%p18521_p4)
}
  0xc9   : > { %18085 = dma.hbm_to_vmem [thread:$0]  (!%p19627_p5), %s19417_s30, 32, %s1313_s1, [#allocation14], %s19318_s23, %s19318_s23, %s19319_s28  }
  0xca   : > { %s19320_s26 = smov [#allocation16]   ;;  %s19321_s2 = smov [#allocation19]  }
  0xcb   : > { %s1344_s10 = sshll.u32 %s19320_s26, 4  ;;  %s1370_s18 = sshll.u32 %s19321_s2, 4  ;;  %s1345_s10 = int_to_ptr.vmem [resolvable:$true] %s1344_s10  ;;  %s1371_s18 = int_to_ptr.vmem [resolvable:$true] %s1370_s18 }
  0xcc   : > { %s18525_s16 = scalar_lea.hbm %s19437_s27, 32 }
  0xcd   : > { %p18526_p6 = scmp.ne.s32.totalorder %s19437_s27, %s18525_s16  ;;  %p18532_p3 = scmp.lt.u32.totalorder %s18525_s16, %s19437_s27 }
  0xcf   : > { %p18528_p8 = pnand %p18526_p6, %p19639_p7 }
  0xd1   : > { %p18529_p2 = pneg %p18528_p8 }
  0xd3   : > { %p18534_p9 = pnand %p18532_p3, %p18529_p2 }
  0xd5   : > { %18537 = shalt.err (!%p18534_p9)
}
  0xd6   : > { %s18538_s8 = scalar_lea.vmem %s1345_s10, 32  ;;  %p18546_p13 = scmp.lt.s32.totalorder %s1345_s10, %s1345_s10 }
  0xd7   : > { %p18539_p10 = scmp.ne.s32.totalorder %s1345_s10, %s18538_s8  ;;  %p18547_p0 = scmp.lt.s32.totalorder %s18538_s8, %s18538_s8 }
  0xd9   : > { %p18541_p11 = pnand %p18539_p10, %p19639_p7  ;;  %p18548_p1 = por %p18547_p0, %p18546_p13 }
  0xdb   : > { %p18542_p12 = pneg %p18541_p11 }
  0xdd   : > { %p18549_p4 = pnand %p18548_p1, %p18542_p12 }
  0xdf   : > { %18552 = shalt.err (!%p18549_p4)
}
  0xe0   : > { %18091 = dma.hbm_to_vmem [thread:$0]  (!%p19627_p5), %s19437_s27, 32, %s1345_s10, [#allocation17], %s19318_s23, %s19318_s23, %s19319_s28  }
  0xe1   : > { %s18553_s1 = scalar_lea.hbm %s19447_s21, 32 }
  0xe2   : > { %p18554_p6 = scmp.ne.s32.totalorder %s19447_s21, %s18553_s1  ;;  %p18560_p3 = scmp.lt.u32.totalorder %s18553_s1, %s19447_s21 }
  0xe4   : > { %p18556_p8 = pnand %p18554_p6, %p19639_p7 }
  0xe6   : > { %p18557_p2 = pneg %p18556_p8 }
  0xe8   : > { %p18562_p9 = pnand %p18560_p3, %p18557_p2 }
  0xea   : > { %18565 = shalt.err (!%p18562_p9)
}
  0xeb   : > { %s18566_s8 = scalar_lea.vmem %s1371_s18, 32  ;;  %p18574_p13 = scmp.lt.s32.totalorder %s1371_s18, %s1371_s18 }
  0xec   : > { %p18567_p10 = scmp.ne.s32.totalorder %s1371_s18, %s18566_s8  ;;  %p18575_p0 = scmp.lt.s32.totalorder %s18566_s8, %s18566_s8 }
  0xee   : > { %p18569_p11 = pnand %p18567_p10, %p19639_p7  ;;  %p18576_p1 = por %p18575_p0, %p18574_p13 }
  0xf0   : > { %p18570_p12 = pneg %p18569_p11 }
  0xf2   : > { %p18577_p4 = pnand %p18576_p1, %p18570_p12 }
  0xf4   : > { %18580 = shalt.err (!%p18577_p4)
}
  0xf5   : > { %18097 = dma.hbm_to_vmem [thread:$0]  (!%p19627_p5), %s19447_s21, 32, %s1371_s18, [#allocation20], %s19318_s23, %s19318_s23, %s19319_s28  }
  0xf6   : > { %s19322_s26 = smov [#allocation22]   ;;  %s19323_s2 = smov [#allocation25]  }
  0xf7   : > { %s1402_s10 = sshll.u32 %s19322_s26, 4  ;;  %s1428_s16 = sshll.u32 %s19323_s2, 4  ;;  %s1403_s10 = int_to_ptr.vmem [resolvable:$true] %s1402_s10  ;;  %s1429_s16 = int_to_ptr.vmem [resolvable:$true] %s1428_s16 }
  0xf8   : > { %s18581_s1 = scalar_lea.hbm %s21252_s6, 128 }
  0xf9   : > { %p18582_p6 = scmp.ne.s32.totalorder %s21252_s6, %s18581_s1  ;;  %p18588_p3 = scmp.lt.u32.totalorder %s18581_s1, %s21252_s6 }
  0xfb   : > { %p18584_p8 = pnand %p18582_p6, %p19639_p7 }
  0xfd   : > { %p18585_p2 = pneg %p18584_p8 }
  0xff   : > { %p18590_p9 = pnand %p18588_p3, %p18585_p2 }
 0x101   : > { %18593 = shalt.err (!%p18590_p9)
}
 0x102   : > { %s18594_s8 = scalar_lea.vmem %s1403_s10, 128  ;;  %p18602_p13 = scmp.lt.s32.totalorder %s1403_s10, %s1403_s10 }
 0x103   : > { %p18595_p10 = scmp.ne.s32.totalorder %s1403_s10, %s18594_s8  ;;  %p18603_p0 = scmp.lt.s32.totalorder %s18594_s8, %s18594_s8 }
 0x105   : > { %p18597_p11 = pnand %p18595_p10, %p19639_p7  ;;  %p18604_p1 = por %p18603_p0, %p18602_p13 }
 0x107   : > { %p18598_p12 = pneg %p18597_p11 }
 0x109   : > { %p18605_p4 = pnand %p18604_p1, %p18598_p12 }
 0x10b   : > { %18608 = shalt.err (!%p18605_p4)
}
 0x10c   : > { %18103 = dma.hbm_to_vmem [thread:$0]  (!%p19627_p5), %s21252_s6, 128, %s1403_s10, [#allocation23], %s19318_s23, %s19318_s23, %s19319_s28  }
 0x10d   : > { %s18609_s18 = scalar_lea.hbm %s21251_s9, 128 }
 0x10e   : > { %p18610_p6 = scmp.ne.s32.totalorder %s21251_s9, %s18609_s18  ;;  %p18616_p3 = scmp.lt.u32.totalorder %s18609_s18, %s21251_s9 }
 0x110   : > { %p18612_p8 = pnand %p18610_p6, %p19639_p7 }
 0x112   : > { %p18613_p2 = pneg %p18612_p8 }
 0x114   : > { %p18618_p9 = pnand %p18616_p3, %p18613_p2 }
 0x116   : > { %18621 = shalt.err (!%p18618_p9)
}
 0x117   : > { %s18622_s26 = scalar_lea.vmem %s1429_s16, 128  ;;  %p18630_p13 = scmp.lt.s32.totalorder %s1429_s16, %s1429_s16 }
 0x118   : > { %p18623_p10 = scmp.ne.s32.totalorder %s1429_s16, %s18622_s26  ;;  %p18631_p0 = scmp.lt.s32.totalorder %s18622_s26, %s18622_s26 }
 0x11a   : > { %p18625_p11 = pnand %p18623_p10, %p19639_p7  ;;  %p18632_p1 = por %p18631_p0, %p18630_p13 }
 0x11c   : > { %p18626_p12 = pneg %p18625_p11 }
 0x11e   : > { %p18633_p4 = pnand %p18632_p1, %p18626_p12 }
 0x120   : > { %18636 = shalt.err (!%p18633_p4)
}
 0x121   : > { %18109 = dma.hbm_to_vmem [thread:$0]  (!%p19627_p5), %s21251_s9, 128, %s1429_s16, [#allocation26], %s19318_s23, %s19318_s23, %s19319_s28  }
 0x122   : > { %s19324_s10 = smov [#allocation28]   ;;  %s19325_s1 = smov [#allocation31]  }
 0x123   : > { %s1454_s2 = sshll.u32 %s19324_s10, 4  ;;  %s1480_s8 = sshll.u32 %s19325_s1, 4  ;;  %s1455_s2 = int_to_ptr.vmem [resolvable:$true] %s1454_s2  ;;  %s1481_s8 = int_to_ptr.vmem [resolvable:$true] %s1480_s8 }
 0x124   : > { %s18637_s18 = scalar_lea.hbm %s21253_s5, 128 }
 0x125   : > { %p18638_p6 = scmp.ne.s32.totalorder %s21253_s5, %s18637_s18  ;;  %p18644_p3 = scmp.lt.u32.totalorder %s18637_s18, %s21253_s5 }
 0x127   : > { %p18640_p8 = pnand %p18638_p6, %p19639_p7 }
 0x129   : > { %p18641_p2 = pneg %p18640_p8 }
 0x12b   : > { %p18646_p9 = pnand %p18644_p3, %p18641_p2 }
 0x12d   : > { %18649 = shalt.err (!%p18646_p9)
}
 0x12e   : > { %s18650_s26 = scalar_lea.vmem %s1455_s2, 128  ;;  %p18658_p13 = scmp.lt.s32.totalorder %s1455_s2, %s1455_s2 }
 0x12f   : > { %p18651_p10 = scmp.ne.s32.totalorder %s1455_s2, %s18650_s26  ;;  %p18659_p0 = scmp.lt.s32.totalorder %s18650_s26, %s18650_s26 }
 0x131   : > { %p18653_p11 = pnand %p18651_p10, %p19639_p7  ;;  %p18660_p1 = por %p18659_p0, %p18658_p13 }
 0x133   : > { %p18654_p12 = pneg %p18653_p11 }
 0x135   : > { %p18661_p4 = pnand %p18660_p1, %p18654_p12 }
 0x137   : > { %18664 = shalt.err (!%p18661_p4)
}
 0x138   : > { %18115 = dma.hbm_to_vmem [thread:$0]  (!%p19627_p5), %s21253_s5, 128, %s1455_s2, [#allocation29], %s19318_s23, %s19318_s23, %s19319_s28  }
 0x139   : > { %s18665_s16 = scalar_lea.hbm %s19497_s12, 32 }
 0x13a   : > { %p18666_p6 = scmp.ne.s32.totalorder %s19497_s12, %s18665_s16  ;;  %p18672_p3 = scmp.lt.u32.totalorder %s18665_s16, %s19497_s12 }
 0x13c   : > { %p18668_p8 = pnand %p18666_p6, %p19639_p7 }
 0x13e   : > { %p18669_p2 = pneg %p18668_p8 }
 0x140   : > { %p18674_p9 = pnand %p18672_p3, %p18669_p2 }
 0x142   : > { %18677 = shalt.err (!%p18674_p9)
}
 0x143   : > { %s18678_s10 = scalar_lea.vmem %s1481_s8, 32  ;;  %p18686_p13 = scmp.lt.s32.totalorder %s1481_s8, %s1481_s8 }
 0x144   : > { %p18679_p10 = scmp.ne.s32.totalorder %s1481_s8, %s18678_s10  ;;  %p18687_p0 = scmp.lt.s32.totalorder %s18678_s10, %s18678_s10 }
 0x146   : > { %p18681_p11 = pnand %p18679_p10, %p19639_p7  ;;  %p18688_p1 = por %p18687_p0, %p18686_p13 }
 0x148   : > { %p18682_p12 = pneg %p18681_p11 }
 0x14a   : > { %p18689_p4 = pnand %p18688_p1, %p18682_p12 }
 0x14c   : > { %18692 = shalt.err (!%p18689_p4)
}
 0x14d   : > { %18121 = dma.hbm_to_vmem [thread:$0]  (!%p19627_p5), %s19497_s12, 32, %s1481_s8, [#allocation32], %s19318_s23, %s19318_s23, %s19319_s28  }
 0x14e   : > { %s19326_s2 = smov [#allocation34]   ;;  %s19327_s18 = smov [#allocation37]  }
 0x14f   : > { %s1512_s1 = sshll.u32 %s19326_s2, 4  ;;  %s1550_s26 = sshll.u32 %s19327_s18, 4  ;;  %s1513_s1 = int_to_ptr.vmem [resolvable:$true] %s1512_s1  ;;  %s1551_s26 = int_to_ptr.vmem [resolvable:$true] %s1550_s26 }
 0x150   : > { %s18693_s16 = scalar_lea.hbm %s19517_s20, 128 }
 0x151   : > { %p18694_p6 = scmp.ne.s32.totalorder %s19517_s20, %s18693_s16  ;;  %p18700_p3 = scmp.lt.u32.totalorder %s18693_s16, %s19517_s20 }
 0x153   : > { %p18696_p8 = pnand %p18694_p6, %p19639_p7 }
 0x155   : > { %p18697_p2 = pneg %p18696_p8 }
 0x157   : > { %p18702_p9 = pnand %p18700_p3, %p18697_p2 }
 0x159   : > { %18705 = shalt.err (!%p18702_p9)
}
 0x15a   : > { %s18706_s10 = scalar_lea.vmem %s1513_s1, 128  ;;  %p18714_p13 = scmp.lt.s32.totalorder %s1513_s1, %s1513_s1 }
 0x15b   : > { %p18707_p10 = scmp.ne.s32.totalorder %s1513_s1, %s18706_s10  ;;  %p18715_p0 = scmp.lt.s32.totalorder %s18706_s10, %s18706_s10 }
 0x15d   : > { %p18709_p11 = pnand %p18707_p10, %p19639_p7  ;;  %p18716_p1 = por %p18715_p0, %p18714_p13 }
 0x15f   : > { %p18710_p12 = pneg %p18709_p11 }
 0x161   : > { %p18717_p4 = pnand %p18716_p1, %p18710_p12 }
 0x163   : > { %18720 = shalt.err (!%p18717_p4)
}
 0x164   : > { %18127 = dma.hbm_to_vmem [thread:$0]  (!%p19627_p5), %s19517_s20, 128, %s1513_s1, [#allocation35], %s19318_s23, %s19318_s23, %s19319_s28  }
 0x165   : > { %s18721_s8 = scalar_lea.hbm %s21254_s4, 32 }
 0x166   : > { %p18722_p6 = scmp.ne.s32.totalorder %s21254_s4, %s18721_s8  ;;  %p18728_p3 = scmp.lt.u32.totalorder %s18721_s8, %s21254_s4 }
 0x168   : > { %p18724_p8 = pnand %p18722_p6, %p19639_p7 }
 0x16a   : > { %p18725_p2 = pneg %p18724_p8 }
 0x16c   : > { %p18730_p9 = pnand %p18728_p3, %p18725_p2 }
 0x16e   : > { %18733 = shalt.err (!%p18730_p9)
}
 0x16f   : > { %s18734_s2 = scalar_lea.vmem %s1551_s26, 32  ;;  %p18742_p13 = scmp.lt.s32.totalorder %s1551_s26, %s1551_s26 }
 0x170   : > { %p18735_p10 = scmp.ne.s32.totalorder %s1551_s26, %s18734_s2  ;;  %p18743_p0 = scmp.lt.s32.totalorder %s18734_s2, %s18734_s2 }
 0x172   : > { %p18737_p11 = pnand %p18735_p10, %p19639_p7  ;;  %p18744_p1 = por %p18743_p0, %p18742_p13 }
 0x174   : > { %p18738_p12 = pneg %p18737_p11 }
 0x176   : > { %p18745_p4 = pnand %p18744_p1, %p18738_p12 }
 0x178   : > { %18748 = shalt.err (!%p18745_p4)
}
 0x179   : > { %18133 = dma.hbm_to_vmem [thread:$0]  (!%p19627_p5), %s21254_s4, 32, %s1551_s26, [#allocation38], %s19318_s23, %s19318_s23, %s19319_s28  }
 0x17a   : > { %s19328_s1 = smov [#allocation40]   ;;  %s19329_s16 = smov [#allocation2]  }
 0x17b   : > { %s1582_s18 = sshll.u32 %s19328_s1, 4  ;;  %s1221_s10 = sshll.u32 %s19329_s16, 4  ;;  %s1583_s18 = int_to_ptr.vmem [resolvable:$true] %s1582_s18  ;;  %s1222_s10 = int_to_ptr.vmem [resolvable:$true] %s1221_s10 }
 0x17c   : > { %s18749_s8 = scalar_lea.hbm %s19567_s14, 32 }
 0x17d   : > { %p18750_p6 = scmp.ne.s32.totalorder %s19567_s14, %s18749_s8  ;;  %p18756_p3 = scmp.lt.u32.totalorder %s18749_s8, %s19567_s14 }
 0x17f   : > { %p18752_p8 = pnand %p18750_p6, %p19639_p7 }
 0x181   : > { %p18753_p2 = pneg %p18752_p8 }
 0x183   : > { %p18758_p9 = pnand %p18756_p3, %p18753_p2 }
 0x185   : > { %18761 = shalt.err (!%p18758_p9)
}
 0x186   : > { %s18762_s2 = scalar_lea.vmem %s1583_s18, 32  ;;  %p18770_p13 = scmp.lt.s32.totalorder %s1583_s18, %s1583_s18 }
 0x187   : > { %p18763_p10 = scmp.ne.s32.totalorder %s1583_s18, %s18762_s2  ;;  %p18771_p0 = scmp.lt.s32.totalorder %s18762_s2, %s18762_s2 }
 0x189   : > { %p18765_p11 = pnand %p18763_p10, %p19639_p7  ;;  %p18772_p1 = por %p18771_p0, %p18770_p13 }
 0x18b   : > { %p18766_p12 = pneg %p18765_p11 }
 0x18d   : > { %p18773_p4 = pnand %p18772_p1, %p18766_p12 }
 0x18f   : > { %18776 = shalt.err (!%p18773_p4)
}
 0x190   : > { %18139 = dma.hbm_to_vmem [thread:$0]  (!%p19627_p5), %s19567_s14, 32, %s1583_s18, [#allocation41], %s19318_s23, %s19318_s23, %s19319_s28  }
 0x191   : > { %s18777_s26 = scalar_lea.hbm %s19382_s25, 4096 }
 0x192   : > { %p18778_p6 = scmp.ne.s32.totalorder %s19382_s25, %s18777_s26  ;;  %p18784_p3 = scmp.lt.u32.totalorder %s18777_s26, %s19382_s25 }
 0x194   : > { %p18780_p8 = pnand %p18778_p6, %p19639_p7 }
 0x196   : > { %p18781_p2 = pneg %p18780_p8 }
 0x198   : > { %p18786_p9 = pnand %p18784_p3, %p18781_p2 }
 0x19a   : > { %18789 = shalt.err (!%p18786_p9)
}
 0x19b   : > { %s18790_s1 = scalar_lea.vmem %s1222_s10, 4096  ;;  %p18798_p13 = scmp.lt.s32.totalorder %s1222_s10, %s1222_s10 }
 0x19c   : > { %p18791_p10 = scmp.ne.s32.totalorder %s1222_s10, %s18790_s1  ;;  %p18799_p0 = scmp.lt.s32.totalorder %s18790_s1, %s18790_s1 }
 0x19e   : > { %p18793_p11 = pnand %p18791_p10, %p19639_p7  ;;  %p18800_p1 = por %p18799_p0, %p18798_p13 }
 0x1a0   : > { %p18794_p12 = pneg %p18793_p11 }
 0x1a2   : > { %p18801_p4 = pnand %p18800_p1, %p18794_p12 }
 0x1a4   : > { %18804 = shalt.err (!%p18801_p4)
}
 0x1a5   : > { %s19330_s23 = smov 128   ;;  %s21259_s28 = sld [smem:[#allocation65_spill]] }
 0x1a6   : > { %s19331_s18 = smov 8   ;;  %s19332_s16 = smov [#allocation6]  }
 0x1a7   : > { %18064 = dma.hbm_to_vmem [thread:$0]  (!%p19627_p5), %s19382_s25, 4096, %s1222_s10, [#allocation3], %s19330_s23, %s19330_s23, %s19331_s18  }
 0x1a8   : > { %s1247_s8 = sshll.u32 %s19332_s16, 4  ;;  %s19333_s2 = smov [#allocation9]   ;;  %s1248_s8 = int_to_ptr.vmem [resolvable:$true] %s1247_s8 }
 0x1a9   : > { %s1273_s26 = sshll.u32 %s19333_s2, 4  ;;  %s1274_s26 = int_to_ptr.vmem [resolvable:$true] %s1273_s26 }
 0x1ab   : > { %s18805_s1 = scalar_lea.hbm %s21259_s28, 4096 }
 0x1ac   : > { %p18806_p6 = scmp.ne.s32.totalorder %s21259_s28, %s18805_s1  ;;  %p18812_p3 = scmp.lt.u32.totalorder %s18805_s1, %s21259_s28 }
 0x1ae   : > { %p18808_p8 = pnand %p18806_p6, %p19639_p7 }
 0x1b0   : > { %p18809_p2 = pneg %p18808_p8 }
 0x1b2   : > { %p18814_p9 = pnand %p18812_p3, %p18809_p2 }
 0x1b4   : > { %18817 = shalt.err (!%p18814_p9)
}
 0x1b5   : > { %s18818_s4 = scalar_lea.vmem %s1248_s8, 4096  ;;  %p18826_p13 = scmp.lt.s32.totalorder %s1248_s8, %s1248_s8 }
 0x1b6   : > { %p18819_p10 = scmp.ne.s32.totalorder %s1248_s8, %s18818_s4  ;;  %p18827_p0 = scmp.lt.s32.totalorder %s18818_s4, %s18818_s4 }
 0x1b8   : > { %p18821_p11 = pnand %p18819_p10, %p19639_p7  ;;  %p18828_p1 = por %p18827_p0, %p18826_p13 }
 0x1ba   : > { %p18822_p12 = pneg %p18821_p11 }
 0x1bc   : > { %p18829_p4 = pnand %p18828_p1, %p18822_p12 }
 0x1be   : > { %18832 = shalt.err (!%p18829_p4)
}
 0x1bf   : > { %s21260_s10 = sld [smem:[#allocation67_spill]] }
 0x1c0   : > { %18070 = dma.hbm_to_vmem [thread:$0]  (!%p19627_p5), %s21259_s28, 4096, %s1248_s8, [#allocation5], %s19330_s23, %s19330_s23, %s19331_s18  }
 0x1c5   : > { %s18833_s16 = scalar_lea.hbm %s21260_s10, 4096 }
 0x1c6   : > { %p18834_p6 = scmp.ne.s32.totalorder %s21260_s10, %s18833_s16  ;;  %p18840_p3 = scmp.lt.u32.totalorder %s18833_s16, %s21260_s10 }
 0x1c8   : > { %p18836_p8 = pnand %p18834_p6, %p19639_p7 }
 0x1ca   : > { %p18837_p2 = pneg %p18836_p8 }
 0x1cc   : > { %p18842_p9 = pnand %p18840_p3, %p18837_p2 }
 0x1ce   : > { %18845 = shalt.err (!%p18842_p9)
}
 0x1cf   : > { %s18846_s4 = scalar_lea.vmem %s1274_s26, 4096  ;;  %p18854_p13 = scmp.lt.s32.totalorder %s1274_s26, %s1274_s26 }
 0x1d0   : > { %p18847_p10 = scmp.ne.s32.totalorder %s1274_s26, %s18846_s4  ;;  %p18855_p0 = scmp.lt.s32.totalorder %s18846_s4, %s18846_s4 }
 0x1d2   : > { %p18849_p11 = pnand %p18847_p10, %p19639_p7  ;;  %p18856_p1 = por %p18855_p0, %p18854_p13 }
 0x1d4   : > { %p18850_p12 = pneg %p18849_p11 }
 0x1d6   : > { %p18857_p4 = pnand %p18856_p1, %p18850_p12 }
 0x1d8   : > { %18860 = shalt.err (!%p18857_p4)
}
 0x1d9   : > { %s21261_s8 = sld [smem:[#allocation68_spill]]  ;;  %s19334_s2 = smov [#allocation12]  }
 0x1da   : > { %18076 = dma.hbm_to_vmem [thread:$0]  (!%p19627_p5), %s21260_s10, 4096, %s1274_s26, [#allocation8], %s19330_s23, %s19330_s23, %s19331_s18  }
 0x1db   : > { %s1299_s1 = sshll.u32 %s19334_s2, 4  ;;  %s19335_s16 = smov [#allocation15]   ;;  %s1300_s1 = int_to_ptr.vmem [resolvable:$true] %s1299_s1 }
 0x1dc   : > { %s1331_s5 = sshll.u32 %s19335_s16, 4  ;;  %s1332_s5 = int_to_ptr.vmem [resolvable:$true] %s1331_s5 }
 0x1df   : > { %s18861_s4 = scalar_lea.hbm %s21261_s8, 1024 }
 0x1e0   : > { %p18862_p6 = scmp.ne.s32.totalorder %s21261_s8, %s18861_s4  ;;  %p18868_p3 = scmp.lt.u32.totalorder %s18861_s4, %s21261_s8 }
 0x1e2   : > { %p18864_p8 = pnand %p18862_p6, %p19639_p7 }
 0x1e4   : > { %p18865_p2 = pneg %p18864_p8 }
 0x1e6   : > { %p18870_p9 = pnand %p18868_p3, %p18865_p2 }
 0x1e8   : > { %18873 = shalt.err (!%p18870_p9)
}
 0x1e9   : > { %s18874_s6 = scalar_lea.vmem %s1300_s1, 1024  ;;  %p18882_p13 = scmp.lt.s32.totalorder %s1300_s1, %s1300_s1 }
 0x1ea   : > { %p18875_p10 = scmp.ne.s32.totalorder %s1300_s1, %s18874_s6  ;;  %p18883_p0 = scmp.lt.s32.totalorder %s18874_s6, %s18874_s6 }
 0x1ec   : > { %p18877_p11 = pnand %p18875_p10, %p19639_p7  ;;  %p18884_p1 = por %p18883_p0, %p18882_p13 }
 0x1ee   : > { %p18878_p12 = pneg %p18877_p11 }
 0x1f0   : > { %p18885_p4 = pnand %p18884_p1, %p18878_p12 }
 0x1f2   : > { %18888 = shalt.err (!%p18885_p4)
}
 0x1f3   : > { %s21262_s26 = sld [smem:[#allocation71_spill]] }
 0x1f4   : > { %18082 = dma.hbm_to_vmem [thread:$0]  (!%p19627_p5), %s21261_s8, 1024, %s1300_s1, [#allocation11], %s19330_s23, %s19330_s23, %s19331_s18  }
 0x1f9   : > { %s18889_s2 = scalar_lea.hbm %s21262_s26, 1024 }
 0x1fa   : > { %p18890_p6 = scmp.ne.s32.totalorder %s21262_s26, %s18889_s2  ;;  %p18896_p3 = scmp.lt.u32.totalorder %s18889_s2, %s21262_s26 }
 0x1fc   : > { %p18892_p8 = pnand %p18890_p6, %p19639_p7 }
 0x1fe   : > { %p18893_p2 = pneg %p18892_p8 }
 0x200   : > { %p18898_p9 = pnand %p18896_p3, %p18893_p2 }
 0x202   : > { %18901 = shalt.err (!%p18898_p9)
}
 0x203   : > { %s18902_s6 = scalar_lea.vmem %s1332_s5, 1024  ;;  %p18910_p13 = scmp.lt.s32.totalorder %s1332_s5, %s1332_s5 }
 0x204   : > { %p18903_p10 = scmp.ne.s32.totalorder %s1332_s5, %s18902_s6  ;;  %p18911_p0 = scmp.lt.s32.totalorder %s18902_s6, %s18902_s6 }
 0x206   : > { %p18905_p11 = pnand %p18903_p10, %p19639_p7  ;;  %p18912_p1 = por %p18911_p0, %p18910_p13 }
 0x208   : > { %p18906_p12 = pneg %p18905_p11 }
 0x20a   : > { %p18913_p4 = pnand %p18912_p1, %p18906_p12 }
 0x20c   : > { %18916 = shalt.err (!%p18913_p4)
}
 0x20d   : > { %s21263_s1 = sld [smem:[#allocation72_spill]]  ;;  %s19336_s16 = smov [#allocation18]  }
 0x20e   : > { %18088 = dma.hbm_to_vmem [thread:$0]  (!%p19627_p5), %s21262_s26, 1024, %s1332_s5, [#allocation14], %s19330_s23, %s19330_s23, %s19331_s18  }
 0x20f   : > { %s1357_s4 = sshll.u32 %s19336_s16, 4  ;;  %s19337_s2 = smov [#allocation21]   ;;  %s1358_s4 = int_to_ptr.vmem [resolvable:$true] %s1357_s4 }
 0x210   : > { %s1389_s8 = sshll.u32 %s19337_s2, 4  ;;  %s1390_s8 = int_to_ptr.vmem [resolvable:$true] %s1389_s8 }
 0x213   : > { %s18917_s6 = scalar_lea.hbm %s21263_s1, 2048 }
 0x214   : > { %p18918_p6 = scmp.ne.s32.totalorder %s21263_s1, %s18917_s6  ;;  %p18924_p3 = scmp.lt.u32.totalorder %s18917_s6, %s21263_s1 }
 0x216   : > { %p18920_p8 = pnand %p18918_p6, %p19639_p7 }
 0x218   : > { %p18921_p2 = pneg %p18920_p8 }
 0x21a   : > { %p18926_p9 = pnand %p18924_p3, %p18921_p2 }
 0x21c   : > { %18929 = shalt.err (!%p18926_p9)
}
 0x21d   : > { %s18930_s9 = scalar_lea.vmem %s1358_s4, 2048  ;;  %p18938_p13 = scmp.lt.s32.totalorder %s1358_s4, %s1358_s4 }
 0x21e   : > { %p18931_p10 = scmp.ne.s32.totalorder %s1358_s4, %s18930_s9  ;;  %p18939_p0 = scmp.lt.s32.totalorder %s18930_s9, %s18930_s9 }
 0x220   : > { %p18933_p11 = pnand %p18931_p10, %p19639_p7  ;;  %p18940_p1 = por %p18939_p0, %p18938_p13 }
 0x222   : > { %p18934_p12 = pneg %p18933_p11 }
 0x224   : > { %p18941_p4 = pnand %p18940_p1, %p18934_p12 }
 0x226   : > { %18944 = shalt.err (!%p18941_p4)
}
 0x227   : > { %s21264_s5 = sld [smem:[#allocation75_spill]] }
 0x228   : > { %18094 = dma.hbm_to_vmem [thread:$0]  (!%p19627_p5), %s21263_s1, 2048, %s1358_s4, [#allocation17], %s19330_s23, %s19330_s23, %s19331_s18  }
 0x22d   : > { %s18945_s16 = scalar_lea.hbm %s21264_s5, 4096 }
 0x22e   : > { %p18946_p6 = scmp.ne.s32.totalorder %s21264_s5, %s18945_s16  ;;  %p18952_p3 = scmp.lt.u32.totalorder %s18945_s16, %s21264_s5 }
 0x230   : > { %p18948_p8 = pnand %p18946_p6, %p19639_p7 }
 0x232   : > { %p18949_p2 = pneg %p18948_p8 }
 0x234   : > { %p18954_p9 = pnand %p18952_p3, %p18949_p2 }
 0x236   : > { %18957 = shalt.err (!%p18954_p9)
}
 0x237   : > { %s18958_s9 = scalar_lea.vmem %s1390_s8, 4096  ;;  %p18966_p13 = scmp.lt.s32.totalorder %s1390_s8, %s1390_s8 }
 0x238   : > { %p18959_p10 = scmp.ne.s32.totalorder %s1390_s8, %s18958_s9  ;;  %p18967_p0 = scmp.lt.s32.totalorder %s18958_s9, %s18958_s9 }
 0x23a   : > { %p18961_p11 = pnand %p18959_p10, %p19639_p7  ;;  %p18968_p1 = por %p18967_p0, %p18966_p13 }
 0x23c   : > { %p18962_p12 = pneg %p18961_p11 }
 0x23e   : > { %p18969_p4 = pnand %p18968_p1, %p18962_p12 }
 0x240   : > { %18972 = shalt.err (!%p18969_p4)
}
 0x241   : > { %s21265_s4 = sld [smem:[#allocation77_spill]]  ;;  %s19338_s2 = smov [#allocation24]  }
 0x242   : > { %18100 = dma.hbm_to_vmem [thread:$0]  (!%p19627_p5), %s21264_s5, 4096, %s1390_s8, [#allocation20], %s19330_s23, %s19330_s23, %s19331_s18  }
 0x243   : > { %s1415_s6 = sshll.u32 %s19338_s2, 4  ;;  %s19339_s16 = smov [#allocation27]   ;;  %s1416_s6 = int_to_ptr.vmem [resolvable:$true] %s1415_s6 }
 0x244   : > { %s1441_s1 = sshll.u32 %s19339_s16, 4  ;;  %s1442_s1 = int_to_ptr.vmem [resolvable:$true] %s1441_s1 }
 0x247   : > { %s18973_s9 = scalar_lea.hbm %s21265_s4, 4096 }
 0x248   : > { %p18974_p6 = scmp.ne.s32.totalorder %s21265_s4, %s18973_s9  ;;  %p18980_p3 = scmp.lt.u32.totalorder %s18973_s9, %s21265_s4 }
 0x24a   : > { %p18976_p8 = pnand %p18974_p6, %p19639_p7 }
 0x24c   : > { %p18977_p2 = pneg %p18976_p8 }
 0x24e   : > { %p18982_p9 = pnand %p18980_p3, %p18977_p2 }
 0x250   : > { %18985 = shalt.err (!%p18982_p9)
}
 0x251   : > { %s18986_s10 = scalar_lea.vmem %s1416_s6, 4096  ;;  %p18994_p13 = scmp.lt.s32.totalorder %s1416_s6, %s1416_s6 }
 0x252   : > { %p18987_p10 = scmp.ne.s32.totalorder %s1416_s6, %s18986_s10  ;;  %p18995_p0 = scmp.lt.s32.totalorder %s18986_s10, %s18986_s10 }
 0x254   : > { %p18989_p11 = pnand %p18987_p10, %p19639_p7  ;;  %p18996_p1 = por %p18995_p0, %p18994_p13 }
 0x256   : > { %p18990_p12 = pneg %p18989_p11 }
 0x258   : > { %p18997_p4 = pnand %p18996_p1, %p18990_p12 }
 0x25a   : > { %19000 = shalt.err (!%p18997_p4)
}
 0x25b   : > { %s21266_s8 = sld [smem:[#allocation79_spill]] }
 0x25c   : > { %18106 = dma.hbm_to_vmem [thread:$0]  (!%p19627_p5), %s21265_s4, 4096, %s1416_s6, [#allocation23], %s19330_s23, %s19330_s23, %s19331_s18  }
 0x261   : > { %s19001_s2 = scalar_lea.hbm %s21266_s8, 4096 }
 0x262   : > { %p19002_p6 = scmp.ne.s32.totalorder %s21266_s8, %s19001_s2  ;;  %p19008_p3 = scmp.lt.u32.totalorder %s19001_s2, %s21266_s8 }
 0x264   : > { %p19004_p8 = pnand %p19002_p6, %p19639_p7 }
 0x266   : > { %p19005_p2 = pneg %p19004_p8 }
 0x268   : > { %p19010_p9 = pnand %p19008_p3, %p19005_p2 }
 0x26a   : > { %19013 = shalt.err (!%p19010_p9)
}
 0x26b   : > { %s19014_s10 = scalar_lea.vmem %s1442_s1, 4096  ;;  %p19022_p13 = scmp.lt.s32.totalorder %s1442_s1, %s1442_s1 }
 0x26c   : > { %p19015_p10 = scmp.ne.s32.totalorder %s1442_s1, %s19014_s10  ;;  %p19023_p0 = scmp.lt.s32.totalorder %s19014_s10, %s19014_s10 }
 0x26e   : > { %p19017_p11 = pnand %p19015_p10, %p19639_p7  ;;  %p19024_p1 = por %p19023_p0, %p19022_p13 }
 0x270   : > { %p19018_p12 = pneg %p19017_p11 }
 0x272   : > { %p19025_p4 = pnand %p19024_p1, %p19018_p12 }
 0x274   : > { %19028 = shalt.err (!%p19025_p4)
}
 0x275   : > { %s21267_s6 = sld [smem:[#allocation81_spill]]  ;;  %s19340_s16 = smov [#allocation30]  }
 0x276   : > { %18112 = dma.hbm_to_vmem [thread:$0]  (!%p19627_p5), %s21266_s8, 4096, %s1442_s1, [#allocation26], %s19330_s23, %s19330_s23, %s19331_s18  }
 0x277   : > { %s1467_s9 = sshll.u32 %s19340_s16, 4  ;;  %s19341_s2 = smov [#allocation33]   ;;  %s1468_s9 = int_to_ptr.vmem [resolvable:$true] %s1467_s9 }
 0x278   : > { %s1499_s4 = sshll.u32 %s19341_s2, 4  ;;  %s1500_s4 = int_to_ptr.vmem [resolvable:$true] %s1499_s4 }
 0x27b   : > { %s19029_s10 = scalar_lea.hbm %s21267_s6, 1024 }
 0x27c   : > { %p19030_p6 = scmp.ne.s32.totalorder %s21267_s6, %s19029_s10  ;;  %p19036_p3 = scmp.lt.u32.totalorder %s19029_s10, %s21267_s6 }
 0x27e   : > { %p19032_p8 = pnand %p19030_p6, %p19639_p7 }
 0x280   : > { %p19033_p2 = pneg %p19032_p8 }
 0x282   : > { %p19038_p9 = pnand %p19036_p3, %p19033_p2 }
 0x284   : > { %19041 = shalt.err (!%p19038_p9)
}
 0x285   : > { %s19042_s5 = scalar_lea.vmem %s1468_s9, 1024  ;;  %p19050_p13 = scmp.lt.s32.totalorder %s1468_s9, %s1468_s9 }
 0x286   : > { %p19043_p10 = scmp.ne.s32.totalorder %s1468_s9, %s19042_s5  ;;  %p19051_p0 = scmp.lt.s32.totalorder %s19042_s5, %s19042_s5 }
 0x288   : > { %p19045_p11 = pnand %p19043_p10, %p19639_p7  ;;  %p19052_p1 = por %p19051_p0, %p19050_p13 }
 0x28a   : > { %p19046_p12 = pneg %p19045_p11 }
 0x28c   : > { %p19053_p4 = pnand %p19052_p1, %p19046_p12 }
 0x28e   : > { %19056 = shalt.err (!%p19053_p4)
}
 0x28f   : > { %s21268_s1 = sld [smem:[#allocation84_spill]] }
 0x290   : > { %18118 = dma.hbm_to_vmem [thread:$0]  (!%p19627_p5), %s21267_s6, 1024, %s1468_s9, [#allocation29], %s19330_s23, %s19330_s23, %s19331_s18  }
 0x295   : > { %s19057_s16 = scalar_lea.hbm %s21268_s1, 4096 }
 0x296   : > { %p19058_p6 = scmp.ne.s32.totalorder %s21268_s1, %s19057_s16  ;;  %p19064_p3 = scmp.lt.u32.totalorder %s19057_s16, %s21268_s1 }
 0x298   : > { %p19060_p8 = pnand %p19058_p6, %p19639_p7 }
 0x29a   : > { %p19061_p2 = pneg %p19060_p8 }
 0x29c   : > { %p19066_p9 = pnand %p19064_p3, %p19061_p2 }
 0x29e   : > { %19069 = shalt.err (!%p19066_p9)
}
 0x29f   : > { %s19070_s5 = scalar_lea.vmem %s1500_s4, 4096  ;;  %p19078_p13 = scmp.lt.s32.totalorder %s1500_s4, %s1500_s4 }
 0x2a0   : > { %p19071_p10 = scmp.ne.s32.totalorder %s1500_s4, %s19070_s5  ;;  %p19079_p0 = scmp.lt.s32.totalorder %s19070_s5, %s19070_s5 }
 0x2a2   : > { %p19073_p11 = pnand %p19071_p10, %p19639_p7  ;;  %p19080_p1 = por %p19079_p0, %p19078_p13 }
 0x2a4   : > { %p19074_p12 = pneg %p19073_p11 }
 0x2a6   : > { %p19081_p4 = pnand %p19080_p1, %p19074_p12 }
 0x2a8   : > { %19084 = shalt.err (!%p19081_p4)
}
 0x2a9   : > { %s21269_s9 = sld [smem:[#allocation89_spill]]  ;;  %s19342_s2 = smov [#allocation36]  }
 0x2aa   : > { %18124 = dma.hbm_to_vmem [thread:$0]  (!%p19627_p5), %s21268_s1, 4096, %s1500_s4, [#allocation32], %s19330_s23, %s19330_s23, %s19331_s18  }
 0x2ab   : > { %s1537_s10 = sshll.u32 %s19342_s2, 4  ;;  %s19343_s16 = smov [#allocation39]   ;;  %s1538_s10 = int_to_ptr.vmem [resolvable:$true] %s1537_s10 }
 0x2ac   : > { %s1569_s6 = sshll.u32 %s19343_s16, 4  ;;  %s1570_s6 = int_to_ptr.vmem [resolvable:$true] %s1569_s6 }
 0x2af   : > { %s19085_s5 = scalar_lea.hbm %s21269_s9, 1024 }
 0x2b0   : > { %p19086_p6 = scmp.ne.s32.totalorder %s21269_s9, %s19085_s5  ;;  %p19092_p3 = scmp.lt.u32.totalorder %s19085_s5, %s21269_s9 }
 0x2b2   : > { %p19088_p8 = pnand %p19086_p6, %p19639_p7 }
 0x2b4   : > { %p19089_p2 = pneg %p19088_p8 }
 0x2b6   : > { %p19094_p9 = pnand %p19092_p3, %p19089_p2 }
 0x2b8   : > { %19097 = shalt.err (!%p19094_p9)
}
 0x2b9   : > { %s19098_s8 = scalar_lea.vmem %s1538_s10, 1024  ;;  %p19106_p13 = scmp.lt.s32.totalorder %s1538_s10, %s1538_s10 }
 0x2ba   : > { %p19099_p10 = scmp.ne.s32.totalorder %s1538_s10, %s19098_s8  ;;  %p19107_p0 = scmp.lt.s32.totalorder %s19098_s8, %s19098_s8 }
 0x2bc   : > { %p19101_p11 = pnand %p19099_p10, %p19639_p7  ;;  %p19108_p1 = por %p19107_p0, %p19106_p13 }
 0x2be   : > { %p19102_p12 = pneg %p19101_p11 }
 0x2c0   : > { %p19109_p4 = pnand %p19108_p1, %p19102_p12 }
 0x2c2   : > { %19112 = shalt.err (!%p19109_p4)
}
 0x2c3   : > { %s21270_s4 = sld [smem:[#allocation93_spill]] }
 0x2c4   : > { %18130 = dma.hbm_to_vmem [thread:$0]  (!%p19627_p5), %s21269_s9, 1024, %s1538_s10, [#allocation35], %s19330_s23, %s19330_s23, %s19331_s18  }
 0x2c9   : > { %s19113_s2 = scalar_lea.hbm %s21270_s4, 1024 }
 0x2ca   : > { %p19114_p6 = scmp.ne.s32.totalorder %s21270_s4, %s19113_s2  ;;  %p19120_p3 = scmp.lt.u32.totalorder %s19113_s2, %s21270_s4 }
 0x2cc   : > { %p19116_p8 = pnand %p19114_p6, %p19639_p7 }
 0x2ce   : > { %p19117_p2 = pneg %p19116_p8 }
 0x2d0   : > { %p19122_p9 = pnand %p19120_p3, %p19117_p2 }
 0x2d2   : > { %19125 = shalt.err (!%p19122_p9)
}
 0x2d3   : > { %s19126_s8 = scalar_lea.vmem %s1570_s6, 1024  ;;  %p19134_p13 = scmp.lt.s32.totalorder %s1570_s6, %s1570_s6 }
 0x2d4   : > { %p19127_p10 = scmp.ne.s32.totalorder %s1570_s6, %s19126_s8  ;;  %p19135_p0 = scmp.lt.s32.totalorder %s19126_s8, %s19126_s8 }
 0x2d6   : > { %p19129_p11 = pnand %p19127_p10, %p19639_p7  ;;  %p19136_p1 = por %p19135_p0, %p19134_p13 }
 0x2d8   : > { %p19130_p12 = pneg %p19129_p11 }
 0x2da   : > { %p19137_p4 = pnand %p19136_p1, %p19130_p12 }
 0x2dc   : > { %19140 = shalt.err (!%p19137_p4)
}
 0x2dd   : > { %s21271_s10 = sld [smem:[#allocation94_spill]]  ;;  %s19344_s16 = smov [#allocation42]  }
 0x2de   : > { %18136 = dma.hbm_to_vmem [thread:$0]  (!%p19627_p5), %s21270_s4, 1024, %s1570_s6, [#allocation38], %s19330_s23, %s19330_s23, %s19331_s18  }
 0x2df   : > { %s1595_s5 = sshll.u32 %s19344_s16, 4  ;;  %s19345_s2 = smov [#allocation43]   ;;  %s1596_s5 = int_to_ptr.vmem [resolvable:$true] %s1595_s5 }
 0x2e0   : > { %s1621_s1 = sshll.u32 %s19345_s2, 4  ;;  %s1622_s1 = int_to_ptr.vmem [resolvable:$true] %s1621_s1 }
 0x2e3   : > { %s19141_s8 = scalar_lea.hbm %s21271_s10, 2048 }
 0x2e4   : > { %p19142_p6 = scmp.ne.s32.totalorder %s21271_s10, %s19141_s8  ;;  %p19148_p3 = scmp.lt.u32.totalorder %s19141_s8, %s21271_s10 }
 0x2e6   : > { %p19144_p8 = pnand %p19142_p6, %p19639_p7 }
 0x2e8   : > { %p19145_p2 = pneg %p19144_p8 }
 0x2ea   : > { %p19150_p9 = pnand %p19148_p3, %p19145_p2 }
 0x2ec   : > { %19153 = shalt.err (!%p19150_p9)
}
 0x2ed   : > { %s19154_s9 = scalar_lea.vmem %s1596_s5, 2048  ;;  %p19162_p13 = scmp.lt.s32.totalorder %s1596_s5, %s1596_s5 }
 0x2ee   : > { %p19155_p10 = scmp.ne.s32.totalorder %s1596_s5, %s19154_s9  ;;  %p19163_p0 = scmp.lt.s32.totalorder %s19154_s9, %s19154_s9 }
 0x2f0   : > { %p19157_p11 = pnand %p19155_p10, %p19639_p7  ;;  %p19164_p1 = por %p19163_p0, %p19162_p13 }
 0x2f2   : > { %p19158_p12 = pneg %p19157_p11 }
 0x2f4   : > { %p19165_p4 = pnand %p19164_p1, %p19158_p12 }
 0x2f6   : > { %19168 = shalt.err (!%p19165_p4)
}
 0x2f7   : > { %18142 = dma.hbm_to_vmem [thread:$0]  (!%p19627_p5), %s21271_s10, 2048, %s1596_s5, [#allocation41], %s19330_s23, %s19330_s23, %s19331_s18  }
 0x2f8   : > { %s19169_s6 = scalar_lea.hbm %s19597_s24, 16 }
 0x2f9   : > { %p19170_p6 = scmp.ne.s32.totalorder %s19597_s24, %s19169_s6  ;;  %p19176_p3 = scmp.lt.u32.totalorder %s19169_s6, %s19597_s24 }
 0x2fb   : > { %p19172_p8 = pnand %p19170_p6, %p19639_p7 }
 0x2fd   : > { %p19173_p2 = pneg %p19172_p8 }
 0x2ff   : > { %p19178_p9 = pnand %p19176_p3, %p19173_p2 }
 0x301   : > { %19181 = shalt.err (!%p19178_p9)
}
 0x302   : > { %s19182_s9 = scalar_lea.vmem %s1622_s1, 16  ;;  %s19189_s16 = scalar_lea.vmem %s1622_s1, 32 }
 0x303   : > { %p19183_p10 = scmp.ne.s32.totalorder %s1622_s1, %s19182_s9  ;;  %p19190_p13 = scmp.lt.s32.totalorder %s1622_s1, %s1622_s1 }
 0x304   : > { %p19191_p0 = scmp.lt.s32.totalorder %s19189_s16, %s19182_s9 }
 0x305   : > { %p19185_p11 = pnand %p19183_p10, %p19639_p7 }
 0x306   : > { %p19192_p1 = por %p19191_p0, %p19190_p13 }
 0x307   : > { %p19186_p12 = pneg %p19185_p11 }
 0x309   : > { %p19193_p4 = pnand %p19192_p1, %p19186_p12 }
 0x30b   : > { %19196 = shalt.err (!%p19193_p4)
}
 0x30c   : > { %18145 = dma.hbm_to_vmem [thread:$0]  (!%p19627_p5), %s19597_s24, 16, %s1622_s1, [#allocation44]  }
 0x30d   : > { %p21272_p6 = scmp.ne.s32.totalorder %s21256_s15, 0 }
 0x30e   : > { %p21273_p8 = scmp.eq.s32.totalorder (!%p21272_p6), %s19610_s11, 0 }
 0x30f   : > { %1669 = sbr.rel (%p21272_p6) target bundleno = 28346 (0x6eba), region = 216 }
 0x316   : > { %19202 = dma.done.wait (%p21273_p8), [#allocation3], 4096   ;;  %p21274_p2 = pmov %p21273_p8 }
 0x318   : > { %19204 = vsyncadd (%p21274_p2), [#allocation3], 4294963200  ;;  %p21275_p7 = pmov %p21274_p2 }
 0x319   : > { %p21276_p3 = pmov %p21274_p2 }
 0x31a   : > { %19206 = dma.done.wait (%p21275_p7), [#allocation5], 4224  }
 0x31b   : > { %19208 = vsyncadd (%p21276_p3), [#allocation5], 4294963072  ;;  %p21277_p9 = pmov %p21274_p2 }
 0x31c   : > { %p21278_p5 = pmov %p21274_p2 }
 0x31d   : > { %19210 = dma.done.wait (%p21277_p9), [#allocation8], 4224  }
 0x31e   : > { %19212 = vsyncadd (%p21278_p5), [#allocation8], 4294963072  ;;  %p21279_p10 = pmov %p21274_p2 }
 0x31f   : > { %p21280_p11 = pmov %p21274_p2 }
 0x320   : > { %19214 = dma.done.wait (%p21279_p10), [#allocation11], 1152  }
 0x321   : > { %19216 = vsyncadd (%p21280_p11), [#allocation11], 4294966144  ;;  %p21281_p12 = pmov %p21274_p2 }
 0x322   : > { %p21282_p13 = pmov %p21274_p2 }
 0x323   : > { %19218 = dma.done.wait (%p21281_p12), [#allocation14], 1056  }
 0x324   : > { %19220 = vsyncadd (%p21282_p13), [#allocation14], 4294966240  ;;  %p21283_p0 = pmov %p21274_p2 }
 0x326   : > { %19222 = dma.done.wait (%p21283_p0), [#allocation17], 2080   ;;  %p21284_p1 = pmov %p21283_p0 }
 0x327   : > { %p21285_p4 = pmov %p21283_p0 }
 0x328   : > { %19224 = vsyncadd (%p21284_p1), [#allocation17], 4294965216 }
 0x329   : > { %19226 = dma.done.wait (%p21285_p4), [#allocation20], 4128   ;;  %p21286_p6 = pmov %p21283_p0 }
 0x32a   : > { %p21287_p8 = pmov %p21283_p0 }
 0x32b   : > { %19228 = vsyncadd (%p21286_p6), [#allocation20], 4294963168 }
 0x32c   : > { %19230 = dma.done.wait (%p21287_p8), [#allocation23], 4224   ;;  %p21288_p2 = pmov %p21283_p0 }
 0x32d   : > { %p21289_p7 = pmov %p21283_p0 }
 0x32e   : > { %19232 = vsyncadd (%p21288_p2), [#allocation23], 4294963072 }
 0x32f   : > { %19234 = dma.done.wait (%p21289_p7), [#allocation26], 4224   ;;  %p21290_p3 = pmov %p21283_p0 }
 0x330   : > { %p21291_p9 = pmov %p21283_p0 }
 0x331   : > { %19236 = vsyncadd (%p21290_p3), [#allocation26], 4294963072 }
 0x332   : > { %19238 = dma.done.wait (%p21291_p9), [#allocation29], 1152   ;;  %p21292_p5 = pmov %p21283_p0 }
 0x333   : > { %p21293_p10 = pmov %p21283_p0 }
 0x334   : > { %19240 = vsyncadd (%p21292_p5), [#allocation29], 4294966144 }
 0x335   : > { %19242 = dma.done.wait (%p21293_p10), [#allocation32], 4128   ;;  %p21294_p11 = pmov %p21283_p0 }
 0x336   : > { %p21295_p12 = pmov %p21283_p0 }
 0x337   : > { %19244 = vsyncadd (%p21294_p11), [#allocation32], 4294963168 }
 0x338   : > { %19246 = dma.done.wait (%p21295_p12), [#allocation35], 1152   ;;  %p21296_p13 = pmov %p21283_p0 }
 0x33a   : > { %19248 = vsyncadd (%p21296_p13), [#allocation35], 4294966144 }
 0x33b   : > { %19250 = dma.done.wait (%p21283_p0), [#allocation38], 1056   ;;  %p21297_p1 = pmov %p21283_p0 }
 0x33c   : > { %p21298_p4 = pmov %p21283_p0 }
 0x33d   : > { %19252 = vsyncadd (%p21297_p1), [#allocation38], 4294966240 }
 0x33e   : > { %19254 = dma.done.wait (%p21298_p4), [#allocation41], 2080   ;;  %p21299_p6 = pmov %p21283_p0 }
 0x33f   : > { %p21300_p8 = pmov %p21283_p0 }
 0x340   : > { %19256 = vsyncadd (%p21299_p6), [#allocation41], 4294965216 }
 0x341   : > { %19258 = dma.done.wait (%p21300_p8), [#allocation44], 16   ;;  %p21301_p2 = pmov %p21283_p0 }
 0x342   : > { %p1907_p7 = scmp.lt.s32.totalorder %s19610_s11, 1  ;;  %v19346_v0 = vmov 0.0|0.0   ;;  %vm19347_vm0 = vmmov 0   ;;  %v19348_v1 = vmov 0.0   ;;  %v1935_v2 = vld [vmem:[#allocation2] sm:$0xff]  ;;  %s21302_s15 = sld [smem:[#allocation60_spill]] }
 0x343   : > { %19260 = vsyncadd (%p21301_p2), [#allocation44], 4294967280  ;;  %17439 = vmatprep.subr.bf16.mxu0 %v19346_v0  ;;  %17445 = vmatprep.subr.bf16.mxu1 %v19346_v0  ;;  %v1936_v3 = vld [vmem:[#allocation2 + $0x8] sm:$0xff]  ;;  %v2021_v6 = vld [vmem:[#allocation6 + $0x8] sm:$0xff]  ;;  %vm1946_vm1 = vcmask 261120   ;;  %vm2183_vm2 = vcmask 64512  }
 0x344   : > { %16164 = vmatprep.mubr.msk.f32.mxu0 %vm19347_vm0, %v19348_v1  ;;  %16175 = vmatprep.mubr.msk.f32.mxu1 %vm19347_vm0, %v19348_v1  ;;  %s21322_s11 = smov (!%p1907_p7, %s19610_s11), 1  ;;  %v2020_v4 = vld [vmem:[#allocation6] sm:$0xff]  ;;  %v17440_v5 = vpack.c.bf16 %v1936_v3, %v1935_v2  ;;  %v1937_v7 = vld [vmem:[#allocation2 + $0x10] sm:$0xff]  ;;  %v1938_v8 = vld [vmem:[#allocation2 + $0x18] sm:$0xff]  ;;  %s21304_s18 = sld [smem:[#allocation69_spill]]  ;;  %vm4014_vm3 = vcmask 523264  }
 0x345   : > { %s20088_s22 = sshll.u32 %s21322_s11, 3  ;;  %v17446_v9 = vpack.c.bf16 %v2021_v6, %v2020_v4  ;;  %v2022_v10 = vld [vmem:[#allocation6 + $0x10] sm:$0xff]  ;;  %v2023_v11 = vld [vmem:[#allocation6 + $0x18] sm:$0xff]  ;;  %v17443_v12 = vpack.c.bf16 %v1938_v8, %v1937_v7  ;;  %v15226_v16 = vld [vmem:[#allocation7] ss:$0 sm:$0xff]  ;;  %s21303_s11 = sld [smem:[#allocation62_spill]] }
 0x346   : > { %17441 = vmatpush3.bf16.msra.mxu0 %v17440_v5  ;;  %v17449_v13 = vpack.c.bf16 %v2023_v11, %v2022_v10  ;;  %v15224_v15 = vld [vmem:[#allocation4] ss:$0 sm:$0xff]  ;;  %v2101_v24 = vld [vmem:[#allocation9] sm:$0xff]  ;;  %v2102_v25 = vld [vmem:[#allocation9 + $0x8] sm:$0xff]  ;;  %s21305_s1 = sld [smem:[#allocation70_spill]]  ;;  %s21306_s5 = sld [smem:[#allocation73_spill]] }
 0x347   : > { %17447 = vmatpush3.bf16.msra.mxu1 %v17446_v9  ;;  %17442 = vmatprep.subr.bf16.mxu0 %v19346_v0  ;;  %v2103_v26 = vld [vmem:[#allocation9 + $0x10] sm:$0xff]  ;;  %v17452_v27 = vpack.c.bf16 %v2102_v25, %v2101_v24  ;;  %v2104_v28 = vld [vmem:[#allocation9 + $0x18] sm:$0xff]  ;;  %v15228_v41 = vld [vmem:[#allocation10] ss:$0 sm:$0xff]  ;;  %s21307_s2 = sld [smem:[#allocation74_spill]]  ;;  %s21308_s8 = sld [smem:[#allocation61_spill]] }
 0x348   : > { %s1910_s0 = scalar_lea.vmem %s21302_s15, %s20088_s22  ;;  %17448 = vmatprep.subr.bf16.mxu1 %v19346_v0  ;;  %v17455_v29 = vpack.c.bf16 %v2104_v28, %v2103_v26  ;;  %v2346_v44 = vld [vmem:[#allocation2 + $0x20] sm:$0xff]  ;;  %v2347_v45 = vld [vmem:[#allocation2 + $0x28] sm:$0xff]  ;;  %v2348_v47 = vld [vmem:[#allocation2 + $0x30] sm:$0xff]  ;;  %s21309_s9 = sld [smem:[#allocation63_spill]] }
 0x349   : > { %v20094_v14 = vld [vmem:[%s1910_s0] sm:$0xff]  ;;  %v17458_v46 = vpack.c.bf16 %v2347_v45, %v2346_v44  ;;  %v2349_v48 = vld [vmem:[#allocation2 + $0x38] sm:$0xff]  ;;  %v2429_v51 = vld [vmem:[#allocation6 + $0x20] sm:$0xff]  ;;  %s21310_s15 = sld [smem:[#allocation85_spill]]  ;;  %s21311_s0 = sld [smem:[#allocation86_spill]] }
 0x34a   : > { %17444 = vmatpush3.bf16.msra.mxu0 %v17443_v12  ;;  %v17461_v49 = vpack.c.bf16 %v2349_v48, %v2348_v47  ;;  %v2430_v52 = vld [vmem:[#allocation6 + $0x28] sm:$0xff]  ;;  %v2431_v56 = vld [vmem:[#allocation6 + $0x30] sm:$0xff]  ;;  %v2432_v57 = vld [vmem:[#allocation6 + $0x38] sm:$0xff]  ;;  %s21319_s4 = sld [smem:[#allocation95_spill]] }
 0x34b   : > { %17450 = vmatpush3.bf16.msra.mxu1 %v17449_v13  ;;  %17451 = vmatprep.subr.bf16.mxu0 %v19346_v0  ;;  %s20119_s23 = scalar_lea.vmem %s21303_s11, %s20088_s22  ;;  %v17464_v54 = vpack.c.bf16 %v2430_v52, %v2429_v51  ;;  %v17467_v58 = vpack.c.bf16 %v2432_v57, %v2431_v56  ;;  %v15233_v63 = vld [vmem:[#allocation4 + $0x1] ss:$0 sm:$0xff]  ;;  %v15235_v3 = vld [vmem:[#allocation7 + $0x1] ss:$0 sm:$0xff]  ;;  %v2512_v8 = vld [vmem:[#allocation9 + $0x20] sm:$0xff]  ;;  %s21312_s11 = sld [smem:[#allocation82_spill]] }
 0x34c   : > { %16189 = vmatprep.subr.mxu1 %v19348_v1  ;;  %v20122_v30 = vld [vmem:[%s20119_s23] sm:$0xff]  ;;  %v2513_v9 = vld [vmem:[#allocation9 + $0x28] sm:$0xff]  ;;  %v2515_v12 = vld [vmem:[#allocation9 + $0x38] sm:$0xff] }
 0x34d   : > { %16165 = vmatmul.mubr.msk.f32.vlgmr.msra.gmra.mrb[0].mxu0 %vm1946_vm1, %v20094_v14  ;;  %v2514_v10 = vld [vmem:[#allocation9 + $0x30] sm:$0xff]  ;;  %v17470_v11 = vpack.c.bf16 %v2513_v9, %v2512_v8  ;;  %v15237_v25 = vld [vmem:[#allocation10 + $0x1] ss:$0 sm:$0xff]  ;;  %v2907_v44 = vld [vmem:[#allocation2 + $0x58] sm:$0xff]  ;;  %s1914_s6 = scalar_lea.vmem %s21308_s8, %s20088_s22  ;;  %s21314_s8 = sld [smem:[#allocation83_spill]] }
 0x34e   : > { %16176 = vmatmul.mubr.msk.f32.vlgmr.msra.gmra.mrb[0].mxu1 %vm1946_vm1, %v20094_v14  ;;  %16186 = vmatprep.mubr.msk.f32.mxu0 %vm19347_vm0, %v19348_v1  ;;  %v17473_v13 = vpack.c.bf16 %v2515_v12, %v2514_v10  ;;  %v2756_v28 = vld [vmem:[#allocation12 + $0x8] sm:$0xff]  ;;  %s20456_s16 = scalar_lea.vmem %s21309_s9, %s20088_s22  ;;  %s21316_s9 = sld [smem:[#allocation64_spill]] }
 0x34f   : > { %16191 = vmatprep.mubr.msk.f32.mxu1 %vm19347_vm0, %v19348_v1  ;;  %17453 = vmatpush3.bf16.msra.mxu0 %v17452_v27  ;;  %v15244_v57 = vld [vmem:[#allocation4 + $0x2] ss:$0 sm:$0xff] }
 0x350   : > { %17454 = vmatprep.subr.bf16.mxu0 %v19346_v0 }
 0x353   : > { %17456 = vmatpush3.bf16.msra.mxu0 %v17455_v29 }
 0x354   : > { %17457 = vmatprep.subr.bf16.mxu0 %v19346_v0 }
 0x356   : > { %16187 = vmatmul.mubr.msk.f32.vlgmr.msra.gmra.mrb[2].mxu0 %vm1946_vm1, %v20094_v14 }
 0x357   : > { %16207 = vmatprep.mubr.msk.f32.mxu0 %vm19347_vm0, %v19348_v1  ;;  %17459 = vmatpush3.bf16.msra.mxu0 %v17458_v46 }
 0x358   : > { %17460 = vmatprep.subr.bf16.mxu0 %v19346_v0 }
 0x35b   : > { %17462 = vmatpush3.bf16.msra.mxu0 %v17461_v49 }
 0x35c   : > { %17469 = vmatprep.subr.bf16.mxu0 %v19346_v0 }
 0x35e   : > { %16208 = vmatmul.mubr.msk.f32.vlgmr.msra.gmra.mrb[4].mxu0 %vm1946_vm1, %v20094_v14 }
 0x35f   : > { %16229 = vmatprep.mubr.msk.f32.mxu0 %vm19347_vm0, %v19348_v1  ;;  %17471 = vmatpush3.bf16.msra.mxu0 %v17470_v11 }
 0x360   : > { %17472 = vmatprep.subr.bf16.mxu0 %v19346_v0 }
 0x363   : > { %17474 = vmatpush3.bf16.msra.mxu0 %v17473_v13 }
 0x364   : > { %16242 = vmatprep.subr.mxu0 %v19348_v1 }
 0x366   : > { %16230 = vmatmul.mubr.msk.f32.vlgmr.msra.gmra.mrb[6].mxu0 %vm1946_vm1, %v20094_v14 }
 0x367   : > { %16244 = vmatprep.mubr.msk.f32.mxu0 %vm19347_vm0, %v19348_v1  ;;  %16243 = vmatpush3.msra.mxu0 %v2756_v28  ;;  %v3393_v28 = vld [vmem:[#allocation2 + $0x78] sm:$0xff] }
 0x368   : > { %17475 = vmatprep.subr.bf16.mxu0 %v19346_v0 }
 0x420   : > { %v2016_v17 = vpop.f32.mrb[0].mxu0 }
 0x421   : > { %v2017_v18 = vadd.f32 %v15224_v15, %v2016_v17  ;;  %v2097_v19 = vpop.f32.mrb[0].mxu1  ;;  %v16166_v20 = vpop.f32.mrb[1].mxu0 }
 0x422   : > { %v2098_v21 = vadd.f32 %v15226_v16, %v2097_v19  ;;  %v16177_v22 = vpop.f32.mrb[1].mxu1 }
 0x423   : > { %v2182_v23 = vmul.f32 0.35355338, %v2017_v18 }
 0x424   : > { %16190 = vmatpush3.xpose.msk.msra.mxu1 %vm2183_vm2, %v2098_v21 }
 0x425   : > { %16194 = vmatprep.subr.mxu1 %v19348_v1 }
 0x427   : > { %16192 = vmatmul.mubr.msk.f32.vlgmr.msra.gmra.mrb[2].mxu1 %vm2183_vm2, %v2182_v23 }
 0x428   : > { %16196 = vmatprep.mubr.msk.f32.mxu1 %vm19347_vm0, %v19348_v1 }
 0x429   : > { %v2178_v40 = vpop.f32.mrb[2].mxu0 }
 0x42a   : > { %v16188_v42 = vpop.f32.mrb[3].mxu0  ;;  %v2179_v43 = vadd.f32 %v15228_v41, %v2178_v40  ;;  %v2904_v40 = vld [vmem:[#allocation2 + $0x40] sm:$0xff]  ;;  %v2905_v41 = vld [vmem:[#allocation2 + $0x48] sm:$0xff] }
 0x42b   : > { %v17476_v42 = vpack.c.bf16 %v2905_v41, %v2904_v40 }
 0x42c   : > { %16195 = vmatpush3.msra.mxu1 %v2179_v43  ;;  %v2906_v43 = vld [vmem:[#allocation2 + $0x50] sm:$0xff] }
 0x42d   : > { %17463 = vmatprep.subr.bf16.mxu1 %v19346_v0  ;;  %v17479_v47 = vpack.c.bf16 %v2907_v44, %v2906_v43  ;;  %v15254_v44 = vld [vmem:[#allocation4 + $0x3] ss:$0 sm:$0xff] }
 0x431   : > { %v2424_v59 = vpop.f32.mrb[4].mxu0 }
 0x432   : > { %v16209_v60 = vpop.f32.mrb[5].mxu0  ;;  %v2425_v2 = vadd.f32 %v15233_v63, %v2424_v59  ;;  %v3071_v63 = vld [vmem:[#allocation9 + $0x48] sm:$0xff] }
 0x434   : > { %v2594_v7 = vmul.f32 0.35355338, %v2425_v2  ;;  %v3072_v2 = vld [vmem:[#allocation9 + $0x50] sm:$0xff] }
 0x439   : > { %v2590_v24 = vpop.f32.mrb[6].mxu0 }
 0x43a   : > { %v16231_v26 = vpop.f32.mrb[7].mxu0  ;;  %v2591_v27 = vadd.f32 %v15237_v25, %v2590_v24  ;;  %v3390_v24 = vld [vmem:[#allocation2 + $0x60] sm:$0xff]  ;;  %v3391_v25 = vld [vmem:[#allocation2 + $0x68] sm:$0xff] }
 0x43b   : > { %v17494_v26 = vpack.c.bf16 %v3391_v25, %v3390_v24 }
 0x4fa   : > { %v2256_v31 = vpop.f32.mrb[2].mxu1 }
 0x4fb   : > { %v2257_v32 = vadd.f32 %v2256_v31, %v20122_v30  ;;  %v16193_v33 = vpop.f32.mrb[3].mxu1 }
 0x4fc   : > { %v2344_v33 = vld [vmem:[#allocation12] sm:$0xff] }
 0x4fd   : > { %v2260_v34 = vsel %vm2183_vm2, %v2257_v32, -inf }
 0x4fe   : > { %2261 = vmax.xlane.f32.xlu0 %v2260_v34  ;;  %v2987_v34 = vld [vmem:[#allocation6 + $0x40] sm:$0xff] }
 0x58b   : > { %v2262_v35 = vpop.xlane.xlu0 %2261 }
 0x58c   : > { %v2263_v36 = vsub.f32 %v2257_v32, %v2262_v35  ;;  %v2988_v35 = vld [vmem:[#allocation6 + $0x48] sm:$0xff] }
 0x58e   : > { %v2264_v37 = vmul.f32 1.442695, %v2263_v36  ;;  %v17482_v36 = vpack.c.bf16 %v2988_v35, %v2987_v34  ;;  %v3475_v34 = vld [vmem:[#allocation6 + $0x70] sm:$0xff]  ;;  %v3476_v35 = vld [vmem:[#allocation6 + $0x78] sm:$0xff] }
 0x590   : > { %18294 = vpow2.f32 %v2264_v37  ;;  %v2989_v37 = vld [vmem:[#allocation6 + $0x50] sm:$0xff] }
 0x59a   : > { %v18295_v38 = vpop.eup %18294 }
 0x59b   : > { %v2266_v39 = vsel %vm2183_vm2, %v18295_v38, 0.0 }
 0x59c   : > { %2267 = vadd.xlane.f32.xlu0 %v2266_v39 }
 0x629   : > { %v2268_v50 = vpop.xlane.xlu0 %2267 }
 0x62a   : > { %18296 = vrcp.f32 %v2268_v50  ;;  %v15246_v50 = vld [vmem:[#allocation7 + $0x2] ss:$0 sm:$0xff] }
 0x634   : > { %v18297_v53 = vpop.eup %18296 }
 0x635   : > { %v2270_v55 = vmul.f32 %v18297_v53, %v18295_v38  ;;  %v2990_v38 = vld [vmem:[#allocation6 + $0x58] sm:$0xff] }
 0x636   : > { %v17485_v39 = vpack.c.bf16 %v2990_v38, %v2989_v37  ;;  %v17503_v38 = vpack.c.bf16 %v3476_v35, %v3475_v34  ;;  %v4000_v34 = vld [vmem:[#allocation18 + $0x8] sm:$0xff]  ;;  %v4001_v35 = vld [vmem:[#allocation18 + $0x10] sm:$0xff] }
 0x637   : > { %16197 = vmatmul.mubr.msk.f32.vlgmr.msra.gmra.mrb[4].mxu1 %vm2183_vm2, %v2270_v55 }
 0x638   : > { %17465 = vmatpush3.bf16.msra.mxu1 %v17464_v54  ;;  %16218 = vmatprep.mubr.msk.f32.mxu1 %vm19347_vm0, %v19348_v1 }
 0x639   : > { %17466 = vmatprep.subr.bf16.mxu1 %v19346_v0 }
 0x63c   : > { %17468 = vmatpush3.bf16.msra.mxu1 %v17467_v58 }
 0x63d   : > { %16232 = vmatprep.subr.mxu1 %v19348_v1 }
 0x63f   : > { %16219 = vmatmul.mubr.msk.f32.vlgmr.msra.gmra.mrb[6].mxu1 %vm1946_vm1, %v20094_v14 }
 0x640   : > { %16234 = vmatprep.mubr.msk.f32.mxu1 %vm19347_vm0, %v19348_v1 }
 0x70a   : > { %v2340_v61 = vpop.f32.mrb[4].mxu1 }
 0x70b   : > { %v16198_v62 = vpop.f32.mrb[5].mxu1 }
 0x70c   : > { %v3070_v62 = vld [vmem:[#allocation9 + $0x40] sm:$0xff] }
 0x712   : > { %v2507_v4 = vpop.f32.mrb[6].mxu1 }
 0x713   : > { %v2508_v5 = vadd.f32 %v15235_v3, %v2507_v4  ;;  %v16220_v6 = vpop.f32.mrb[7].mxu1  ;;  %v17488_v3 = vpack.c.bf16 %v3071_v63, %v3070_v62  ;;  %v3073_v4 = vld [vmem:[#allocation9 + $0x58] sm:$0xff] }
 0x715   : > { %16233 = vmatpush3.xpose.msk.msra.mxu1 %vm2183_vm2, %v2508_v5  ;;  %v17491_v5 = vpack.c.bf16 %v3073_v4, %v3072_v2 }
 0x716   : > { %16237 = vmatprep.subr.mxu1 %v19348_v1 }
 0x718   : > { %16235 = vmatmul.mubr.msk.f32.vlgmr.msra.gmra.mrb[8].mxu1 %vm2183_vm2, %v2594_v7 }
 0x719   : > { %16239 = vmatprep.mubr.msk.f32.mxu1 %vm19347_vm0, %v19348_v1  ;;  %16238 = vmatpush3.msra.mxu1 %v2591_v27  ;;  %v3392_v27 = vld [vmem:[#allocation2 + $0x70] sm:$0xff] }
 0x71a   : > { %16247 = vmatprep.subr.mxu1 %v19348_v1 }
 0x7eb   : > { %v2667_v15 = vpop.f32.mrb[8].mxu1 }
 0x7ec   : > { %v2668_v16 = vadd.f32 %v2667_v15, %v20122_v30  ;;  %v16236_v17 = vpop.f32.mrb[9].mxu1 }
 0x7ed   : > { %v15248_v17 = vld [vmem:[#allocation10 + $0x2] ss:$0 sm:$0xff] }
 0x7ee   : > { %v2671_v18 = vsel %vm2183_vm2, %v2668_v16, -inf }
 0x7ef   : > { %2672 = vmax.xlane.f32.xlu1 %v2671_v18 }
 0x87c   : > { %v2673_v19 = vpop.xlane.xlu1 %2672 }
 0x87d   : > { %v2674_v20 = vsub.f32 %v2668_v16, %v2673_v19 }
 0x87f   : > { %v2675_v21 = vmul.f32 1.442695, %v2674_v20  ;;  %v3314_v20 = vld [vmem:[#allocation12 + $0x10] sm:$0xff] }
 0x881   : > { %18298 = vpow2.f32 %v2675_v21 }
 0x88b   : > { %v18299_v22 = vpop.eup %18298 }
 0x88c   : > { %v2677_v23 = vsel %vm2183_vm2, %v18299_v22, 0.0 }
 0x88d   : > { %2678 = vadd.xlane.f32.xlu1 %v2677_v23 }
 0x91a   : > { %v2679_v29 = vpop.xlane.xlu1 %2678 }
 0x91b   : > { %18300 = vrcp.f32 %v2679_v29  ;;  %v17497_v29 = vpack.c.bf16 %v3393_v28, %v3392_v27  ;;  %v3914_v27 = vld [vmem:[#allocation15] sm:$0xff]  ;;  %v3915_v28 = vld [vmem:[#allocation15 + $0x8] sm:$0xff] }
 0x925   : > { %v18301_v31 = vpop.eup %18300 }
 0x926   : > { %v2681_v32 = vmul.f32 %v18301_v31, %v18299_v22  ;;  %v3473_v31 = vld [vmem:[#allocation6 + $0x60] sm:$0xff] }
 0x928   : > { %16240 = vmatmul.mubr.msk.f32.vlgmr.msra.gmra.mrb[10].mxu1 %vm2183_vm2, %v2681_v32  ;;  %v3474_v32 = vld [vmem:[#allocation6 + $0x68] sm:$0xff] }
 0x929   : > { %16248 = vmatpush3.msra.mxu1 %v2344_v33  ;;  %16249 = vmatprep.mubr.msk.f32.mxu1 %vm19347_vm0, %v19348_v1  ;;  %v17500_v33 = vpack.c.bf16 %v3474_v32, %v3473_v31  ;;  %v3916_v31 = vld [vmem:[#allocation15 + $0x10] sm:$0xff]  ;;  %v3917_v32 = vld [vmem:[#allocation15 + $0x18] sm:$0xff] }
 0x92a   : > { %17481 = vmatprep.subr.bf16.mxu1 %v19346_v0 }
 0x92c   : > { %16250 = vmatmul.mubr.msk.f32.vlgmr.msra.gmra.mrb[12].mxu1 %vm2183_vm2, %v2340_v61 }
 0x92d   : > { %17483 = vmatpush3.bf16.msra.mxu1 %v17482_v36  ;;  %16271 = vmatprep.mubr.msk.f32.mxu1 %vm19347_vm0, %v19348_v1 }
 0x92e   : > { %17484 = vmatprep.subr.bf16.mxu1 %v19346_v0 }
 0x931   : > { %17486 = vmatpush3.bf16.msra.mxu1 %v17485_v39 }
 0x932   : > { %16285 = vmatprep.subr.mxu1 %v19348_v1 }
 0x934   : > { %16272 = vmatmul.mubr.msk.f32.vlgmr.msra.gmra.mrb[14].mxu1 %vm1946_vm1, %v20094_v14 }
 0x935   : > { %16287 = vmatprep.mubr.msk.f32.mxu1 %vm19347_vm0, %v19348_v1 }
 0x9fb   : > { %v2751_v45 = vpop.f32.mrb[10].mxu1 }
 0x9fc   : > { %v16241_v46 = vpop.f32.mrb[11].mxu1  ;;  %16245 = vmatmul.mubr.msk.f32.vlgmr.msra.gmra.mrb[8].mxu0 %vm2183_vm2, %v2751_v45 }
 0x9fd   : > { %17477 = vmatpush3.bf16.msra.mxu0 %v17476_v42  ;;  %16260 = vmatprep.mubr.msk.f32.mxu0 %vm19347_vm0, %v19348_v1  ;;  %v15256_v46 = vld [vmem:[#allocation7 + $0x3] ss:$0 sm:$0xff] }
 0x9fe   : > { %17478 = vmatprep.subr.bf16.mxu0 %v19346_v0 }
 0x9ff   : > { %v2899_v48 = vpop.f32.mrb[12].mxu1 }
 0xa00   : > { %v16251_v49 = vpop.f32.mrb[13].mxu1 }
 0xa01   : > { %17480 = vmatpush3.bf16.msra.mxu0 %v17479_v47 }
 0xa02   : > { %17487 = vmatprep.subr.bf16.mxu0 %v19346_v0 }
 0xa04   : > { %16261 = vmatmul.mubr.msk.f32.vlgmr.msra.gmra.mrb[10].mxu0 %vm1946_vm1, %v20094_v14 }
 0xa05   : > { %16282 = vmatprep.mubr.msk.f32.mxu0 %vm19347_vm0, %v19348_v1  ;;  %17489 = vmatpush3.bf16.msra.mxu0 %v17488_v3 }
 0xa06   : > { %17490 = vmatprep.subr.bf16.mxu0 %v19346_v0 }
 0xa07   : > { %v3065_v51 = vpop.f32.mrb[14].mxu1 }
 0xa08   : > { %v3066_v52 = vadd.f32 %v15246_v50, %v3065_v51  ;;  %v16273_v53 = vpop.f32.mrb[15].mxu1  ;;  %v3556_v51 = vld [vmem:[#allocation9 + $0x60] sm:$0xff] }
 0xa09   : > { %17492 = vmatpush3.bf16.msra.mxu0 %v17491_v5  ;;  %v3558_v53 = vld [vmem:[#allocation9 + $0x70] sm:$0xff]  ;;  %v15258_v5 = vld [vmem:[#allocation10 + $0x3] ss:$0 sm:$0xff] }
 0xa0a   : > { %16286 = vmatpush3.xpose.msk.msra.mxu1 %vm2183_vm2, %v3066_v52  ;;  %16295 = vmatprep.subr.mxu0 %v19348_v1  ;;  %v3557_v52 = vld [vmem:[#allocation9 + $0x68] sm:$0xff] }
 0xa0b   : > { %16290 = vmatprep.subr.mxu1 %v19348_v1 }
 0xa0c   : > { %16283 = vmatmul.mubr.msk.f32.vlgmr.msra.gmra.mrb[12].mxu0 %vm1946_vm1, %v20094_v14 }
 0xa0d   : > { %16297 = vmatprep.mubr.msk.f32.mxu0 %vm19347_vm0, %v19348_v1  ;;  %16296 = vmatpush3.msra.mxu0 %v3314_v20 }
 0xa0e   : > { %17499 = vmatprep.subr.bf16.mxu0 %v19346_v0 }
 0xacf   : > { %v2826_v54 = vpop.f32.mrb[8].mxu0 }
 0xad0   : > { %v20183_v55 = vadd.f32 %v2899_v48, %v2826_v54  ;;  %v16246_v56 = vpop.f32.mrb[9].mxu0  ;;  %v17506_v54 = vpack.c.bf16 %v3557_v52, %v3556_v51  ;;  %v4005_v51 = vld [vmem:[#allocation18 + $0x30] sm:$0xff]  ;;  %v4006_v52 = vld [vmem:[#allocation18 + $0x38] sm:$0xff] }
 0xad7   : > { %v2982_v58 = vpop.f32.mrb[10].mxu0 }
 0xad8   : > { %v2983_v59 = vadd.f32 %v15244_v57, %v2982_v58  ;;  %v16262_v60 = vpop.f32.mrb[11].mxu0 }
 0xada   : > { %v3152_v61 = vmul.f32 0.35355338, %v2983_v59 }
 0xadc   : > { %16288 = vmatmul.mubr.msk.f32.vlgmr.msra.gmra.mrb[16].mxu1 %vm2183_vm2, %v3152_v61 }
 0xadd   : > { %16292 = vmatprep.mubr.msk.f32.mxu1 %vm19347_vm0, %v19348_v1 }
 0xadf   : > { %v3148_v16 = vpop.f32.mrb[12].mxu0 }
 0xae0   : > { %v16284_v18 = vpop.f32.mrb[13].mxu0  ;;  %v3149_v19 = vadd.f32 %v15248_v17, %v3148_v16  ;;  %v15264_v16 = vld [vmem:[#allocation13] ss:$0 sm:$0xff] }
 0xae2   : > { %16291 = vmatpush3.msra.mxu1 %v3149_v19 }
 0xae3   : > { %17493 = vmatprep.subr.bf16.mxu1 %v19346_v0 }
 0xbaf   : > { %v3225_v6 = vpop.f32.mrb[16].mxu1 }
 0xbb0   : > { %v3226_v7 = vadd.f32 %v3225_v6, %v20122_v30  ;;  %v16289_v8 = vpop.f32.mrb[17].mxu1 }
 0xbb1   : > { %v3800_v8 = vld [vmem:[#allocation12 + $0x18] sm:$0xff] }
 0xbb2   : > { %v3229_v9 = vsel %vm2183_vm2, %v3226_v7, -inf }
 0xbb3   : > { %3230 = vmax.xlane.f32.xlu0 %v3229_v9 }
 0xc40   : > { %v3231_v10 = vpop.xlane.xlu0 %3230 }
 0xc41   : > { %v3232_v11 = vsub.f32 %v3226_v7, %v3231_v10 }
 0xc43   : > { %v3233_v12 = vmul.f32 1.442695, %v3232_v11 }
 0xc45   : > { %18302 = vpow2.f32 %v3233_v12 }
 0xc4f   : > { %v18303_v13 = vpop.eup %18302 }
 0xc50   : > { %v3235_v15 = vsel %vm2183_vm2, %v18303_v13, 0.0 }
 0xc51   : > { %3236 = vadd.xlane.f32.xlu1 %v3235_v15 }
 0xcde   : > { %v3237_v21 = vpop.xlane.xlu1 %3236 }
 0xcdf   : > { %18304 = vrcp.f32 %v3237_v21 }
 0xce9   : > { %v18305_v22 = vpop.eup %18304 }
 0xcea   : > { %v3239_v23 = vmul.f32 %v18305_v22, %v18303_v13 }
 0xcec   : > { %16293 = vmatmul.mubr.msk.f32.vlgmr.msra.gmra.mrb[18].mxu1 %vm2183_vm2, %v3239_v23 }
 0xced   : > { %16308 = vmatprep.mubr.msk.f32.mxu1 %vm19347_vm0, %v19348_v1  ;;  %17495 = vmatpush3.bf16.msra.mxu1 %v17494_v26 }
 0xcee   : > { %17496 = vmatprep.subr.bf16.mxu1 %v19346_v0 }
 0xcf1   : > { %17498 = vmatpush3.bf16.msra.mxu1 %v17497_v29  ;;  %v17512_v29 = vpack.c.bf16 %v3915_v28, %v3914_v27  ;;  %v4205_v27 = vld [vmem:[#allocation6 + $0x80] sm:$0xff]  ;;  %v4206_v28 = vld [vmem:[#allocation6 + $0x88] sm:$0xff] }
 0xcf2   : > { %17505 = vmatprep.subr.bf16.mxu1 %v19346_v0 }
 0xcf4   : > { %16309 = vmatmul.mubr.msk.f32.vlgmr.msra.gmra.mrb[20].mxu1 %vm1946_vm1, %v20094_v14 }
 0xcf5   : > { %16330 = vmatprep.mubr.msk.f32.mxu1 %vm19347_vm0, %v19348_v1  ;;  %17507 = vmatpush3.bf16.msra.mxu1 %v17506_v54  ;;  %v15267_v54 = vld [vmem:[#allocation16] ss:$0 sm:$0xff] }
 0xcf6   : > { %17508 = vmatprep.subr.bf16.mxu1 %v19346_v0 }
 0xdbf   : > { %v3309_v36 = vpop.f32.mrb[18].mxu1 }
 0xdc0   : > { %v16294_v37 = vpop.f32.mrb[19].mxu1  ;;  %16298 = vmatmul.mubr.msk.f32.vlgmr.msra.gmra.mrb[14].mxu0 %vm2183_vm2, %v3309_v36 }
 0xdc1   : > { %17501 = vmatpush3.bf16.msra.mxu0 %v17500_v33  ;;  %16319 = vmatprep.mubr.msk.f32.mxu0 %vm19347_vm0, %v19348_v1  ;;  %v17515_v33 = vpack.c.bf16 %v3917_v32, %v3916_v31  ;;  %v4002_v37 = vld [vmem:[#allocation18 + $0x18] sm:$0xff]  ;;  %v17536_v32 = vpack.c.bf16 %v4206_v28, %v4205_v27 }
 0xdc2   : > { %17502 = vmatprep.subr.bf16.mxu0 %v19346_v0 }
 0xdc5   : > { %17504 = vmatpush3.bf16.msra.mxu0 %v17503_v38  ;;  %v17521_v38 = vpack.c.bf16 %v4002_v37, %v4001_v35 }
 0xdc6   : > { %16333 = vmatprep.subr.mxu0 %v19348_v1 }
 0xdc7   : > { %v3468_v39 = vpop.f32.mrb[20].mxu1 }
 0xdc8   : > { %16320 = vmatmul.mubr.msk.f32.vlgmr.msra.gmra.mrb[16].mxu0 %vm1946_vm1, %v20094_v14  ;;  %v16310_v40 = vpop.f32.mrb[21].mxu1  ;;  %v3469_v45 = vadd.f32 %v15254_v44, %v3468_v39  ;;  %v4003_v39 = vld [vmem:[#allocation18 + $0x20] sm:$0xff] }
 0xdc9   : > { %16335 = vmatprep.mubr.msk.f32.mxu0 %vm19347_vm0, %v19348_v1  ;;  %v4004_v40 = vld [vmem:[#allocation18 + $0x28] sm:$0xff] }
 0xdca   : > { %v3638_v50 = vmul.f32 0.35355338, %v3469_v45 }
 0xe93   : > { %v3384_v41 = vpop.f32.mrb[14].mxu0 }
 0xe94   : > { %v3388_v42 = vadd.f32 %v3384_v41, %v20183_v55  ;;  %v16299_v43 = vpop.f32.mrb[15].mxu0  ;;  %v3559_v55 = vld [vmem:[#allocation9 + $0x78] sm:$0xff]  ;;  %v17524_v41 = vpack.c.bf16 %v4004_v40, %v4003_v39 }
 0xe95   : > { %v17509_v56 = vpack.c.bf16 %v3559_v55, %v3558_v53  ;;  %v17527_v53 = vpack.c.bf16 %v4006_v52, %v4005_v51  ;;  %v4536_v52 = vld [vmem:[#allocation2 + $0xb0] sm:$0xff] }
 0xe97   : > { %17510 = vmatpush3.bf16.msra.mxu1 %v17509_v56 }
 0xe98   : > { %16343 = vmatprep.subr.mxu1 %v19348_v1 }
 0xe9a   : > { %16331 = vmatmul.mubr.msk.f32.vlgmr.msra.gmra.mrb[22].mxu1 %vm1946_vm1, %v20094_v14 }
 0xe9b   : > { %v3551_v47 = vpop.f32.mrb[16].mxu0  ;;  %16345 = vmatprep.mubr.msk.f32.mxu1 %vm19347_vm0, %v19348_v1  ;;  %16344 = vmatpush3.msra.mxu1 %v3800_v8  ;;  %v4119_v8 = vld [vmem:[#allocation2 + $0x80] sm:$0xff] }
 0xe9c   : > { %v3552_v48 = vadd.f32 %v15256_v46, %v3551_v47  ;;  %v16321_v49 = vpop.f32.mrb[17].mxu0  ;;  %17517 = vmatprep.subr.bf16.mxu1 %v19346_v0  ;;  %v15265_v46 = vld [vmem:[%s21304_s18] ss:$0 sm:$0xff] }
 0xe9e   : > { %16334 = vmatpush3.xpose.msk.msra.mxu0 %vm2183_vm2, %v3552_v48  ;;  %v15266_v48 = vld [vmem:[%s21305_s1] ss:$0 sm:$0xff] }
 0xe9f   : > { %16338 = vmatprep.subr.mxu0 %v19348_v1 }
 0xea1   : > { %16336 = vmatmul.mubr.msk.f32.vlgmr.msra.gmra.mrb[18].mxu0 %vm2183_vm2, %v3638_v50 }
 0xea2   : > { %16340 = vmatprep.mubr.msk.f32.mxu0 %vm19347_vm0, %v19348_v1 }
 0xf6d   : > { %v3634_v4 = vpop.f32.mrb[22].mxu1 }
 0xf6e   : > { %v16332_v6 = vpop.f32.mrb[23].mxu1  ;;  %v3635_v7 = vadd.f32 %v15258_v5, %v3634_v4 }
 0xf70   : > { %16339 = vmatpush3.msra.mxu0 %v3635_v7 }
 0xf71   : > { %17511 = vmatprep.subr.bf16.mxu0 %v19346_v0 }
 0xf74   : > { %v3711_v57 = vpop.f32.mrb[18].mxu0 }
 0xf75   : > { %v3712_v58 = vadd.f32 %v3711_v57, %v20122_v30  ;;  %v16337_v59 = vpop.f32.mrb[19].mxu0 }
 0xf76   : > { %v15269_v59 = vld [vmem:[#allocation19] ss:$0 sm:$0xff] }
 0xf77   : > { %v3715_v60 = vsel %vm2183_vm2, %v3712_v58, -inf }
 0xf78   : > { %3716 = vmax.xlane.f32.xlu0 %v3715_v60 }
0x1005   : > { %v3717_v61 = vpop.xlane.xlu0 %3716 }
0x1006   : > { %v3718_v62 = vsub.f32 %v3712_v58, %v3717_v61 }
0x1008   : > { %v3719_v63 = vmul.f32 1.442695, %v3718_v62 }
0x100a   : > { %18306 = vpow2.f32 %v3719_v63 }
0x1014   : > { %v18307_v2 = vpop.eup %18306 }
0x1015   : > { %v3721_v3 = vsel %vm2183_vm2, %v18307_v2, 0.0 }
0x1016   : > { %3722 = vadd.xlane.f32.xlu1 %v3721_v3 }
0x10a3   : > { %v3723_v9 = vpop.xlane.xlu1 %3722 }
0x10a4   : > { %18308 = vrcp.f32 %v3723_v9  ;;  %v4120_v9 = vld [vmem:[#allocation2 + $0x88] sm:$0xff] }
0x10ae   : > { %v18309_v10 = vpop.eup %18308 }
0x10af   : > { %v3725_v11 = vmul.f32 %v18309_v10, %v18307_v2  ;;  %v17530_v10 = vpack.c.bf16 %v4120_v9, %v4119_v8 }
0x10b1   : > { %16341 = vmatmul.mubr.msk.f32.vlgmr.msra.gmra.mrb[20].mxu0 %vm2183_vm2, %v3725_v11  ;;  %v4288_v11 = vld [vmem:[#allocation9 + $0x80] sm:$0xff] }
0x10b2   : > { %16356 = vmatprep.mubr.msk.f32.mxu0 %vm19347_vm0, %v19348_v1  ;;  %17513 = vmatpush3.bf16.msra.mxu0 %v17512_v29  ;;  %v15272_v29 = vld [vmem:[%s21307_s2] ss:$0 sm:$0xff] }
0x10b3   : > { %17514 = vmatprep.subr.bf16.mxu0 %v19346_v0 }
0x10b6   : > { %17516 = vmatpush3.bf16.msra.mxu0 %v17515_v33 }
0x10b7   : > { %17529 = vmatprep.subr.bf16.mxu0 %v19346_v0 }
0x1184   : > { %v3795_v12 = vpop.f32.mrb[20].mxu0 }
0x1185   : > { %v16342_v13 = vpop.f32.mrb[21].mxu0  ;;  %16346 = vmatmul.mubr.msk.f32.vlgmr.msra.gmra.mrb[24].mxu1 %vm2183_vm2, %v3795_v12  ;;  %v4289_v12 = vld [vmem:[#allocation9 + $0x88] sm:$0xff] }
0x1186   : > { %16375 = vmatprep.mubr.msk.f32.mxu1 %vm19347_vm0, %v19348_v1  ;;  %v17542_v13 = vpack.c.bf16 %v4289_v12, %v4288_v11 }
0x1258   : > { %v3870_v15 = vpop.f32.mrb[24].mxu1 }
0x1259   : > { %v3874_v17 = vadd.f32 %v3870_v15, %v3388_v42  ;;  %v16347_v18 = vpop.f32.mrb[25].mxu1  ;;  %v4121_v15 = vld [vmem:[#allocation2 + $0x90] sm:$0xff] }
0x125a   : > { %v4290_v18 = vld [vmem:[#allocation9 + $0x90] sm:$0xff] }
0x125b   : > { %v3882_v19 = vadd.f32 %v15264_v16, %v3874_v17  ;;  %v4122_v16 = vld [vmem:[#allocation2 + $0x98] sm:$0xff] }
0x125c   : > { %v17533_v17 = vpack.c.bf16 %v4122_v16, %v4121_v15  ;;  %v4618_v15 = vld [vmem:[#allocation6 + $0xa8] sm:$0xff] }
0x125d   : > { %v3883_v20 = vadd.f32 %v3882_v19, %v20094_v14  ;;  %v3999_v14 = vld [vmem:[#allocation18] sm:$0xff]  ;;  %v4291_v19 = vld [vmem:[#allocation9 + $0x98] sm:$0xff] }
0x125e   : > { %v17518_v36 = vpack.c.bf16 %v4000_v34, %v3999_v14  ;;  %v4207_v14 = vld [vmem:[#allocation6 + $0x90] sm:$0xff]  ;;  %v4208_v34 = vld [vmem:[#allocation6 + $0x98] sm:$0xff] }
0x125f   : > { %v3886_v21 = vsel %vm1946_vm1, %v3883_v20, 0.0  ;;  %v17539_v35 = vpack.c.bf16 %v4208_v34, %v4207_v14 }
0x1260   : > { %3887 = vadd.xlane.f32.xlu0 %v3886_v21  ;;  %17519 = vmatpush3.bf16.msra.mxu1 %v17518_v36  ;;  %v15277_v36 = vld [vmem:[#allocation10 + $0x4] ss:$0 sm:$0xff] }
0x1261   : > { %17520 = vmatprep.subr.bf16.mxu1 %v19346_v0 }
0x1264   : > { %17522 = vmatpush3.bf16.msra.mxu1 %v17521_v38 }
0x1265   : > { %17523 = vmatprep.subr.bf16.mxu1 %v19346_v0 }
0x1268   : > { %17525 = vmatpush3.bf16.msra.mxu1 %v17524_v41 }
0x1269   : > { %17526 = vmatprep.subr.bf16.mxu1 %v19346_v0 }
0x126c   : > { %17528 = vmatpush3.bf16.msra.mxu1 %v17527_v53  ;;  %v4537_v53 = vld [vmem:[#allocation2 + $0xb8] sm:$0xff] }
0x126d   : > { %17541 = vmatprep.subr.bf16.mxu1 %v19346_v0 }
0x12ed   : > { %v3888_v22 = vpop.xlane.xlu0 %3887 }
0x12ee   : > { %v3890_v23 = vmul.f32 0.03125, %v3888_v22 }
0x12f0   : > { %v3891_v24 = vsub.f32 %v3883_v20, %v3890_v23  ;;  %v17545_v20 = vpack.c.bf16 %v4291_v19, %v4290_v18  ;;  %v4619_v19 = vld [vmem:[#allocation6 + $0xb0] sm:$0xff] }
0x12f2   : > { %v3892_v25 = vmul.f32 %v3891_v24, %v3891_v24 }
0x12f4   : > { %v3893_v26 = vsel %vm1946_vm1, %v3892_v25, 0.0  ;;  %v15271_v25 = vld [vmem:[%s21306_s5] ss:$0 sm:$0xff] }
0x12f5   : > { %3894 = vadd.xlane.f32.xlu1 %v3893_v26 }
0x1382   : > { %v3895_v42 = vpop.xlane.xlu1 %3894 }
0x1383   : > { %v3896_v43 = vmul.f32 0.03125, %v3895_v42  ;;  %v15273_v42 = vld [vmem:[#allocation4 + $0x4] ss:$0 sm:$0xff] }
0x1385   : > { %v3897_v44 = vadd.f32 1e-12, %v3896_v43  ;;  %v15275_v43 = vld [vmem:[#allocation7 + $0x4] ss:$0 sm:$0xff] }
0x1387   : > { %18310 = vrsqrt.f32 %v3897_v44 }
0x1391   : > { %v18311_v45 = vpop.eup %18310 }
0x1392   : > { %v3899_v47 = vmul.f32 %v18311_v45, %v3891_v24 }
0x1394   : > { %v3906_v49 = vmul.f32 %v15265_v46, %v3899_v47  ;;  %v4534_v46 = vld [vmem:[#allocation2 + $0xa0] sm:$0xff]  ;;  %v4535_v47 = vld [vmem:[#allocation2 + $0xa8] sm:$0xff] }
0x1396   : > { %v3913_v50 = vadd.f32 %v15266_v48, %v3906_v49 }
0x1398   : > { %16357 = vmatmul.mubr.msk.f32.vlgmr.msra.gmra.mrb[22].mxu0 %vm1946_vm1, %v3913_v50 }
0x1399   : > { %16386 = vmatprep.mubr.msk.f32.mxu0 %vm19347_vm0, %v19348_v1  ;;  %17531 = vmatpush3.bf16.msra.mxu0 %v17530_v10 }
0x139a   : > { %17532 = vmatprep.subr.bf16.mxu0 %v19346_v0 }
0x139d   : > { %17534 = vmatpush3.bf16.msra.mxu0 %v17533_v17 }
0x139e   : > { %17535 = vmatprep.subr.bf16.mxu0 %v19346_v0 }
0x146b   : > { %v3994_v55 = vpop.f32.mrb[22].mxu0 }
0x146c   : > { %v3995_v56 = vadd.f32 %v15267_v54, %v3994_v55  ;;  %v16358_v57 = vpop.f32.mrb[23].mxu0  ;;  %v17551_v54 = vpack.c.bf16 %v4537_v53, %v4536_v52  ;;  %v4700_v55 = vld [vmem:[#allocation9 + $0xa0] sm:$0xff]  ;;  %v5092_v53 = vld [vmem:[#allocation2 + $0xc0] sm:$0xff] }
0x146e   : > { %v3998_v58 = vmax.f32 %v3995_v56, 0.0  ;;  %v4701_v56 = vld [vmem:[#allocation9 + $0xa8] sm:$0xff] }
0x146f   : > { %v17560_v57 = vpack.c.bf16 %v4701_v56, %v4700_v55  ;;  %v5094_v56 = vld [vmem:[#allocation2 + $0xd0] sm:$0xff] }
0x1470   : > { %16376 = vmatmul.mubr.msk.f32.vlgmr.msra.gmra.mrb[26].mxu1 %vm4014_vm3, %v3998_v58  ;;  %v4702_v58 = vld [vmem:[#allocation9 + $0xb0] sm:$0xff] }
0x1471   : > { %16408 = vmatprep.mubr.msk.f32.mxu1 %vm19347_vm0, %v19348_v1  ;;  %17543 = vmatpush3.bf16.msra.mxu1 %v17542_v13  ;;  %v4617_v13 = vld [vmem:[#allocation6 + $0xa0] sm:$0xff] }
0x1472   : > { %17544 = vmatprep.subr.bf16.mxu1 %v19346_v0  ;;  %v17554_v17 = vpack.c.bf16 %v4618_v15, %v4617_v13  ;;  %v15293_v15 = vld [vmem:[#allocation4 + $0x6] ss:$0 sm:$0xff] }
0x1475   : > { %17546 = vmatpush3.bf16.msra.mxu1 %v17545_v20  ;;  %v4620_v20 = vld [vmem:[#allocation6 + $0xb8] sm:$0xff] }
0x1476   : > { %16416 = vmatprep.subr.mxu1 %v19348_v1 }
0x1543   : > { %v4084_v60 = vpop.f32.mrb[26].mxu1 }
0x1544   : > { %v4085_v61 = vadd.f32 %v15269_v59, %v4084_v60  ;;  %v16377_v62 = vpop.f32.mrb[27].mxu1  ;;  %v4703_v59 = vld [vmem:[#allocation9 + $0xb8] sm:$0xff] }
0x1545   : > { %v17563_v60 = vpack.c.bf16 %v4703_v59, %v4702_v58 }
0x1546   : > { %v4088_v63 = vadd.f32 %v4085_v61, %v3913_v50  ;;  %v17548_v50 = vpack.c.bf16 %v4535_v47, %v4534_v46  ;;  %v4532_v46 = vld [vmem:[#allocation12 + $0x20] sm:$0xff]  ;;  %v5175_v47 = vld [vmem:[#allocation6 + $0xc0] sm:$0xff] }
0x1548   : > { %v4091_v2 = vsel %vm1946_vm1, %v4088_v63, 0.0 }
0x1549   : > { %4092 = vadd.xlane.f32.xlu0 %v4091_v2 }
0x15d6   : > { %v4093_v3 = vpop.xlane.xlu0 %4092 }
0x15d7   : > { %v4094_v4 = vmul.f32 0.03125, %v4093_v3 }
0x15d9   : > { %v4095_v5 = vsub.f32 %v4088_v63, %v4094_v4 }
0x15db   : > { %v4096_v6 = vmul.f32 %v4095_v5, %v4095_v5 }
0x15dd   : > { %v4097_v7 = vsel %vm1946_vm1, %v4096_v6, 0.0 }
0x15de   : > { %4098 = vadd.xlane.f32.xlu1 %v4097_v7 }
0x166b   : > { %v4099_v21 = vpop.xlane.xlu1 %4098 }
0x166c   : > { %v4100_v22 = vmul.f32 0.03125, %v4099_v21  ;;  %v17557_v21 = vpack.c.bf16 %v4620_v20, %v4619_v19  ;;  %v15297_v20 = vld [vmem:[#allocation10 + $0x6] ss:$0 sm:$0xff] }
0x166e   : > { %v4101_v23 = vadd.f32 1e-12, %v4100_v22 }
0x1670   : > { %18312 = vrsqrt.f32 %v4101_v23 }
0x167a   : > { %v18313_v24 = vpop.eup %18312 }
0x167b   : > { %v4103_v26 = vmul.f32 %v18313_v24, %v4095_v5  ;;  %v15282_v24 = vld [vmem:[#allocation4 + $0x5] ss:$0 sm:$0xff] }
0x167d   : > { %v4110_v31 = vmul.f32 %v15271_v25, %v4103_v26  ;;  %v15284_v25 = vld [vmem:[#allocation7 + $0x5] ss:$0 sm:$0xff] }
0x167f   : > { %v20265_v33 = vadd.f32 %v15272_v29, %v4110_v31  ;;  %v15286_v31 = vld [vmem:[#allocation10 + $0x5] ss:$0 sm:$0xff] }
0x1681   : > { %16387 = vmatmul.mubr.msk.f32.vlgmr.msra.gmra.mrb[24].mxu0 %vm1946_vm1, %v20265_v33  ;;  %16409 = vmatmul.mubr.msk.f32.vlgmr.msra.gmra.mrb[28].mxu1 %vm1946_vm1, %v20265_v33 }
0x1682   : > { %17537 = vmatpush3.bf16.msra.mxu0 %v17536_v32  ;;  %16397 = vmatprep.mubr.msk.f32.mxu0 %vm19347_vm0, %v19348_v1 }
0x1683   : > { %17538 = vmatprep.subr.bf16.mxu0 %v19346_v0  ;;  %16418 = vmatprep.mubr.msk.f32.mxu1 %vm19347_vm0, %v19348_v1 }
0x1686   : > { %17540 = vmatpush3.bf16.msra.mxu0 %v17539_v35 }
0x1687   : > { %16411 = vmatprep.subr.mxu0 %v19348_v1 }
0x1689   : > { %16398 = vmatmul.mubr.msk.f32.vlgmr.msra.gmra.mrb[26].mxu0 %vm1946_vm1, %v20265_v33 }
0x168a   : > { %16413 = vmatprep.mubr.msk.f32.mxu0 %vm19347_vm0, %v19348_v1 }
0x1754   : > { %v4200_v37 = vpop.f32.mrb[24].mxu0  ;;  %v4366_v38 = vpop.f32.mrb[28].mxu1 }
0x1755   : > { %v4367_v39 = vadd.f32 %v15277_v36, %v4366_v38  ;;  %v16388_v40 = vpop.f32.mrb[25].mxu0  ;;  %v16410_v41 = vpop.f32.mrb[29].mxu1  ;;  %v4201_v44 = vadd.f32 %v15273_v42, %v4200_v37 }
0x1757   : > { %16417 = vmatpush3.msra.mxu1 %v4367_v39  ;;  %v4370_v51 = vmul.f32 0.35355338, %v4201_v44 }
0x1758   : > { %17553 = vmatprep.subr.bf16.mxu1 %v19346_v0 }
0x175c   : > { %v4283_v45 = vpop.f32.mrb[26].mxu0 }
0x175d   : > { %v4284_v48 = vadd.f32 %v15275_v43, %v4283_v45  ;;  %v16399_v49 = vpop.f32.mrb[27].mxu0  ;;  %v4944_v43 = vld [vmem:[#allocation12 + $0x28] sm:$0xff] }
0x175f   : > { %16412 = vmatpush3.xpose.msk.msra.mxu0 %vm2183_vm2, %v4284_v48  ;;  %v5176_v48 = vld [vmem:[#allocation6 + $0xc8] sm:$0xff] }
0x1760   : > { %17547 = vmatprep.subr.bf16.mxu0 %v19346_v0  ;;  %v17572_v49 = vpack.c.bf16 %v5176_v48, %v5175_v47  ;;  %v5746_v47 = vld [vmem:[#allocation9 + $0xf0] sm:$0xff]  ;;  %v5747_v48 = vld [vmem:[#allocation9 + $0xf8] sm:$0xff] }
0x1762   : > { %16414 = vmatmul.mubr.msk.f32.vlgmr.msra.gmra.mrb[28].mxu0 %vm2183_vm2, %v4370_v51  ;;  %v5178_v51 = vld [vmem:[#allocation6 + $0xd8] sm:$0xff] }
0x1763   : > { %17549 = vmatpush3.bf16.msra.mxu0 %v17548_v50  ;;  %16429 = vmatprep.mubr.msk.f32.mxu0 %vm19347_vm0, %v19348_v1  ;;  %v5177_v50 = vld [vmem:[#allocation6 + $0xd0] sm:$0xff] }
0x1764   : > { %17550 = vmatprep.subr.bf16.mxu0 %v19346_v0  ;;  %v17575_v52 = vpack.c.bf16 %v5178_v51, %v5177_v50  ;;  %v5661_v50 = vld [vmem:[#allocation6 + $0xe0] sm:$0xff]  ;;  %v5662_v51 = vld [vmem:[#allocation6 + $0xe8] sm:$0xff] }
0x1767   : > { %17552 = vmatpush3.bf16.msra.mxu0 %v17551_v54  ;;  %v5093_v54 = vld [vmem:[#allocation2 + $0xc8] sm:$0xff] }
0x1768   : > { %17559 = vmatprep.subr.bf16.mxu0 %v19346_v0  ;;  %v17566_v55 = vpack.c.bf16 %v5093_v54, %v5092_v53  ;;  %v5663_v53 = vld [vmem:[#allocation6 + $0xf0] sm:$0xff]  ;;  %v5664_v54 = vld [vmem:[#allocation6 + $0xf8] sm:$0xff] }
0x176a   : > { %16430 = vmatmul.mubr.msk.f32.vlgmr.msra.gmra.mrb[30].mxu0 %vm1946_vm1, %v20265_v33 }
0x176b   : > { %17561 = vmatpush3.bf16.msra.mxu0 %v17560_v57  ;;  %16451 = vmatprep.mubr.msk.f32.mxu0 %vm19347_vm0, %v19348_v1  ;;  %v5095_v57 = vld [vmem:[#allocation2 + $0xd8] sm:$0xff] }
0x176c   : > { %17562 = vmatprep.subr.bf16.mxu0 %v19346_v0 }
0x176f   : > { %17564 = vmatpush3.bf16.msra.mxu0 %v17563_v60  ;;  %v17569_v60 = vpack.c.bf16 %v5095_v57, %v5094_v56  ;;  %v17593_v57 = vpack.c.bf16 %v5664_v54, %v5663_v53 }
0x1770   : > { %16464 = vmatprep.subr.mxu0 %v19348_v1 }
0x1772   : > { %16452 = vmatmul.mubr.msk.f32.vlgmr.msra.gmra.mrb[32].mxu0 %vm1946_vm1, %v20265_v33 }
0x1773   : > { %16466 = vmatprep.mubr.msk.f32.mxu0 %vm19347_vm0, %v19348_v1  ;;  %16465 = vmatpush3.msra.mxu0 %v4944_v43  ;;  %v5581_v43 = vld [vmem:[#allocation2 + $0xf8] sm:$0xff] }
0x1774   : > { %17565 = vmatprep.subr.bf16.mxu0 %v19346_v0 }
0x1835   : > { %v4443_v61 = vpop.f32.mrb[28].mxu0 }
0x1836   : > { %v4444_v62 = vadd.f32 %v4443_v61, %v20122_v30  ;;  %v16415_v63 = vpop.f32.mrb[29].mxu0  ;;  %v5258_v61 = vld [vmem:[#allocation9 + $0xc0] sm:$0xff] }
0x1838   : > { %v4447_v2 = vsel %vm2183_vm2, %v4444_v62, -inf }
0x1839   : > { %4448 = vmax.xlane.f32.xlu0 %v4447_v2 }
0x183d   : > { %v4612_v3 = vpop.f32.mrb[30].mxu0 }
0x183e   : > { %v16431_v4 = vpop.f32.mrb[31].mxu0  ;;  %v4613_v26 = vadd.f32 %v15282_v24, %v4612_v3 }
0x183f   : > { %v5260_v4 = vld [vmem:[#allocation9 + $0xd0] sm:$0xff] }
0x1840   : > { %v4782_v32 = vmul.f32 0.35355338, %v4613_v26 }
0x1845   : > { %v4778_v5 = vpop.f32.mrb[32].mxu0 }
0x1846   : > { %v16453_v6 = vpop.f32.mrb[33].mxu0  ;;  %v4779_v14 = vadd.f32 %v15286_v31, %v4778_v5  ;;  %v5261_v5 = vld [vmem:[#allocation9 + $0xd8] sm:$0xff] }
0x1847   : > { %v15295_v6 = vld [vmem:[#allocation7 + $0x6] ss:$0 sm:$0xff] }
0x18c6   : > { %v4449_v7 = vpop.xlane.xlu0 %4448 }
0x18c7   : > { %v4450_v8 = vsub.f32 %v4444_v62, %v4449_v7  ;;  %v5259_v62 = vld [vmem:[#allocation9 + $0xc8] sm:$0xff]  ;;  %v17581_v7 = vpack.c.bf16 %v5261_v5, %v5260_v4  ;;  %v15305_v4 = vld [vmem:[#allocation7 + $0x7] ss:$0 sm:$0xff] }
0x18c8   : > { %v17578_v3 = vpack.c.bf16 %v5259_v62, %v5258_v61 }
0x18c9   : > { %v4451_v9 = vmul.f32 1.442695, %v4450_v8 }
0x18cb   : > { %18314 = vpow2.f32 %v4451_v9 }
0x18d5   : > { %v18315_v10 = vpop.eup %18314 }
0x18d6   : > { %v4453_v11 = vsel %vm2183_vm2, %v18315_v10, 0.0 }
0x18d7   : > { %4454 = vadd.xlane.f32.xlu1 %v4453_v11 }
0x1964   : > { %v4455_v12 = vpop.xlane.xlu1 %4454 }
0x1965   : > { %18316 = vrcp.f32 %v4455_v12 }
0x196f   : > { %v18317_v16 = vpop.eup %18316 }
0x1970   : > { %v4457_v18 = vmul.f32 %v18317_v16, %v18315_v10 }
0x1972   : > { %16419 = vmatmul.mubr.msk.f32.vlgmr.msra.gmra.mrb[30].mxu1 %vm2183_vm2, %v4457_v18 }
0x1973   : > { %17555 = vmatpush3.bf16.msra.mxu1 %v17554_v17  ;;  %16440 = vmatprep.mubr.msk.f32.mxu1 %vm19347_vm0, %v19348_v1 }
0x1974   : > { %17556 = vmatprep.subr.bf16.mxu1 %v19346_v0 }
0x1977   : > { %17558 = vmatpush3.bf16.msra.mxu1 %v17557_v21 }
0x1978   : > { %16454 = vmatprep.subr.mxu1 %v19348_v1 }
0x197a   : > { %16441 = vmatmul.mubr.msk.f32.vlgmr.msra.gmra.mrb[32].mxu1 %vm1946_vm1, %v20265_v33 }
0x197b   : > { %16456 = vmatprep.mubr.msk.f32.mxu1 %vm19347_vm0, %v19348_v1 }
0x1a45   : > { %v4527_v22 = vpop.f32.mrb[30].mxu1 }
0x1a46   : > { %v16420_v23 = vpop.f32.mrb[31].mxu1 }
0x1a4d   : > { %v4695_v27 = vpop.f32.mrb[32].mxu1 }
0x1a4e   : > { %v4696_v28 = vadd.f32 %v15284_v25, %v4695_v27  ;;  %v16442_v29 = vpop.f32.mrb[33].mxu1  ;;  %v20358_v25 = vld [vmem:[%s20119_s23] sm:$0xff]  ;;  %s21313_s23 = sld [smem:[#allocation87_spill]] }
0x1a50   : > { %16455 = vmatpush3.xpose.msk.msra.mxu1 %vm2183_vm2, %v4696_v28 }
0x1a51   : > { %16459 = vmatprep.subr.mxu1 %v19348_v1 }
0x1a53   : > { %16457 = vmatmul.mubr.msk.f32.vlgmr.msra.gmra.mrb[34].mxu1 %vm2183_vm2, %v4782_v32 }
0x1a54   : > { %16460 = vmatpush3.msra.mxu1 %v4779_v14  ;;  %16461 = vmatprep.mubr.msk.f32.mxu1 %vm19347_vm0, %v19348_v1 }
0x1a55   : > { %16469 = vmatprep.subr.mxu1 %v19348_v1 }
0x1b26   : > { %v4855_v34 = vpop.f32.mrb[34].mxu1 }
0x1b27   : > { %v4856_v35 = vadd.f32 %v4855_v34, %v20122_v30  ;;  %v16458_v36 = vpop.f32.mrb[35].mxu1 }
0x1b29   : > { %v4859_v37 = vsel %vm2183_vm2, %v4856_v35, -inf }
0x1b2a   : > { %4860 = vmax.xlane.f32.xlu0 %v4859_v37  ;;  %v5578_v37 = vld [vmem:[#allocation2 + $0xe0] sm:$0xff] }
0x1bb7   : > { %v4861_v38 = vpop.xlane.xlu0 %4860 }
0x1bb8   : > { %v4862_v39 = vsub.f32 %v4856_v35, %v4861_v38  ;;  %v5502_v35 = vld [vmem:[#allocation12 + $0x30] sm:$0xff] }
0x1bb9   : > { %v5579_v38 = vld [vmem:[#allocation2 + $0xe8] sm:$0xff] }
0x1bba   : > { %v4863_v40 = vmul.f32 1.442695, %v4862_v39 }
0x1bbc   : > { %18318 = vpow2.f32 %v4863_v40  ;;  %v17584_v40 = vpack.c.bf16 %v5579_v38, %v5578_v37 }
0x1bc6   : > { %v18319_v41 = vpop.eup %18318 }
0x1bc7   : > { %v4865_v42 = vsel %vm2183_vm2, %v18319_v41, 0.0 }
0x1bc8   : > { %4866 = vadd.xlane.f32.xlu1 %v4865_v42  ;;  %v5580_v42 = vld [vmem:[#allocation2 + $0xf0] sm:$0xff] }
0x1c55   : > { %v4867_v44 = vpop.xlane.xlu1 %4866 }
0x1c56   : > { %18320 = vrcp.f32 %v4867_v44  ;;  %v17587_v44 = vpack.c.bf16 %v5581_v43, %v5580_v42  ;;  %v6106_v42 = vld [vmem:[#allocation15 + $0x28] sm:$0xff] }
0x1c60   : > { %v18321_v45 = vpop.eup %18320 }
0x1c61   : > { %v4869_v30 = vmul.f32 %v18321_v45, %v18319_v41  ;;  %v5744_v45 = vld [vmem:[#allocation9 + $0xe0] sm:$0xff] }
0x1c63   : > { %16462 = vmatmul.mubr.msk.f32.vlgmr.msra.gmra.mrb[36].mxu1 %vm2183_vm2, %v4869_v30  ;;  %v5745_v30 = vld [vmem:[#allocation9 + $0xe8] sm:$0xff] }
0x1c64   : > { %16470 = vmatpush3.msra.mxu1 %v4532_v46  ;;  %16471 = vmatprep.mubr.msk.f32.mxu1 %vm19347_vm0, %v19348_v1  ;;  %v17596_v46 = vpack.c.bf16 %v5745_v30, %v5744_v45  ;;  %v6108_v45 = vld [vmem:[#allocation15 + $0x38] sm:$0xff] }
0x1c65   : > { %17571 = vmatprep.subr.bf16.mxu1 %v19346_v0 }
0x1c67   : > { %16472 = vmatmul.mubr.msk.f32.vlgmr.msra.gmra.mrb[38].mxu1 %vm2183_vm2, %v4527_v22 }
0x1c68   : > { %17573 = vmatpush3.bf16.msra.mxu1 %v17572_v49  ;;  %16493 = vmatprep.mubr.msk.f32.mxu1 %vm19347_vm0, %v19348_v1  ;;  %v17599_v49 = vpack.c.bf16 %v5747_v48, %v5746_v47  ;;  %v6194_v47 = vld [vmem:[#allocation18 + $0x50] sm:$0xff] }
0x1c69   : > { %17574 = vmatprep.subr.bf16.mxu1 %v19346_v0 }
0x1c6c   : > { %17576 = vmatpush3.bf16.msra.mxu1 %v17575_v52  ;;  %v17590_v52 = vpack.c.bf16 %v5662_v51, %v5661_v50  ;;  %v6196_v51 = vld [vmem:[#allocation18 + $0x60] sm:$0xff] }
0x1c6d   : > { %16507 = vmatprep.subr.mxu1 %v19348_v1 }
0x1c6f   : > { %16494 = vmatmul.mubr.msk.f32.vlgmr.msra.gmra.mrb[40].mxu1 %vm1946_vm1, %v20265_v33 }
0x1c70   : > { %16509 = vmatprep.mubr.msk.f32.mxu1 %vm19347_vm0, %v19348_v1 }
0x1d36   : > { %v4939_v58 = vpop.f32.mrb[36].mxu1 }
0x1d37   : > { %v16463_v59 = vpop.f32.mrb[37].mxu1  ;;  %16467 = vmatmul.mubr.msk.f32.vlgmr.msra.gmra.mrb[34].mxu0 %vm2183_vm2, %v4939_v58 }
0x1d38   : > { %17567 = vmatpush3.bf16.msra.mxu0 %v17566_v55  ;;  %16482 = vmatprep.mubr.msk.f32.mxu0 %vm19347_vm0, %v19348_v1 }
0x1d39   : > { %17568 = vmatprep.subr.bf16.mxu0 %v19346_v0 }
0x1d3a   : > { %v5087_v63 = vpop.f32.mrb[38].mxu1 }
0x1d3b   : > { %v16473_v2 = vpop.f32.mrb[39].mxu1 }
0x1d3c   : > { %17570 = vmatpush3.bf16.msra.mxu0 %v17569_v60 }
0x1d3d   : > { %17577 = vmatprep.subr.bf16.mxu0 %v19346_v0 }
0x1d3f   : > { %16483 = vmatmul.mubr.msk.f32.vlgmr.msra.gmra.mrb[36].mxu0 %vm1946_vm1, %v20265_v33 }
0x1d40   : > { %17579 = vmatpush3.bf16.msra.mxu0 %v17578_v3  ;;  %16504 = vmatprep.mubr.msk.f32.mxu0 %vm19347_vm0, %v19348_v1  ;;  %v15303_v3 = vld [vmem:[#allocation4 + $0x7] ss:$0 sm:$0xff] }
0x1d41   : > { %17580 = vmatprep.subr.bf16.mxu0 %v19346_v0 }
0x1d42   : > { %v5253_v8 = vpop.f32.mrb[40].mxu1 }
0x1d43   : > { %v5254_v9 = vadd.f32 %v15295_v6, %v5253_v8  ;;  %v16495_v10 = vpop.f32.mrb[41].mxu1 }
0x1d44   : > { %17582 = vmatpush3.bf16.msra.mxu0 %v17581_v7 }
0x1d45   : > { %16508 = vmatpush3.xpose.msk.msra.mxu1 %vm2183_vm2, %v5254_v9  ;;  %16517 = vmatprep.subr.mxu0 %v19348_v1  ;;  %v15307_v9 = vld [vmem:[#allocation10 + $0x7] ss:$0 sm:$0xff] }
0x1d46   : > { %16512 = vmatprep.subr.mxu1 %v19348_v1 }
0x1d47   : > { %16505 = vmatmul.mubr.msk.f32.vlgmr.msra.gmra.mrb[38].mxu0 %vm1946_vm1, %v20265_v33 }
0x1d48   : > { %16519 = vmatprep.mubr.msk.f32.mxu0 %vm19347_vm0, %v19348_v1  ;;  %16518 = vmatpush3.msra.mxu0 %v5502_v35 }
0x1d49   : > { %17589 = vmatprep.subr.bf16.mxu0 %v19346_v0 }
0x1e0a   : > { %v5014_v11 = vpop.f32.mrb[34].mxu0 }
0x1e0b   : > { %v20351_v12 = vadd.f32 %v5087_v63, %v5014_v11  ;;  %v16468_v13 = vpop.f32.mrb[35].mxu0 }
0x1e12   : > { %v5170_v16 = vpop.f32.mrb[36].mxu0 }
0x1e13   : > { %v5171_v17 = vadd.f32 %v15293_v15, %v5170_v16  ;;  %v16484_v18 = vpop.f32.mrb[37].mxu0 }
0x1e15   : > { %v5340_v19 = vmul.f32 0.35355338, %v5171_v17 }
0x1e17   : > { %16510 = vmatmul.mubr.msk.f32.vlgmr.msra.gmra.mrb[42].mxu1 %vm2183_vm2, %v5340_v19 }
0x1e18   : > { %16514 = vmatprep.mubr.msk.f32.mxu1 %vm19347_vm0, %v19348_v1 }
0x1e1a   : > { %v5336_v21 = vpop.f32.mrb[38].mxu0 }
0x1e1b   : > { %v5337_v22 = vadd.f32 %v15297_v20, %v5336_v21  ;;  %v16506_v23 = vpop.f32.mrb[39].mxu0 }
0x1e1d   : > { %16513 = vmatpush3.msra.mxu1 %v5337_v22  ;;  %v5988_v22 = vld [vmem:[#allocation12 + $0x38] sm:$0xff] }
0x1e1e   : > { %17583 = vmatprep.subr.bf16.mxu1 %v19346_v0 }
0x1eea   : > { %v5413_v24 = vpop.f32.mrb[42].mxu1 }
0x1eeb   : > { %v5414_v26 = vadd.f32 %v20358_v25, %v5413_v24  ;;  %v16511_v27 = vpop.f32.mrb[43].mxu1 }
0x1eed   : > { %v5417_v28 = vsel %vm2183_vm2, %v5414_v26, -inf }
0x1eee   : > { %5418 = vmax.xlane.f32.xlu0 %v5417_v28 }
0x1f7b   : > { %v5419_v29 = vpop.xlane.xlu0 %5418 }
0x1f7c   : > { %v5420_v31 = vsub.f32 %v5414_v26, %v5419_v29  ;;  %v15313_v29 = vld [vmem:[#allocation13 + $0x1] ss:$0 sm:$0xff] }
0x1f7e   : > { %v5421_v32 = vmul.f32 1.442695, %v5420_v31 }
0x1f80   : > { %18322 = vpow2.f32 %v5421_v32 }
0x1f8a   : > { %v18323_v14 = vpop.eup %18322 }
0x1f8b   : > { %v5423_v34 = vsel %vm2183_vm2, %v18323_v14, 0.0 }
0x1f8c   : > { %5424 = vadd.xlane.f32.xlu1 %v5423_v34 }
0x2019   : > { %v5425_v36 = vpop.xlane.xlu1 %5424 }
0x201a   : > { %18324 = vrcp.f32 %v5425_v36 }
0x2024   : > { %v18325_v39 = vpop.eup %18324 }
0x2025   : > { %v5427_v41 = vmul.f32 %v18325_v39, %v18323_v14 }
0x2027   : > { %16515 = vmatmul.mubr.msk.f32.vlgmr.msra.gmra.mrb[44].mxu1 %vm2183_vm2, %v5427_v41  ;;  %v6105_v41 = vld [vmem:[#allocation15 + $0x20] sm:$0xff] }
0x2028   : > { %17585 = vmatpush3.bf16.msra.mxu1 %v17584_v40  ;;  %16530 = vmatprep.mubr.msk.f32.mxu1 %vm19347_vm0, %v19348_v1  ;;  %v17602_v43 = vpack.c.bf16 %v6106_v42, %v6105_v41  ;;  %v20459_v41 = vld [vmem:[%s20456_s16] sm:$0xff] }
0x2029   : > { %17586 = vmatprep.subr.bf16.mxu1 %v19346_v0 }
0x202c   : > { %17588 = vmatpush3.bf16.msra.mxu1 %v17587_v44  ;;  %v6107_v44 = vld [vmem:[#allocation15 + $0x30] sm:$0xff] }
0x202d   : > { %17595 = vmatprep.subr.bf16.mxu1 %v19346_v0  ;;  %v17605_v30 = vpack.c.bf16 %v6108_v45, %v6107_v44 }
0x202f   : > { %16531 = vmatmul.mubr.msk.f32.vlgmr.msra.gmra.mrb[46].mxu1 %vm1946_vm1, %v20265_v33 }
0x2030   : > { %17597 = vmatpush3.bf16.msra.mxu1 %v17596_v46  ;;  %16552 = vmatprep.mubr.msk.f32.mxu1 %vm19347_vm0, %v19348_v1  ;;  %v6193_v46 = vld [vmem:[#allocation18 + $0x48] sm:$0xff] }
0x2031   : > { %17598 = vmatprep.subr.bf16.mxu1 %v19346_v0 }
0x2034   : > { %17600 = vmatpush3.bf16.msra.mxu1 %v17599_v49  ;;  %v6195_v49 = vld [vmem:[#allocation18 + $0x58] sm:$0xff] }
0x2035   : > { %16565 = vmatprep.subr.mxu1 %v19348_v1  ;;  %v17611_v50 = vpack.c.bf16 %v6195_v49, %v6194_v47 }
0x2037   : > { %16553 = vmatmul.mubr.msk.f32.vlgmr.msra.gmra.mrb[48].mxu1 %vm1946_vm1, %v20265_v33 }
0x2038   : > { %16567 = vmatprep.mubr.msk.f32.mxu1 %vm19347_vm0, %v19348_v1  ;;  %16566 = vmatpush3.msra.mxu1 %v5988_v22 }
0x2039   : > { %17607 = vmatprep.subr.bf16.mxu1 %v19346_v0 }
0x20fa   : > { %v5497_v55 = vpop.f32.mrb[44].mxu1 }
0x20fb   : > { %v16516_v56 = vpop.f32.mrb[45].mxu1  ;;  %16520 = vmatmul.mubr.msk.f32.vlgmr.msra.gmra.mrb[40].mxu0 %vm2183_vm2, %v5497_v55 }
0x20fc   : > { %17591 = vmatpush3.bf16.msra.mxu0 %v17590_v52  ;;  %16541 = vmatprep.mubr.msk.f32.mxu0 %vm19347_vm0, %v19348_v1  ;;  %v6197_v52 = vld [vmem:[#allocation18 + $0x68] sm:$0xff] }
0x20fd   : > { %17592 = vmatprep.subr.bf16.mxu0 %v19346_v0  ;;  %v17614_v53 = vpack.c.bf16 %v6197_v52, %v6196_v51 }
0x2100   : > { %17594 = vmatpush3.bf16.msra.mxu0 %v17593_v57 }
0x2101   : > { %16555 = vmatprep.subr.mxu0 %v19348_v1 }
0x2102   : > { %v5656_v58 = vpop.f32.mrb[46].mxu1 }
0x2103   : > { %v16532_v59 = vpop.f32.mrb[47].mxu1  ;;  %16542 = vmatmul.mubr.msk.f32.vlgmr.msra.gmra.mrb[42].mxu0 %vm1946_vm1, %v20265_v33  ;;  %v5657_v5 = vadd.f32 %v15303_v3, %v5656_v58  ;;  %v15316_v58 = vld [vmem:[%s21304_s18 + $0x1] ss:$0 sm:$0xff] }
0x2104   : > { %16557 = vmatprep.mubr.msk.f32.mxu0 %vm19347_vm0, %v19348_v1 }
0x2105   : > { %v5826_v10 = vmul.f32 0.35355338, %v5657_v5  ;;  %v6317_v5 = vld [vmem:[#allocation21 + $0x18] sm:$0xff] }
0x210a   : > { %v5822_v60 = vpop.f32.mrb[48].mxu1 }
0x210b   : > { %v16554_v61 = vpop.f32.mrb[49].mxu1  ;;  %v5823_v11 = vadd.f32 %v15307_v9, %v5822_v60  ;;  %v6314_v60 = vld [vmem:[#allocation21] sm:$0xff] }
0x210c   : > { %v6315_v61 = vld [vmem:[#allocation21 + $0x8] sm:$0xff] }
0x210d   : > { %v20424_v9 = vld [vmem:[%s1914_s6] sm:$0xff]  ;;  %s21315_s6 = sld [smem:[#allocation88_spill]] }
0x21ce   : > { %v5572_v62 = vpop.f32.mrb[40].mxu0 }
0x21cf   : > { %v5576_v63 = vadd.f32 %v5572_v62, %v20351_v12  ;;  %v16521_v2 = vpop.f32.mrb[41].mxu0  ;;  %v15317_v62 = vld [vmem:[%s21305_s1 + $0x1] ss:$0 sm:$0xff]  ;;  %s20647_s1 = scalar_lea.vmem %s21316_s9, %s20088_s22  ;;  %s21317_s9 = sld [smem:[#allocation91_spill]] }
0x21d0   : > { %v17620_v2 = vpack.c.bf16 %v6315_v61, %v6314_v60  ;;  %v6806_v60 = vld [vmem:[#allocation24 + $0x20] sm:$0xff]  ;;  %v6807_v61 = vld [vmem:[#allocation24 + $0x28] sm:$0xff] }
0x21d6   : > { %v5739_v6 = vpop.f32.mrb[42].mxu0 }
0x21d7   : > { %v5740_v7 = vadd.f32 %v15305_v4, %v5739_v6  ;;  %v16543_v8 = vpop.f32.mrb[43].mxu0  ;;  %v6316_v4 = vld [vmem:[#allocation21 + $0x10] sm:$0xff] }
0x21d8   : > { %v17623_v6 = vpack.c.bf16 %v6317_v5, %v6316_v4  ;;  %v6399_v8 = vld [vmem:[#allocation24 + $0x8] sm:$0xff]  ;;  %v6808_v4 = vld [vmem:[#allocation24 + $0x30] sm:$0xff]  ;;  %v6809_v5 = vld [vmem:[#allocation24 + $0x38] sm:$0xff] }
0x21d9   : > { %16556 = vmatpush3.xpose.msk.msra.mxu0 %vm2183_vm2, %v5740_v7  ;;  %v6398_v7 = vld [vmem:[#allocation24] sm:$0xff] }
0x21da   : > { %16560 = vmatprep.subr.mxu0 %v19348_v1 }
0x21dc   : > { %16558 = vmatmul.mubr.msk.f32.vlgmr.msra.gmra.mrb[44].mxu0 %vm2183_vm2, %v5826_v10  ;;  %v17626_v10 = vpack.c.bf16 %v6399_v8, %v6398_v7 }
0x21dd   : > { %16561 = vmatpush3.msra.mxu0 %v5823_v11  ;;  %16562 = vmatprep.mubr.msk.f32.mxu0 %vm19347_vm0, %v19348_v1  ;;  %v6400_v11 = vld [vmem:[#allocation24 + $0x10] sm:$0xff] }
0x21de   : > { %17601 = vmatprep.subr.bf16.mxu0 %v19346_v0 }
0x22af   : > { %v5899_v12 = vpop.f32.mrb[44].mxu0 }
0x22b0   : > { %v5900_v13 = vadd.f32 %v20358_v25, %v5899_v12  ;;  %v16559_v15 = vpop.f32.mrb[45].mxu0  ;;  %v6401_v12 = vld [vmem:[#allocation24 + $0x18] sm:$0xff] }
0x22b1   : > { %v6198_v15 = vld [vmem:[#allocation18 + $0x70] sm:$0xff] }
0x22b2   : > { %v5903_v16 = vsel %vm2183_vm2, %v5900_v13, -inf }
0x22b3   : > { %5904 = vmax.xlane.f32.xlu0 %v5903_v16  ;;  %v6199_v16 = vld [vmem:[#allocation18 + $0x78] sm:$0xff] }
0x2340   : > { %v5905_v17 = vpop.xlane.xlu0 %5904 }
0x2341   : > { %v5906_v18 = vsub.f32 %v5900_v13, %v5905_v17  ;;  %v17629_v13 = vpack.c.bf16 %v6401_v12, %v6400_v11  ;;  %v17617_v17 = vpack.c.bf16 %v6199_v16, %v6198_v15  ;;  %v15335_v12 = vld [vmem:[#allocation22 + $0x1] ss:$0 sm:$0xff]  ;;  %v15337_v15 = vld [vmem:[#allocation25 + $0x1] ss:$0 sm:$0xff] }
0x2343   : > { %v5907_v19 = vmul.f32 1.442695, %v5906_v18  ;;  %v15318_v18 = vld [vmem:[#allocation16 + $0x1] ss:$0 sm:$0xff] }
0x2345   : > { %18326 = vpow2.f32 %v5907_v19 }
0x234f   : > { %v18327_v20 = vpop.eup %18326 }
0x2350   : > { %v5909_v21 = vsel %vm2183_vm2, %v18327_v20, 0.0 }
0x2351   : > { %5910 = vadd.xlane.f32.xlu1 %v5909_v21 }
0x23de   : > { %v5911_v23 = vpop.xlane.xlu1 %5910 }
0x23df   : > { %18328 = vrcp.f32 %v5911_v23 }
0x23e9   : > { %v18329_v24 = vpop.eup %18328 }
0x23ea   : > { %v5913_v25 = vmul.f32 %v18329_v24, %v18327_v20 }
0x23ec   : > { %16563 = vmatmul.mubr.msk.f32.vlgmr.msra.gmra.mrb[46].mxu0 %vm2183_vm2, %v5913_v25  ;;  %v15326_v25 = vld [vmem:[#allocation22] ss:$0 sm:$0xff] }
0x23ed   : > { %16578 = vmatprep.mubr.msk.f32.mxu0 %vm19347_vm0, %v19348_v1  ;;  %17603 = vmatpush3.bf16.msra.mxu0 %v17602_v43 }
0x23ee   : > { %17604 = vmatprep.subr.bf16.mxu0 %v19346_v0 }
0x23f1   : > { %17606 = vmatpush3.bf16.msra.mxu0 %v17605_v30 }
0x23f2   : > { %17619 = vmatprep.subr.bf16.mxu0 %v19346_v0 }
0x24bf   : > { %v5983_v26 = vpop.f32.mrb[46].mxu0 }
0x24c0   : > { %v16564_v27 = vpop.f32.mrb[47].mxu0  ;;  %16568 = vmatmul.mubr.msk.f32.vlgmr.msra.gmra.mrb[50].mxu1 %vm2183_vm2, %v5983_v26  ;;  %v15328_v26 = vld [vmem:[#allocation25] ss:$0 sm:$0xff] }
0x24c1   : > { %16597 = vmatprep.mubr.msk.f32.mxu1 %vm19347_vm0, %v19348_v1 }
0x2593   : > { %v6058_v28 = vpop.f32.mrb[50].mxu1 }
0x2594   : > { %v6062_v31 = vadd.f32 %v6058_v28, %v5576_v63  ;;  %v16569_v32 = vpop.f32.mrb[51].mxu1 }
0x2596   : > { %v6071_v14 = vadd.f32 %v15313_v29, %v6062_v31 }
0x2598   : > { %v6072_v34 = vadd.f32 %v6071_v14, %v20265_v33  ;;  %v6192_v33 = vld [vmem:[#allocation18 + $0x40] sm:$0xff]  ;;  %v6479_v14 = vld [vmem:[#allocation27] sm:$0xff] }
0x2599   : > { %v17608_v48 = vpack.c.bf16 %v6193_v46, %v6192_v33 }
0x259a   : > { %v6077_v35 = vsel %vm1946_vm1, %v6072_v34, 0.0 }
0x259b   : > { %6078 = vadd.xlane.f32.xlu0 %v6077_v35  ;;  %17609 = vmatpush3.bf16.msra.mxu1 %v17608_v48  ;;  %v6481_v35 = vld [vmem:[#allocation27 + $0x10] sm:$0xff] }
0x259c   : > { %17610 = vmatprep.subr.bf16.mxu1 %v19346_v0 }
0x259f   : > { %17612 = vmatpush3.bf16.msra.mxu1 %v17611_v50  ;;  %v15330_v50 = vld [vmem:[#allocation28] ss:$0 sm:$0xff] }
0x25a0   : > { %17613 = vmatprep.subr.bf16.mxu1 %v19346_v0 }
0x25a3   : > { %17615 = vmatpush3.bf16.msra.mxu1 %v17614_v53  ;;  %v6723_v53 = vld [vmem:[#allocation21 + $0x20] sm:$0xff] }
0x25a4   : > { %17616 = vmatprep.subr.bf16.mxu1 %v19346_v0 }
0x25a7   : > { %17618 = vmatpush3.bf16.msra.mxu1 %v17617_v17 }
0x25a8   : > { %17631 = vmatprep.subr.bf16.mxu1 %v19346_v0 }
0x2628   : > { %v6079_v36 = vpop.xlane.xlu0 %6078 }
0x2629   : > { %v6080_v37 = vmul.f32 0.03125, %v6079_v36 }
0x262b   : > { %v6081_v38 = vsub.f32 %v6072_v34, %v6080_v37  ;;  %v6480_v34 = vld [vmem:[#allocation27 + $0x8] sm:$0xff]  ;;  %v6482_v37 = vld [vmem:[#allocation27 + $0x18] sm:$0xff] }
0x262c   : > { %v17632_v36 = vpack.c.bf16 %v6480_v34, %v6479_v14 }
0x262d   : > { %v6082_v39 = vmul.f32 %v6081_v38, %v6081_v38 }
0x262f   : > { %v6083_v40 = vsel %vm1946_vm1, %v6082_v39, 0.0 }
0x2630   : > { %6084 = vadd.xlane.f32.xlu1 %v6083_v40 }
0x26bd   : > { %v6085_v54 = vpop.xlane.xlu1 %6084 }
0x26be   : > { %v6086_v55 = vmul.f32 0.03125, %v6085_v54  ;;  %v6724_v54 = vld [vmem:[#allocation21 + $0x28] sm:$0xff] }
0x26c0   : > { %v6087_v56 = vadd.f32 1e-12, %v6086_v55  ;;  %v17638_v55 = vpack.c.bf16 %v6724_v54, %v6723_v53  ;;  %v7283_v54 = vld [vmem:[#allocation21 + $0x50] sm:$0xff] }
0x26c2   : > { %18330 = vrsqrt.f32 %v6087_v56  ;;  %v6725_v56 = vld [vmem:[#allocation21 + $0x30] sm:$0xff] }
0x26cc   : > { %v18331_v57 = vpop.eup %18330 }
0x26cd   : > { %v6089_v59 = vmul.f32 %v18331_v57, %v6081_v38  ;;  %v17635_v38 = vpack.c.bf16 %v6482_v37, %v6481_v35  ;;  %v6726_v57 = vld [vmem:[#allocation21 + $0x38] sm:$0xff]  ;;  %v15339_v37 = vld [vmem:[#allocation28 + $0x1] ss:$0 sm:$0xff] }
0x26cf   : > { %v6096_v63 = vmul.f32 %v15316_v58, %v6089_v59  ;;  %v17641_v58 = vpack.c.bf16 %v6726_v57, %v6725_v56 }
0x26d1   : > { %v20415_v3 = vadd.f32 %v15317_v62, %v6096_v63  ;;  %v17644_v63 = vpack.c.bf16 %v6807_v61, %v6806_v60  ;;  %v15348_v61 = vld [vmem:[#allocation25 + $0x2] ss:$0 sm:$0xff] }
0x26d3   : > { %16579 = vmatmul.mubr.msk.f32.vlgmr.msra.gmra.mrb[48].mxu0 %vm1946_vm1, %v20415_v3 }
0x26d4   : > { %17621 = vmatpush3.bf16.msra.mxu0 %v17620_v2  ;;  %16608 = vmatprep.mubr.msk.f32.mxu0 %vm19347_vm0, %v19348_v1 }
0x26d5   : > { %17622 = vmatprep.subr.bf16.mxu0 %v19346_v0 }
0x26d8   : > { %17624 = vmatpush3.bf16.msra.mxu0 %v17623_v6  ;;  %v17647_v6 = vpack.c.bf16 %v6809_v5, %v6808_v4 }
0x26d9   : > { %17625 = vmatprep.subr.bf16.mxu0 %v19346_v0 }
0x26db   : > { %16609 = vmatmul.mubr.msk.f32.vlgmr.msra.gmra.mrb[50].mxu0 %vm1946_vm1, %v20424_v9 }
0x26dc   : > { %17627 = vmatpush3.bf16.msra.mxu0 %v17626_v10  ;;  %16619 = vmatprep.mubr.msk.f32.mxu0 %vm19347_vm0, %v19348_v1 }
0x26dd   : > { %17628 = vmatprep.subr.bf16.mxu0 %v19346_v0 }
0x26e0   : > { %17630 = vmatpush3.bf16.msra.mxu0 %v17629_v13 }
0x26e1   : > { %16633 = vmatprep.subr.mxu0 %v19348_v1 }
0x26e3   : > { %16620 = vmatmul.mubr.msk.f32.vlgmr.msra.gmra.mrb[52].mxu0 %vm1946_vm1, %v20424_v9 }
0x26e4   : > { %16635 = vmatprep.mubr.msk.f32.mxu0 %vm19347_vm0, %v19348_v1 }
0x27a6   : > { %v6186_v19 = vpop.f32.mrb[48].mxu0 }
0x27a7   : > { %v6187_v20 = vadd.f32 %v15318_v18, %v6186_v19  ;;  %v16580_v21 = vpop.f32.mrb[49].mxu0 }
0x27a8   : > { %v6890_v21 = vld [vmem:[#allocation27 + $0x28] sm:$0xff] }
0x27a9   : > { %v6190_v22 = vmax.f32 %v6187_v20, 0.0  ;;  %v6889_v20 = vld [vmem:[#allocation27 + $0x20] sm:$0xff] }
0x27ab   : > { %16598 = vmatmul.mubr.msk.f32.vlgmr.msra.gmra.mrb[52].mxu1 %vm4014_vm3, %v6190_v22  ;;  %v6891_v22 = vld [vmem:[#allocation27 + $0x30] sm:$0xff] }
0x27ac   : > { %16630 = vmatprep.mubr.msk.f32.mxu1 %vm19347_vm0, %v19348_v1  ;;  %17633 = vmatpush3.bf16.msra.mxu1 %v17632_v36 }
0x27ad   : > { %17634 = vmatprep.subr.bf16.mxu1 %v19346_v0 }
0x27ae   : > { %v6394_v23 = vpop.f32.mrb[50].mxu0 }
0x27af   : > { %v16610_v24 = vpop.f32.mrb[51].mxu0  ;;  %v6395_v27 = vadd.f32 %v15326_v25, %v6394_v23  ;;  %v17650_v23 = vpack.c.bf16 %v6890_v21, %v6889_v20 }
0x27b0   : > { %17636 = vmatpush3.bf16.msra.mxu1 %v17635_v38  ;;  %v6892_v24 = vld [vmem:[#allocation27 + $0x38] sm:$0xff] }
0x27b1   : > { %v6560_v32 = vmul.f32 0.35355338, %v6395_v27  ;;  %16638 = vmatprep.subr.mxu1 %v19348_v1  ;;  %v17653_v25 = vpack.c.bf16 %v6892_v24, %v6891_v22 }
0x27b3   : > { %16631 = vmatmul.mubr.msk.f32.vlgmr.msra.gmra.mrb[54].mxu1 %vm1946_vm1, %v20424_v9 }
0x27b4   : > { %16640 = vmatprep.mubr.msk.f32.mxu1 %vm19347_vm0, %v19348_v1 }
0x27b6   : > { %v6475_v28 = vpop.f32.mrb[52].mxu0 }
0x27b7   : > { %v6476_v29 = vadd.f32 %v15328_v26, %v6475_v28  ;;  %v16621_v31 = vpop.f32.mrb[53].mxu0 }
0x27b9   : > { %16634 = vmatpush3.xpose.msk.msra.mxu0 %vm2183_vm2, %v6476_v29 }
0x27ba   : > { %17637 = vmatprep.subr.bf16.mxu0 %v19346_v0 }
0x27bc   : > { %16636 = vmatmul.mubr.msk.f32.vlgmr.msra.gmra.mrb[54].mxu0 %vm2183_vm2, %v6560_v32 }
0x27bd   : > { %16651 = vmatprep.mubr.msk.f32.mxu0 %vm19347_vm0, %v19348_v1  ;;  %17639 = vmatpush3.bf16.msra.mxu0 %v17638_v55  ;;  %v7284_v55 = vld [vmem:[#allocation21 + $0x58] sm:$0xff] }
0x27be   : > { %17640 = vmatprep.subr.bf16.mxu0 %v19346_v0 }
0x27c1   : > { %17642 = vmatpush3.bf16.msra.mxu0 %v17641_v58  ;;  %v17659_v58 = vpack.c.bf16 %v7284_v55, %v7283_v54 }
0x27c2   : > { %17649 = vmatprep.subr.bf16.mxu0 %v19346_v0 }
0x27c4   : > { %16652 = vmatmul.mubr.msk.f32.vlgmr.msra.gmra.mrb[56].mxu0 %vm1946_vm1, %v20424_v9 }
0x27c5   : > { %16673 = vmatprep.mubr.msk.f32.mxu0 %vm19347_vm0, %v19348_v1  ;;  %17651 = vmatpush3.bf16.msra.mxu0 %v17650_v23 }
0x27c6   : > { %17652 = vmatprep.subr.bf16.mxu0 %v19346_v0 }
0x27c9   : > { %17654 = vmatpush3.bf16.msra.mxu0 %v17653_v25 }
0x27ca   : > { %16686 = vmatprep.subr.mxu0 %v19348_v1 }
0x27cc   : > { %16674 = vmatmul.mubr.msk.f32.vlgmr.msra.gmra.mrb[58].mxu0 %vm1946_vm1, %v20424_v9 }
0x27cd   : > { %16688 = vmatprep.mubr.msk.f32.mxu0 %vm19347_vm0, %v19348_v1 }
0x287e   : > { %v20452_v39 = vpop.f32.mrb[52].mxu1 }
0x287f   : > { %v16599_v40 = vpop.f32.mrb[53].mxu1 }
0x2886   : > { %v6556_v49 = vpop.f32.mrb[54].mxu1 }
0x2887   : > { %v16632_v51 = vpop.f32.mrb[55].mxu1  ;;  %v6557_v52 = vadd.f32 %v15330_v50, %v6556_v49  ;;  %v7367_v49 = vld [vmem:[#allocation24 + $0x58] sm:$0xff] }
0x2888   : > { %v7281_v51 = vld [vmem:[#allocation21 + $0x40] sm:$0xff] }
0x2889   : > { %16639 = vmatpush3.msra.mxu1 %v6557_v52  ;;  %v7282_v52 = vld [vmem:[#allocation21 + $0x48] sm:$0xff] }
0x288a   : > { %17643 = vmatprep.subr.bf16.mxu1 %v19346_v0  ;;  %v17656_v53 = vpack.c.bf16 %v7282_v52, %v7281_v51 }
0x288f   : > { %v6633_v42 = vpop.f32.mrb[54].mxu0 }
0x2890   : > { %v6634_v43 = vadd.f32 %v6633_v42, %v20459_v41  ;;  %v16637_v44 = vpop.f32.mrb[55].mxu0  ;;  %v7133_v42 = vld [vmem:[#allocation30 + $0x8] sm:$0xff] }
0x2891   : > { %16687 = vmatpush3.msra.mxu0 %v7133_v42 }
0x2892   : > { %v6637_v45 = vsel %vm2183_vm2, %v6634_v43, -inf  ;;  %17655 = vmatprep.subr.bf16.mxu0 %v19346_v0 }
0x2893   : > { %6638 = vmax.xlane.f32.xlu0 %v6637_v45 }
0x2897   : > { %v6801_v7 = vpop.f32.mrb[56].mxu0 }
0x2898   : > { %v16653_v8 = vpop.f32.mrb[57].mxu0  ;;  %v6802_v13 = vadd.f32 %v15335_v12, %v6801_v7  ;;  %v15346_v7 = vld [vmem:[#allocation22 + $0x2] ss:$0 sm:$0xff] }
0x289a   : > { %v6971_v19 = vmul.f32 0.35355338, %v6802_v13  ;;  %v7447_v13 = vld [vmem:[#allocation27 + $0x40] sm:$0xff] }
0x289f   : > { %v6967_v36 = vpop.f32.mrb[58].mxu0 }
0x28a0   : > { %v16675_v38 = vpop.f32.mrb[59].mxu0  ;;  %v6968_v40 = vadd.f32 %v15339_v37, %v6967_v36 }
0x28a1   : > { %v7767_v38 = vld [vmem:[#allocation21 + $0x60] sm:$0xff] }
0x2920   : > { %v6639_v30 = vpop.xlane.xlu0 %6638 }
0x2921   : > { %v6640_v33 = vsub.f32 %v6634_v43, %v6639_v30  ;;  %v6721_v30 = vld [vmem:[#allocation30] sm:$0xff] }
0x2923   : > { %v6641_v46 = vmul.f32 1.442695, %v6640_v33  ;;  %v7364_v33 = vld [vmem:[#allocation24 + $0x40] sm:$0xff] }
0x2925   : > { %18332 = vpow2.f32 %v6641_v46  ;;  %v7365_v46 = vld [vmem:[#allocation24 + $0x48] sm:$0xff] }
0x292f   : > { %v18333_v47 = vpop.eup %18332 }
0x2930   : > { %v6643_v48 = vsel %vm2183_vm2, %v18333_v47, 0.0 }
0x2931   : > { %6644 = vadd.xlane.f32.xlu1 %v6643_v48  ;;  %v7366_v48 = vld [vmem:[#allocation24 + $0x50] sm:$0xff] }
0x2932   : > { %v17665_v50 = vpack.c.bf16 %v7367_v49, %v7366_v48  ;;  %v7853_v48 = vld [vmem:[#allocation24 + $0x78] sm:$0xff] }
0x29be   : > { %v6645_v59 = vpop.xlane.xlu1 %6644 }
0x29bf   : > { %18334 = vrcp.f32 %v6645_v59 }
0x29c9   : > { %v18335_v62 = vpop.eup %18334 }
0x29ca   : > { %v6647_v2 = vmul.f32 %v18335_v62, %v18333_v47  ;;  %v17662_v47 = vpack.c.bf16 %v7365_v46, %v7364_v33  ;;  %v7851_v33 = vld [vmem:[#allocation24 + $0x68] sm:$0xff] }
0x29cc   : > { %16641 = vmatmul.mubr.msk.f32.vlgmr.msra.gmra.mrb[56].mxu1 %vm2183_vm2, %v6647_v2 }
0x29cd   : > { %17645 = vmatpush3.bf16.msra.mxu1 %v17644_v63  ;;  %16662 = vmatprep.mubr.msk.f32.mxu1 %vm19347_vm0, %v19348_v1 }
0x29ce   : > { %17646 = vmatprep.subr.bf16.mxu1 %v19346_v0 }
0x29d1   : > { %17648 = vmatpush3.bf16.msra.mxu1 %v17647_v6 }
0x29d2   : > { %16676 = vmatprep.subr.mxu1 %v19348_v1 }
0x29d4   : > { %16663 = vmatmul.mubr.msk.f32.vlgmr.msra.gmra.mrb[58].mxu1 %vm1946_vm1, %v20424_v9 }
0x29d5   : > { %16678 = vmatprep.mubr.msk.f32.mxu1 %vm19347_vm0, %v19348_v1 }
0x2a9f   : > { %v6717_v10 = vpop.f32.mrb[56].mxu1 }
0x2aa0   : > { %v16642_v11 = vpop.f32.mrb[57].mxu1 }
0x2aa7   : > { %v6884_v16 = vpop.f32.mrb[58].mxu1 }
0x2aa8   : > { %v6885_v17 = vadd.f32 %v15337_v15, %v6884_v16  ;;  %v16664_v18 = vpop.f32.mrb[59].mxu1  ;;  %v7448_v15 = vld [vmem:[#allocation27 + $0x48] sm:$0xff]  ;;  %v7449_v16 = vld [vmem:[#allocation27 + $0x50] sm:$0xff] }
0x2aa9   : > { %v7450_v18 = vld [vmem:[#allocation27 + $0x58] sm:$0xff] }
0x2aaa   : > { %16677 = vmatpush3.xpose.msk.msra.mxu1 %vm2183_vm2, %v6885_v17  ;;  %v17668_v17 = vpack.c.bf16 %v7448_v15, %v7447_v13 }
0x2aab   : > { %16681 = vmatprep.subr.mxu1 %v19348_v1 }
0x2aad   : > { %16679 = vmatmul.mubr.msk.f32.vlgmr.msra.gmra.mrb[60].mxu1 %vm2183_vm2, %v6971_v19  ;;  %v17671_v19 = vpack.c.bf16 %v7450_v18, %v7449_v16 }
0x2aae   : > { %16683 = vmatprep.mubr.msk.f32.mxu1 %vm19347_vm0, %v19348_v1  ;;  %16682 = vmatpush3.msra.mxu1 %v6968_v40  ;;  %v7768_v40 = vld [vmem:[#allocation21 + $0x68] sm:$0xff] }
0x2aaf   : > { %16691 = vmatprep.subr.mxu1 %v19348_v1  ;;  %v17674_v42 = vpack.c.bf16 %v7768_v40, %v7767_v38  ;;  %v8374_v38 = vld [vmem:[%s21310_s15] sm:$0xff]  ;;  %v8375_v40 = vld [vmem:[%s21310_s15 + $0x8] sm:$0xff] }
0x2b80   : > { %v7044_v26 = vpop.f32.mrb[60].mxu1 }
0x2b81   : > { %v7045_v27 = vadd.f32 %v7044_v26, %v20459_v41  ;;  %v16680_v28 = vpop.f32.mrb[61].mxu1 }
0x2b83   : > { %v7048_v29 = vsel %vm2183_vm2, %v7045_v27, -inf }
0x2b84   : > { %7049 = vmax.xlane.f32.xlu0 %v7048_v29 }
0x2c11   : > { %v7050_v31 = vpop.xlane.xlu0 %7049 }
0x2c12   : > { %v7051_v32 = vsub.f32 %v7045_v27, %v7050_v31  ;;  %v15350_v31 = vld [vmem:[#allocation28 + $0x2] ss:$0 sm:$0xff] }
0x2c14   : > { %v7052_v14 = vmul.f32 1.442695, %v7051_v32 }
0x2c16   : > { %18336 = vpow2.f32 %v7052_v14 }
0x2c20   : > { %v18337_v34 = vpop.eup %18336 }
0x2c21   : > { %v7054_v35 = vsel %vm2183_vm2, %v18337_v34, 0.0 }
0x2c22   : > { %7055 = vadd.xlane.f32.xlu1 %v7054_v35 }
0x2caf   : > { %v7056_v43 = vpop.xlane.xlu1 %7055 }
0x2cb0   : > { %18338 = vrcp.f32 %v7056_v43  ;;  %v7769_v43 = vld [vmem:[#allocation21 + $0x70] sm:$0xff] }
0x2cba   : > { %v18339_v44 = vpop.eup %18338 }
0x2cbb   : > { %v7058_v45 = vmul.f32 %v18339_v44, %v18337_v34  ;;  %v7691_v34 = vld [vmem:[#allocation30 + $0x10] sm:$0xff]  ;;  %v7770_v44 = vld [vmem:[#allocation21 + $0x78] sm:$0xff] }
0x2cbd   : > { %16684 = vmatmul.mubr.msk.f32.vlgmr.msra.gmra.mrb[62].mxu1 %vm2183_vm2, %v7058_v45  ;;  %v17677_v45 = vpack.c.bf16 %v7770_v44, %v7769_v43  ;;  %v17698_v43 = vpack.c.bf16 %v8375_v40, %v8374_v38  ;;  %v15369_v40 = vld [vmem:[#allocation34] ss:$0 sm:$0xff] }
0x2cbe   : > { %16692 = vmatpush3.msra.mxu1 %v6721_v30  ;;  %16693 = vmatprep.mubr.msk.f32.mxu1 %vm19347_vm0, %v19348_v1  ;;  %v7850_v30 = vld [vmem:[#allocation24 + $0x60] sm:$0xff] }
0x2cbf   : > { %17661 = vmatprep.subr.bf16.mxu1 %v19346_v0  ;;  %v17680_v46 = vpack.c.bf16 %v7851_v33, %v7850_v30  ;;  %v8377_v30 = vld [vmem:[%s21310_s15 + $0x18] sm:$0xff]  ;;  %v15324_v33 = vld [vmem:[%s21306_s5 + $0x1] ss:$0 sm:$0xff]  ;;  %s21320_s5 = sld [smem:[#allocation96_spill]] }
0x2cc1   : > { %16694 = vmatmul.mubr.msk.f32.vlgmr.msra.gmra.mrb[64].mxu1 %vm2183_vm2, %v6717_v10 }
0x2cc2   : > { %17663 = vmatpush3.bf16.msra.mxu1 %v17662_v47  ;;  %16715 = vmatprep.mubr.msk.f32.mxu1 %vm19347_vm0, %v19348_v1  ;;  %v7852_v47 = vld [vmem:[#allocation24 + $0x70] sm:$0xff] }
0x2cc3   : > { %17664 = vmatprep.subr.bf16.mxu1 %v19346_v0  ;;  %v17683_v51 = vpack.c.bf16 %v7853_v48, %v7852_v47 }
0x2cc6   : > { %17666 = vmatpush3.bf16.msra.mxu1 %v17665_v50 }
0x2cc7   : > { %16729 = vmatprep.subr.mxu1 %v19348_v1 }
0x2cc9   : > { %16716 = vmatmul.mubr.msk.f32.vlgmr.msra.gmra.mrb[66].mxu1 %vm1946_vm1, %v20424_v9 }
0x2cca   : > { %16731 = vmatprep.mubr.msk.f32.mxu1 %vm19347_vm0, %v19348_v1 }
0x2d90   : > { %v7128_v56 = vpop.f32.mrb[62].mxu1 }
0x2d91   : > { %v16685_v57 = vpop.f32.mrb[63].mxu1  ;;  %16689 = vmatmul.mubr.msk.f32.vlgmr.msra.gmra.mrb[60].mxu0 %vm2183_vm2, %v7128_v56 }
0x2d92   : > { %17657 = vmatpush3.bf16.msra.mxu0 %v17656_v53  ;;  %16704 = vmatprep.mubr.msk.f32.mxu0 %vm19347_vm0, %v19348_v1  ;;  %v15356_v57 = vld [vmem:[#allocation22 + $0x3] ss:$0 sm:$0xff] }
0x2d93   : > { %17658 = vmatprep.subr.bf16.mxu0 %v19346_v0 }
0x2d94   : > { %v7276_v59 = vpop.f32.mrb[64].mxu1 }
0x2d95   : > { %v16695_v60 = vpop.f32.mrb[65].mxu1 }
0x2d96   : > { %17660 = vmatpush3.bf16.msra.mxu0 %v17659_v58 }
0x2d97   : > { %17667 = vmatprep.subr.bf16.mxu0 %v19346_v0 }
0x2d99   : > { %16705 = vmatmul.mubr.msk.f32.vlgmr.msra.gmra.mrb[62].mxu0 %vm1946_vm1, %v20424_v9 }
0x2d9a   : > { %16726 = vmatprep.mubr.msk.f32.mxu0 %vm19347_vm0, %v19348_v1  ;;  %17669 = vmatpush3.bf16.msra.mxu0 %v17668_v17 }
0x2d9b   : > { %17670 = vmatprep.subr.bf16.mxu0 %v19346_v0 }
0x2d9c   : > { %v7442_v62 = vpop.f32.mrb[66].mxu1 }
0x2d9d   : > { %v7443_v63 = vadd.f32 %v15348_v61, %v7442_v62  ;;  %v16717_v2 = vpop.f32.mrb[67].mxu1 }
0x2d9e   : > { %17672 = vmatpush3.bf16.msra.mxu0 %v17671_v19  ;;  %v7933_v2 = vld [vmem:[#allocation27 + $0x60] sm:$0xff] }
0x2d9f   : > { %16730 = vmatpush3.xpose.msk.msra.mxu1 %vm2183_vm2, %v7443_v63  ;;  %16739 = vmatprep.subr.mxu0 %v19348_v1 }
0x2da0   : > { %16734 = vmatprep.subr.mxu1 %v19348_v1 }
0x2da1   : > { %16727 = vmatmul.mubr.msk.f32.vlgmr.msra.gmra.mrb[64].mxu0 %vm1946_vm1, %v20424_v9 }
0x2da2   : > { %16741 = vmatprep.mubr.msk.f32.mxu0 %vm19347_vm0, %v19348_v1  ;;  %16740 = vmatpush3.msra.mxu0 %v7691_v34 }
0x2da3   : > { %17679 = vmatprep.subr.bf16.mxu0 %v19346_v0 }
0x2e64   : > { %v7203_v4 = vpop.f32.mrb[60].mxu0 }
0x2e65   : > { %v20520_v5 = vadd.f32 %v7276_v59, %v7203_v4  ;;  %v16690_v6 = vpop.f32.mrb[61].mxu0  ;;  %v15358_v59 = vld [vmem:[#allocation25 + $0x3] ss:$0 sm:$0xff]  ;;  %v7934_v4 = vld [vmem:[#allocation27 + $0x68] sm:$0xff] }
0x2e66   : > { %v17686_v6 = vpack.c.bf16 %v7934_v4, %v7933_v2 }
0x2e6c   : > { %v7359_v8 = vpop.f32.mrb[62].mxu0 }
0x2e6d   : > { %v7360_v10 = vadd.f32 %v15346_v7, %v7359_v8  ;;  %v16706_v11 = vpop.f32.mrb[63].mxu0  ;;  %v7936_v7 = vld [vmem:[#allocation27 + $0x78] sm:$0xff] }
0x2e6f   : > { %v7529_v12 = vmul.f32 0.35355338, %v7360_v10  ;;  %v15320_v10 = vld [vmem:[#allocation19 + $0x1] ss:$0 sm:$0xff] }
0x2e70   : > { %v6278_v11 = vadd.f32 %v15320_v10, %v20452_v39  ;;  %v8292_v10 = vld [vmem:[#allocation33 + $0x10] sm:$0xff] }
0x2e71   : > { %16732 = vmatmul.mubr.msk.f32.vlgmr.msra.gmra.mrb[68].mxu1 %vm2183_vm2, %v7529_v12 }
0x2e72   : > { %16736 = vmatprep.mubr.msk.f32.mxu1 %vm19347_vm0, %v19348_v1  ;;  %v6281_v17 = vadd.f32 %v6278_v11, %v20415_v3  ;;  %v8293_v11 = vld [vmem:[#allocation33 + $0x18] sm:$0xff] }
0x2e74   : > { %v7525_v29 = vpop.f32.mrb[64].mxu0  ;;  %v6286_v18 = vsel %vm1946_vm1, %v6281_v17, 0.0 }
0x2e75   : > { %v16728_v32 = vpop.f32.mrb[65].mxu0  ;;  %v7526_v14 = vadd.f32 %v15350_v31, %v7525_v29  ;;  %v8177_v31 = vld [vmem:[#allocation30 + $0x18] sm:$0xff] }
0x2e77   : > { %16735 = vmatpush3.msra.mxu1 %v7526_v14 }
0x2e78   : > { %17673 = vmatprep.subr.bf16.mxu1 %v19346_v0 }
0x2f44   : > { %v7602_v20 = vpop.f32.mrb[68].mxu1 }
0x2f45   : > { %v7603_v21 = vadd.f32 %v7602_v20, %v20459_v41  ;;  %v16733_v22 = vpop.f32.mrb[69].mxu1 }
0x2f47   : > { %v7606_v23 = vsel %vm2183_vm2, %v7603_v21, -inf }
0x2f48   : > { %7607 = vmax.xlane.f32.xlu0 %v7606_v23 }
0x2fd5   : > { %v7608_v24 = vpop.xlane.xlu0 %7607 }
0x2fd6   : > { %v7609_v25 = vsub.f32 %v7603_v21, %v7608_v24 }
0x2fd8   : > { %v7610_v26 = vmul.f32 1.442695, %v7609_v25 }
0x2fda   : > { %18340 = vpow2.f32 %v7610_v26 }
0x2fe4   : > { %v18341_v27 = vpop.eup %18340 }
0x2fe5   : > { %v7612_v28 = vsel %vm2183_vm2, %v18341_v27, 0.0 }
0x2fe6   : > { %7613 = vadd.xlane.f32.xlu1 %v7612_v28 }
0x3073   : > { %v7614_v35 = vpop.xlane.xlu1 %7613 }
0x3074   : > { %18342 = vrcp.f32 %v7614_v35 }
0x307e   : > { %v18343_v36 = vpop.eup %18342 }
0x307f   : > { %v7616_v37 = vmul.f32 %v18343_v36, %v18341_v27  ;;  %v15360_v27 = vld [vmem:[#allocation28 + $0x3] ss:$0 sm:$0xff] }
0x3081   : > { %16737 = vmatmul.mubr.msk.f32.vlgmr.msra.gmra.mrb[70].mxu1 %vm2183_vm2, %v7616_v37 }
0x3082   : > { %16752 = vmatprep.mubr.msk.f32.mxu1 %vm19347_vm0, %v19348_v1  ;;  %17675 = vmatpush3.bf16.msra.mxu1 %v17674_v42 }
0x3083   : > { %17676 = vmatprep.subr.bf16.mxu1 %v19346_v0 }
0x3086   : > { %17678 = vmatpush3.bf16.msra.mxu1 %v17677_v45  ;;  %v8376_v45 = vld [vmem:[%s21310_s15 + $0x10] sm:$0xff] }
0x3087   : > { %17685 = vmatprep.subr.bf16.mxu1 %v19346_v0  ;;  %v17701_v48 = vpack.c.bf16 %v8377_v30, %v8376_v45  ;;  %v15373_v30 = vld [vmem:[%s21315_s6] ss:$0 sm:$0xff] }
0x3089   : > { %16753 = vmatmul.mubr.msk.f32.vlgmr.msra.gmra.mrb[72].mxu1 %vm1946_vm1, %v20424_v9 }
0x308a   : > { %16774 = vmatprep.mubr.msk.f32.mxu1 %vm19347_vm0, %v19348_v1  ;;  %17687 = vmatpush3.bf16.msra.mxu1 %v17686_v6 }
0x308b   : > { %17688 = vmatprep.subr.bf16.mxu1 %v19346_v0 }
0x3154   : > { %v7686_v49 = vpop.f32.mrb[70].mxu1 }
0x3155   : > { %v16738_v50 = vpop.f32.mrb[71].mxu1  ;;  %16742 = vmatmul.mubr.msk.f32.vlgmr.msra.gmra.mrb[66].mxu0 %vm2183_vm2, %v7686_v49 }
0x3156   : > { %17681 = vmatpush3.bf16.msra.mxu0 %v17680_v46  ;;  %16763 = vmatprep.mubr.msk.f32.mxu0 %vm19347_vm0, %v19348_v1  ;;  %v15325_v50 = vld [vmem:[%s21307_s2 + $0x1] ss:$0 sm:$0xff]  ;;  %s21318_s2 = sld [smem:[#allocation92_spill]] }
0x3157   : > { %17682 = vmatprep.subr.bf16.mxu0 %v19346_v0 }
0x315a   : > { %17684 = vmatpush3.bf16.msra.mxu0 %v17683_v51 }
0x315b   : > { %16777 = vmatprep.subr.mxu0 %v19348_v1 }
0x315c   : > { %v7845_v52 = vpop.f32.mrb[72].mxu1 }
0x315d   : > { %16764 = vmatmul.mubr.msk.f32.vlgmr.msra.gmra.mrb[68].mxu0 %vm1946_vm1, %v20424_v9  ;;  %v16754_v53 = vpop.f32.mrb[73].mxu1  ;;  %v7846_v58 = vadd.f32 %v15356_v57, %v7845_v52 }
0x315e   : > { %16779 = vmatprep.mubr.msk.f32.mxu0 %vm19347_vm0, %v19348_v1  ;;  %v15366_v53 = vld [vmem:[#allocation31] ss:$0 sm:$0xff] }
0x315f   : > { %v8015_v63 = vmul.f32 0.35355338, %v7846_v58 }
0x3228   : > { %v7761_v54 = vpop.f32.mrb[66].mxu0 }
0x3229   : > { %v20555_v55 = vadd.f32 %v7761_v54, %v20520_v5  ;;  %v16743_v56 = vpop.f32.mrb[67].mxu0  ;;  %v7935_v5 = vld [vmem:[#allocation27 + $0x70] sm:$0xff] }
0x322a   : > { %v17689_v8 = vpack.c.bf16 %v7936_v7, %v7935_v5  ;;  %v8291_v7 = vld [vmem:[#allocation33 + $0x8] sm:$0xff] }
0x322c   : > { %17690 = vmatpush3.bf16.msra.mxu1 %v17689_v8 }
0x322d   : > { %16787 = vmatprep.subr.mxu1 %v19348_v1 }
0x322f   : > { %16775 = vmatmul.mubr.msk.f32.vlgmr.msra.gmra.mrb[74].mxu1 %vm1946_vm1, %v20424_v9 }
0x3230   : > { %v7928_v60 = vpop.f32.mrb[68].mxu0  ;;  %16789 = vmatprep.mubr.msk.f32.mxu1 %vm19347_vm0, %v19348_v1  ;;  %16788 = vmatpush3.msra.mxu1 %v8177_v31  ;;  %v8705_v31 = vld [vmem:[#allocation33 + $0x38] sm:$0xff] }
0x3231   : > { %v7929_v61 = vadd.f32 %v15358_v59, %v7928_v60  ;;  %v16765_v62 = vpop.f32.mrb[69].mxu0  ;;  %17697 = vmatprep.subr.bf16.mxu1 %v19346_v0  ;;  %v15371_v59 = vld [vmem:[%s21311_s0] ss:$0 sm:$0xff] }
0x3233   : > { %16778 = vmatpush3.xpose.msk.msra.mxu0 %vm2183_vm2, %v7929_v61 }
0x3234   : > { %16782 = vmatprep.subr.mxu0 %v19348_v1 }
0x3236   : > { %16780 = vmatmul.mubr.msk.f32.vlgmr.msra.gmra.mrb[70].mxu0 %vm2183_vm2, %v8015_v63 }
0x3237   : > { %16784 = vmatprep.mubr.msk.f32.mxu0 %vm19347_vm0, %v19348_v1 }
0x3302   : > { %v8011_v3 = vpop.f32.mrb[74].mxu1 }
0x3303   : > { %v16776_v28 = vpop.f32.mrb[75].mxu1  ;;  %v8012_v29 = vadd.f32 %v15360_v27, %v8011_v3  ;;  %v8702_v3 = vld [vmem:[#allocation33 + $0x20] sm:$0xff]  ;;  %v8703_v27 = vld [vmem:[#allocation33 + $0x28] sm:$0xff] }
0x3304   : > { %v17710_v28 = vpack.c.bf16 %v8703_v27, %v8702_v3 }
0x3305   : > { %16783 = vmatpush3.msra.mxu0 %v8012_v29  ;;  %v8704_v29 = vld [vmem:[#allocation33 + $0x30] sm:$0xff] }
0x3306   : > { %17691 = vmatprep.subr.bf16.mxu0 %v19346_v0 }
0x3309   : > { %v8088_v12 = vpop.f32.mrb[70].mxu0 }
0x330a   : > { %v8089_v13 = vadd.f32 %v8088_v12, %v20459_v41  ;;  %v16781_v15 = vpop.f32.mrb[71].mxu0  ;;  %v17695_v12 = vpack.c.bf16 %v8293_v11, %v8292_v10 }
0x330c   : > { %v8092_v16 = vsel %vm2183_vm2, %v8089_v13, -inf }
0x330d   : > { %8093 = vmax.xlane.f32.xlu0 %v8092_v16 }
0x3311   : > { %6287 = vadd.xlane.f32.xlu0 %v6286_v18  ;;  %v15367_v18 = vld [vmem:[%s21312_s11] ss:$0 sm:$0xff] }
0x339a   : > { %v8094_v19 = vpop.xlane.xlu0 %8093 }
0x339b   : > { %v8095_v20 = vsub.f32 %v8089_v13, %v8094_v19 }
0x339d   : > { %v8096_v21 = vmul.f32 1.442695, %v8095_v20  ;;  %v8458_v20 = vld [vmem:[%s21313_s23] sm:$0xff] }
0x339e   : > { %v6288_v22 = vpop.xlane.xlu0 %6287 }
0x339f   : > { %18344 = vpow2.f32 %v8096_v21  ;;  %v6289_v23 = vmul.f32 0.03125, %v6288_v22  ;;  %v8459_v21 = vld [vmem:[%s21313_s23 + $0x8] sm:$0xff]  ;;  %v15368_v22 = vld [vmem:[%s21314_s8] ss:$0 sm:$0xff] }
0x33a1   : > { %v6290_v24 = vsub.f32 %v6281_v17, %v6289_v23 }
0x33a3   : > { %v6291_v39 = vmul.f32 %v6290_v24, %v6290_v24 }
0x33a5   : > { %v6292_v25 = vsel %vm1946_vm1, %v6291_v39, 0.0 }
0x33a6   : > { %6293 = vadd.xlane.f32.xlu0 %v6292_v25  ;;  %v8460_v25 = vld [vmem:[%s21313_s23 + $0x10] sm:$0xff] }
0x33a9   : > { %v18345_v41 = vpop.eup %18344 }
0x33aa   : > { %v8098_v26 = vsel %vm2183_vm2, %v18345_v41, 0.0 }
0x33ab   : > { %8099 = vadd.xlane.f32.xlu1 %v8098_v26 }
0x3433   : > { %v6294_v35 = vpop.xlane.xlu0 %6293 }
0x3434   : > { %v6295_v36 = vmul.f32 0.03125, %v6294_v35 }
0x3436   : > { %v6296_v37 = vadd.f32 1e-12, %v6295_v36  ;;  %v15389_v36 = vld [vmem:[%s21313_s23 + $0x30] sm:$0xff] }
0x3438   : > { %v8100_v32 = vpop.xlane.xlu1 %8099 }
0x3439   : > { %18346 = vrcp.f32 %v8100_v32  ;;  %v17713_v32 = vpack.c.bf16 %v8705_v31, %v8704_v29  ;;  %v9112_v31 = vld [vmem:[#allocation36 + $0x8] sm:$0xff] }
0x343a   : > { %18348 = vrsqrt.f32 %v6296_v37  ;;  %v15390_v37 = vld [vmem:[%s21313_s23 + $0x38] sm:$0xff] }
0x343b   : > { %v17725_v38 = vpack.c.bf16 %v15390_v37, %v15389_v36  ;;  %v15401_v36 = vld [vmem:[%s21310_s15 + $0x40] sm:$0xff]  ;;  %v15402_v37 = vld [vmem:[%s21310_s15 + $0x48] sm:$0xff] }
0x3443   : > { %v18347_v14 = vpop.eup %18346 }
0x3444   : > { %v8102_v34 = vmul.f32 %v18347_v14, %v18345_v41  ;;  %v18349_v42 = vpop.eup %18348  ;;  %v8461_v41 = vld [vmem:[%s21313_s23 + $0x18] sm:$0xff]  ;;  %v15387_v14 = vld [vmem:[%s21313_s23 + $0x20] sm:$0xff] }
0x3445   : > { %v6298_v44 = vmul.f32 %v18349_v42, %v6290_v24  ;;  %v17704_v24 = vpack.c.bf16 %v8459_v21, %v8458_v20  ;;  %v17707_v26 = vpack.c.bf16 %v8461_v41, %v8460_v25  ;;  %v15392_v20 = vld [vmem:[%s21315_s6 + $0x1] ss:$0 sm:$0xff] }
0x3446   : > { %16785 = vmatmul.mubr.msk.f32.vlgmr.msra.gmra.mrb[72].mxu0 %vm2183_vm2, %v8102_v34  ;;  %v15388_v34 = vld [vmem:[%s21313_s23 + $0x28] sm:$0xff] }
0x3447   : > { %16800 = vmatprep.mubr.msk.f32.mxu0 %vm19347_vm0, %v19348_v1  ;;  %v6305_v49 = vmul.f32 %v15324_v33, %v6298_v44  ;;  %v17722_v35 = vpack.c.bf16 %v15388_v34, %v15387_v14 }
0x3449   : > { %v20590_v51 = vadd.f32 %v15325_v50, %v6305_v49 }
0x3519   : > { %v8172_v46 = vpop.f32.mrb[72].mxu0 }
0x351a   : > { %v16786_v47 = vpop.f32.mrb[73].mxu0  ;;  %16790 = vmatmul.mubr.msk.f32.vlgmr.msra.gmra.mrb[76].mxu1 %vm2183_vm2, %v8172_v46 }
0x351b   : > { %17699 = vmatpush3.bf16.msra.mxu1 %v17698_v43  ;;  %16811 = vmatprep.mubr.msk.f32.mxu1 %vm19347_vm0, %v19348_v1 }
0x351c   : > { %17700 = vmatprep.subr.bf16.mxu1 %v19346_v0 }
0x351f   : > { %17702 = vmatpush3.bf16.msra.mxu1 %v17701_v48 }
0x3520   : > { %16825 = vmatprep.subr.mxu1 %v19348_v1 }
0x3522   : > { %16812 = vmatmul.mubr.msk.f32.vlgmr.msra.gmra.mrb[78].mxu1 %vm1946_vm1, %v20590_v51 }
0x3523   : > { %16827 = vmatprep.mubr.msk.f32.mxu1 %vm19347_vm0, %v19348_v1 }
0x35ed   : > { %v8247_v52 = vpop.f32.mrb[76].mxu1 }
0x35ee   : > { %v8251_v54 = vadd.f32 %v8247_v52, %v20555_v55  ;;  %v16791_v56 = vpop.f32.mrb[77].mxu1 }
0x35f0   : > { %v8259_v57 = vadd.f32 %v15366_v53, %v8251_v54  ;;  %v20650_v53 = vld [vmem:[%s20647_s1] sm:$0xff] }
0x35f2   : > { %v8260_v58 = vadd.f32 %v8259_v57, %v20424_v9  ;;  %v8290_v9 = vld [vmem:[#allocation33] sm:$0xff] }
0x35f3   : > { %v17692_v8 = vpack.c.bf16 %v8291_v7, %v8290_v9  ;;  %v15382_v7 = vld [vmem:[%s21310_s15 + $0x30] sm:$0xff] }
0x35f4   : > { %v8263_v60 = vsel %vm1946_vm1, %v8260_v58, 0.0 }
0x35f5   : > { %v8454_v61 = vpop.f32.mrb[78].mxu1  ;;  %8264 = vadd.xlane.f32.xlu1 %v8263_v60  ;;  %17693 = vmatpush3.bf16.msra.mxu0 %v17692_v8  ;;  %v15383_v8 = vld [vmem:[%s21310_s15 + $0x38] sm:$0xff] }
0x35f6   : > { %v8455_v62 = vadd.f32 %v15371_v59, %v8454_v61  ;;  %v16813_v63 = vpop.f32.mrb[79].mxu1  ;;  %17694 = vmatprep.subr.bf16.mxu0 %v19346_v0  ;;  %v17719_v10 = vpack.c.bf16 %v15383_v8, %v15382_v7 }
0x35f8   : > { %16826 = vmatpush3.xpose.msk.msra.mxu1 %vm2183_vm2, %v8455_v62 }
0x35f9   : > { %16830 = vmatprep.subr.mxu1 %v19348_v1  ;;  %17696 = vmatpush3.bf16.msra.mxu0 %v17695_v12 }
0x35fa   : > { %17703 = vmatprep.subr.bf16.mxu0 %v19346_v0 }
0x3682   : > { %v8265_v2 = vpop.xlane.xlu1 %8264 }
0x3683   : > { %v8266_v4 = vmul.f32 0.03125, %v8265_v2 }
0x3685   : > { %v8267_v5 = vsub.f32 %v8260_v58, %v8266_v4  ;;  %v15380_v4 = vld [vmem:[%s21310_s15 + $0x20] sm:$0xff] }
0x3687   : > { %v8268_v6 = vmul.f32 %v8267_v5, %v8267_v5 }
0x3689   : > { %v8269_v55 = vsel %vm1946_vm1, %v8268_v6, 0.0 }
0x368a   : > { %8270 = vadd.xlane.f32.xlu1 %v8269_v55 }
0x3717   : > { %v8271_v13 = vpop.xlane.xlu1 %8270 }
0x3718   : > { %v8272_v15 = vmul.f32 0.03125, %v8271_v13  ;;  %v15378_v13 = vld [vmem:[#allocation34 + $0x1] ss:$0 sm:$0xff] }
0x371a   : > { %v8273_v16 = vadd.f32 1e-12, %v8272_v15  ;;  %v15385_v15 = vld [vmem:[%s21311_s0 + $0x1] ss:$0 sm:$0xff] }
0x371c   : > { %18350 = vrsqrt.f32 %v8273_v16 }
0x3726   : > { %v18351_v17 = vpop.eup %18350 }
0x3727   : > { %v8275_v19 = vmul.f32 %v18351_v17, %v8267_v5  ;;  %v15381_v5 = vld [vmem:[%s21310_s15 + $0x28] sm:$0xff] }
0x3728   : > { %v17716_v55 = vpack.c.bf16 %v15381_v5, %v15380_v4 }
0x3729   : > { %v8282_v23 = vmul.f32 %v15367_v18, %v8275_v19 }
0x372b   : > { %v20610_v39 = vadd.f32 %v15368_v22, %v8282_v23 }
0x372d   : > { %16801 = vmatmul.mubr.msk.f32.vlgmr.msra.gmra.mrb[74].mxu0 %vm1946_vm1, %v20610_v39 }
0x372e   : > { %17705 = vmatpush3.bf16.msra.mxu0 %v17704_v24  ;;  %16822 = vmatprep.mubr.msk.f32.mxu0 %vm19347_vm0, %v19348_v1 }
0x372f   : > { %17706 = vmatprep.subr.bf16.mxu0 %v19346_v0 }
0x3732   : > { %17708 = vmatpush3.bf16.msra.mxu0 %v17707_v26 }
0x3733   : > { %17709 = vmatprep.subr.bf16.mxu0 %v19346_v0 }
0x3735   : > { %16823 = vmatmul.mubr.msk.f32.vlgmr.msra.gmra.mrb[76].mxu0 %vm1946_vm1, %v20590_v51 }
0x3736   : > { %17711 = vmatpush3.bf16.msra.mxu0 %v17710_v28  ;;  %16843 = vmatprep.mubr.msk.f32.mxu0 %vm19347_vm0, %v19348_v1 }
0x3737   : > { %17712 = vmatprep.subr.bf16.mxu0 %v19346_v0 }
0x373a   : > { %17714 = vmatpush3.bf16.msra.mxu0 %v17713_v32 }
0x373b   : > { %17721 = vmatprep.subr.bf16.mxu0 %v19346_v0 }
0x373d   : > { %16844 = vmatmul.mubr.msk.f32.vlgmr.msra.gmra.mrb[78].mxu0 %vm1946_vm1, %v20610_v39 }
0x373e   : > { %17723 = vmatpush3.bf16.msra.mxu0 %v17722_v35  ;;  %16865 = vmatprep.mubr.msk.f32.mxu0 %vm19347_vm0, %v19348_v1  ;;  %v8700_v35 = vld [vmem:[#allocation36] sm:$0xff] }
0x373f   : > { %17724 = vmatprep.subr.bf16.mxu0 %v19346_v0 }
0x3742   : > { %17726 = vmatpush3.bf16.msra.mxu0 %v17725_v38  ;;  %v17734_v38 = vpack.c.bf16 %v15402_v37, %v15401_v36  ;;  %v15430_v37 = vld [vmem:[%s21313_s23 + $0x70] sm:$0xff] }
0x3743   : > { %16878 = vmatprep.subr.mxu0 %v19348_v1 }
0x3745   : > { %16866 = vmatmul.mubr.msk.f32.vlgmr.msra.gmra.mrb[80].mxu0 %vm1946_vm1, %v20590_v51 }
0x3746   : > { %16880 = vmatprep.mubr.msk.f32.mxu0 %vm19347_vm0, %v19348_v1  ;;  %16879 = vmatpush3.msra.mxu0 %v9112_v31  ;;  %v9748_v31 = vld [vmem:[#allocation33 + $0x70] sm:$0xff] }
0x3747   : > { %17727 = vmatprep.subr.bf16.mxu0 %v19346_v0 }
0x3800   : > { %v8370_v42 = vpop.f32.mrb[74].mxu0 }
0x3801   : > { %v8371_v43 = vadd.f32 %v15369_v40, %v8370_v42  ;;  %v16802_v44 = vpop.f32.mrb[75].mxu0  ;;  %v15403_v40 = vld [vmem:[%s21310_s15 + $0x50] sm:$0xff]  ;;  %v15404_v42 = vld [vmem:[%s21310_s15 + $0x58] sm:$0xff] }
0x3802   : > { %v9260_v44 = vld [vmem:[#allocation33 + $0x40] sm:$0xff] }
0x3803   : > { %v8539_v45 = vmul.f32 0.35355338, %v8371_v43  ;;  %v17737_v43 = vpack.c.bf16 %v15404_v42, %v15403_v40  ;;  %v15421_v42 = vld [vmem:[%s21310_s15 + $0x60] sm:$0xff] }
0x3805   : > { %16828 = vmatmul.mubr.msk.f32.vlgmr.msra.gmra.mrb[80].mxu1 %vm2183_vm2, %v8539_v45  ;;  %v9261_v45 = vld [vmem:[#allocation33 + $0x48] sm:$0xff] }
0x3806   : > { %16832 = vmatprep.mubr.msk.f32.mxu1 %vm19347_vm0, %v19348_v1 }
0x3808   : > { %v8535_v33 = vpop.f32.mrb[76].mxu0 }
0x3809   : > { %v8536_v46 = vadd.f32 %v15373_v30, %v8535_v33  ;;  %v16824_v47 = vpop.f32.mrb[77].mxu0  ;;  %v17728_v30 = vpack.c.bf16 %v9261_v45, %v9260_v44  ;;  %v9262_v33 = vld [vmem:[#allocation33 + $0x50] sm:$0xff]  ;;  %v15423_v45 = vld [vmem:[%s21310_s15 + $0x70] sm:$0xff] }
0x380b   : > { %16831 = vmatpush3.msra.mxu1 %v8536_v46  ;;  %v9263_v46 = vld [vmem:[#allocation33 + $0x58] sm:$0xff] }
0x380c   : > { %17715 = vmatprep.subr.bf16.mxu1 %v19346_v0 }
0x3810   : > { %v8780_v48 = vpop.f32.mrb[78].mxu0 }
0x3811   : > { %v16845_v49 = vpop.f32.mrb[79].mxu0  ;;  %v8781_v16 = vadd.f32 %v15378_v13, %v8780_v48 }
0x3812   : > { %v17731_v49 = vpack.c.bf16 %v9263_v46, %v9262_v33 }
0x3813   : > { %v8950_v21 = vmul.f32 0.35355338, %v8781_v16 }
0x3818   : > { %v8946_v50 = vpop.f32.mrb[80].mxu0 }
0x3819   : > { %v16867_v52 = vpop.f32.mrb[81].mxu0  ;;  %v8947_v22 = vadd.f32 %v15392_v20, %v8946_v50  ;;  %v15408_v50 = vld [vmem:[%s21313_s23 + $0x40] sm:$0xff] }
0x381a   : > { %v15409_v52 = vld [vmem:[%s21313_s23 + $0x48] sm:$0xff] }
0x38d8   : > { %v8612_v54 = vpop.f32.mrb[80].mxu1 }
0x38d9   : > { %v8613_v56 = vadd.f32 %v8612_v54, %v20650_v53  ;;  %v16829_v57 = vpop.f32.mrb[81].mxu1 }
0x38da   : > { %v17740_v57 = vpack.c.bf16 %v15409_v52, %v15408_v50 }
0x38db   : > { %v8616_v58 = vsel %vm2183_vm2, %v8613_v56, -inf }
0x38dc   : > { %8617 = vmax.xlane.f32.xlu0 %v8616_v58  ;;  %v15410_v58 = vld [vmem:[%s21313_s23 + $0x50] sm:$0xff] }
0x3969   : > { %v8618_v59 = vpop.xlane.xlu0 %8617 }
0x396a   : > { %v8619_v60 = vsub.f32 %v8613_v56, %v8618_v59  ;;  %v15411_v59 = vld [vmem:[%s21313_s23 + $0x58] sm:$0xff] }
0x396c   : > { %v8620_v61 = vmul.f32 1.442695, %v8619_v60  ;;  %v15406_v60 = vld [vmem:[%s21311_s0 + $0x2] ss:$0 sm:$0xff] }
0x396e   : > { %18352 = vpow2.f32 %v8620_v61  ;;  %v17743_v61 = vpack.c.bf16 %v15411_v59, %v15410_v58  ;;  %v15419_v58 = vld [vmem:[#allocation34 + $0x3] ss:$0 sm:$0xff]  ;;  %v15426_v59 = vld [vmem:[%s21311_s0 + $0x3] ss:$0 sm:$0xff] }
0x3978   : > { %v18353_v62 = vpop.eup %18352 }
0x3979   : > { %v8622_v63 = vsel %vm2183_vm2, %v18353_v62, 0.0 }
0x397a   : > { %8623 = vadd.xlane.f32.xlu1 %v8622_v63 }
0x3a07   : > { %v8624_v2 = vpop.xlane.xlu1 %8623 }
0x3a08   : > { %18354 = vrcp.f32 %v8624_v2 }
0x3a12   : > { %v18355_v6 = vpop.eup %18354 }
0x3a13   : > { %v8626_v9 = vmul.f32 %v18355_v6, %v18353_v62 }
0x3a15   : > { %16833 = vmatmul.mubr.msk.f32.vlgmr.msra.gmra.mrb[82].mxu1 %vm2183_vm2, %v8626_v9 }
0x3a16   : > { %17717 = vmatpush3.bf16.msra.mxu1 %v17716_v55  ;;  %16854 = vmatprep.mubr.msk.f32.mxu1 %vm19347_vm0, %v19348_v1  ;;  %v15399_v55 = vld [vmem:[#allocation34 + $0x2] ss:$0 sm:$0xff] }
0x3a17   : > { %17718 = vmatprep.subr.bf16.mxu1 %v19346_v0 }
0x3a1a   : > { %17720 = vmatpush3.bf16.msra.mxu1 %v17719_v10 }
0x3a1b   : > { %16868 = vmatprep.subr.mxu1 %v19348_v1 }
0x3a1d   : > { %16855 = vmatmul.mubr.msk.f32.vlgmr.msra.gmra.mrb[84].mxu1 %vm1946_vm1, %v20590_v51 }
0x3a1e   : > { %16870 = vmatprep.mubr.msk.f32.mxu1 %vm19347_vm0, %v19348_v1 }
0x3ae8   : > { %v8696_v11 = vpop.f32.mrb[82].mxu1 }
0x3ae9   : > { %v16834_v12 = vpop.f32.mrb[83].mxu1 }
0x3af0   : > { %v8863_v17 = vpop.f32.mrb[84].mxu1 }
0x3af1   : > { %v8864_v18 = vadd.f32 %v15385_v15, %v8863_v17  ;;  %v16856_v19 = vpop.f32.mrb[85].mxu1 }
0x3af3   : > { %16869 = vmatpush3.xpose.msk.msra.mxu1 %vm2183_vm2, %v8864_v18 }
0x3af4   : > { %16873 = vmatprep.subr.mxu1 %v19348_v1 }
0x3af6   : > { %16871 = vmatmul.mubr.msk.f32.vlgmr.msra.gmra.mrb[86].mxu1 %vm2183_vm2, %v8950_v21 }
0x3af7   : > { %16874 = vmatpush3.msra.mxu1 %v8947_v22  ;;  %16875 = vmatprep.mubr.msk.f32.mxu1 %vm19347_vm0, %v19348_v1 }
0x3af8   : > { %16883 = vmatprep.subr.mxu1 %v19348_v1 }
0x3bc9   : > { %v9023_v23 = vpop.f32.mrb[86].mxu1 }
0x3bca   : > { %v9024_v24 = vadd.f32 %v9023_v23, %v20650_v53  ;;  %v16872_v25 = vpop.f32.mrb[87].mxu1 }
0x3bcb   : > { %v9670_v25 = vld [vmem:[#allocation36 + $0x10] sm:$0xff] }
0x3bcc   : > { %v9027_v41 = vsel %vm2183_vm2, %v9024_v24, -inf }
0x3bcd   : > { %9028 = vmax.xlane.f32.xlu0 %v9027_v41 }
0x3c5a   : > { %v9029_v26 = vpop.xlane.xlu0 %9028 }
0x3c5b   : > { %v9030_v3 = vsub.f32 %v9024_v24, %v9029_v26  ;;  %v9746_v26 = vld [vmem:[#allocation33 + $0x60] sm:$0xff] }
0x3c5d   : > { %v9031_v27 = vmul.f32 1.442695, %v9030_v3  ;;  %v9747_v3 = vld [vmem:[#allocation33 + $0x68] sm:$0xff] }
0x3c5f   : > { %18356 = vpow2.f32 %v9031_v27 }
0x3c69   : > { %v18357_v28 = vpop.eup %18356 }
0x3c6a   : > { %v9033_v29 = vsel %vm2183_vm2, %v18357_v28, 0.0 }
0x3c6b   : > { %9034 = vadd.xlane.f32.xlu1 %v9033_v29 }
0x3cf8   : > { %v9035_v32 = vpop.xlane.xlu1 %9034 }
0x3cf9   : > { %18358 = vrcp.f32 %v9035_v32  ;;  %v9749_v32 = vld [vmem:[#allocation33 + $0x78] sm:$0xff] }
0x3d03   : > { %v18359_v14 = vpop.eup %18358 }
0x3d04   : > { %v9037_v34 = vmul.f32 %v18359_v14, %v18357_v28  ;;  %v17746_v28 = vpack.c.bf16 %v9747_v3, %v9746_v26  ;;  %v17749_v14 = vpack.c.bf16 %v9749_v32, %v9748_v31  ;;  %v10269_v31 = vld [vmem:[#allocation39] sm:$0xff]  ;;  %v10270_v32 = vld [vmem:[#allocation39 + $0x8] sm:$0xff] }
0x3d06   : > { %16876 = vmatmul.mubr.msk.f32.vlgmr.msra.gmra.mrb[88].mxu1 %vm2183_vm2, %v9037_v34  ;;  %v15428_v34 = vld [vmem:[%s21313_s23 + $0x60] sm:$0xff] }
0x3d07   : > { %16884 = vmatpush3.msra.mxu1 %v8700_v35  ;;  %16885 = vmatprep.mubr.msk.f32.mxu1 %vm19347_vm0, %v19348_v1  ;;  %v15429_v35 = vld [vmem:[%s21313_s23 + $0x68] sm:$0xff] }
0x3d08   : > { %17733 = vmatprep.subr.bf16.mxu1 %v19346_v0  ;;  %v17758_v36 = vpack.c.bf16 %v15429_v35, %v15428_v34  ;;  %v10271_v34 = vld [vmem:[#allocation39 + $0x10] sm:$0xff]  ;;  %v10272_v35 = vld [vmem:[#allocation39 + $0x18] sm:$0xff] }
0x3d0a   : > { %16886 = vmatmul.mubr.msk.f32.vlgmr.msra.gmra.mrb[90].mxu1 %vm2183_vm2, %v8696_v11  ;;  %v15413_v11 = vld [vmem:[%s21315_s6 + $0x2] ss:$0 sm:$0xff] }
0x3d0b   : > { %17735 = vmatpush3.bf16.msra.mxu1 %v17734_v38  ;;  %16907 = vmatprep.mubr.msk.f32.mxu1 %vm19347_vm0, %v19348_v1  ;;  %v15431_v38 = vld [vmem:[%s21313_s23 + $0x78] sm:$0xff] }
0x3d0c   : > { %17736 = vmatprep.subr.bf16.mxu1 %v19346_v0  ;;  %v17761_v40 = vpack.c.bf16 %v15431_v38, %v15430_v37  ;;  %v10355_v37 = vld [vmem:[#allocation42 + $0x8] sm:$0xff]  ;;  %v10356_v38 = vld [vmem:[#allocation42 + $0x10] sm:$0xff] }
0x3d0f   : > { %17738 = vmatpush3.bf16.msra.mxu1 %v17737_v43  ;;  %v15422_v43 = vld [vmem:[%s21310_s15 + $0x68] sm:$0xff] }
0x3d10   : > { %16921 = vmatprep.subr.mxu1 %v19348_v1  ;;  %v17752_v44 = vpack.c.bf16 %v15422_v43, %v15421_v42  ;;  %v10357_v42 = vld [vmem:[#allocation42 + $0x18] sm:$0xff] }
0x3d11   : > { %v17773_v43 = vpack.c.bf16 %v10357_v42, %v10356_v38 }
0x3d12   : > { %16908 = vmatmul.mubr.msk.f32.vlgmr.msra.gmra.mrb[92].mxu1 %vm1946_vm1, %v20590_v51 }
0x3d13   : > { %16923 = vmatprep.mubr.msk.f32.mxu1 %vm19347_vm0, %v19348_v1 }
0x3dd9   : > { %v9107_v47 = vpop.f32.mrb[88].mxu1 }
0x3dda   : > { %v16877_v48 = vpop.f32.mrb[89].mxu1  ;;  %16881 = vmatmul.mubr.msk.f32.vlgmr.msra.gmra.mrb[82].mxu0 %vm2183_vm2, %v9107_v47 }
0x3ddb   : > { %17729 = vmatpush3.bf16.msra.mxu0 %v17728_v30  ;;  %16896 = vmatprep.mubr.msk.f32.mxu0 %vm19347_vm0, %v19348_v1  ;;  %v15424_v30 = vld [vmem:[%s21310_s15 + $0x78] sm:$0xff] }
0x3ddc   : > { %17730 = vmatprep.subr.bf16.mxu0 %v19346_v0  ;;  %v17755_v47 = vpack.c.bf16 %v15424_v30, %v15423_v45  ;;  %v10359_v45 = vld [vmem:[#allocation42 + $0x28] sm:$0xff] }
0x3ddd   : > { %v9255_v54 = vpop.f32.mrb[90].mxu1 }
0x3dde   : > { %v16887_v56 = vpop.f32.mrb[91].mxu1 }
0x3ddf   : > { %17732 = vmatpush3.bf16.msra.mxu0 %v17731_v49 }
0x3de0   : > { %17739 = vmatprep.subr.bf16.mxu0 %v19346_v0 }
0x3de2   : > { %16897 = vmatmul.mubr.msk.f32.vlgmr.msra.gmra.mrb[84].mxu0 %vm1946_vm1, %v20610_v39 }
0x3de3   : > { %17741 = vmatpush3.bf16.msra.mxu0 %v17740_v57  ;;  %16918 = vmatprep.mubr.msk.f32.mxu0 %vm19347_vm0, %v19348_v1 }
0x3de4   : > { %17742 = vmatprep.subr.bf16.mxu0 %v19346_v0 }
0x3de5   : > { %v9421_v62 = vpop.f32.mrb[92].mxu1 }
0x3de6   : > { %v9422_v63 = vadd.f32 %v15406_v60, %v9421_v62  ;;  %v16909_v2 = vpop.f32.mrb[93].mxu1 }
0x3de7   : > { %17744 = vmatpush3.bf16.msra.mxu0 %v17743_v61  ;;  %v15433_v2 = vld [vmem:[%s21315_s6 + $0x3] ss:$0 sm:$0xff] }
0x3de8   : > { %16922 = vmatpush3.xpose.msk.msra.mxu1 %vm2183_vm2, %v9422_v63  ;;  %16931 = vmatprep.subr.mxu0 %v19348_v1 }
0x3de9   : > { %16926 = vmatprep.subr.mxu1 %v19348_v1 }
0x3dea   : > { %16919 = vmatmul.mubr.msk.f32.vlgmr.msra.gmra.mrb[86].mxu0 %vm1946_vm1, %v20590_v51 }
0x3deb   : > { %16933 = vmatprep.mubr.msk.f32.mxu0 %vm19347_vm0, %v19348_v1  ;;  %16932 = vmatpush3.msra.mxu0 %v9670_v25 }
0x3dec   : > { %17751 = vmatprep.subr.bf16.mxu0 %v19346_v0 }
0x3ead   : > { %v9182_v4 = vpop.f32.mrb[82].mxu0 }
0x3eae   : > { %v20719_v5 = vadd.f32 %v9255_v54, %v9182_v4  ;;  %v16882_v6 = vpop.f32.mrb[83].mxu0 }
0x3eb5   : > { %v9338_v9 = vpop.f32.mrb[84].mxu0 }
0x3eb6   : > { %v9339_v7 = vadd.f32 %v15399_v55, %v9338_v9  ;;  %v16898_v8 = vpop.f32.mrb[85].mxu0 }
0x3eb8   : > { %v9508_v10 = vmul.f32 0.35355338, %v9339_v7 }
0x3eba   : > { %16924 = vmatmul.mubr.msk.f32.vlgmr.msra.gmra.mrb[94].mxu1 %vm2183_vm2, %v9508_v10 }
0x3ebb   : > { %16928 = vmatprep.mubr.msk.f32.mxu1 %vm19347_vm0, %v19348_v1 }
0x3ebd   : > { %v9504_v12 = vpop.f32.mrb[86].mxu0 }
0x3ebe   : > { %v9505_v13 = vadd.f32 %v15413_v11, %v9504_v12  ;;  %v16920_v15 = vpop.f32.mrb[87].mxu0 }
0x3ebf   : > { %v10156_v15 = vld [vmem:[#allocation36 + $0x18] sm:$0xff] }
0x3ec0   : > { %16927 = vmatpush3.msra.mxu1 %v9505_v13 }
0x3ec1   : > { %17745 = vmatprep.subr.bf16.mxu1 %v19346_v0 }
0x3f8d   : > { %v9581_v16 = vpop.f32.mrb[94].mxu1 }
0x3f8e   : > { %v9582_v17 = vadd.f32 %v9581_v16, %v20650_v53  ;;  %v16925_v18 = vpop.f32.mrb[95].mxu1 }
0x3f90   : > { %v9585_v19 = vsel %vm2183_vm2, %v9582_v17, -inf }
0x3f91   : > { %9586 = vmax.xlane.f32.xlu0 %v9585_v19 }
0x401e   : > { %v9587_v20 = vpop.xlane.xlu0 %9586 }
0x401f   : > { %v9588_v21 = vsub.f32 %v9582_v17, %v9587_v20 }
0x4021   : > { %v9589_v22 = vmul.f32 1.442695, %v9588_v21  ;;  %v15439_v21 = vld [vmem:[#allocation37] ss:$0 sm:$0xff] }
0x4023   : > { %18360 = vpow2.f32 %v9589_v22 }
0x402d   : > { %v18361_v23 = vpop.eup %18360 }
0x402e   : > { %v9591_v24 = vsel %vm2183_vm2, %v18361_v23, 0.0 }
0x402f   : > { %9592 = vadd.xlane.f32.xlu1 %v9591_v24 }
0x40bc   : > { %v9593_v41 = vpop.xlane.xlu1 %9592 }
0x40bd   : > { %18362 = vrcp.f32 %v9593_v41 }
0x40c7   : > { %v18363_v27 = vpop.eup %18362 }
0x40c8   : > { %v9595_v29 = vmul.f32 %v18363_v27, %v18361_v23 }
0x40ca   : > { %16929 = vmatmul.mubr.msk.f32.vlgmr.msra.gmra.mrb[96].mxu1 %vm2183_vm2, %v9595_v29 }
0x40cb   : > { %17747 = vmatpush3.bf16.msra.mxu1 %v17746_v28  ;;  %16944 = vmatprep.mubr.msk.f32.mxu1 %vm19347_vm0, %v19348_v1 }
0x40cc   : > { %17748 = vmatprep.subr.bf16.mxu1 %v19346_v0 }
0x40cf   : > { %17750 = vmatpush3.bf16.msra.mxu1 %v17749_v14  ;;  %v17764_v14 = vpack.c.bf16 %v10270_v32, %v10269_v31  ;;  %v10559_v31 = vld [vmem:[#allocation24 + $0x80] sm:$0xff]  ;;  %v10560_v32 = vld [vmem:[#allocation24 + $0x88] sm:$0xff] }
0x40d0   : > { %17757 = vmatprep.subr.bf16.mxu1 %v19346_v0 }
0x40d2   : > { %16945 = vmatmul.mubr.msk.f32.vlgmr.msra.gmra.mrb[98].mxu1 %vm1946_vm1, %v20610_v39 }
0x40d3   : > { %17759 = vmatpush3.bf16.msra.mxu1 %v17758_v36  ;;  %16966 = vmatprep.mubr.msk.f32.mxu1 %vm19347_vm0, %v19348_v1  ;;  %v17767_v36 = vpack.c.bf16 %v10272_v35, %v10271_v34  ;;  %v17788_v35 = vpack.c.bf16 %v10560_v32, %v10559_v31 }
0x40d4   : > { %17760 = vmatprep.subr.bf16.mxu1 %v19346_v0 }
0x40d7   : > { %17762 = vmatpush3.bf16.msra.mxu1 %v17761_v40 }
0x40d8   : > { %16979 = vmatprep.subr.mxu1 %v19348_v1 }
0x40da   : > { %16967 = vmatmul.mubr.msk.f32.vlgmr.msra.gmra.mrb[100].mxu1 %vm1946_vm1, %v20590_v51 }
0x40db   : > { %16981 = vmatprep.mubr.msk.f32.mxu1 %vm19347_vm0, %v19348_v1  ;;  %16980 = vmatpush3.msra.mxu1 %v10156_v15  ;;  %v10473_v15 = vld [vmem:[#allocation21 + $0x80] sm:$0xff] }
0x40dc   : > { %17769 = vmatprep.subr.bf16.mxu1 %v19346_v0 }
0x419d   : > { %v9665_v33 = vpop.f32.mrb[96].mxu1 }
0x419e   : > { %v16930_v46 = vpop.f32.mrb[97].mxu1  ;;  %16934 = vmatmul.mubr.msk.f32.vlgmr.msra.gmra.mrb[88].mxu0 %vm2183_vm2, %v9665_v33 }
0x419f   : > { %17753 = vmatpush3.bf16.msra.mxu0 %v17752_v44  ;;  %16955 = vmatprep.mubr.msk.f32.mxu0 %vm19347_vm0, %v19348_v1  ;;  %v10358_v44 = vld [vmem:[#allocation42 + $0x20] sm:$0xff] }
0x41a0   : > { %17754 = vmatprep.subr.bf16.mxu0 %v19346_v0  ;;  %v17776_v30 = vpack.c.bf16 %v10359_v45, %v10358_v44 }
0x41a3   : > { %17756 = vmatpush3.bf16.msra.mxu0 %v17755_v47 }
0x41a4   : > { %16969 = vmatprep.subr.mxu0 %v19348_v1 }
0x41a5   : > { %v9824_v48 = vpop.f32.mrb[98].mxu1 }
0x41a6   : > { %v16946_v49 = vpop.f32.mrb[99].mxu1  ;;  %16956 = vmatmul.mubr.msk.f32.vlgmr.msra.gmra.mrb[90].mxu0 %vm1946_vm1, %v20590_v51  ;;  %v9825_v60 = vadd.f32 %v15419_v58, %v9824_v48  ;;  %v10361_v58 = vld [vmem:[#allocation42 + $0x38] sm:$0xff] }
0x41a7   : > { %16971 = vmatprep.mubr.msk.f32.mxu0 %vm19347_vm0, %v19348_v1  ;;  %v15440_v49 = vld [vmem:[%s21317_s9] ss:$0 sm:$0xff] }
0x41a8   : > { %v9994_v4 = vmul.f32 0.35355338, %v9825_v60  ;;  %v15442_v60 = vld [vmem:[#allocation40] ss:$0 sm:$0xff] }
0x41ad   : > { %v9990_v50 = vpop.f32.mrb[100].mxu1 }
0x41ae   : > { %v16968_v52 = vpop.f32.mrb[101].mxu1  ;;  %v9991_v6 = vadd.f32 %v15433_v2, %v9990_v50 }
0x41af   : > { %v15441_v52 = vld [vmem:[%s21318_s2] ss:$0 sm:$0xff] }
0x4271   : > { %v9740_v54 = vpop.f32.mrb[88].mxu0 }
0x4272   : > { %v9744_v56 = vadd.f32 %v9740_v54, %v20719_v5  ;;  %v16935_v57 = vpop.f32.mrb[89].mxu0 }
0x4273   : > { %v10360_v57 = vld [vmem:[#allocation42 + $0x30] sm:$0xff] }
0x4279   : > { %v9907_v61 = vpop.f32.mrb[90].mxu0 }
0x427a   : > { %v9908_v62 = vadd.f32 %v15426_v59, %v9907_v61  ;;  %v16957_v63 = vpop.f32.mrb[91].mxu0  ;;  %v17779_v59 = vpack.c.bf16 %v10361_v58, %v10360_v57  ;;  %v10890_v58 = vld [vmem:[#allocation21 + $0xb0] sm:$0xff] }
0x427c   : > { %16970 = vmatpush3.xpose.msk.msra.mxu0 %vm2183_vm2, %v9908_v62 }
0x427d   : > { %16974 = vmatprep.subr.mxu0 %v19348_v1 }
0x427f   : > { %16972 = vmatmul.mubr.msk.f32.vlgmr.msra.gmra.mrb[92].mxu0 %vm2183_vm2, %v9994_v4  ;;  %v15444_v4 = vld [vmem:[%s21319_s4] ss:$0 sm:$0xff] }
0x4280   : > { %16975 = vmatpush3.msra.mxu0 %v9991_v6  ;;  %16976 = vmatprep.mubr.msk.f32.mxu0 %vm19347_vm0, %v19348_v1 }
0x4281   : > { %17763 = vmatprep.subr.bf16.mxu0 %v19346_v0 }
0x4352   : > { %v10067_v5 = vpop.f32.mrb[92].mxu0 }
0x4353   : > { %v10068_v55 = vadd.f32 %v10067_v5, %v20650_v53  ;;  %v16973_v9 = vpop.f32.mrb[93].mxu0 }
0x4355   : > { %v10071_v7 = vsel %vm2183_vm2, %v10068_v55, -inf }
0x4356   : > { %10072 = vmax.xlane.f32.xlu0 %v10071_v7 }
0x43e3   : > { %v10073_v8 = vpop.xlane.xlu0 %10072 }
0x43e4   : > { %v10074_v10 = vsub.f32 %v10068_v55, %v10073_v8 }
0x43e6   : > { %v10075_v11 = vmul.f32 1.442695, %v10074_v10 }
0x43e8   : > { %18364 = vpow2.f32 %v10075_v11 }
0x43f2   : > { %v18365_v12 = vpop.eup %18364 }
0x43f3   : > { %v10077_v13 = vsel %vm2183_vm2, %v18365_v12, 0.0 }
0x43f4   : > { %10078 = vadd.xlane.f32.xlu1 %v10077_v13 }
0x4481   : > { %v10079_v16 = vpop.xlane.xlu1 %10078 }
0x4482   : > { %18366 = vrcp.f32 %v10079_v16  ;;  %v10474_v16 = vld [vmem:[#allocation21 + $0x88] sm:$0xff] }
0x448c   : > { %v18367_v17 = vpop.eup %18366 }
0x448d   : > { %v10081_v53 = vmul.f32 %v18367_v17, %v18365_v12  ;;  %v17782_v17 = vpack.c.bf16 %v10474_v16, %v10473_v15 }
0x448f   : > { %16977 = vmatmul.mubr.msk.f32.vlgmr.msra.gmra.mrb[94].mxu0 %vm2183_vm2, %v10081_v53  ;;  %v10642_v53 = vld [vmem:[#allocation27 + $0x80] sm:$0xff] }
0x4490   : > { %16992 = vmatprep.mubr.msk.f32.mxu0 %vm19347_vm0, %v19348_v1  ;;  %17765 = vmatpush3.bf16.msra.mxu0 %v17764_v14  ;;  %v15447_v14 = vld [vmem:[%s19587_s3] ss:$0 sm:$0xff] }
0x4491   : > { %17766 = vmatprep.subr.bf16.mxu0 %v19346_v0 }
0x4494   : > { %17768 = vmatpush3.bf16.msra.mxu0 %v17767_v36 }
0x4495   : > { %17781 = vmatprep.subr.bf16.mxu0 %v19346_v0 }
0x4562   : > { %v10151_v18 = vpop.f32.mrb[94].mxu0 }
0x4563   : > { %v16978_v19 = vpop.f32.mrb[95].mxu0  ;;  %16982 = vmatmul.mubr.msk.f32.vlgmr.msra.gmra.mrb[102].mxu1 %vm2183_vm2, %v10151_v18  ;;  %v10643_v18 = vld [vmem:[#allocation27 + $0x88] sm:$0xff] }
0x4564   : > { %17011 = vmatprep.mubr.msk.f32.mxu1 %vm19347_vm0, %v19348_v1  ;;  %v17794_v19 = vpack.c.bf16 %v10643_v18, %v10642_v53 }
0x4636   : > { %v10226_v20 = vpop.f32.mrb[102].mxu1 }
0x4637   : > { %v10230_v22 = vadd.f32 %v10226_v20, %v9744_v56  ;;  %v16983_v23 = vpop.f32.mrb[103].mxu1  ;;  %v10475_v20 = vld [vmem:[#allocation21 + $0x90] sm:$0xff] }
0x4638   : > { %v10644_v23 = vld [vmem:[#allocation27 + $0x90] sm:$0xff] }
0x4639   : > { %v10238_v24 = vadd.f32 %v15439_v21, %v10230_v22  ;;  %v10476_v21 = vld [vmem:[#allocation21 + $0x98] sm:$0xff] }
0x463a   : > { %v17785_v22 = vpack.c.bf16 %v10476_v21, %v10475_v20  ;;  %v10971_v20 = vld [vmem:[#allocation24 + $0xa0] sm:$0xff]  ;;  %v10972_v21 = vld [vmem:[#allocation24 + $0xa8] sm:$0xff] }
0x463b   : > { %v10239_v25 = vadd.f32 %v10238_v24, %v20610_v39  ;;  %v10354_v39 = vld [vmem:[#allocation42] sm:$0xff] }
0x463c   : > { %v17770_v40 = vpack.c.bf16 %v10355_v37, %v10354_v39  ;;  %v10645_v24 = vld [vmem:[#allocation27 + $0x98] sm:$0xff]  ;;  %v10561_v39 = vld [vmem:[#allocation24 + $0x90] sm:$0xff]  ;;  %v10562_v37 = vld [vmem:[#allocation24 + $0x98] sm:$0xff] }
0x463d   : > { %v10242_v41 = vsel %vm1946_vm1, %v10239_v25, 0.0  ;;  %v17791_v38 = vpack.c.bf16 %v10562_v37, %v10561_v39 }
0x463e   : > { %10243 = vadd.xlane.f32.xlu0 %v10242_v41  ;;  %17771 = vmatpush3.bf16.msra.mxu1 %v17770_v40  ;;  %v15452_v40 = vld [vmem:[#allocation28 + $0x4] ss:$0 sm:$0xff] }
0x463f   : > { %17772 = vmatprep.subr.bf16.mxu1 %v19346_v0 }
0x4642   : > { %17774 = vmatpush3.bf16.msra.mxu1 %v17773_v43 }
0x4643   : > { %17775 = vmatprep.subr.bf16.mxu1 %v19346_v0 }
0x4646   : > { %17777 = vmatpush3.bf16.msra.mxu1 %v17776_v30 }
0x4647   : > { %17778 = vmatprep.subr.bf16.mxu1 %v19346_v0 }
0x464a   : > { %17780 = vmatpush3.bf16.msra.mxu1 %v17779_v59  ;;  %v10891_v59 = vld [vmem:[#allocation21 + $0xb8] sm:$0xff] }
0x464b   : > { %17793 = vmatprep.subr.bf16.mxu1 %v19346_v0 }
0x46cb   : > { %v10244_v26 = vpop.xlane.xlu0 %10243 }
0x46cc   : > { %v10245_v3 = vmul.f32 0.03125, %v10244_v26 }
0x46ce   : > { %v10246_v27 = vsub.f32 %v10239_v25, %v10245_v3  ;;  %v17797_v25 = vpack.c.bf16 %v10645_v24, %v10644_v23  ;;  %v17806_v23 = vpack.c.bf16 %v10972_v21, %v10971_v20 }
0x46d0   : > { %v10247_v28 = vmul.f32 %v10246_v27, %v10246_v27 }
0x46d2   : > { %v10248_v29 = vsel %vm1946_vm1, %v10247_v28, 0.0  ;;  %v15446_v28 = vld [vmem:[%s21320_s5] ss:$0 sm:$0xff] }
0x46d3   : > { %10249 = vadd.xlane.f32.xlu1 %v10248_v29 }
0x4760   : > { %v10250_v33 = vpop.xlane.xlu1 %10249 }
0x4761   : > { %v10251_v46 = vmul.f32 0.03125, %v10250_v33  ;;  %v15448_v33 = vld [vmem:[#allocation22 + $0x4] ss:$0 sm:$0xff] }
0x4763   : > { %v10252_v47 = vadd.f32 1e-12, %v10251_v46  ;;  %v15450_v46 = vld [vmem:[#allocation25 + $0x4] ss:$0 sm:$0xff] }
0x4765   : > { %18368 = vrsqrt.f32 %v10252_v47 }
0x476f   : > { %v18369_v48 = vpop.eup %18368 }
0x4770   : > { %v10254_v50 = vmul.f32 %v18369_v48, %v10246_v27 }
0x4772   : > { %v10261_v54 = vmul.f32 %v15440_v49, %v10254_v50  ;;  %v10888_v49 = vld [vmem:[#allocation21 + $0xa0] sm:$0xff]  ;;  %v10889_v50 = vld [vmem:[#allocation21 + $0xa8] sm:$0xff] }
0x4774   : > { %v10268_v56 = vadd.f32 %v15441_v52, %v10261_v54 }
0x4776   : > { %16993 = vmatmul.mubr.msk.f32.vlgmr.msra.gmra.mrb[96].mxu0 %vm1946_vm1, %v10268_v56 }
0x4777   : > { %17022 = vmatprep.mubr.msk.f32.mxu0 %vm19347_vm0, %v19348_v1  ;;  %17783 = vmatpush3.bf16.msra.mxu0 %v17782_v17 }
0x4778   : > { %17784 = vmatprep.subr.bf16.mxu0 %v19346_v0 }
0x477b   : > { %17786 = vmatpush3.bf16.msra.mxu0 %v17785_v22 }
0x477c   : > { %17787 = vmatprep.subr.bf16.mxu0 %v19346_v0 }
0x4849   : > { %v10349_v61 = vpop.f32.mrb[96].mxu0 }
0x484a   : > { %v10350_v62 = vadd.f32 %v15442_v60, %v10349_v61  ;;  %v16994_v63 = vpop.f32.mrb[97].mxu0  ;;  %v17803_v60 = vpack.c.bf16 %v10891_v59, %v10890_v58  ;;  %v11054_v61 = vld [vmem:[#allocation27 + $0xa0] sm:$0xff]  ;;  %v11531_v58 = vld [vmem:[#allocation24 + $0xd0] sm:$0xff]  ;;  %v11532_v59 = vld [vmem:[#allocation24 + $0xd8] sm:$0xff] }
0x484c   : > { %v10353_v2 = vmax.f32 %v10350_v62, 0.0  ;;  %v11055_v62 = vld [vmem:[#allocation27 + $0xa8] sm:$0xff] }
0x484d   : > { %v17812_v63 = vpack.c.bf16 %v11055_v62, %v11054_v61  ;;  %v11446_v61 = vld [vmem:[#allocation21 + $0xc0] sm:$0xff]  ;;  %v11447_v62 = vld [vmem:[#allocation21 + $0xc8] sm:$0xff] }
0x484e   : > { %17012 = vmatmul.mubr.msk.f32.vlgmr.msra.gmra.mrb[104].mxu1 %vm4014_vm3, %v10353_v2  ;;  %v11056_v2 = vld [vmem:[#allocation27 + $0xb0] sm:$0xff] }
0x484f   : > { %17044 = vmatprep.mubr.msk.f32.mxu1 %vm19347_vm0, %v19348_v1  ;;  %17795 = vmatpush3.bf16.msra.mxu1 %v17794_v19 }
0x4850   : > { %17796 = vmatprep.subr.bf16.mxu1 %v19346_v0 }
0x4853   : > { %17798 = vmatpush3.bf16.msra.mxu1 %v17797_v25  ;;  %v10973_v25 = vld [vmem:[#allocation24 + $0xb0] sm:$0xff] }
0x4854   : > { %17052 = vmatprep.subr.mxu1 %v19348_v1 }
0x4921   : > { %v10438_v6 = vpop.f32.mrb[104].mxu1 }
0x4922   : > { %v10439_v5 = vadd.f32 %v15444_v4, %v10438_v6  ;;  %v17013_v55 = vpop.f32.mrb[105].mxu1  ;;  %v11057_v4 = vld [vmem:[#allocation27 + $0xb8] sm:$0xff] }
0x4923   : > { %v17815_v6 = vpack.c.bf16 %v11057_v4, %v11056_v2  ;;  %v20842_v55 = vld [vmem:[%s20456_s16] sm:$0xff]  ;;  %v11448_v2 = vld [vmem:[#allocation21 + $0xd0] sm:$0xff]  ;;  %v11449_v4 = vld [vmem:[#allocation21 + $0xd8] sm:$0xff] }
0x4924   : > { %v10442_v9 = vadd.f32 %v10439_v5, %v10268_v56  ;;  %v17800_v56 = vpack.c.bf16 %v10889_v50, %v10888_v49 }
0x4926   : > { %v10445_v7 = vsel %vm1946_vm1, %v10442_v9, 0.0 }
0x4927   : > { %10446 = vadd.xlane.f32.xlu0 %v10445_v7 }
0x49b4   : > { %v10447_v8 = vpop.xlane.xlu0 %10446 }
0x49b5   : > { %v10448_v10 = vmul.f32 0.03125, %v10447_v8 }
0x49b7   : > { %v10449_v11 = vsub.f32 %v10442_v9, %v10448_v10 }
0x49b9   : > { %v10450_v12 = vmul.f32 %v10449_v11, %v10449_v11 }
0x49bb   : > { %v10451_v13 = vsel %vm1946_vm1, %v10450_v12, 0.0 }
0x49bc   : > { %10452 = vadd.xlane.f32.xlu1 %v10451_v13 }
0x4a49   : > { %v10453_v41 = vpop.xlane.xlu1 %10452 }
0x4a4a   : > { %v10454_v26 = vmul.f32 0.03125, %v10453_v41  ;;  %v10974_v41 = vld [vmem:[#allocation24 + $0xb8] sm:$0xff] }
0x4a4c   : > { %v10455_v3 = vadd.f32 1e-12, %v10454_v26  ;;  %v17809_v26 = vpack.c.bf16 %v10974_v41, %v10973_v25 }
0x4a4e   : > { %18370 = vrsqrt.f32 %v10455_v3 }
0x4a58   : > { %v18371_v27 = vpop.eup %18370 }
0x4a59   : > { %v10457_v29 = vmul.f32 %v18371_v27, %v10449_v11 }
0x4a5b   : > { %v10464_v34 = vmul.f32 %v15446_v28, %v10457_v29  ;;  %v15457_v28 = vld [vmem:[#allocation22 + $0x5] ss:$0 sm:$0xff]  ;;  %v15459_v29 = vld [vmem:[#allocation25 + $0x5] ss:$0 sm:$0xff] }
0x4a5d   : > { %v20807_v36 = vadd.f32 %v15447_v14, %v10464_v34 }
0x4a5f   : > { %17023 = vmatmul.mubr.msk.f32.vlgmr.msra.gmra.mrb[98].mxu0 %vm1946_vm1, %v20807_v36  ;;  %17045 = vmatmul.mubr.msk.f32.vlgmr.msra.gmra.mrb[106].mxu1 %vm1946_vm1, %v20807_v36 }
0x4a60   : > { %17789 = vmatpush3.bf16.msra.mxu0 %v17788_v35  ;;  %17033 = vmatprep.mubr.msk.f32.mxu0 %vm19347_vm0, %v19348_v1  ;;  %v15461_v35 = vld [vmem:[#allocation28 + $0x5] ss:$0 sm:$0xff] }
0x4a61   : > { %17790 = vmatprep.subr.bf16.mxu0 %v19346_v0  ;;  %17054 = vmatprep.mubr.msk.f32.mxu1 %vm19347_vm0, %v19348_v1 }
0x4a64   : > { %17792 = vmatpush3.bf16.msra.mxu0 %v17791_v38 }
0x4a65   : > { %17047 = vmatprep.subr.mxu0 %v19348_v1 }
0x4a67   : > { %17034 = vmatmul.mubr.msk.f32.vlgmr.msra.gmra.mrb[100].mxu0 %vm1946_vm1, %v20807_v36 }
0x4a68   : > { %17049 = vmatprep.mubr.msk.f32.mxu0 %vm19347_vm0, %v19348_v1 }
0x4b32   : > { %v10554_v42 = vpop.f32.mrb[98].mxu0  ;;  %v10720_v43 = vpop.f32.mrb[106].mxu1 }
0x4b33   : > { %v10721_v44 = vadd.f32 %v15452_v40, %v10720_v43  ;;  %v17024_v45 = vpop.f32.mrb[99].mxu0  ;;  %v17046_v30 = vpop.f32.mrb[107].mxu1  ;;  %v10555_v47 = vadd.f32 %v15448_v33, %v10554_v42 }
0x4b35   : > { %17053 = vmatpush3.msra.mxu1 %v10721_v44  ;;  %v10724_v57 = vmul.f32 0.35355338, %v10555_v47  ;;  %v11298_v47 = vld [vmem:[#allocation30 + $0x28] sm:$0xff] }
0x4b36   : > { %17805 = vmatprep.subr.bf16.mxu1 %v19346_v0 }
0x4b3a   : > { %v10637_v48 = vpop.f32.mrb[100].mxu0 }
0x4b3b   : > { %v10638_v52 = vadd.f32 %v15450_v46, %v10637_v48  ;;  %v17035_v54 = vpop.f32.mrb[101].mxu0 }
0x4b3c   : > { %v11529_v54 = vld [vmem:[#allocation24 + $0xc0] sm:$0xff] }
0x4b3d   : > { %17048 = vmatpush3.xpose.msk.msra.mxu0 %vm2183_vm2, %v10638_v52  ;;  %v10886_v52 = vld [vmem:[#allocation30 + $0x20] sm:$0xff] }
0x4b3e   : > { %17799 = vmatprep.subr.bf16.mxu0 %v19346_v0 }
0x4b40   : > { %17050 = vmatmul.mubr.msk.f32.vlgmr.msra.gmra.mrb[102].mxu0 %vm2183_vm2, %v10724_v57 }
0x4b41   : > { %17801 = vmatpush3.bf16.msra.mxu0 %v17800_v56  ;;  %17065 = vmatprep.mubr.msk.f32.mxu0 %vm19347_vm0, %v19348_v1  ;;  %v11530_v56 = vld [vmem:[#allocation24 + $0xc8] sm:$0xff] }
0x4b42   : > { %17802 = vmatprep.subr.bf16.mxu0 %v19346_v0  ;;  %v17824_v57 = vpack.c.bf16 %v11530_v56, %v11529_v54  ;;  %v12100_v56 = vld [vmem:[#allocation27 + $0xf0] sm:$0xff] }
0x4b45   : > { %17804 = vmatpush3.bf16.msra.mxu0 %v17803_v60  ;;  %v17827_v60 = vpack.c.bf16 %v11532_v59, %v11531_v58  ;;  %v12015_v59 = vld [vmem:[#allocation24 + $0xe0] sm:$0xff] }
0x4b46   : > { %17811 = vmatprep.subr.bf16.mxu0 %v19346_v0 }
0x4b48   : > { %17066 = vmatmul.mubr.msk.f32.vlgmr.msra.gmra.mrb[104].mxu0 %vm1946_vm1, %v20807_v36 }
0x4b49   : > { %17813 = vmatpush3.bf16.msra.mxu0 %v17812_v63  ;;  %17087 = vmatprep.mubr.msk.f32.mxu0 %vm19347_vm0, %v19348_v1  ;;  %v17818_v63 = vpack.c.bf16 %v11447_v62, %v11446_v61  ;;  %v12017_v62 = vld [vmem:[#allocation24 + $0xf0] sm:$0xff] }
0x4b4a   : > { %17814 = vmatprep.subr.bf16.mxu0 %v19346_v0 }
0x4b4d   : > { %17816 = vmatpush3.bf16.msra.mxu0 %v17815_v6 }
0x4b4e   : > { %17100 = vmatprep.subr.mxu0 %v19348_v1 }
0x4b50   : > { %17088 = vmatmul.mubr.msk.f32.vlgmr.msra.gmra.mrb[106].mxu0 %vm1946_vm1, %v20807_v36 }
0x4b51   : > { %17102 = vmatprep.mubr.msk.f32.mxu0 %vm19347_vm0, %v19348_v1  ;;  %17101 = vmatpush3.msra.mxu0 %v11298_v47  ;;  %v11934_v47 = vld [vmem:[#allocation21 + $0xf0] sm:$0xff] }
0x4b52   : > { %17817 = vmatprep.subr.bf16.mxu0 %v19346_v0 }
0x4c13   : > { %v10797_v5 = vpop.f32.mrb[102].mxu0 }
0x4c14   : > { %v10798_v9 = vadd.f32 %v20842_v55, %v10797_v5  ;;  %v17051_v7 = vpop.f32.mrb[103].mxu0 }
0x4c15   : > { %v11612_v7 = vld [vmem:[#allocation27 + $0xc0] sm:$0xff] }
0x4c16   : > { %v10801_v8 = vsel %vm2183_vm2, %v10798_v9, -inf }
0x4c17   : > { %10802 = vmax.xlane.f32.xlu0 %v10801_v8  ;;  %v11613_v8 = vld [vmem:[#allocation27 + $0xc8] sm:$0xff] }
0x4c1b   : > { %v10966_v10 = vpop.f32.mrb[104].mxu0 }
0x4c1c   : > { %v17067_v11 = vpop.f32.mrb[105].mxu0  ;;  %v10967_v31 = vadd.f32 %v15457_v28, %v10966_v10 }
0x4c1e   : > { %v11136_v39 = vmul.f32 0.35355338, %v10967_v31 }
0x4c23   : > { %v11132_v12 = vpop.f32.mrb[106].mxu0 }
0x4c24   : > { %v17089_v13 = vpop.f32.mrb[107].mxu0  ;;  %v11133_v37 = vadd.f32 %v15461_v35, %v11132_v12  ;;  %v17830_v12 = vpack.c.bf16 %v11613_v8, %v11612_v7 }
0x4c25   : > { %v11614_v13 = vld [vmem:[#allocation27 + $0xd0] sm:$0xff] }
0x4ca4   : > { %v10803_v15 = vpop.xlane.xlu0 %10802 }
0x4ca5   : > { %v10804_v16 = vsub.f32 %v10798_v9, %v10803_v15  ;;  %v17821_v9 = vpack.c.bf16 %v11449_v4, %v11448_v2  ;;  %v11615_v15 = vld [vmem:[#allocation27 + $0xd8] sm:$0xff] }
0x4ca7   : > { %v10805_v17 = vmul.f32 1.442695, %v10804_v16  ;;  %v15470_v16 = vld [vmem:[#allocation25 + $0x6] ss:$0 sm:$0xff] }
0x4ca9   : > { %18372 = vpow2.f32 %v10805_v17  ;;  %v17833_v17 = vpack.c.bf16 %v11615_v15, %v11614_v13  ;;  %v15478_v13 = vld [vmem:[#allocation22 + $0x7] ss:$0 sm:$0xff]  ;;  %v15480_v15 = vld [vmem:[#allocation25 + $0x7] ss:$0 sm:$0xff] }
0x4cb3   : > { %v18373_v53 = vpop.eup %18372 }
0x4cb4   : > { %v10807_v18 = vsel %vm2183_vm2, %v18373_v53, 0.0 }
0x4cb5   : > { %10808 = vadd.xlane.f32.xlu1 %v10807_v18 }
0x4d42   : > { %v10809_v19 = vpop.xlane.xlu1 %10808 }
0x4d43   : > { %18374 = vrcp.f32 %v10809_v19 }
0x4d4d   : > { %v18375_v22 = vpop.eup %18374 }
0x4d4e   : > { %v10811_v24 = vmul.f32 %v18375_v22, %v18373_v53 }
0x4d50   : > { %17055 = vmatmul.mubr.msk.f32.vlgmr.msra.gmra.mrb[108].mxu1 %vm2183_vm2, %v10811_v24 }
0x4d51   : > { %17807 = vmatpush3.bf16.msra.mxu1 %v17806_v23  ;;  %17076 = vmatprep.mubr.msk.f32.mxu1 %vm19347_vm0, %v19348_v1  ;;  %v15468_v23 = vld [vmem:[#allocation22 + $0x6] ss:$0 sm:$0xff] }
0x4d52   : > { %17808 = vmatprep.subr.bf16.mxu1 %v19346_v0 }
0x4d55   : > { %17810 = vmatpush3.bf16.msra.mxu1 %v17809_v26 }
0x4d56   : > { %17090 = vmatprep.subr.mxu1 %v19348_v1 }
0x4d58   : > { %17077 = vmatmul.mubr.msk.f32.vlgmr.msra.gmra.mrb[110].mxu1 %vm1946_vm1, %v20807_v36 }
0x4d59   : > { %17092 = vmatprep.mubr.msk.f32.mxu1 %vm19347_vm0, %v19348_v1 }
0x4e23   : > { %v10881_v3 = vpop.f32.mrb[108].mxu1 }
0x4e24   : > { %v17056_v27 = vpop.f32.mrb[109].mxu1 }
0x4e2b   : > { %v11049_v32 = vpop.f32.mrb[110].mxu1 }
0x4e2c   : > { %v11050_v14 = vadd.f32 %v15459_v29, %v11049_v32  ;;  %v17078_v34 = vpop.f32.mrb[111].mxu1 }
0x4e2e   : > { %17091 = vmatpush3.xpose.msk.msra.mxu1 %vm2183_vm2, %v11050_v14 }
0x4e2f   : > { %17095 = vmatprep.subr.mxu1 %v19348_v1 }
0x4e31   : > { %17093 = vmatmul.mubr.msk.f32.vlgmr.msra.gmra.mrb[112].mxu1 %vm2183_vm2, %v11136_v39 }
0x4e32   : > { %17096 = vmatpush3.msra.mxu1 %v11133_v37  ;;  %17097 = vmatprep.mubr.msk.f32.mxu1 %vm19347_vm0, %v19348_v1 }
0x4e33   : > { %17105 = vmatprep.subr.mxu1 %v19348_v1 }
0x4f04   : > { %v11209_v38 = vpop.f32.mrb[112].mxu1 }
0x4f05   : > { %v11210_v40 = vadd.f32 %v20842_v55, %v11209_v38  ;;  %v17094_v42 = vpop.f32.mrb[113].mxu1 }
0x4f06   : > { %v11856_v42 = vld [vmem:[#allocation30 + $0x30] sm:$0xff] }
0x4f07   : > { %v11213_v43 = vsel %vm2183_vm2, %v11210_v40, -inf }
0x4f08   : > { %11214 = vmax.xlane.f32.xlu0 %v11213_v43 }
0x4f95   : > { %v11215_v44 = vpop.xlane.xlu0 %11214 }
0x4f96   : > { %v11216_v45 = vsub.f32 %v11210_v40, %v11215_v44  ;;  %v11932_v44 = vld [vmem:[#allocation21 + $0xe0] sm:$0xff] }
0x4f98   : > { %v11217_v30 = vmul.f32 1.442695, %v11216_v45  ;;  %v11933_v45 = vld [vmem:[#allocation21 + $0xe8] sm:$0xff] }
0x4f9a   : > { %18376 = vpow2.f32 %v11217_v30 }
0x4fa4   : > { %v18377_v33 = vpop.eup %18376 }
0x4fa5   : > { %v11219_v46 = vsel %vm2183_vm2, %v18377_v33, 0.0 }
0x4fa6   : > { %11220 = vadd.xlane.f32.xlu1 %v11219_v46 }
0x5033   : > { %v11221_v48 = vpop.xlane.xlu1 %11220 }
0x5034   : > { %18378 = vrcp.f32 %v11221_v48  ;;  %v11935_v48 = vld [vmem:[#allocation21 + $0xf8] sm:$0xff] }
0x503e   : > { %v18379_v49 = vpop.eup %18378 }
0x503f   : > { %v11223_v50 = vmul.f32 %v18379_v49, %v18377_v33  ;;  %v17836_v33 = vpack.c.bf16 %v11933_v45, %v11932_v44  ;;  %v17839_v49 = vpack.c.bf16 %v11935_v48, %v11934_v47  ;;  %v15488_v44 = vld [vmem:[#allocation31 + $0x1] ss:$0 sm:$0xff]  ;;  %v15500_v47 = vld [vmem:[%s21311_s0 + $0x4] ss:$0 sm:$0xff] }
0x5041   : > { %17098 = vmatmul.mubr.msk.f32.vlgmr.msra.gmra.mrb[114].mxu1 %vm2183_vm2, %v11223_v50  ;;  %v12098_v50 = vld [vmem:[#allocation27 + $0xe0] sm:$0xff] }
0x5042   : > { %17106 = vmatpush3.msra.mxu1 %v10886_v52  ;;  %17107 = vmatprep.mubr.msk.f32.mxu1 %vm19347_vm0, %v19348_v1  ;;  %v12099_v52 = vld [vmem:[#allocation27 + $0xe8] sm:$0xff] }
0x5043   : > { %17823 = vmatprep.subr.bf16.mxu1 %v19346_v0  ;;  %v17848_v54 = vpack.c.bf16 %v12099_v52, %v12098_v50 }
0x5045   : > { %17108 = vmatmul.mubr.msk.f32.vlgmr.msra.gmra.mrb[116].mxu1 %vm2183_vm2, %v10881_v3  ;;  %v15472_v3 = vld [vmem:[#allocation28 + $0x6] ss:$0 sm:$0xff] }
0x5046   : > { %17825 = vmatpush3.bf16.msra.mxu1 %v17824_v57  ;;  %17129 = vmatprep.mubr.msk.f32.mxu1 %vm19347_vm0, %v19348_v1  ;;  %v12101_v57 = vld [vmem:[#allocation27 + $0xf8] sm:$0xff] }
0x5047   : > { %17826 = vmatprep.subr.bf16.mxu1 %v19346_v0  ;;  %v17851_v58 = vpack.c.bf16 %v12101_v57, %v12100_v56 }
0x504a   : > { %17828 = vmatpush3.bf16.msra.mxu1 %v17827_v60  ;;  %v12016_v60 = vld [vmem:[#allocation24 + $0xe8] sm:$0xff] }
0x504b   : > { %17143 = vmatprep.subr.mxu1 %v19348_v1  ;;  %v17842_v61 = vpack.c.bf16 %v12016_v60, %v12015_v59  ;;  %v12460_v60 = vld [vmem:[#allocation33 + $0x88] sm:$0xff] }
0x504d   : > { %17130 = vmatmul.mubr.msk.f32.vlgmr.msra.gmra.mrb[118].mxu1 %vm1946_vm1, %v20807_v36 }
0x504e   : > { %17145 = vmatprep.mubr.msk.f32.mxu1 %vm19347_vm0, %v19348_v1 }
0x5114   : > { %v11293_v6 = vpop.f32.mrb[114].mxu1 }
0x5115   : > { %v17099_v5 = vpop.f32.mrb[115].mxu1  ;;  %17103 = vmatmul.mubr.msk.f32.vlgmr.msra.gmra.mrb[108].mxu0 %vm2183_vm2, %v11293_v6 }
0x5116   : > { %17819 = vmatpush3.bf16.msra.mxu0 %v17818_v63  ;;  %17118 = vmatprep.mubr.msk.f32.mxu0 %vm19347_vm0, %v19348_v1  ;;  %v12018_v63 = vld [vmem:[#allocation24 + $0xf8] sm:$0xff] }
0x5117   : > { %17820 = vmatprep.subr.bf16.mxu0 %v19346_v0  ;;  %v17845_v6 = vpack.c.bf16 %v12018_v63, %v12017_v62  ;;  %v12461_v62 = vld [vmem:[#allocation33 + $0x90] sm:$0xff]  ;;  %v12462_v63 = vld [vmem:[#allocation33 + $0x98] sm:$0xff] }
0x5118   : > { %v11441_v10 = vpop.f32.mrb[116].mxu1 }
0x5119   : > { %v17109_v11 = vpop.f32.mrb[117].mxu1 }
0x511a   : > { %17822 = vmatpush3.bf16.msra.mxu0 %v17821_v9 }
0x511b   : > { %17829 = vmatprep.subr.bf16.mxu0 %v19346_v0 }
0x511d   : > { %17119 = vmatmul.mubr.msk.f32.vlgmr.msra.gmra.mrb[110].mxu0 %vm1946_vm1, %v20807_v36 }
0x511e   : > { %17831 = vmatpush3.bf16.msra.mxu0 %v17830_v12  ;;  %17140 = vmatprep.mubr.msk.f32.mxu0 %vm19347_vm0, %v19348_v1 }
0x511f   : > { %17832 = vmatprep.subr.bf16.mxu0 %v19346_v0 }
0x5120   : > { %v11607_v53 = vpop.f32.mrb[118].mxu1 }
0x5121   : > { %v11608_v18 = vadd.f32 %v15470_v16, %v11607_v53  ;;  %v17131_v19 = vpop.f32.mrb[119].mxu1 }
0x5122   : > { %17834 = vmatpush3.bf16.msra.mxu0 %v17833_v17  ;;  %v15482_v19 = vld [vmem:[#allocation28 + $0x7] ss:$0 sm:$0xff] }
0x5123   : > { %17144 = vmatpush3.xpose.msk.msra.mxu1 %vm2183_vm2, %v11608_v18  ;;  %17153 = vmatprep.subr.mxu0 %v19348_v1 }
0x5124   : > { %17148 = vmatprep.subr.mxu1 %v19348_v1 }
0x5125   : > { %17141 = vmatmul.mubr.msk.f32.vlgmr.msra.gmra.mrb[112].mxu0 %vm1946_vm1, %v20807_v36 }
0x5126   : > { %17155 = vmatprep.mubr.msk.f32.mxu0 %vm19347_vm0, %v19348_v1  ;;  %17154 = vmatpush3.msra.mxu0 %v11856_v42 }
0x5127   : > { %17841 = vmatprep.subr.bf16.mxu0 %v19346_v0 }
0x51e8   : > { %v11368_v20 = vpop.f32.mrb[108].mxu0 }
0x51e9   : > { %v20896_v21 = vadd.f32 %v11441_v10, %v11368_v20  ;;  %v17104_v22 = vpop.f32.mrb[109].mxu0 }
0x51f0   : > { %v11524_v24 = vpop.f32.mrb[110].mxu0 }
0x51f1   : > { %v11525_v25 = vadd.f32 %v15468_v23, %v11524_v24  ;;  %v17120_v41 = vpop.f32.mrb[111].mxu0 }
0x51f3   : > { %v11694_v26 = vmul.f32 0.35355338, %v11525_v25 }
0x51f5   : > { %17146 = vmatmul.mubr.msk.f32.vlgmr.msra.gmra.mrb[120].mxu1 %vm2183_vm2, %v11694_v26 }
0x51f6   : > { %17150 = vmatprep.mubr.msk.f32.mxu1 %vm19347_vm0, %v19348_v1 }
0x51f8   : > { %v11690_v27 = vpop.f32.mrb[112].mxu0 }
0x51f9   : > { %v11691_v28 = vadd.f32 %v15472_v3, %v11690_v27  ;;  %v17142_v29 = vpop.f32.mrb[113].mxu0 }
0x51fa   : > { %v12342_v29 = vld [vmem:[#allocation30 + $0x38] sm:$0xff] }
0x51fb   : > { %17149 = vmatpush3.msra.mxu1 %v11691_v28 }
0x51fc   : > { %17835 = vmatprep.subr.bf16.mxu1 %v19346_v0 }
0x52c8   : > { %v11767_v31 = vpop.f32.mrb[120].mxu1 }
0x52c9   : > { %v11768_v32 = vadd.f32 %v20842_v55, %v11767_v31  ;;  %v17147_v14 = vpop.f32.mrb[121].mxu1 }
0x52ca   : > { %v15495_v14 = vld [vmem:[%s21310_s15 + $0x80] sm:$0xff] }
0x52cb   : > { %v11771_v34 = vsel %vm2183_vm2, %v11768_v32, -inf }
0x52cc   : > { %11772 = vmax.xlane.f32.xlu0 %v11771_v34  ;;  %v15496_v34 = vld [vmem:[%s21310_s15 + $0x88] sm:$0xff] }
0x5359   : > { %v11773_v35 = vpop.xlane.xlu0 %11772 }
0x535a   : > { %v11774_v39 = vsub.f32 %v11768_v32, %v11773_v35  ;;  %v17860_v35 = vpack.c.bf16 %v15496_v34, %v15495_v14  ;;  %v15507_v34 = vld [vmem:[%s21315_s6 + $0x4] ss:$0 sm:$0xff] }
0x535c   : > { %v11775_v37 = vmul.f32 1.442695, %v11774_v39  ;;  %v15497_v39 = vld [vmem:[%s21310_s15 + $0x90] sm:$0xff] }
0x535e   : > { %18380 = vpow2.f32 %v11775_v37  ;;  %v15498_v37 = vld [vmem:[%s21310_s15 + $0x98] sm:$0xff] }
0x535f   : > { %v17863_v42 = vpack.c.bf16 %v15498_v37, %v15497_v39 }
0x5368   : > { %v18381_v38 = vpop.eup %18380 }
0x5369   : > { %v11777_v40 = vsel %vm2183_vm2, %v18381_v38, 0.0 }
0x536a   : > { %11778 = vadd.xlane.f32.xlu1 %v11777_v40 }
0x53f7   : > { %v11779_v43 = vpop.xlane.xlu1 %11778 }
0x53f8   : > { %18382 = vrcp.f32 %v11779_v43 }
0x5402   : > { %v18383_v30 = vpop.eup %18382 }
0x5403   : > { %v11781_v46 = vmul.f32 %v18383_v30, %v18381_v38 }
0x5405   : > { %17151 = vmatmul.mubr.msk.f32.vlgmr.msra.gmra.mrb[122].mxu1 %vm2183_vm2, %v11781_v46 }
0x5406   : > { %17837 = vmatpush3.bf16.msra.mxu1 %v17836_v33  ;;  %17166 = vmatprep.mubr.msk.f32.mxu1 %vm19347_vm0, %v19348_v1 }
0x5407   : > { %17838 = vmatprep.subr.bf16.mxu1 %v19346_v0 }
0x540a   : > { %17840 = vmatpush3.bf16.msra.mxu1 %v17839_v49 }
0x540b   : > { %17847 = vmatprep.subr.bf16.mxu1 %v19346_v0 }
0x540d   : > { %17167 = vmatmul.mubr.msk.f32.vlgmr.msra.gmra.mrb[124].mxu1 %vm1946_vm1, %v20807_v36 }
0x540e   : > { %17849 = vmatpush3.bf16.msra.mxu1 %v17848_v54  ;;  %17188 = vmatprep.mubr.msk.f32.mxu1 %vm19347_vm0, %v19348_v1 }
0x540f   : > { %17850 = vmatprep.subr.bf16.mxu1 %v19346_v0 }
0x5412   : > { %17852 = vmatpush3.bf16.msra.mxu1 %v17851_v58 }
0x5413   : > { %17201 = vmatprep.subr.mxu1 %v19348_v1 }
0x5415   : > { %17189 = vmatmul.mubr.msk.f32.vlgmr.msra.gmra.mrb[126].mxu1 %vm1946_vm1, %v20807_v36 }
0x5416   : > { %17203 = vmatprep.mubr.msk.f32.mxu1 %vm19347_vm0, %v19348_v1  ;;  %17202 = vmatpush3.msra.mxu1 %v12342_v29  ;;  %v15493_v29 = vld [vmem:[#allocation34 + $0x4] ss:$0 sm:$0xff] }
0x5417   : > { %17859 = vmatprep.subr.bf16.mxu1 %v19346_v0 }
0x54d8   : > { %v11851_v2 = vpop.f32.mrb[122].mxu1 }
0x54d9   : > { %v17152_v4 = vpop.f32.mrb[123].mxu1  ;;  %17156 = vmatmul.mubr.msk.f32.vlgmr.msra.gmra.mrb[114].mxu0 %vm2183_vm2, %v11851_v2  ;;  %v17857_v2 = vpack.c.bf16 %v12462_v63, %v12461_v62 }
0x54da   : > { %17843 = vmatpush3.bf16.msra.mxu0 %v17842_v61  ;;  %17177 = vmatprep.mubr.msk.f32.mxu0 %vm19347_vm0, %v19348_v1 }
0x54db   : > { %17844 = vmatprep.subr.bf16.mxu0 %v19346_v0 }
0x54de   : > { %17846 = vmatpush3.bf16.msra.mxu0 %v17845_v6 }
0x54df   : > { %17191 = vmatprep.subr.mxu0 %v19348_v1 }
0x54e0   : > { %v12010_v5 = vpop.f32.mrb[124].mxu1 }
0x54e1   : > { %v17168_v9 = vpop.f32.mrb[125].mxu1  ;;  %17178 = vmatmul.mubr.msk.f32.vlgmr.msra.gmra.mrb[116].mxu0 %vm1946_vm1, %v20807_v36  ;;  %v12011_v16 = vadd.f32 %v15478_v13, %v12010_v5 }
0x54e2   : > { %17193 = vmatprep.mubr.msk.f32.mxu0 %vm19347_vm0, %v19348_v1 }
0x54e3   : > { %v12180_v20 = vmul.f32 0.35355338, %v12011_v16 }
0x54e8   : > { %v12176_v7 = vpop.f32.mrb[126].mxu1 }
0x54e9   : > { %v17190_v8 = vpop.f32.mrb[127].mxu1  ;;  %v12177_v22 = vadd.f32 %v15482_v19, %v12176_v7  ;;  %v15491_v7 = vld [vmem:[%s21312_s11 + $0x1] ss:$0 sm:$0xff]  ;;  %v12874_v19 = vld [vmem:[#allocation33 + $0xa0] sm:$0xff] }
0x55ac   : > { %v11926_v10 = vpop.f32.mrb[114].mxu0 }
0x55ad   : > { %v11930_v11 = vadd.f32 %v11926_v10, %v20896_v21  ;;  %v17157_v12 = vpop.f32.mrb[115].mxu0  ;;  %v15502_v10 = vld [vmem:[%s21313_s23 + $0x80] sm:$0xff] }
0x55ae   : > { %v15492_v12 = vld [vmem:[%s21314_s8 + $0x1] ss:$0 sm:$0xff] }
0x55b4   : > { %v12093_v17 = vpop.f32.mrb[116].mxu0 }
0x55b5   : > { %v12094_v53 = vadd.f32 %v15480_v15, %v12093_v17  ;;  %v17179_v18 = vpop.f32.mrb[117].mxu0  ;;  %v15504_v17 = vld [vmem:[%s21313_s23 + $0x90] sm:$0xff] }
0x55b7   : > { %17192 = vmatpush3.xpose.msk.msra.mxu0 %vm2183_vm2, %v12094_v53  ;;  %v15505_v53 = vld [vmem:[%s21313_s23 + $0x98] sm:$0xff] }
0x55b8   : > { %17196 = vmatprep.subr.mxu0 %v19348_v1  ;;  %v17869_v18 = vpack.c.bf16 %v15505_v53, %v15504_v17 }
0x55ba   : > { %17194 = vmatmul.mubr.msk.f32.vlgmr.msra.gmra.mrb[118].mxu0 %vm2183_vm2, %v12180_v20  ;;  %v12875_v20 = vld [vmem:[#allocation33 + $0xa8] sm:$0xff] }
0x55bb   : > { %17197 = vmatpush3.msra.mxu0 %v12177_v22  ;;  %17198 = vmatprep.mubr.msk.f32.mxu0 %vm19347_vm0, %v19348_v1  ;;  %v17872_v22 = vpack.c.bf16 %v12875_v20, %v12874_v19 }
0x55bc   : > { %17853 = vmatprep.subr.bf16.mxu0 %v19346_v0 }
0x568d   : > { %v12253_v21 = vpop.f32.mrb[118].mxu0 }
0x568e   : > { %v12254_v23 = vadd.f32 %v20842_v55, %v12253_v21  ;;  %v17195_v24 = vpop.f32.mrb[119].mxu0  ;;  %v12876_v21 = vld [vmem:[#allocation33 + $0xb0] sm:$0xff] }
0x5690   : > { %v12257_v25 = vsel %vm2183_vm2, %v12254_v23, -inf }
0x5691   : > { %12258 = vmax.xlane.f32.xlu0 %v12257_v25  ;;  %v15521_v25 = vld [vmem:[%s21313_s23 + $0xa0] sm:$0xff] }
0x571e   : > { %v12259_v41 = vpop.xlane.xlu0 %12258 }
0x571f   : > { %v12260_v26 = vsub.f32 %v12254_v23, %v12259_v41  ;;  %v12877_v23 = vld [vmem:[#allocation33 + $0xb8] sm:$0xff]  ;;  %v15522_v41 = vld [vmem:[%s21313_s23 + $0xa8] sm:$0xff] }
0x5720   : > { %v17875_v24 = vpack.c.bf16 %v12877_v23, %v12876_v21  ;;  %v13284_v23 = vld [vmem:[#allocation36 + $0x28] sm:$0xff] }
0x5721   : > { %v12261_v3 = vmul.f32 1.442695, %v12260_v26  ;;  %v17884_v26 = vpack.c.bf16 %v15522_v41, %v15521_v25 }
0x5723   : > { %18384 = vpow2.f32 %v12261_v3  ;;  %v15523_v3 = vld [vmem:[%s21313_s23 + $0xb0] sm:$0xff] }
0x572d   : > { %v18385_v27 = vpop.eup %18384 }
0x572e   : > { %v12263_v28 = vsel %vm2183_vm2, %v18385_v27, 0.0 }
0x572f   : > { %12264 = vadd.xlane.f32.xlu1 %v12263_v28 }
0x57bc   : > { %v12265_v55 = vpop.xlane.xlu1 %12264 }
0x57bd   : > { %18386 = vrcp.f32 %v12265_v55 }
0x57c7   : > { %v18387_v31 = vpop.eup %18386 }
0x57c8   : > { %v12267_v32 = vmul.f32 %v18387_v31, %v18385_v27  ;;  %v15524_v27 = vld [vmem:[%s21313_s23 + $0xb8] sm:$0xff] }
0x57c9   : > { %v17887_v28 = vpack.c.bf16 %v15524_v27, %v15523_v3  ;;  %v15535_v3 = vld [vmem:[%s21310_s15 + $0xc0] sm:$0xff]  ;;  %v15536_v27 = vld [vmem:[%s21310_s15 + $0xc8] sm:$0xff] }
0x57ca   : > { %17199 = vmatmul.mubr.msk.f32.vlgmr.msra.gmra.mrb[120].mxu0 %vm2183_vm2, %v12267_v32 }
0x57cb   : > { %17214 = vmatprep.mubr.msk.f32.mxu0 %vm19347_vm0, %v19348_v1 }
0x589d   : > { %v12337_v38 = vpop.f32.mrb[120].mxu0 }
0x589e   : > { %v17200_v40 = vpop.f32.mrb[121].mxu0  ;;  %17204 = vmatmul.mubr.msk.f32.vlgmr.msra.gmra.mrb[128].mxu1 %vm2183_vm2, %v12337_v38 }
0x589f   : > { %17861 = vmatpush3.bf16.msra.mxu1 %v17860_v35  ;;  %17225 = vmatprep.mubr.msk.f32.mxu1 %vm19347_vm0, %v19348_v1 }
0x58a0   : > { %17862 = vmatprep.subr.bf16.mxu1 %v19346_v0 }
0x58a3   : > { %17864 = vmatpush3.bf16.msra.mxu1 %v17863_v42 }
0x58a4   : > { %17239 = vmatprep.subr.mxu1 %v19348_v1 }
0x58a6   : > { %17226 = vmatmul.mubr.msk.f32.vlgmr.msra.gmra.mrb[130].mxu1 %vm1946_vm1, %v20590_v51 }
0x58a7   : > { %17241 = vmatprep.mubr.msk.f32.mxu1 %vm19347_vm0, %v19348_v1 }
0x5971   : > { %v12412_v43 = vpop.f32.mrb[128].mxu1 }
0x5972   : > { %v12416_v45 = vadd.f32 %v12412_v43, %v11930_v11  ;;  %v17205_v30 = vpop.f32.mrb[129].mxu1  ;;  %v15503_v11 = vld [vmem:[%s21313_s23 + $0x88] sm:$0xff] }
0x5973   : > { %v17866_v15 = vpack.c.bf16 %v15503_v11, %v15502_v10  ;;  %v15526_v10 = vld [vmem:[%s21315_s6 + $0x5] ss:$0 sm:$0xff] }
0x5974   : > { %v12425_v33 = vadd.f32 %v15488_v44, %v12416_v45  ;;  %v21005_v45 = vld [vmem:[%s20647_s1] sm:$0xff]  ;;  %s1930_s1 = scalar_lea.vmem %s19602_s13, %s20088_s22 }
0x5976   : > { %v12426_v46 = vadd.f32 %v12425_v33, %v20807_v36  ;;  %v12459_v36 = vld [vmem:[#allocation33 + $0x80] sm:$0xff] }
0x5977   : > { %v17854_v61 = vpack.c.bf16 %v12460_v60, %v12459_v36  ;;  %v15516_v60 = vld [vmem:[%s21310_s15 + $0xb0] sm:$0xff] }
0x5978   : > { %v12431_v48 = vsel %vm1946_vm1, %v12426_v46, 0.0 }
0x5979   : > { %v12623_v49 = vpop.f32.mrb[130].mxu1  ;;  %12432 = vadd.xlane.f32.xlu0 %v12431_v48  ;;  %17855 = vmatpush3.bf16.msra.mxu0 %v17854_v61  ;;  %v15517_v61 = vld [vmem:[%s21310_s15 + $0xb8] sm:$0xff] }
0x597a   : > { %v12624_v50 = vadd.f32 %v15500_v47, %v12623_v49  ;;  %v17227_v52 = vpop.f32.mrb[131].mxu1  ;;  %17856 = vmatprep.subr.bf16.mxu0 %v19346_v0  ;;  %v17881_v62 = vpack.c.bf16 %v15517_v61, %v15516_v60 }
0x597c   : > { %17240 = vmatpush3.xpose.msk.msra.mxu1 %vm2183_vm2, %v12624_v50 }
0x597d   : > { %17244 = vmatprep.subr.mxu1 %v19348_v1  ;;  %17858 = vmatpush3.bf16.msra.mxu0 %v17857_v2 }
0x597e   : > { %17865 = vmatprep.subr.bf16.mxu0 %v19346_v0 }
0x5a06   : > { %v12433_v54 = vpop.xlane.xlu0 %12432 }
0x5a07   : > { %v12434_v56 = vmul.f32 0.03125, %v12433_v54 }
0x5a09   : > { %v12435_v57 = vsub.f32 %v12426_v46, %v12434_v56  ;;  %v15514_v56 = vld [vmem:[%s21310_s15 + $0xa0] sm:$0xff] }
0x5a0b   : > { %v12436_v58 = vmul.f32 %v12435_v57, %v12435_v57 }
0x5a0d   : > { %v12437_v59 = vsel %vm1946_vm1, %v12436_v58, 0.0 }
0x5a0e   : > { %12438 = vadd.xlane.f32.xlu1 %v12437_v59 }
0x5a9b   : > { %v12439_v4 = vpop.xlane.xlu1 %12438 }
0x5a9c   : > { %v12440_v6 = vmul.f32 0.03125, %v12439_v4  ;;  %v15512_v4 = vld [vmem:[#allocation34 + $0x5] ss:$0 sm:$0xff] }
0x5a9e   : > { %v12441_v5 = vadd.f32 1e-12, %v12440_v6  ;;  %v15519_v6 = vld [vmem:[%s21311_s0 + $0x5] ss:$0 sm:$0xff] }
0x5aa0   : > { %18388 = vrsqrt.f32 %v12441_v5 }
0x5aaa   : > { %v18389_v9 = vpop.eup %18388 }
0x5aab   : > { %v12443_v8 = vmul.f32 %v18389_v9, %v12435_v57  ;;  %v15515_v57 = vld [vmem:[%s21310_s15 + $0xa8] sm:$0xff] }
0x5aac   : > { %v17878_v59 = vpack.c.bf16 %v15515_v57, %v15514_v56 }
0x5aad   : > { %v12450_v13 = vmul.f32 %v15491_v7, %v12443_v8 }
0x5aaf   : > { %v20969_v16 = vadd.f32 %v15492_v12, %v12450_v13 }
0x5ab1   : > { %17215 = vmatmul.mubr.msk.f32.vlgmr.msra.gmra.mrb[122].mxu0 %vm1946_vm1, %v20969_v16 }
0x5ab2   : > { %17867 = vmatpush3.bf16.msra.mxu0 %v17866_v15  ;;  %17236 = vmatprep.mubr.msk.f32.mxu0 %vm19347_vm0, %v19348_v1 }
0x5ab3   : > { %17868 = vmatprep.subr.bf16.mxu0 %v19346_v0 }
0x5ab6   : > { %17870 = vmatpush3.bf16.msra.mxu0 %v17869_v18 }
0x5ab7   : > { %17871 = vmatprep.subr.bf16.mxu0 %v19346_v0 }
0x5ab9   : > { %17237 = vmatmul.mubr.msk.f32.vlgmr.msra.gmra.mrb[124].mxu0 %vm1946_vm1, %v20590_v51 }
0x5aba   : > { %17873 = vmatpush3.bf16.msra.mxu0 %v17872_v22  ;;  %17257 = vmatprep.mubr.msk.f32.mxu0 %vm19347_vm0, %v19348_v1 }
0x5abb   : > { %17874 = vmatprep.subr.bf16.mxu0 %v19346_v0 }
0x5abe   : > { %17876 = vmatpush3.bf16.msra.mxu0 %v17875_v24 }
0x5abf   : > { %17883 = vmatprep.subr.bf16.mxu0 %v19346_v0 }
0x5ac1   : > { %17258 = vmatmul.mubr.msk.f32.vlgmr.msra.gmra.mrb[126].mxu0 %vm1946_vm1, %v20969_v16 }
0x5ac2   : > { %17885 = vmatpush3.bf16.msra.mxu0 %v17884_v26  ;;  %17279 = vmatprep.mubr.msk.f32.mxu0 %vm19347_vm0, %v19348_v1  ;;  %v12872_v26 = vld [vmem:[#allocation36 + $0x20] sm:$0xff] }
0x5ac3   : > { %17886 = vmatprep.subr.bf16.mxu0 %v19346_v0 }
0x5ac6   : > { %17888 = vmatpush3.bf16.msra.mxu0 %v17887_v28  ;;  %v17896_v28 = vpack.c.bf16 %v15536_v27, %v15535_v3  ;;  %v15564_v27 = vld [vmem:[%s21313_s23 + $0xf0] sm:$0xff] }
0x5ac7   : > { %17292 = vmatprep.subr.mxu0 %v19348_v1 }
0x5ac9   : > { %17280 = vmatmul.mubr.msk.f32.vlgmr.msra.gmra.mrb[128].mxu0 %vm1946_vm1, %v20590_v51 }
0x5aca   : > { %17294 = vmatprep.mubr.msk.f32.mxu0 %vm19347_vm0, %v19348_v1  ;;  %17293 = vmatpush3.msra.mxu0 %v13284_v23  ;;  %v13920_v23 = vld [vmem:[#allocation33 + $0xf0] sm:$0xff] }
0x5acb   : > { %17889 = vmatprep.subr.bf16.mxu0 %v19346_v0 }
0x5b84   : > { %v12540_v55 = vpop.f32.mrb[122].mxu0 }
0x5b85   : > { %v12541_v31 = vadd.f32 %v15493_v29, %v12540_v55  ;;  %v17216_v32 = vpop.f32.mrb[123].mxu0  ;;  %v15537_v29 = vld [vmem:[%s21310_s15 + $0xd0] sm:$0xff]  ;;  %v15538_v55 = vld [vmem:[%s21310_s15 + $0xd8] sm:$0xff] }
0x5b86   : > { %v13432_v32 = vld [vmem:[#allocation33 + $0xc0] sm:$0xff] }
0x5b87   : > { %v12710_v14 = vmul.f32 0.35355338, %v12541_v31  ;;  %v17899_v31 = vpack.c.bf16 %v15538_v55, %v15537_v29  ;;  %v15555_v55 = vld [vmem:[%s21310_s15 + $0xe0] sm:$0xff] }
0x5b89   : > { %17242 = vmatmul.mubr.msk.f32.vlgmr.msra.gmra.mrb[132].mxu1 %vm2183_vm2, %v12710_v14  ;;  %v13433_v14 = vld [vmem:[#allocation33 + $0xc8] sm:$0xff] }
0x5b8a   : > { %17246 = vmatprep.mubr.msk.f32.mxu1 %vm19347_vm0, %v19348_v1 }
0x5b8c   : > { %v12706_v35 = vpop.f32.mrb[124].mxu0 }
0x5b8d   : > { %v12707_v39 = vadd.f32 %v15507_v34, %v12706_v35  ;;  %v17238_v37 = vpop.f32.mrb[125].mxu0  ;;  %v17890_v34 = vpack.c.bf16 %v13433_v14, %v13432_v32  ;;  %v13434_v35 = vld [vmem:[#allocation33 + $0xd0] sm:$0xff]  ;;  %v15557_v14 = vld [vmem:[%s21310_s15 + $0xf0] sm:$0xff] }
0x5b8f   : > { %17245 = vmatpush3.msra.mxu1 %v12707_v39  ;;  %v13435_v39 = vld [vmem:[#allocation33 + $0xd8] sm:$0xff] }
0x5b90   : > { %17877 = vmatprep.subr.bf16.mxu1 %v19346_v0 }
0x5b94   : > { %v12952_v38 = vpop.f32.mrb[126].mxu0 }
0x5b95   : > { %v17259_v40 = vpop.f32.mrb[127].mxu0  ;;  %v12953_v5 = vadd.f32 %v15512_v4, %v12952_v38 }
0x5b96   : > { %v17893_v40 = vpack.c.bf16 %v13435_v39, %v13434_v35 }
0x5b97   : > { %v13122_v11 = vmul.f32 0.35355338, %v12953_v5 }
0x5b9c   : > { %v13118_v42 = vpop.f32.mrb[128].mxu0 }
0x5b9d   : > { %v17281_v43 = vpop.f32.mrb[129].mxu0  ;;  %v13119_v12 = vadd.f32 %v15526_v10, %v13118_v42  ;;  %v15542_v42 = vld [vmem:[%s21313_s23 + $0xc0] sm:$0xff] }
0x5b9e   : > { %v15543_v43 = vld [vmem:[%s21313_s23 + $0xc8] sm:$0xff] }
0x5c5c   : > { %v12783_v44 = vpop.f32.mrb[132].mxu1 }
0x5c5d   : > { %v12784_v30 = vadd.f32 %v21005_v45, %v12783_v44  ;;  %v17243_v33 = vpop.f32.mrb[133].mxu1 }
0x5c5e   : > { %v17902_v33 = vpack.c.bf16 %v15543_v43, %v15542_v42 }
0x5c5f   : > { %v12787_v46 = vsel %vm2183_vm2, %v12784_v30, -inf }
0x5c60   : > { %12788 = vmax.xlane.f32.xlu0 %v12787_v46  ;;  %v15544_v46 = vld [vmem:[%s21313_s23 + $0xd0] sm:$0xff] }
0x5ced   : > { %v12789_v47 = vpop.xlane.xlu0 %12788 }
0x5cee   : > { %v12790_v48 = vsub.f32 %v12784_v30, %v12789_v47  ;;  %v15545_v47 = vld [vmem:[%s21313_s23 + $0xd8] sm:$0xff] }
0x5cf0   : > { %v12791_v49 = vmul.f32 1.442695, %v12790_v48  ;;  %v15540_v48 = vld [vmem:[%s21311_s0 + $0x6] ss:$0 sm:$0xff] }
0x5cf2   : > { %18390 = vpow2.f32 %v12791_v49  ;;  %v17905_v49 = vpack.c.bf16 %v15545_v47, %v15544_v46  ;;  %v15553_v46 = vld [vmem:[#allocation34 + $0x7] ss:$0 sm:$0xff]  ;;  %v15560_v47 = vld [vmem:[%s21311_s0 + $0x7] ss:$0 sm:$0xff] }
0x5cfc   : > { %v18391_v50 = vpop.eup %18390 }
0x5cfd   : > { %v12793_v52 = vsel %vm2183_vm2, %v18391_v50, 0.0 }
0x5cfe   : > { %12794 = vadd.xlane.f32.xlu1 %v12793_v52 }
0x5d8b   : > { %v12795_v54 = vpop.xlane.xlu1 %12794 }
0x5d8c   : > { %18392 = vrcp.f32 %v12795_v54 }
0x5d96   : > { %v18393_v58 = vpop.eup %18392 }
0x5d97   : > { %v12797_v36 = vmul.f32 %v18393_v58, %v18391_v50 }
0x5d99   : > { %17247 = vmatmul.mubr.msk.f32.vlgmr.msra.gmra.mrb[134].mxu1 %vm2183_vm2, %v12797_v36 }
0x5d9a   : > { %17879 = vmatpush3.bf16.msra.mxu1 %v17878_v59  ;;  %17268 = vmatprep.mubr.msk.f32.mxu1 %vm19347_vm0, %v19348_v1  ;;  %v15533_v59 = vld [vmem:[#allocation34 + $0x6] ss:$0 sm:$0xff] }
0x5d9b   : > { %17880 = vmatprep.subr.bf16.mxu1 %v19346_v0 }
0x5d9e   : > { %17882 = vmatpush3.bf16.msra.mxu1 %v17881_v62 }
0x5d9f   : > { %17282 = vmatprep.subr.mxu1 %v19348_v1 }
0x5da1   : > { %17269 = vmatmul.mubr.msk.f32.vlgmr.msra.gmra.mrb[136].mxu1 %vm1946_vm1, %v20590_v51 }
0x5da2   : > { %17284 = vmatprep.mubr.msk.f32.mxu1 %vm19347_vm0, %v19348_v1 }
0x5e6c   : > { %v12867_v63 = vpop.f32.mrb[134].mxu1 }
0x5e6d   : > { %v17248_v2 = vpop.f32.mrb[135].mxu1 }
0x5e74   : > { %v13035_v9 = vpop.f32.mrb[136].mxu1 }
0x5e75   : > { %v13036_v7 = vadd.f32 %v15519_v6, %v13035_v9  ;;  %v17270_v8 = vpop.f32.mrb[137].mxu1 }
0x5e77   : > { %17283 = vmatpush3.xpose.msk.msra.mxu1 %vm2183_vm2, %v13036_v7 }
0x5e78   : > { %17287 = vmatprep.subr.mxu1 %v19348_v1 }
0x5e7a   : > { %17285 = vmatmul.mubr.msk.f32.vlgmr.msra.gmra.mrb[138].mxu1 %vm2183_vm2, %v13122_v11 }
0x5e7b   : > { %17288 = vmatpush3.msra.mxu1 %v13119_v12  ;;  %17289 = vmatprep.mubr.msk.f32.mxu1 %vm19347_vm0, %v19348_v1 }
0x5e7c   : > { %17297 = vmatprep.subr.mxu1 %v19348_v1 }
0x5f4d   : > { %v13195_v13 = vpop.f32.mrb[138].mxu1 }
0x5f4e   : > { %v13196_v15 = vadd.f32 %v21005_v45, %v13195_v13  ;;  %v17286_v17 = vpop.f32.mrb[139].mxu1 }
0x5f4f   : > { %v13842_v17 = vld [vmem:[#allocation36 + $0x30] sm:$0xff] }
0x5f50   : > { %v13199_v53 = vsel %vm2183_vm2, %v13196_v15, -inf }
0x5f51   : > { %13200 = vmax.xlane.f32.xlu0 %v13199_v53 }
0x5fde   : > { %v13201_v18 = vpop.xlane.xlu0 %13200 }
0x5fdf   : > { %v13202_v19 = vsub.f32 %v13196_v15, %v13201_v18  ;;  %v13918_v18 = vld [vmem:[#allocation33 + $0xe0] sm:$0xff] }
0x5fe1   : > { %v13203_v20 = vmul.f32 1.442695, %v13202_v19  ;;  %v13919_v19 = vld [vmem:[#allocation33 + $0xe8] sm:$0xff] }
0x5fe3   : > { %18394 = vpow2.f32 %v13203_v20 }
0x5fed   : > { %v18395_v22 = vpop.eup %18394 }
0x5fee   : > { %v13205_v21 = vsel %vm2183_vm2, %v18395_v22, 0.0 }
0x5fef   : > { %13206 = vadd.xlane.f32.xlu1 %v13205_v21 }
0x607c   : > { %v13207_v24 = vpop.xlane.xlu1 %13206 }
0x607d   : > { %18396 = vrcp.f32 %v13207_v24  ;;  %v13921_v24 = vld [vmem:[#allocation33 + $0xf8] sm:$0xff] }
0x6087   : > { %v18397_v25 = vpop.eup %18396 }
0x6088   : > { %v13209_v41 = vmul.f32 %v18397_v25, %v18395_v22  ;;  %v17908_v22 = vpack.c.bf16 %v13919_v19, %v13918_v18  ;;  %v17911_v25 = vpack.c.bf16 %v13921_v24, %v13920_v23  ;;  %v14446_v23 = vld [vmem:[#allocation39 + $0x28] sm:$0xff] }
0x608a   : > { %17290 = vmatmul.mubr.msk.f32.vlgmr.msra.gmra.mrb[140].mxu1 %vm2183_vm2, %v13209_v41  ;;  %v15562_v41 = vld [vmem:[%s21313_s23 + $0xe0] sm:$0xff] }
0x608b   : > { %17298 = vmatpush3.msra.mxu1 %v12872_v26  ;;  %17299 = vmatprep.mubr.msk.f32.mxu1 %vm19347_vm0, %v19348_v1  ;;  %v15563_v26 = vld [vmem:[%s21313_s23 + $0xe8] sm:$0xff] }
0x608c   : > { %17895 = vmatprep.subr.bf16.mxu1 %v19346_v0  ;;  %v17920_v3 = vpack.c.bf16 %v15563_v26, %v15562_v41  ;;  %v14448_v41 = vld [vmem:[#allocation39 + $0x38] sm:$0xff] }
0x608e   : > { %17300 = vmatmul.mubr.msk.f32.vlgmr.msra.gmra.mrb[142].mxu1 %vm2183_vm2, %v12867_v63  ;;  %v15547_v63 = vld [vmem:[%s21315_s6 + $0x6] ss:$0 sm:$0xff] }
0x608f   : > { %17897 = vmatpush3.bf16.msra.mxu1 %v17896_v28  ;;  %17321 = vmatprep.mubr.msk.f32.mxu1 %vm19347_vm0, %v19348_v1  ;;  %v15565_v28 = vld [vmem:[%s21313_s23 + $0xf8] sm:$0xff] }
0x6090   : > { %17898 = vmatprep.subr.bf16.mxu1 %v19346_v0  ;;  %v17923_v29 = vpack.c.bf16 %v15565_v28, %v15564_v27  ;;  %v14534_v27 = vld [vmem:[#allocation42 + $0x50] sm:$0xff] }
0x6093   : > { %17900 = vmatpush3.bf16.msra.mxu1 %v17899_v31  ;;  %v15556_v31 = vld [vmem:[%s21310_s15 + $0xe8] sm:$0xff] }
0x6094   : > { %17335 = vmatprep.subr.mxu1 %v19348_v1  ;;  %v17914_v32 = vpack.c.bf16 %v15556_v31, %v15555_v55  ;;  %v14536_v31 = vld [vmem:[#allocation42 + $0x60] sm:$0xff] }
0x6096   : > { %17322 = vmatmul.mubr.msk.f32.vlgmr.msra.gmra.mrb[144].mxu1 %vm1946_vm1, %v20590_v51 }
0x6097   : > { %17337 = vmatprep.mubr.msk.f32.mxu1 %vm19347_vm0, %v19348_v1 }
0x615d   : > { %v13279_v37 = vpop.f32.mrb[140].mxu1 }
0x615e   : > { %v17291_v38 = vpop.f32.mrb[141].mxu1  ;;  %17295 = vmatmul.mubr.msk.f32.vlgmr.msra.gmra.mrb[130].mxu0 %vm2183_vm2, %v13279_v37 }
0x615f   : > { %17891 = vmatpush3.bf16.msra.mxu0 %v17890_v34  ;;  %17310 = vmatprep.mubr.msk.f32.mxu0 %vm19347_vm0, %v19348_v1  ;;  %v15558_v34 = vld [vmem:[%s21310_s15 + $0xf8] sm:$0xff] }
0x6160   : > { %17892 = vmatprep.subr.bf16.mxu0 %v19346_v0  ;;  %v17917_v37 = vpack.c.bf16 %v15558_v34, %v15557_v14 }
0x6161   : > { %v13427_v44 = vpop.f32.mrb[142].mxu1 }
0x6162   : > { %v17301_v30 = vpop.f32.mrb[143].mxu1 }
0x6163   : > { %17894 = vmatpush3.bf16.msra.mxu0 %v17893_v40 }
0x6164   : > { %17901 = vmatprep.subr.bf16.mxu0 %v19346_v0 }
0x6166   : > { %17311 = vmatmul.mubr.msk.f32.vlgmr.msra.gmra.mrb[132].mxu0 %vm1946_vm1, %v20969_v16 }
0x6167   : > { %17903 = vmatpush3.bf16.msra.mxu0 %v17902_v33  ;;  %17332 = vmatprep.mubr.msk.f32.mxu0 %vm19347_vm0, %v19348_v1 }
0x6168   : > { %17904 = vmatprep.subr.bf16.mxu0 %v19346_v0 }
0x6169   : > { %v13593_v50 = vpop.f32.mrb[144].mxu1 }
0x616a   : > { %v13594_v52 = vadd.f32 %v15540_v48, %v13593_v50  ;;  %v17323_v54 = vpop.f32.mrb[145].mxu1 }
0x616b   : > { %17906 = vmatpush3.bf16.msra.mxu0 %v17905_v49  ;;  %v15567_v54 = vld [vmem:[%s21315_s6 + $0x7] ss:$0 sm:$0xff] }
0x616c   : > { %17336 = vmatpush3.xpose.msk.msra.mxu1 %vm2183_vm2, %v13594_v52  ;;  %17345 = vmatprep.subr.mxu0 %v19348_v1 }
0x616d   : > { %17340 = vmatprep.subr.mxu1 %v19348_v1 }
0x616e   : > { %17333 = vmatmul.mubr.msk.f32.vlgmr.msra.gmra.mrb[134].mxu0 %vm1946_vm1, %v20590_v51 }
0x616f   : > { %17347 = vmatprep.mubr.msk.f32.mxu0 %vm19347_vm0, %v19348_v1  ;;  %17346 = vmatpush3.msra.mxu0 %v13842_v17 }
0x6170   : > { %17913 = vmatprep.subr.bf16.mxu0 %v19346_v0 }
0x6231   : > { %v13354_v56 = vpop.f32.mrb[130].mxu0 }
0x6232   : > { %v21074_v57 = vadd.f32 %v13427_v44, %v13354_v56  ;;  %v17296_v58 = vpop.f32.mrb[131].mxu0 }
0x6239   : > { %v13510_v36 = vpop.f32.mrb[132].mxu0 }
0x623a   : > { %v13511_v60 = vadd.f32 %v15533_v59, %v13510_v36  ;;  %v17312_v61 = vpop.f32.mrb[133].mxu0 }
0x623c   : > { %v13680_v62 = vmul.f32 0.35355338, %v13511_v60 }
0x623e   : > { %17338 = vmatmul.mubr.msk.f32.vlgmr.msra.gmra.mrb[146].mxu1 %vm2183_vm2, %v13680_v62 }
0x623f   : > { %17342 = vmatprep.mubr.msk.f32.mxu1 %vm19347_vm0, %v19348_v1 }
0x6241   : > { %v13676_v2 = vpop.f32.mrb[134].mxu0 }
0x6242   : > { %v13677_v4 = vadd.f32 %v15547_v63, %v13676_v2  ;;  %v17334_v6 = vpop.f32.mrb[135].mxu0 }
0x6244   : > { %17341 = vmatpush3.msra.mxu1 %v13677_v4  ;;  %v14328_v4 = vld [vmem:[#allocation36 + $0x38] sm:$0xff] }
0x6245   : > { %17907 = vmatprep.subr.bf16.mxu1 %v19346_v0 }
0x6311   : > { %v13753_v5 = vpop.f32.mrb[146].mxu1 }
0x6312   : > { %v13754_v9 = vadd.f32 %v21005_v45, %v13753_v5  ;;  %v17339_v7 = vpop.f32.mrb[147].mxu1 }
0x6314   : > { %v13757_v8 = vsel %vm2183_vm2, %v13754_v9, -inf }
0x6315   : > { %13758 = vmax.xlane.f32.xlu0 %v13757_v8 }
0x63a2   : > { %v13759_v10 = vpop.xlane.xlu0 %13758 }
0x63a3   : > { %v13760_v11 = vsub.f32 %v13754_v9, %v13759_v10  ;;  %v15573_v10 = vld [vmem:[#allocation37 + $0x1] ss:$0 sm:$0xff] }
0x63a5   : > { %v13761_v12 = vmul.f32 1.442695, %v13760_v11 }
0x63a7   : > { %18398 = vpow2.f32 %v13761_v12 }
0x63b1   : > { %v18399_v13 = vpop.eup %18398 }
0x63b2   : > { %v13763_v15 = vsel %vm2183_vm2, %v18399_v13, 0.0 }
0x63b3   : > { %13764 = vadd.xlane.f32.xlu1 %v13763_v15 }
0x6440   : > { %v13765_v53 = vpop.xlane.xlu1 %13764 }
0x6441   : > { %18400 = vrcp.f32 %v13765_v53 }
0x644b   : > { %v18401_v20 = vpop.eup %18400 }
0x644c   : > { %v13767_v21 = vmul.f32 %v18401_v20, %v18399_v13 }
0x644e   : > { %17343 = vmatmul.mubr.msk.f32.vlgmr.msra.gmra.mrb[148].mxu1 %vm2183_vm2, %v13767_v21  ;;  %v14445_v21 = vld [vmem:[#allocation39 + $0x20] sm:$0xff] }
0x644f   : > { %17909 = vmatpush3.bf16.msra.mxu1 %v17908_v22  ;;  %17358 = vmatprep.mubr.msk.f32.mxu1 %vm19347_vm0, %v19348_v1  ;;  %v17926_v24 = vpack.c.bf16 %v14446_v23, %v14445_v21 }
0x6450   : > { %17910 = vmatprep.subr.bf16.mxu1 %v19346_v0 }
0x6453   : > { %17912 = vmatpush3.bf16.msra.mxu1 %v17911_v25  ;;  %v14447_v25 = vld [vmem:[#allocation39 + $0x30] sm:$0xff] }
0x6454   : > { %17919 = vmatprep.subr.bf16.mxu1 %v19346_v0  ;;  %v17929_v26 = vpack.c.bf16 %v14448_v41, %v14447_v25 }
0x6456   : > { %17359 = vmatmul.mubr.msk.f32.vlgmr.msra.gmra.mrb[150].mxu1 %vm1946_vm1, %v20969_v16 }
0x6457   : > { %17921 = vmatpush3.bf16.msra.mxu1 %v17920_v3  ;;  %17380 = vmatprep.mubr.msk.f32.mxu1 %vm19347_vm0, %v19348_v1  ;;  %v14533_v3 = vld [vmem:[#allocation42 + $0x48] sm:$0xff] }
0x6458   : > { %17922 = vmatprep.subr.bf16.mxu1 %v19346_v0 }
0x645b   : > { %17924 = vmatpush3.bf16.msra.mxu1 %v17923_v29  ;;  %v14535_v29 = vld [vmem:[#allocation42 + $0x58] sm:$0xff] }
0x645c   : > { %17393 = vmatprep.subr.mxu1 %v19348_v1  ;;  %v17935_v55 = vpack.c.bf16 %v14535_v29, %v14534_v27 }
0x645e   : > { %17381 = vmatmul.mubr.msk.f32.vlgmr.msra.gmra.mrb[152].mxu1 %vm1946_vm1, %v20590_v51 }
0x645f   : > { %17395 = vmatprep.mubr.msk.f32.mxu1 %vm19347_vm0, %v19348_v1  ;;  %17394 = vmatpush3.msra.mxu1 %v14328_v4 }
0x6460   : > { %17931 = vmatprep.subr.bf16.mxu1 %v19346_v0 }
0x6521   : > { %v13837_v35 = vpop.f32.mrb[148].mxu1 }
0x6522   : > { %v17344_v39 = vpop.f32.mrb[149].mxu1  ;;  %17348 = vmatmul.mubr.msk.f32.vlgmr.msra.gmra.mrb[136].mxu0 %vm2183_vm2, %v13837_v35 }
0x6523   : > { %17915 = vmatpush3.bf16.msra.mxu0 %v17914_v32  ;;  %17369 = vmatprep.mubr.msk.f32.mxu0 %vm19347_vm0, %v19348_v1  ;;  %v14537_v32 = vld [vmem:[#allocation42 + $0x68] sm:$0xff] }
0x6524   : > { %17916 = vmatprep.subr.bf16.mxu0 %v19346_v0  ;;  %v17938_v14 = vpack.c.bf16 %v14537_v32, %v14536_v31 }
0x6527   : > { %17918 = vmatpush3.bf16.msra.mxu0 %v17917_v37 }
0x6528   : > { %17383 = vmatprep.subr.mxu0 %v19348_v1 }
0x6529   : > { %v13996_v38 = vpop.f32.mrb[150].mxu1 }
0x652a   : > { %v17360_v40 = vpop.f32.mrb[151].mxu1  ;;  %17370 = vmatmul.mubr.msk.f32.vlgmr.msra.gmra.mrb[138].mxu0 %vm1946_vm1, %v20590_v51  ;;  %v13997_v48 = vadd.f32 %v15553_v46, %v13996_v38  ;;  %v15576_v38 = vld [vmem:[%s21317_s9 + $0x1] ss:$0 sm:$0xff] }
0x652b   : > { %17385 = vmatprep.mubr.msk.f32.mxu0 %vm19347_vm0, %v19348_v1 }
0x652c   : > { %v14166_v56 = vmul.f32 0.35355338, %v13997_v48 }
0x6531   : > { %v14162_v42 = vpop.f32.mrb[152].mxu1 }
0x6532   : > { %v17382_v43 = vpop.f32.mrb[153].mxu1  ;;  %v14163_v51 = vadd.f32 %v15567_v54, %v14162_v42  ;;  %v15577_v42 = vld [vmem:[%s21318_s2 + $0x1] ss:$0 sm:$0xff] }
0x6533   : > { %v15581_v54 = vld [vmem:[%s21319_s4 + $0x1] ss:$0 sm:$0xff] }
0x65f5   : > { %v13912_v44 = vpop.f32.mrb[136].mxu0 }
0x65f6   : > { %v13916_v30 = vadd.f32 %v13912_v44, %v21074_v57  ;;  %v17349_v33 = vpop.f32.mrb[137].mxu0 }
0x65f7   : > { %v14539_v33 = vld [vmem:[#allocation42 + $0x78] sm:$0xff] }
0x65fd   : > { %v14079_v49 = vpop.f32.mrb[138].mxu0 }
0x65fe   : > { %v14080_v50 = vadd.f32 %v15560_v47, %v14079_v49  ;;  %v17371_v52 = vpop.f32.mrb[139].mxu0  ;;  %v15578_v47 = vld [vmem:[#allocation40 + $0x1] ss:$0 sm:$0xff] }
0x6600   : > { %17384 = vmatpush3.xpose.msk.msra.mxu0 %vm2183_vm2, %v14080_v50 }
0x6601   : > { %17388 = vmatprep.subr.mxu0 %v19348_v1 }
0x6603   : > { %17386 = vmatmul.mubr.msk.f32.vlgmr.msra.gmra.mrb[140].mxu0 %vm2183_vm2, %v14166_v56 }
0x6604   : > { %17389 = vmatpush3.msra.mxu0 %v14163_v51  ;;  %17390 = vmatprep.mubr.msk.f32.mxu0 %vm19347_vm0, %v19348_v1 }
0x6605   : > { %17925 = vmatprep.subr.bf16.mxu0 %v19346_v0 }
0x66d6   : > { %v14239_v57 = vpop.f32.mrb[140].mxu0 }
0x66d7   : > { %v14240_v58 = vadd.f32 %v21005_v45, %v14239_v57  ;;  %v17387_v59 = vpop.f32.mrb[141].mxu0 }
0x66d9   : > { %v14243_v36 = vsel %vm2183_vm2, %v14240_v58, -inf }
0x66da   : > { %14244 = vmax.xlane.f32.xlu0 %v14243_v36 }
0x6767   : > { %v14245_v60 = vpop.xlane.xlu0 %14244 }
0x6768   : > { %v14246_v61 = vsub.f32 %v14240_v58, %v14245_v60 }
0x676a   : > { %v14247_v62 = vmul.f32 1.442695, %v14246_v61 }
0x676c   : > { %18402 = vpow2.f32 %v14247_v62 }
0x6776   : > { %v18403_v63 = vpop.eup %18402 }
0x6777   : > { %v14249_v2 = vsel %vm2183_vm2, %v18403_v63, 0.0 }
0x6778   : > { %14250 = vadd.xlane.f32.xlu1 %v14249_v2  ;;  %v14654_v2 = vld [vmem:[%s19592_s17 + $0x8] sm:$0xff] }
0x6805   : > { %v14251_v6 = vpop.xlane.xlu1 %14250 }
0x6806   : > { %18404 = vrcp.f32 %v14251_v6  ;;  %v14655_v6 = vld [vmem:[%s19592_s17 + $0x10] sm:$0xff] }
0x6810   : > { %v18405_v5 = vpop.eup %18404 }
0x6811   : > { %v14253_v45 = vmul.f32 %v18405_v5, %v18403_v63  ;;  %v14653_v63 = vld [vmem:[%s19592_s17] sm:$0xff]  ;;  %v14656_v5 = vld [vmem:[%s19592_s17 + $0x18] sm:$0xff] }
0x6812   : > { %v17944_v4 = vpack.c.bf16 %v14654_v2, %v14653_v63 }
0x6813   : > { %17391 = vmatmul.mubr.msk.f32.vlgmr.msra.gmra.mrb[142].mxu0 %vm2183_vm2, %v14253_v45  ;;  %v17947_v45 = vpack.c.bf16 %v14656_v5, %v14655_v6 }
0x6814   : > { %17406 = vmatprep.mubr.msk.f32.mxu0 %vm19347_vm0, %v19348_v1  ;;  %17927 = vmatpush3.bf16.msra.mxu0 %v17926_v24 }
0x6815   : > { %17928 = vmatprep.subr.bf16.mxu0 %v19346_v0 }
0x6818   : > { %17930 = vmatpush3.bf16.msra.mxu0 %v17929_v26 }
0x6819   : > { %17943 = vmatprep.subr.bf16.mxu0 %v19346_v0 }
0x68e6   : > { %v14323_v9 = vpop.f32.mrb[142].mxu0 }
0x68e7   : > { %v17392_v7 = vpop.f32.mrb[143].mxu0  ;;  %17396 = vmatmul.mubr.msk.f32.vlgmr.msra.gmra.mrb[154].mxu1 %vm2183_vm2, %v14323_v9 }
0x68e8   : > { %17425 = vmatprep.mubr.msk.f32.mxu1 %vm19347_vm0, %v19348_v1 }
0x69ba   : > { %v14398_v8 = vpop.f32.mrb[154].mxu1 }
0x69bb   : > { %v14402_v11 = vadd.f32 %v14398_v8, %v13916_v30  ;;  %v17397_v12 = vpop.f32.mrb[155].mxu1  ;;  %v14538_v30 = vld [vmem:[#allocation42 + $0x70] sm:$0xff] }
0x69bc   : > { %v17941_v46 = vpack.c.bf16 %v14539_v33, %v14538_v30 }
0x69bd   : > { %v14411_v13 = vadd.f32 %v15573_v10, %v14402_v11  ;;  %v15585_v11 = vld [vmem:[%s21320_s5 + $0x1] ss:$0 sm:$0xff] }
0x69bf   : > { %v14412_v15 = vadd.f32 %v14411_v13, %v20969_v16  ;;  %v14532_v16 = vld [vmem:[#allocation42 + $0x40] sm:$0xff]  ;;  %v15586_v13 = vld [vmem:[%s19587_s3 + $0x1] ss:$0 sm:$0xff] }
0x69c0   : > { %v17932_v28 = vpack.c.bf16 %v14533_v3, %v14532_v16 }
0x69c1   : > { %v14417_v17 = vsel %vm1946_vm1, %v14412_v15, 0.0 }
0x69c2   : > { %14418 = vadd.xlane.f32.xlu0 %v14417_v17  ;;  %17933 = vmatpush3.bf16.msra.mxu1 %v17932_v28 }
0x69c3   : > { %17934 = vmatprep.subr.bf16.mxu1 %v19346_v0 }
0x69c6   : > { %17936 = vmatpush3.bf16.msra.mxu1 %v17935_v55 }
0x69c7   : > { %17937 = vmatprep.subr.bf16.mxu1 %v19346_v0 }
0x69ca   : > { %17939 = vmatpush3.bf16.msra.mxu1 %v17938_v14 }
0x69cb   : > { %17940 = vmatprep.subr.bf16.mxu1 %v19346_v0 }
0x69ce   : > { %17942 = vmatpush3.bf16.msra.mxu1 %v17941_v46 }
0x6a4f   : > { %v14419_v53 = vpop.xlane.xlu0 %14418 }
0x6a50   : > { %v14420_v18 = vmul.f32 0.03125, %v14419_v53  ;;  %v15587_v53 = vld [vmem:[#allocation43] ss:$0 sm:$0xff] }
0x6a52   : > { %v14421_v19 = vsub.f32 %v14412_v15, %v14420_v18 }
0x6a54   : > { %v14422_v20 = vmul.f32 %v14421_v19, %v14421_v19 }
0x6a56   : > { %v14423_v22 = vsel %vm1946_vm1, %v14422_v20, 0.0 }
0x6a57   : > { %14424 = vadd.xlane.f32.xlu1 %v14423_v22 }
0x6ae4   : > { %v14425_v34 = vpop.xlane.xlu1 %14424 }
0x6ae5   : > { %v14426_v35 = vmul.f32 0.03125, %v14425_v34 }
0x6ae7   : > { %v14427_v39 = vadd.f32 1e-12, %v14426_v35 }
0x6ae9   : > { %18406 = vrsqrt.f32 %v14427_v39 }
0x6af3   : > { %v18407_v37 = vpop.eup %18406 }
0x6af4   : > { %v14429_v40 = vmul.f32 %v18407_v37, %v14421_v19 }
0x6af6   : > { %v14436_v43 = vmul.f32 %v15576_v38, %v14429_v40 }
0x6af8   : > { %v14443_v44 = vadd.f32 %v15577_v42, %v14436_v43 }
0x6afa   : > { %17407 = vmatmul.mubr.msk.f32.vlgmr.msra.gmra.mrb[144].mxu0 %vm1946_vm1, %v14443_v44 }
0x6afb   : > { %17436 = vmatprep.mubr.msk.f32.mxu0 %vm19347_vm0, %v19348_v1  ;;  %17945 = vmatpush3.bf16.msra.mxu0 %v17944_v4 }
0x6afc   : > { %17946 = vmatprep.subr.bf16.mxu0 %v19346_v0 }
0x6aff   : > { %17948 = vmatpush3.bf16.msra.mxu0 %v17947_v45 }
0x6bcd   : > { %v14526_v48 = vpop.f32.mrb[144].mxu0 }
0x6bce   : > { %v14527_v49 = vadd.f32 %v15578_v47, %v14526_v48  ;;  %v17408_v50 = vpop.f32.mrb[145].mxu0 }
0x6bd0   : > { %v14530_v52 = vmax.f32 %v14527_v49, 0.0 }
0x6bd2   : > { %17426 = vmatmul.mubr.msk.f32.vlgmr.msra.gmra.mrb[156].mxu1 %vm4014_vm3, %v14530_v52 }
0x6ca5   : > { %v14617_v56 = vpop.f32.mrb[156].mxu1 }
0x6ca6   : > { %v14618_v51 = vadd.f32 %v15581_v54, %v14617_v56  ;;  %v17427_v57 = vpop.f32.mrb[157].mxu1 }
0x6ca8   : > { %v14621_v1 = vadd.f32 %v14618_v51, %v14443_v44 }
0x6caa   : > { %v14626_v58 = vsel %vm1946_vm1, %v14621_v1, 0.0 }
0x6cab   : > { %14627 = vadd.xlane.f32.xlu0 %v14626_v58 }
0x6d38   : > { %v14628_v59 = vpop.xlane.xlu0 %14627 }
0x6d39   : > { %v14629_v36 = vmul.f32 0.03125, %v14628_v59 }
0x6d3b   : > { %v14630_v60 = vsub.f32 %v14621_v1, %v14629_v36 }
0x6d3d   : > { %v14631_v61 = vmul.f32 %v14630_v60, %v14630_v60 }
0x6d3f   : > { %v14632_v62 = vsel %vm1946_vm1, %v14631_v61, 0.0 }
0x6d40   : > { %14633 = vadd.xlane.f32.xlu1 %v14632_v62 }
0x6dcd   : > { %v14634_v9 = vpop.xlane.xlu1 %14633 }
0x6dce   : > { %v14635_v7 = vmul.f32 0.03125, %v14634_v9 }
0x6dd0   : > { %v14636_v8 = vadd.f32 1e-12, %v14635_v7 }
0x6dd2   : > { %18408 = vrsqrt.f32 %v14636_v8 }
0x6ddc   : > { %v18409_v10 = vpop.eup %18408 }
0x6ddd   : > { %v14638_v12 = vmul.f32 %v18409_v10, %v14630_v60 }
0x6ddf   : > { %v14645_v15 = vmul.f32 %v15585_v11, %v14638_v12 }
0x6de1   : > { %v14652_v17 = vadd.f32 %v15586_v13, %v14645_v15 }
0x6de3   : > { %17437 = vmatmul.mubr.msk.f32.vlgmr.msra.gmra.mrb[146].mxu0 %vm1946_vm1, %v14652_v17 }
0x6eb6   : > { %v14733_v0 = vpop.f32.mrb[146].mxu0 }
0x6eb7   : > { %v14734_v18 = vadd.f32 %v15587_v53, %v14733_v0  ;;  %v17438_v19 = vpop.f32.mrb[147].mxu0 }
0x6eb9   : > { %14737 = vst [vmem:[%s1930_s1] sm:$0xff] %v14734_v18 }
0x6eba PF: > { %s124_s7 = sadd.s32 1, %s19263_s7  }
0x6ebb   : > { %p121_p3 = scmp.ge.s32.totalorder %s124_s7, 4  }
0x6ebd   :  { %123 = sbr.rel (!%p121_p3) target bundleno = 105 (0x69), region = 588 }
0x6ec4   :  { %14757 = vsyncpa [#allocation3], 1 }
0x6ec5   :  { %14759 = vsyncpa [#allocation3 + $0x1], 1 }
0x6ec6   :  { %14760 = vsyncpa [#allocation5], 1 }
0x6ec7   :  { %14761 = vsyncpa [#allocation8], 1 }
0x6ec8   :  { %14762 = vsyncpa [#allocation11], 1 }
0x6ec9   :  { %14763 = vsyncpa [#allocation14], 1 }
0x6eca   :  { %14764 = vsyncpa [#allocation17], 1 }
0x6ecb   :  { %14765 = vsyncpa [#allocation20], 1 }
0x6ecc   :  { %14766 = vsyncpa [#allocation23], 1 }
0x6ecd   :  { %14767 = vsyncpa [#allocation26], 1 }
0x6ece   :  { %14768 = vsyncpa [#allocation29], 1 }
0x6ecf   :  { %14769 = vsyncpa [#allocation32], 1 }
0x6ed0   :  { %14770 = vsyncpa [#allocation35], 1 }
0x6ed1   :  { %14771 = vsyncpa [#allocation38], 1 }
0x6ed2   :  { %14772 = vsyncpa [#allocation41], 1 }
0x6ed3   :  { %14773 = vsyncpa [#allocation44], 1 }

</bundles_post_ra>
